<compile_context>
chip_gen: v7x
topology: tpu7x:2x2x1
jax: 0.10.0
libtpu: 0.0.40
codegen_flags: <defaults>
</compile_context>

<pallas_src>
import functools

import jax
import jax.numpy as jnp
from jax import lax
from jax.experimental import pallas as pl
from jax.experimental.pallas import tpu as pltpu

EPS = 1e-5
LANES = 128


def _round_up(a, b):
    return (a + b - 1) // b * b


def _valid_mask(H, WPA, W, CP):
    """(H*WPA, CP) f32 0/1 mask: slab row s is a real pixel iff (s % WPA) < W.

    Built without integer div/rem: a one-period (WPA, CP) iota pattern tiled H
    times along sublanes (WPA is a multiple of 8, so the tile is layout clean).
    """
    pat = (lax.broadcasted_iota(jnp.int32, (WPA, CP), 0) < W).astype(jnp.float32)
    return jnp.tile(pat, (H, 1))


# ---------------------------------------------------------------------------
# Kernels
# ---------------------------------------------------------------------------
def conv1_kernel(x_ref, w_ref, y_ref, sum_ref, ssq_ref, a_ref,
                 *, H, W, WPA, LEAD, LS, KIN, CP):
    """One image: conv1 as a single MXU dot (taps folded into K = 9*KIN),
    bf16 slab writeback, per-image BN1 partial sums on the f32 result."""
    # Partial im2col in VMEM: column block t holds the (kh, kw)-shifted rows.
    for t in range(9):
        kh, kw = divmod(t, 3)
        d = LEAD + kh * WPA + kw - 1                     # kw folded -> only +/-1 unaligned
        a_ref[:, t * KIN:(t + 1) * KIN] = x_ref[0, d:d + LS, :].astype(jnp.bfloat16)

    acc = jnp.dot(a_ref[...], w_ref[...], preferred_element_type=jnp.float32)
    m = _valid_mask(H, WPA, W, CP)                       # zero the ghost-column rows
    yv = acc * m
    y_ref[0] = yv.astype(y_ref.dtype)                    # bf16 slab to HBM
    sum_ref[0] = jnp.sum(yv, axis=0, keepdims=True)      # stats stay f32 (pre-cast)
    ssq_ref[0] = jnp.sum(yv * yv, axis=0, keepdims=True)


def conv2_kernel(y1_ref, scale_ref, shift_ref, w_ref,
                 y2_ref, sum_ref, ssq_ref,
                 h_ref, a_ref, acc_ref,
                 *, H, W, WPA, LEAD, LS, LIN, CP):
    """One image: fused bn1+ReLU on the bf16 y1 slab, conv2 as 3 dots with the
    kw taps folded into K = 3*CP, per-image BN2 partial sums (f32)."""
    m = _valid_mask(H, WPA, W, CP)
    HEAD = LEAD + WPA                                    # aligned slab offset

    # bn1 + relu (f32 math), ghost/halo re-imposed, written into the
    # padded-flat VMEM buffer that conv2's shifted reads consume.
    h = jnp.maximum(y1_ref[0].astype(jnp.float32) * scale_ref[...]
                    + shift_ref[...], 0.0) * m
    h_ref[:HEAD, :] = jnp.zeros((HEAD, CP), jnp.bfloat16)
    h_ref[HEAD:HEAD + LS, :] = h.astype(jnp.bfloat16)
    h_ref[HEAD + LS:, :] = jnp.zeros((LIN - HEAD - LS, CP), jnp.bfloat16)

    for kh in range(3):
        base = LEAD + kh * WPA - 1                       # kh*WPA shift is 8-aligned
        for kw in range(3):
            a_ref[:, kw * CP:(kw + 1) * CP] = h_ref[base + kw:base + kw + LS, :]
        p = jnp.dot(a_ref[...], w_ref[kh], preferred_element_type=jnp.float32)
        if kh == 0:
            acc_ref[...] = p
        else:
            acc_ref[...] += p

    yv = acc_ref[...] * m
    y2_ref[0] = yv
    sum_ref[0] = jnp.sum(yv, axis=0, keepdims=True)
    ssq_ref[0] = jnp.sum(yv * yv, axis=0, keepdims=True)


def bn2_add_relu_kernel(y2_ref, x_ref, scale_ref, shift_ref, o_ref,
                        *, HEAD, LS, KIN):
    """out = relu(bn2(y2) + residual), in place over y2.  The residual comes
    straight from the f32 conv1 input buffer (KIN lanes, no CP-padded copy)."""
    t = y2_ref[0] * scale_ref[...] + shift_ref[...]
    o_ref[0] = jnp.maximum(t, 0.0)                       # lanes >= KIN: residual is 0
    o_ref[0, :, :KIN] = jnp.maximum(
        t[:, :KIN] + x_ref[0, HEAD:HEAD + LS, :], 0.0)   # real channels + residual


# ---------------------------------------------------------------------------
# pallas_call wrappers
# ---------------------------------------------------------------------------
def _compiler_params():
    # 128 MiB physical on v5e/v6e -> 64 MiB scoped; 64 MiB physical on v7x -> 32.
    try:
        cap = pltpu.get_tpu_info().vmem_capacity_bytes
        limit = min(96 * 1024 * 1024, int(cap) // 2)
    except Exception:
        limit = 32 * 1024 * 1024
    return pltpu.CompilerParams(dimension_semantics=("parallel",),
                                vmem_limit_bytes=limit)


def _conv1_call(x_in, w1f, *, N, H, W, WPA, LEAD, LS, LIN, KIN, CP):
    K1 = 9 * KIN
    kernel = functools.partial(conv1_kernel, H=H, W=W, WPA=WPA, LEAD=LEAD,
                               LS=LS, KIN=KIN, CP=CP)
    return pl.pallas_call(
        kernel,
        out_shape=(
            jax.ShapeDtypeStruct((N, LS, CP), jnp.bfloat16),   # y1 slab (bf16)
            jax.ShapeDtypeStruct((N, 1, CP), jnp.float32),     # per-image sum
            jax.ShapeDtypeStruct((N, 1, CP), jnp.float32),     # per-image sumsq
        ),
        grid_spec=pltpu.PrefetchScalarGridSpec(
            num_scalar_prefetch=0,
            grid=(N,),
            in_specs=[
                pl.BlockSpec((1, LIN, KIN), lambda i: (i, 0, 0)),
                pl.BlockSpec((K1, CP), lambda i: (0, 0)),
            ],
            out_specs=[
                pl.BlockSpec((1, LS, CP), lambda i: (i, 0, 0)),
                pl.BlockSpec((1, 1, CP), lambda i: (i, 0, 0)),
                pl.BlockSpec((1, 1, CP), lambda i: (i, 0, 0)),
            ],
            scratch_shapes=[pltpu.VMEM((LS, K1), jnp.bfloat16)],   # im2col
        ),
        compiler_params=_compiler_params(),
    )(x_in, w1f)


def _conv2_call(y1, scale1, shift1, w2g, *, N, H, W, WPA, LEAD, LS, LIN, CP):
    kernel = functools.partial(conv2_kernel, H=H, W=W, WPA=WPA, LEAD=LEAD,
                               LS=LS, LIN=LIN, CP=CP)
    return pl.pallas_call(
        kernel,
        out_shape=(
            jax.ShapeDtypeStruct((N, LS, CP), jnp.float32),    # y2 slab
            jax.ShapeDtypeStruct((N, 1, CP), jnp.float32),
            jax.ShapeDtypeStruct((N, 1, CP), jnp.float32),
        ),
        grid_spec=pltpu.PrefetchScalarGridSpec(
            num_scalar_prefetch=0,
            grid=(N,),
            in_specs=[
                pl.BlockSpec((1, LS, CP), lambda i: (i, 0, 0)),
                pl.BlockSpec((1, CP), lambda i: (0, 0)),
                pl.BlockSpec((1, CP), lambda i: (0, 0)),
                pl.BlockSpec((3, 3 * CP, CP), lambda i: (0, 0, 0)),
            ],
            out_specs=[
                pl.BlockSpec((1, LS, CP), lambda i: (i, 0, 0)),
                pl.BlockSpec((1, 1, CP), lambda i: (i, 0, 0)),
                pl.BlockSpec((1, 1, CP), lambda i: (i, 0, 0)),
            ],
            scratch_shapes=[
                pltpu.VMEM((LIN, CP), jnp.bfloat16),   # padded-flat bn1+relu input
                pltpu.VMEM((LS, 3 * CP), jnp.bfloat16),  # per-kh im2col (K = 3*CP)
                pltpu.VMEM((LS, CP), jnp.float32),     # f32 accumulator (3 dots)
            ],
        ),
        compiler_params=_compiler_params(),
    )(y1, scale1, shift1, w2g)


def _bn2_add_relu_call(y2, x_in, scale2, shift2, *, N, LS, LIN, KIN, CP, HEAD):
    kernel = functools.partial(bn2_add_relu_kernel, HEAD=HEAD, LS=LS, KIN=KIN)
    return pl.pallas_call(
        kernel,
        out_shape=jax.ShapeDtypeStruct((N, LS, CP), jnp.float32),
        grid_spec=pltpu.PrefetchScalarGridSpec(
            num_scalar_prefetch=0,
            grid=(N,),
            in_specs=[
                pl.BlockSpec((1, LS, CP), lambda i: (i, 0, 0)),
                pl.BlockSpec((1, LIN, KIN), lambda i: (i, 0, 0)),
                pl.BlockSpec((1, CP), lambda i: (0, 0)),
                pl.BlockSpec((1, CP), lambda i: (0, 0)),
            ],
            out_specs=pl.BlockSpec((1, LS, CP), lambda i: (i, 0, 0)),
        ),
        input_output_aliases={0: 0},                     # write in place over y2
        compiler_params=_compiler_params(),
    )(y2, x_in, scale2, shift2)


# ---------------------------------------------------------------------------
# Glue: layout plumbing and BN stat folding
# ---------------------------------------------------------------------------
def _fold_bn(psum, pssq, count, gamma, beta):
    """Training-mode BN (biased variance over N*H*W) folded to scale/shift."""
    s = jnp.sum(psum, axis=0)                            # (1, CP)
    q = jnp.sum(pssq, axis=0)                            # (1, CP)
    mean = s / count
    # TODO(synk): E[y^2]-E[y]^2 cancels catastrophically for very large N*H*W;
    # switch to a shifted / Welford-style accumulation for production sizes.
    var = jnp.maximum(q / count - mean * mean, 0.0)
    scale = gamma.reshape(1, -1) * lax.rsqrt(var + EPS)
    shift = beta.reshape(1, -1) - mean * scale
    return scale, shift


def basic_block_forward(x_nchw, w1, gamma1, beta1, w2, gamma2, beta2):
    """w1, w2: PyTorch-layout (Cout, Cin, 3, 3) conv weights."""
    N, C, H, W = x_nchw.shape
    assert w1.shape[0] == w1.shape[1] == C and w2.shape[0] == w2.shape[1] == C, \
        "BasicBlock with stride=1 / no downsample requires inplanes == planes"

    WPA = _round_up(W + 2, 8)                # padded row stride, 8-sublane aligned
    HP = H + 2
    LEAD = 8                                 # leading zero rows (keeps kw=0 read >= 0)
    HEAD = LEAD + WPA                        # aligned offset of the real slab
    LS = H * WPA                             # output slab rows
    LIN = LEAD + HP * WPA + 8                # padded-flat buffer rows (covers all taps)
    KIN = _round_up(C, 16)                   # conv1 per-tap contraction width
    CP = _round_up(C, LANES)                 # lane-dense channel padding
    M = N * H * W                            # BN population size

    # ---- layout plumbing: NCHW -> padded-flat rows (f32, reused as residual) --
    x_nhwc = jnp.transpose(x_nchw, (0, 2, 3, 1))                        # (N,H,W,C)
    xpf = jnp.pad(x_nhwc, ((0, 0), (1, 1), (0, WPA - W), (0, 0))) \
             .reshape(N, HP * WPA, C)
    x_in = jnp.pad(xpf, ((0, 0), (LEAD, LIN - LEAD - HP * WPA),
                         (0, KIN - C)))                                 # (N,LIN,KIN) f32

    # Weights: (Cout,Cin,3,3) -> tap-folded MXU operands (bf16).
    w1t = jnp.transpose(w1, (2, 3, 1, 0))                               # (3,3,Ci,Co)
    w1f = jnp.pad(w1t, ((0, 0), (0, 0), (0, KIN - C), (0, CP - C))) \
             .reshape(9 * KIN, CP).astype(jnp.bfloat16)                 # (9*KIN, CP)
    w2t = jnp.transpose(w2, (2, 3, 1, 0))
    w2g = jnp.pad(w2t, ((0, 0), (0, 0), (0, CP - C), (0, CP - C))) \
             .reshape(3, 3 * CP, CP).astype(jnp.bfloat16)               # (3, 3*CP, CP)

    g1 = jnp.pad(gamma1, (0, CP - C), constant_values=1.0)
    b1 = jnp.pad(beta1, (0, CP - C))
    g2 = jnp.pad(gamma2, (0, CP - C), constant_values=1.0)
    b2 = jnp.pad(beta2, (0, CP - C))

    # ---- conv1 (single tap-folded dot) + BN1 partial statistics ---------------
    y1, s1, q1 = _conv1_call(x_in, w1f, N=N, H=H, W=W, WPA=WPA, LEAD=LEAD,
                             LS=LS, LIN=LIN, KIN=KIN, CP=CP)
    scale1, shift1 = _fold_bn(s1, q1, M, g1, b1)

    # ---- fused bn1+relu -> conv2 (3 tap-folded dots) + BN2 partial stats ------
    y2, s2, q2 = _conv2_call(y1, scale1, shift1, w2g, N=N, H=H, W=W, WPA=WPA,
                             LEAD=LEAD, LS=LS, LIN=LIN, CP=CP)
    scale2, shift2 = _fold_bn(s2, q2, M, g2, b2)

    # ---- bn2 + residual add + relu (in place over y2, residual from x_in) -----
    out_slab = _bn2_add_relu_call(y2, x_in, scale2, shift2, N=N, LS=LS, LIN=LIN,
                                  KIN=KIN, CP=CP, HEAD=HEAD)

    out = out_slab.reshape(N, H, WPA, CP)[:, :, :W, :C]
    return jnp.transpose(out, (0, 3, 1, 2))


# ---------------------------------------------------------------------------
# Pure-JAX reference (independent f32 path: lax.conv, training-mode BN stats)
# ---------------------------------------------------------------------------
def reference_forward(x, w1, gamma1, beta1, w2, gamma2, beta2):
    def conv(x_, w_):
        return lax.conv_general_dilated(
            x_, w_, (1, 1), ((1, 1), (1, 1)),
            dimension_numbers=("NCHW", "OIHW", "NCHW"))

    def bn(y, g, b):
        mean = y.mean(axis=(0, 2, 3), keepdims=True)
        var = y.var(axis=(0, 2, 3), keepdims=True)       # biased, as in BN training
        return (y - mean) * lax.rsqrt(var + EPS) * g.reshape(1, -1, 1, 1) \
               + b.reshape(1, -1, 1, 1)

    out = jax.nn.relu(bn(conv(x, w1), gamma1, beta1))
    out = bn(conv(out, w2), gamma2, beta2)
    return jax.nn.relu(out + x)


# ---------------------------------------------------------------------------
if __name__ == "__main__":
    N, C, H, W = 2, 4, 16, 16          # inplanes = planes = 4, stride = 1
    key = jax.random.PRNGKey(0)
    kx, k1, k2 = jax.random.split(key, 3)

    x = jax.random.normal(kx, (N, C, H, W), dtype=jnp.float32)
    w1 = jax.random.normal(k1, (C, C, 3, 3), dtype=jnp.float32) * 0.1
    w2 = jax.random.normal(k2, (C, C, 3, 3), dtype=jnp.float32) * 0.1
    gamma1 = jnp.ones((C,), jnp.float32)   # SynchronizedBatchNorm2d init
    beta1 = jnp.zeros((C,), jnp.float32)
    gamma2 = jnp.ones((C,), jnp.float32)
    beta2 = jnp.zeros((C,), jnp.float32)

    fwd = jax.jit(basic_block_forward)
    out = jax.block_until_ready(fwd(x, w1, gamma1, beta1, w2, gamma2, beta2))

    ref = reference_forward(x, w1, gamma1, beta1, w2, gamma2, beta2)
    assert out.shape == ref.shape == (N, C, H, W)
    # bf16 MXU operands + bf16 y1 roundtrip (BN stats on f32) vs an all-f32
    # reference -> bf16-appropriate tolerance.
    err = float(jnp.max(jnp.abs(out - ref)))
    assert jnp.allclose(out, ref, atol=5e-2, rtol=3e-2), \
        f"mismatch vs reference (max abs err {err})"

    print("KERNEL_OK")
</pallas_src>

<mosaic_0001>
module attributes {stable_mosaic.version = 11 : i64} {
  func.func @conv1_kernel(%arg0: i32, %arg1: memref<1x448x16xf32, #tpu.memory_space<vmem>>, %arg2: memref<144x128xbf16, #tpu.memory_space<vmem>>, %arg3: memref<1x384x128xbf16, #tpu.memory_space<vmem>>, %arg4: memref<1x1x128xf32, #tpu.memory_space<vmem>>, %arg5: memref<1x1x128xf32, #tpu.memory_space<vmem>>, %arg6: memref<384x144xbf16, #tpu.memory_space<vmem>>) attributes {dimension_semantics = [#tpu.dimension_semantics<parallel>], iteration_bounds = array<i64: 2>, scalar_prefetch = 0 : i64, scratch_operands = 1 : i64, tpu.core_type = #tpu.core_type<tc>, window_params = [{transform_indices = @transform_0, window_bounds = array<i64: 1, 448, 16>}, {pipeline_mode = #tpu.pipeline_mode<synchronous>, transform_indices = @transform_1, window_bounds = array<i64: 144, 128>}, {transform_indices = @transform_2, window_bounds = array<i64: 1, 384, 128>}, {transform_indices = @transform_3, window_bounds = array<i64: 1, 1, 128>}, {transform_indices = @transform_4, window_bounds = array<i64: 1, 1, 128>}]} {
    %c0 = arith.constant 0 : index
    %c7 = arith.constant 7 : index
    %c0_0 = arith.constant 0 : index
    %0 = vector.load %arg1[%c0, %c7, %c0_0] : memref<1x448x16xf32, #tpu.memory_space<vmem>>, vector<1x384x16xf32>
    %1 = vector.shape_cast %0 : vector<1x384x16xf32> to vector<384x16xf32>
    %2 = arith.truncf %1 : vector<384x16xf32> to vector<384x16xbf16>
    %c0_1 = arith.constant 0 : index
    %c0_2 = arith.constant 0 : index
    %3 = vector.load %arg6[%c0_1, %c0_2] : memref<384x144xbf16, #tpu.memory_space<vmem>>, vector<384x16xbf16>
    tpu.vector_store %arg6[%c0_1, %c0_2], %2 {strides = array<i32>} : memref<384x144xbf16, #tpu.memory_space<vmem>>, vector<384x16xbf16>,
    %c0_3 = arith.constant 0 : index
    %c8 = arith.constant 8 : index
    %c0_4 = arith.constant 0 : index
    %4 = vector.load %arg1[%c0_3, %c8, %c0_4] : memref<1x448x16xf32, #tpu.memory_space<vmem>>, vector<1x384x16xf32>
    %5 = vector.shape_cast %4 : vector<1x384x16xf32> to vector<384x16xf32>
    %6 = arith.truncf %5 : vector<384x16xf32> to vector<384x16xbf16>
    %c0_5 = arith.constant 0 : index
    %c16 = arith.constant 16 : index
    %7 = vector.load %arg6[%c0_5, %c16] : memref<384x144xbf16, #tpu.memory_space<vmem>>, vector<384x16xbf16>
    tpu.vector_store %arg6[%c0_5, %c16], %6 {strides = array<i32>} : memref<384x144xbf16, #tpu.memory_space<vmem>>, vector<384x16xbf16>,
    %c0_6 = arith.constant 0 : index
    %c9 = arith.constant 9 : index
    %c0_7 = arith.constant 0 : index
    %8 = vector.load %arg1[%c0_6, %c9, %c0_7] : memref<1x448x16xf32, #tpu.memory_space<vmem>>, vector<1x384x16xf32>
    %9 = vector.shape_cast %8 : vector<1x384x16xf32> to vector<384x16xf32>
    %10 = arith.truncf %9 : vector<384x16xf32> to vector<384x16xbf16>
    %c0_8 = arith.constant 0 : index
    %c32 = arith.constant 32 : index
    %11 = vector.load %arg6[%c0_8, %c32] : memref<384x144xbf16, #tpu.memory_space<vmem>>, vector<384x16xbf16>
    tpu.vector_store %arg6[%c0_8, %c32], %10 {strides = array<i32>} : memref<384x144xbf16, #tpu.memory_space<vmem>>, vector<384x16xbf16>,
    %c0_9 = arith.constant 0 : index
    %c31 = arith.constant 31 : index
    %c0_10 = arith.constant 0 : index
    %12 = vector.load %arg1[%c0_9, %c31, %c0_10] : memref<1x448x16xf32, #tpu.memory_space<vmem>>, vector<1x384x16xf32>
    %13 = vector.shape_cast %12 : vector<1x384x16xf32> to vector<384x16xf32>
    %14 = arith.truncf %13 : vector<384x16xf32> to vector<384x16xbf16>
    %c0_11 = arith.constant 0 : index
    %c48 = arith.constant 48 : index
    %15 = vector.load %arg6[%c0_11, %c48] : memref<384x144xbf16, #tpu.memory_space<vmem>>, vector<384x16xbf16>
    tpu.vector_store %arg6[%c0_11, %c48], %14 {strides = array<i32>} : memref<384x144xbf16, #tpu.memory_space<vmem>>, vector<384x16xbf16>,
    %c0_12 = arith.constant 0 : index
    %c32_13 = arith.constant 32 : index
    %c0_14 = arith.constant 0 : index
    %16 = vector.load %arg1[%c0_12, %c32_13, %c0_14] : memref<1x448x16xf32, #tpu.memory_space<vmem>>, vector<1x384x16xf32>
    %17 = vector.shape_cast %16 : vector<1x384x16xf32> to vector<384x16xf32>
    %18 = arith.truncf %17 : vector<384x16xf32> to vector<384x16xbf16>
    %c0_15 = arith.constant 0 : index
    %c64 = arith.constant 64 : index
    %19 = vector.load %arg6[%c0_15, %c64] : memref<384x144xbf16, #tpu.memory_space<vmem>>, vector<384x16xbf16>
    tpu.vector_store %arg6[%c0_15, %c64], %18 {strides = array<i32>} : memref<384x144xbf16, #tpu.memory_space<vmem>>, vector<384x16xbf16>,
    %c0_16 = arith.constant 0 : index
    %c33 = arith.constant 33 : index
    %c0_17 = arith.constant 0 : index
    %20 = vector.load %arg1[%c0_16, %c33, %c0_17] : memref<1x448x16xf32, #tpu.memory_space<vmem>>, vector<1x384x16xf32>
    %21 = vector.shape_cast %20 : vector<1x384x16xf32> to vector<384x16xf32>
    %22 = arith.truncf %21 : vector<384x16xf32> to vector<384x16xbf16>
    %c0_18 = arith.constant 0 : index
    %c80 = arith.constant 80 : index
    %23 = vector.load %arg6[%c0_18, %c80] : memref<384x144xbf16, #tpu.memory_space<vmem>>, vector<384x16xbf16>
    tpu.vector_store %arg6[%c0_18, %c80], %22 {strides = array<i32>} : memref<384x144xbf16, #tpu.memory_space<vmem>>, vector<384x16xbf16>,
    %c0_19 = arith.constant 0 : index
    %c55 = arith.constant 55 : index
    %c0_20 = arith.constant 0 : index
    %24 = vector.load %arg1[%c0_19, %c55, %c0_20] : memref<1x448x16xf32, #tpu.memory_space<vmem>>, vector<1x384x16xf32>
    %25 = vector.shape_cast %24 : vector<1x384x16xf32> to vector<384x16xf32>
    %26 = arith.truncf %25 : vector<384x16xf32> to vector<384x16xbf16>
    %c0_21 = arith.constant 0 : index
    %c96 = arith.constant 96 : index
    %27 = vector.load %arg6[%c0_21, %c96] : memref<384x144xbf16, #tpu.memory_space<vmem>>, vector<384x16xbf16>
    tpu.vector_store %arg6[%c0_21, %c96], %26 {strides = array<i32>} : memref<384x144xbf16, #tpu.memory_space<vmem>>, vector<384x16xbf16>,
    %c0_22 = arith.constant 0 : index
    %c56 = arith.constant 56 : index
    %c0_23 = arith.constant 0 : index
    %28 = vector.load %arg1[%c0_22, %c56, %c0_23] : memref<1x448x16xf32, #tpu.memory_space<vmem>>, vector<1x384x16xf32>
    %29 = vector.shape_cast %28 : vector<1x384x16xf32> to vector<384x16xf32>
    %30 = arith.truncf %29 : vector<384x16xf32> to vector<384x16xbf16>
    %c0_24 = arith.constant 0 : index
    %c112 = arith.constant 112 : index
    %31 = vector.load %arg6[%c0_24, %c112] : memref<384x144xbf16, #tpu.memory_space<vmem>>, vector<384x16xbf16>
    tpu.vector_store %arg6[%c0_24, %c112], %30 {strides = array<i32>} : memref<384x144xbf16, #tpu.memory_space<vmem>>, vector<384x16xbf16>,
    %c0_25 = arith.constant 0 : index
    %c57 = arith.constant 57 : index
    %c0_26 = arith.constant 0 : index
    %32 = vector.load %arg1[%c0_25, %c57, %c0_26] : memref<1x448x16xf32, #tpu.memory_space<vmem>>, vector<1x384x16xf32>
    %33 = vector.shape_cast %32 : vector<1x384x16xf32> to vector<384x16xf32>
    %34 = arith.truncf %33 : vector<384x16xf32> to vector<384x16xbf16>
    %c0_27 = arith.constant 0 : index
    %c128 = arith.constant 128 : index
    %35 = vector.load %arg6[%c0_27, %c128] : memref<384x144xbf16, #tpu.memory_space<vmem>>, vector<384x16xbf16>
    tpu.vector_store %arg6[%c0_27, %c128], %34 {strides = array<i32>} : memref<384x144xbf16, #tpu.memory_space<vmem>>, vector<384x16xbf16>,
    %c0_28 = arith.constant 0 : index
    %c0_29 = arith.constant 0 : index
    %36 = vector.load %arg6[%c0_28, %c0_29] : memref<384x144xbf16, #tpu.memory_space<vmem>>, vector<384x144xbf16>
    %c0_30 = arith.constant 0 : index
    %c0_31 = arith.constant 0 : index
    %37 = vector.load %arg2[%c0_30, %c0_31] : memref<144x128xbf16, #tpu.memory_space<vmem>>, vector<144x128xbf16>
    %cst = arith.constant dense<0.000000e+00> : vector<384x128xf32>
    %38 = tpu.matmul %36, %37, %cst {dimension_numbers = #tpu.dot_dimension_numbers<[1], [0], [0], [1], [0, 0, 1, 1], [], []>} : vector<384x144xbf16>, vector<144x128xbf16>, vector<384x128xf32> -> vector<384x128xf32>
    %39 = tpu.iota {dimensions = array<i32: 0>} : vector<24x128xi32>
    %c16_i32 = arith.constant 16 : i32
    %40 = vector.broadcast %c16_i32 : i32 to vector<24x128xi32>
    %41 = arith.cmpi slt, %39, %40 : vector<24x128xi32>
    %42 = arith.extui %41 : vector<24x128xi1> to vector<24x128xi32>
    %43 = arith.sitofp %42 : vector<24x128xi32> to vector<24x128xf32>
    %44 = tpu.concatenate %43, %43, %43, %43, %43, %43, %43, %43, %43, %43, %43, %43, %43, %43, %43, %43 in 0 : vector<24x128xf32>, vector<24x128xf32>, vector<24x128xf32>, vector<24x128xf32>, vector<24x128xf32>, vector<24x128xf32>, vector<24x128xf32>, vector<24x128xf32>, vector<24x128xf32>, vector<24x128xf32>, vector<24x128xf32>, vector<24x128xf32>, vector<24x128xf32>, vector<24x128xf32>, vector<24x128xf32>, vector<24x128xf32> -> vector<384x128xf32>
    %45 = arith.mulf %38, %44 : vector<384x128xf32>
    %46 = arith.truncf %45 : vector<384x128xf32> to vector<384x128xbf16>
    %c0_32 = arith.constant 0 : index
    %c0_33 = arith.constant 0 : index
    %c0_34 = arith.constant 0 : index
    %47 = vector.load %arg3[%c0_32, %c0_33, %c0_34] : memref<1x384x128xbf16, #tpu.memory_space<vmem>>, vector<1x384x128xbf16>
    %48 = vector.shape_cast %47 : vector<1x384x128xbf16> to vector<384x128xbf16>
    %49 = vector.shape_cast %46 : vector<384x128xbf16> to vector<1x384x128xbf16>
    tpu.vector_store %arg3[%c0_32, %c0_33, %c0_34], %49 {strides = array<i32>} : memref<1x384x128xbf16, #tpu.memory_space<vmem>>, vector<1x384x128xbf16>,
    %cst_35 = arith.constant dense<0.000000e+00> : vector<128xf32>
    %50 = vector.multi_reduction <add>, %45, %cst_35 [0] : vector<384x128xf32> to vector<128xf32>
    %51 = vector.shape_cast %50 : vector<128xf32> to vector<1x128xf32>
    %c0_36 = arith.constant 0 : index
    %c0_37 = arith.constant 0 : index
    %c0_38 = arith.constant 0 : index
    %52 = vector.load %arg4[%c0_36, %c0_37, %c0_38] : memref<1x1x128xf32, #tpu.memory_space<vmem>>, vector<1x1x128xf32>
    %53 = vector.shape_cast %52 : vector<1x1x128xf32> to vector<1x128xf32>
    %54 = vector.shape_cast %51 : vector<1x128xf32> to vector<1x1x128xf32>
    tpu.vector_store %arg4[%c0_36, %c0_37, %c0_38], %54 {strides = array<i32>} : memref<1x1x128xf32, #tpu.memory_space<vmem>>, vector<1x1x128xf32>,
    %55 = arith.mulf %45, %45 : vector<384x128xf32>
    %cst_39 = arith.constant dense<0.000000e+00> : vector<128xf32>
    %56 = vector.multi_reduction <add>, %55, %cst_39 [0] : vector<384x128xf32> to vector<128xf32>
    %57 = vector.shape_cast %56 : vector<128xf32> to vector<1x128xf32>
    %c0_40 = arith.constant 0 : index
    %c0_41 = arith.constant 0 : index
    %c0_42 = arith.constant 0 : index
    %58 = vector.load %arg5[%c0_40, %c0_41, %c0_42] : memref<1x1x128xf32, #tpu.memory_space<vmem>>, vector<1x1x128xf32>
    %59 = vector.shape_cast %58 : vector<1x1x128xf32> to vector<1x128xf32>
    %60 = vector.shape_cast %57 : vector<1x128xf32> to vector<1x1x128xf32>
    tpu.vector_store %arg5[%c0_40, %c0_41, %c0_42], %60 {strides = array<i32>} : memref<1x1x128xf32, #tpu.memory_space<vmem>>, vector<1x1x128xf32>,
    return
  }
  func.func @transform_0(%arg0: i32) -> (i32, i32, i32) {
    %c0_i32 = arith.constant 0 : i32
    %c0_i32_0 = arith.constant 0 : i32
    %c0_i32_1 = arith.constant 0 : i32
    return %arg0, %c0_i32, %c0_i32_0 : i32, i32, i32
  }
  func.func @transform_1(%arg0: i32) -> (i32, i32) {
    %c0_i32 = arith.constant 0 : i32
    %c0_i32_0 = arith.constant 0 : i32
    %c0_i32_1 = arith.constant 0 : i32
    return %c0_i32, %c0_i32_0 : i32, i32
  }
  func.func @transform_2(%arg0: i32) -> (i32, i32, i32) {
    %c0_i32 = arith.constant 0 : i32
    %c0_i32_0 = arith.constant 0 : i32
    %c0_i32_1 = arith.constant 0 : i32
    return %arg0, %c0_i32, %c0_i32_0 : i32, i32, i32
  }
  func.func @transform_3(%arg0: i32) -> (i32, i32, i32) {
    %c0_i32 = arith.constant 0 : i32
    %c0_i32_0 = arith.constant 0 : i32
    %c0_i32_1 = arith.constant 0 : i32
    return %arg0, %c0_i32, %c0_i32_0 : i32, i32, i32
  }
  func.func @transform_4(%arg0: i32) -> (i32, i32, i32) {
    %c0_i32 = arith.constant 0 : i32
    %c0_i32_0 = arith.constant 0 : i32
    %c0_i32_1 = arith.constant 0 : i32
    return %arg0, %c0_i32, %c0_i32_0 : i32, i32, i32
  }
}

module attributes {stable_mosaic.version = 11 : i64} {
  func.func @bn2_add_relu_kernel(%arg0: i32, %arg1: memref<1x384x128xf32, #tpu.memory_space<vmem>>, %arg2: memref<1x448x16xf32, #tpu.memory_space<vmem>>, %arg3: memref<1x128xf32, #tpu.memory_space<vmem>>, %arg4: memref<1x128xf32, #tpu.memory_space<vmem>>, %arg5: memref<1x384x128xf32, #tpu.memory_space<vmem>>) attributes {dimension_semantics = [#tpu.dimension_semantics<parallel>], iteration_bounds = array<i64: 2>, scalar_prefetch = 0 : i64, scratch_operands = 0 : i64, tpu.core_type = #tpu.core_type<tc>, window_params = [{transform_indices = @transform_0, window_bounds = array<i64: 1, 384, 128>}, {transform_indices = @transform_1, window_bounds = array<i64: 1, 448, 16>}, {pipeline_mode = #tpu.pipeline_mode<synchronous>, transform_indices = @transform_2, window_bounds = array<i64: 1, 128>}, {pipeline_mode = #tpu.pipeline_mode<synchronous>, transform_indices = @transform_3, window_bounds = array<i64: 1, 128>}, {transform_indices = @transform_4, window_bounds = array<i64: 1, 384, 128>}]} {
    %c0 = arith.constant 0 : index
    %c0_0 = arith.constant 0 : index
    %c0_1 = arith.constant 0 : index
    %0 = vector.load %arg1[%c0, %c0_0, %c0_1] : memref<1x384x128xf32, #tpu.memory_space<vmem>>, vector<1x384x128xf32>
    %1 = vector.shape_cast %0 : vector<1x384x128xf32> to vector<384x128xf32>
    %c0_2 = arith.constant 0 : index
    %c0_3 = arith.constant 0 : index
    %2 = vector.load %arg3[%c0_2, %c0_3] : memref<1x128xf32, #tpu.memory_space<vmem>>, vector<1x128xf32>
    %3 = vector.broadcast %2 : vector<1x128xf32> to vector<384x128xf32>
    %4 = arith.mulf %1, %3 : vector<384x128xf32>
    %c0_4 = arith.constant 0 : index
    %c0_5 = arith.constant 0 : index
    %5 = vector.load %arg4[%c0_4, %c0_5] : memref<1x128xf32, #tpu.memory_space<vmem>>, vector<1x128xf32>
    %6 = vector.broadcast %5 : vector<1x128xf32> to vector<384x128xf32>
    %7 = arith.addf %4, %6 : vector<384x128xf32>
    %cst = arith.constant 0.000000e+00 : f32
    %8 = vector.broadcast %cst : f32 to vector<384x128xf32>
    %9 = arith.maximumf %7, %8 : vector<384x128xf32>
    %c0_6 = arith.constant 0 : index
    %c0_7 = arith.constant 0 : index
    %c0_8 = arith.constant 0 : index
    %10 = vector.load %arg5[%c0_6, %c0_7, %c0_8] : memref<1x384x128xf32, #tpu.memory_space<vmem>>, vector<1x384x128xf32>
    %11 = vector.shape_cast %10 : vector<1x384x128xf32> to vector<384x128xf32>
    %12 = vector.shape_cast %9 : vector<384x128xf32> to vector<1x384x128xf32>
    tpu.vector_store %arg5[%c0_6, %c0_7, %c0_8], %12 {strides = array<i32>} : memref<1x384x128xf32, #tpu.memory_space<vmem>>, vector<1x384x128xf32>,
    %13 = vector.extract_strided_slice %7 {offsets = [0, 0], sizes = [384, 16], strides = [1, 1]} : vector<384x128xf32> to vector<384x16xf32>
    %c0_9 = arith.constant 0 : index
    %c32 = arith.constant 32 : index
    %c0_10 = arith.constant 0 : index
    %14 = vector.load %arg2[%c0_9, %c32, %c0_10] : memref<1x448x16xf32, #tpu.memory_space<vmem>>, vector<1x384x16xf32>
    %15 = vector.shape_cast %14 : vector<1x384x16xf32> to vector<384x16xf32>
    %16 = arith.addf %13, %15 : vector<384x16xf32>
    %cst_11 = arith.constant 0.000000e+00 : f32
    %17 = vector.broadcast %cst_11 : f32 to vector<384x16xf32>
    %18 = arith.maximumf %16, %17 : vector<384x16xf32>
    %c0_12 = arith.constant 0 : index
    %c0_13 = arith.constant 0 : index
    %c0_14 = arith.constant 0 : index
    %19 = vector.load %arg5[%c0_12, %c0_13, %c0_14] : memref<1x384x128xf32, #tpu.memory_space<vmem>>, vector<1x384x16xf32>
    %20 = vector.shape_cast %19 : vector<1x384x16xf32> to vector<384x16xf32>
    %21 = vector.shape_cast %18 : vector<384x16xf32> to vector<1x384x16xf32>
    tpu.vector_store %arg5[%c0_12, %c0_13, %c0_14], %21 {strides = array<i32>} : memref<1x384x128xf32, #tpu.memory_space<vmem>>, vector<1x384x16xf32>,
    return
  }
  func.func @transform_0(%arg0: i32) -> (i32, i32, i32) {
    %c0_i32 = arith.constant 0 : i32
    %c0_i32_0 = arith.constant 0 : i32
    %c0_i32_1 = arith.constant 0 : i32
    return %arg0, %c0_i32, %c0_i32_0 : i32, i32, i32
  }
  func.func @transform_1(%arg0: i32) -> (i32, i32, i32) {
    %c0_i32 = arith.constant 0 : i32
    %c0_i32_0 = arith.constant 0 : i32
    %c0_i32_1 = arith.constant 0 : i32
    return %arg0, %c0_i32, %c0_i32_0 : i32, i32, i32
  }
  func.func @transform_2(%arg0: i32) -> (i32, i32) {
    %c0_i32 = arith.constant 0 : i32
    %c0_i32_0 = arith.constant 0 : i32
    %c0_i32_1 = arith.constant 0 : i32
    return %c0_i32, %c0_i32_0 : i32, i32
  }
  func.func @transform_3(%arg0: i32) -> (i32, i32) {
    %c0_i32 = arith.constant 0 : i32
    %c0_i32_0 = arith.constant 0 : i32
    %c0_i32_1 = arith.constant 0 : i32
    return %c0_i32, %c0_i32_0 : i32, i32
  }
  func.func @transform_4(%arg0: i32) -> (i32, i32, i32) {
    %c0_i32 = arith.constant 0 : i32
    %c0_i32_0 = arith.constant 0 : i32
    %c0_i32_1 = arith.constant 0 : i32
    return %arg0, %c0_i32, %c0_i32_0 : i32, i32, i32
  }
}

module attributes {stable_mosaic.version = 11 : i64} {
  func.func @conv2_kernel(%arg0: i32, %arg1: memref<1x384x128xbf16, #tpu.memory_space<vmem>>, %arg2: memref<1x128xf32, #tpu.memory_space<vmem>>, %arg3: memref<1x128xf32, #tpu.memory_space<vmem>>, %arg4: memref<3x384x128xbf16, #tpu.memory_space<vmem>>, %arg5: memref<1x384x128xf32, #tpu.memory_space<vmem>>, %arg6: memref<1x1x128xf32, #tpu.memory_space<vmem>>, %arg7: memref<1x1x128xf32, #tpu.memory_space<vmem>>, %arg8: memref<448x128xbf16, #tpu.memory_space<vmem>>, %arg9: memref<384x384xbf16, #tpu.memory_space<vmem>>, %arg10: memref<384x128xf32, #tpu.memory_space<vmem>>) attributes {dimension_semantics = [#tpu.dimension_semantics<parallel>], iteration_bounds = array<i64: 2>, scalar_prefetch = 0 : i64, scratch_operands = 3 : i64, tpu.core_type = #tpu.core_type<tc>, window_params = [{transform_indices = @transform_0, window_bounds = array<i64: 1, 384, 128>}, {pipeline_mode = #tpu.pipeline_mode<synchronous>, transform_indices = @transform_1, window_bounds = array<i64: 1, 128>}, {pipeline_mode = #tpu.pipeline_mode<synchronous>, transform_indices = @transform_2, window_bounds = array<i64: 1, 128>}, {pipeline_mode = #tpu.pipeline_mode<synchronous>, transform_indices = @transform_3, window_bounds = array<i64: 3, 384, 128>}, {transform_indices = @transform_4, window_bounds = array<i64: 1, 384, 128>}, {transform_indices = @transform_5, window_bounds = array<i64: 1, 1, 128>}, {transform_indices = @transform_6, window_bounds = array<i64: 1, 1, 128>}]} {
    %0 = tpu.iota {dimensions = array<i32: 0>} : vector<24x128xi32>
    %c16_i32 = arith.constant 16 : i32
    %1 = vector.broadcast %c16_i32 : i32 to vector<24x128xi32>
    %2 = arith.cmpi slt, %0, %1 : vector<24x128xi32>
    %3 = arith.extui %2 : vector<24x128xi1> to vector<24x128xi32>
    %4 = arith.sitofp %3 : vector<24x128xi32> to vector<24x128xf32>
    %5 = tpu.concatenate %4, %4, %4, %4, %4, %4, %4, %4, %4, %4, %4, %4, %4, %4, %4, %4 in 0 : vector<24x128xf32>, vector<24x128xf32>, vector<24x128xf32>, vector<24x128xf32>, vector<24x128xf32>, vector<24x128xf32>, vector<24x128xf32>, vector<24x128xf32>, vector<24x128xf32>, vector<24x128xf32>, vector<24x128xf32>, vector<24x128xf32>, vector<24x128xf32>, vector<24x128xf32>, vector<24x128xf32>, vector<24x128xf32> -> vector<384x128xf32>
    %c0 = arith.constant 0 : index
    %c0_0 = arith.constant 0 : index
    %c0_1 = arith.constant 0 : index
    %6 = vector.load %arg1[%c0, %c0_0, %c0_1] : memref<1x384x128xbf16, #tpu.memory_space<vmem>>, vector<1x384x128xbf16>
    %7 = vector.shape_cast %6 : vector<1x384x128xbf16> to vector<384x128xbf16>
    %8 = arith.extf %7 : vector<384x128xbf16> to vector<384x128xf32>
    %c0_2 = arith.constant 0 : index
    %c0_3 = arith.constant 0 : index
    %9 = vector.load %arg2[%c0_2, %c0_3] : memref<1x128xf32, #tpu.memory_space<vmem>>, vector<1x128xf32>
    %10 = vector.broadcast %9 : vector<1x128xf32> to vector<384x128xf32>
    %11 = arith.mulf %8, %10 : vector<384x128xf32>
    %c0_4 = arith.constant 0 : index
    %c0_5 = arith.constant 0 : index
    %12 = vector.load %arg3[%c0_4, %c0_5] : memref<1x128xf32, #tpu.memory_space<vmem>>, vector<1x128xf32>
    %13 = vector.broadcast %12 : vector<1x128xf32> to vector<384x128xf32>
    %14 = arith.addf %11, %13 : vector<384x128xf32>
    %cst = arith.constant 0.000000e+00 : f32
    %15 = vector.broadcast %cst : f32 to vector<384x128xf32>
    %16 = arith.maximumf %14, %15 : vector<384x128xf32>
    %17 = arith.mulf %16, %5 : vector<384x128xf32>
    %cst_6 = arith.constant 0.000000e+00 : bf16
    %18 = vector.broadcast %cst_6 : bf16 to vector<32x128xbf16>
    %c0_7 = arith.constant 0 : index
    %c0_8 = arith.constant 0 : index
    %19 = vector.load %arg8[%c0_7, %c0_8] : memref<448x128xbf16, #tpu.memory_space<vmem>>, vector<32x128xbf16>
    tpu.vector_store %arg8[%c0_7, %c0_8], %18 {strides = array<i32>} : memref<448x128xbf16, #tpu.memory_space<vmem>>, vector<32x128xbf16>,
    %20 = arith.truncf %17 : vector<384x128xf32> to vector<384x128xbf16>
    %c32 = arith.constant 32 : index
    %c0_9 = arith.constant 0 : index
    %21 = vector.load %arg8[%c32, %c0_9] : memref<448x128xbf16, #tpu.memory_space<vmem>>, vector<384x128xbf16>
    tpu.vector_store %arg8[%c32, %c0_9], %20 {strides = array<i32>} : memref<448x128xbf16, #tpu.memory_space<vmem>>, vector<384x128xbf16>,
    %cst_10 = arith.constant 0.000000e+00 : bf16
    %22 = vector.broadcast %cst_10 : bf16 to vector<32x128xbf16>
    %c416 = arith.constant 416 : index
    %c0_11 = arith.constant 0 : index
    %23 = vector.load %arg8[%c416, %c0_11] : memref<448x128xbf16, #tpu.memory_space<vmem>>, vector<32x128xbf16>
    tpu.vector_store %arg8[%c416, %c0_11], %22 {strides = array<i32>} : memref<448x128xbf16, #tpu.memory_space<vmem>>, vector<32x128xbf16>,
    %c7 = arith.constant 7 : index
    %c0_12 = arith.constant 0 : index
    %24 = vector.load %arg8[%c7, %c0_12] : memref<448x128xbf16, #tpu.memory_space<vmem>>, vector<384x128xbf16>
    %c0_13 = arith.constant 0 : index
    %c0_14 = arith.constant 0 : index
    %25 = vector.load %arg9[%c0_13, %c0_14] : memref<384x384xbf16, #tpu.memory_space<vmem>>, vector<384x128xbf16>
    tpu.vector_store %arg9[%c0_13, %c0_14], %24 {strides = array<i32>} : memref<384x384xbf16, #tpu.memory_space<vmem>>, vector<384x128xbf16>,
    %c8 = arith.constant 8 : index
    %c0_15 = arith.constant 0 : index
    %26 = vector.load %arg8[%c8, %c0_15] : memref<448x128xbf16, #tpu.memory_space<vmem>>, vector<384x128xbf16>
    %c0_16 = arith.constant 0 : index
    %c128 = arith.constant 128 : index
    %27 = vector.load %arg9[%c0_16, %c128] : memref<384x384xbf16, #tpu.memory_space<vmem>>, vector<384x128xbf16>
    tpu.vector_store %arg9[%c0_16, %c128], %26 {strides = array<i32>} : memref<384x384xbf16, #tpu.memory_space<vmem>>, vector<384x128xbf16>,
    %c9 = arith.constant 9 : index
    %c0_17 = arith.constant 0 : index
    %28 = vector.load %arg8[%c9, %c0_17] : memref<448x128xbf16, #tpu.memory_space<vmem>>, vector<384x128xbf16>
    %c0_18 = arith.constant 0 : index
    %c256 = arith.constant 256 : index
    %29 = vector.load %arg9[%c0_18, %c256] : memref<384x384xbf16, #tpu.memory_space<vmem>>, vector<384x128xbf16>
    tpu.vector_store %arg9[%c0_18, %c256], %28 {strides = array<i32>} : memref<384x384xbf16, #tpu.memory_space<vmem>>, vector<384x128xbf16>,
    %c0_19 = arith.constant 0 : index
    %c0_20 = arith.constant 0 : index
    %30 = vector.load %arg9[%c0_19, %c0_20] : memref<384x384xbf16, #tpu.memory_space<vmem>>, vector<384x384xbf16>
    %c0_21 = arith.constant 0 : index
    %c0_22 = arith.constant 0 : index
    %c0_23 = arith.constant 0 : index
    %31 = vector.load %arg4[%c0_21, %c0_22, %c0_23] : memref<3x384x128xbf16, #tpu.memory_space<vmem>>, vector<1x384x128xbf16>
    %32 = vector.shape_cast %31 : vector<1x384x128xbf16> to vector<384x128xbf16>
    %cst_24 = arith.constant dense<0.000000e+00> : vector<384x128xf32>
    %33 = tpu.matmul %30, %32, %cst_24 {dimension_numbers = #tpu.dot_dimension_numbers<[1], [0], [0], [1], [0, 0, 1, 1], [], []>} : vector<384x384xbf16>, vector<384x128xbf16>, vector<384x128xf32> -> vector<384x128xf32>
    %c0_25 = arith.constant 0 : index
    %c0_26 = arith.constant 0 : index
    %34 = vector.load %arg10[%c0_25, %c0_26] : memref<384x128xf32, #tpu.memory_space<vmem>>, vector<384x128xf32>
    tpu.vector_store %arg10[%c0_25, %c0_26], %33 {strides = array<i32>} : memref<384x128xf32, #tpu.memory_space<vmem>>, vector<384x128xf32>,
    %c31 = arith.constant 31 : index
    %c0_27 = arith.constant 0 : index
    %35 = vector.load %arg8[%c31, %c0_27] : memref<448x128xbf16, #tpu.memory_space<vmem>>, vector<384x128xbf16>
    %c0_28 = arith.constant 0 : index
    %c0_29 = arith.constant 0 : index
    %36 = vector.load %arg9[%c0_28, %c0_29] : memref<384x384xbf16, #tpu.memory_space<vmem>>, vector<384x128xbf16>
    tpu.vector_store %arg9[%c0_28, %c0_29], %35 {strides = array<i32>} : memref<384x384xbf16, #tpu.memory_space<vmem>>, vector<384x128xbf16>,
    %c32_30 = arith.constant 32 : index
    %c0_31 = arith.constant 0 : index
    %37 = vector.load %arg8[%c32_30, %c0_31] : memref<448x128xbf16, #tpu.memory_space<vmem>>, vector<384x128xbf16>
    %c0_32 = arith.constant 0 : index
    %c128_33 = arith.constant 128 : index
    %38 = vector.load %arg9[%c0_32, %c128_33] : memref<384x384xbf16, #tpu.memory_space<vmem>>, vector<384x128xbf16>
    tpu.vector_store %arg9[%c0_32, %c128_33], %37 {strides = array<i32>} : memref<384x384xbf16, #tpu.memory_space<vmem>>, vector<384x128xbf16>,
    %c33 = arith.constant 33 : index
    %c0_34 = arith.constant 0 : index
    %39 = vector.load %arg8[%c33, %c0_34] : memref<448x128xbf16, #tpu.memory_space<vmem>>, vector<384x128xbf16>
    %c0_35 = arith.constant 0 : index
    %c256_36 = arith.constant 256 : index
    %40 = vector.load %arg9[%c0_35, %c256_36] : memref<384x384xbf16, #tpu.memory_space<vmem>>, vector<384x128xbf16>
    tpu.vector_store %arg9[%c0_35, %c256_36], %39 {strides = array<i32>} : memref<384x384xbf16, #tpu.memory_space<vmem>>, vector<384x128xbf16>,
    %c0_37 = arith.constant 0 : index
    %c0_38 = arith.constant 0 : index
    %41 = vector.load %arg9[%c0_37, %c0_38] : memref<384x384xbf16, #tpu.memory_space<vmem>>, vector<384x384xbf16>
    %c1 = arith.constant 1 : index
    %c0_39 = arith.constant 0 : index
    %c0_40 = arith.constant 0 : index
    %42 = vector.load %arg4[%c1, %c0_39, %c0_40] : memref<3x384x128xbf16, #tpu.memory_space<vmem>>, vector<1x384x128xbf16>
    %43 = vector.shape_cast %42 : vector<1x384x128xbf16> to vector<384x128xbf16>
    %cst_41 = arith.constant dense<0.000000e+00> : vector<384x128xf32>
    %44 = tpu.matmul %41, %43, %cst_41 {dimension_numbers = #tpu.dot_dimension_numbers<[1], [0], [0], [1], [0, 0, 1, 1], [], []>} : vector<384x384xbf16>, vector<384x128xbf16>, vector<384x128xf32> -> vector<384x128xf32>
    %c0_42 = arith.constant 0 : index
    %c0_43 = arith.constant 0 : index
    %45 = vector.load %arg10[%c0_42, %c0_43] : memref<384x128xf32, #tpu.memory_space<vmem>>, vector<384x128xf32>
    %46 = arith.addf %45, %44 : vector<384x128xf32>
    %c0_44 = arith.constant 0 : index
    %c0_45 = arith.constant 0 : index
    %47 = vector.load %arg10[%c0_44, %c0_45] : memref<384x128xf32, #tpu.memory_space<vmem>>, vector<384x128xf32>
    tpu.vector_store %arg10[%c0_44, %c0_45], %46 {strides = array<i32>} : memref<384x128xf32, #tpu.memory_space<vmem>>, vector<384x128xf32>,
    %c55 = arith.constant 55 : index
    %c0_46 = arith.constant 0 : index
    %48 = vector.load %arg8[%c55, %c0_46] : memref<448x128xbf16, #tpu.memory_space<vmem>>, vector<384x128xbf16>
    %c0_47 = arith.constant 0 : index
    %c0_48 = arith.constant 0 : index
    %49 = vector.load %arg9[%c0_47, %c0_48] : memref<384x384xbf16, #tpu.memory_space<vmem>>, vector<384x128xbf16>
    tpu.vector_store %arg9[%c0_47, %c0_48], %48 {strides = array<i32>} : memref<384x384xbf16, #tpu.memory_space<vmem>>, vector<384x128xbf16>,
    %c56 = arith.constant 56 : index
    %c0_49 = arith.constant 0 : index
    %50 = vector.load %arg8[%c56, %c0_49] : memref<448x128xbf16, #tpu.memory_space<vmem>>, vector<384x128xbf16>
    %c0_50 = arith.constant 0 : index
    %c128_51 = arith.constant 128 : index
    %51 = vector.load %arg9[%c0_50, %c128_51] : memref<384x384xbf16, #tpu.memory_space<vmem>>, vector<384x128xbf16>
    tpu.vector_store %arg9[%c0_50, %c128_51], %50 {strides = array<i32>} : memref<384x384xbf16, #tpu.memory_space<vmem>>, vector<384x128xbf16>,
    %c57 = arith.constant 57 : index
    %c0_52 = arith.constant 0 : index
    %52 = vector.load %arg8[%c57, %c0_52] : memref<448x128xbf16, #tpu.memory_space<vmem>>, vector<384x128xbf16>
    %c0_53 = arith.constant 0 : index
    %c256_54 = arith.constant 256 : index
    %53 = vector.load %arg9[%c0_53, %c256_54] : memref<384x384xbf16, #tpu.memory_space<vmem>>, vector<384x128xbf16>
    tpu.vector_store %arg9[%c0_53, %c256_54], %52 {strides = array<i32>} : memref<384x384xbf16, #tpu.memory_space<vmem>>, vector<384x128xbf16>,
    %c0_55 = arith.constant 0 : index
    %c0_56 = arith.constant 0 : index
    %54 = vector.load %arg9[%c0_55, %c0_56] : memref<384x384xbf16, #tpu.memory_space<vmem>>, vector<384x384xbf16>
    %c2 = arith.constant 2 : index
    %c0_57 = arith.constant 0 : index
    %c0_58 = arith.constant 0 : index
    %55 = vector.load %arg4[%c2, %c0_57, %c0_58] : memref<3x384x128xbf16, #tpu.memory_space<vmem>>, vector<1x384x128xbf16>
    %56 = vector.shape_cast %55 : vector<1x384x128xbf16> to vector<384x128xbf16>
    %cst_59 = arith.constant dense<0.000000e+00> : vector<384x128xf32>
    %57 = tpu.matmul %54, %56, %cst_59 {dimension_numbers = #tpu.dot_dimension_numbers<[1], [0], [0], [1], [0, 0, 1, 1], [], []>} : vector<384x384xbf16>, vector<384x128xbf16>, vector<384x128xf32> -> vector<384x128xf32>
    %c0_60 = arith.constant 0 : index
    %c0_61 = arith.constant 0 : index
    %58 = vector.load %arg10[%c0_60, %c0_61] : memref<384x128xf32, #tpu.memory_space<vmem>>, vector<384x128xf32>
    %59 = arith.addf %58, %57 : vector<384x128xf32>
    %c0_62 = arith.constant 0 : index
    %c0_63 = arith.constant 0 : index
    %60 = vector.load %arg10[%c0_62, %c0_63] : memref<384x128xf32, #tpu.memory_space<vmem>>, vector<384x128xf32>
    tpu.vector_store %arg10[%c0_62, %c0_63], %59 {strides = array<i32>} : memref<384x128xf32, #tpu.memory_space<vmem>>, vector<384x128xf32>,
    %c0_64 = arith.constant 0 : index
    %c0_65 = arith.constant 0 : index
    %61 = vector.load %arg10[%c0_64, %c0_65] : memref<384x128xf32, #tpu.memory_space<vmem>>, vector<384x128xf32>
    %62 = arith.mulf %61, %5 : vector<384x128xf32>
    %c0_66 = arith.constant 0 : index
    %c0_67 = arith.constant 0 : index
    %c0_68 = arith.constant 0 : index
    %63 = vector.load %arg5[%c0_66, %c0_67, %c0_68] : memref<1x384x128xf32, #tpu.memory_space<vmem>>, vector<1x384x128xf32>
    %64 = vector.shape_cast %63 : vector<1x384x128xf32> to vector<384x128xf32>
    %65 = vector.shape_cast %62 : vector<384x128xf32> to vector<1x384x128xf32>
    tpu.vector_store %arg5[%c0_66, %c0_67, %c0_68], %65 {strides = array<i32>} : memref<1x384x128xf32, #tpu.memory_space<vmem>>, vector<1x384x128xf32>,
    %cst_69 = arith.constant dense<0.000000e+00> : vector<128xf32>
    %66 = vector.multi_reduction <add>, %62, %cst_69 [0] : vector<384x128xf32> to vector<128xf32>
    %67 = vector.shape_cast %66 : vector<128xf32> to vector<1x128xf32>
    %c0_70 = arith.constant 0 : index
    %c0_71 = arith.constant 0 : index
    %c0_72 = arith.constant 0 : index
    %68 = vector.load %arg6[%c0_70, %c0_71, %c0_72] : memref<1x1x128xf32, #tpu.memory_space<vmem>>, vector<1x1x128xf32>
    %69 = vector.shape_cast %68 : vector<1x1x128xf32> to vector<1x128xf32>
    %70 = vector.shape_cast %67 : vector<1x128xf32> to vector<1x1x128xf32>
    tpu.vector_store %arg6[%c0_70, %c0_71, %c0_72], %70 {strides = array<i32>} : memref<1x1x128xf32, #tpu.memory_space<vmem>>, vector<1x1x128xf32>,
    %71 = arith.mulf %62, %62 : vector<384x128xf32>
    %cst_73 = arith.constant dense<0.000000e+00> : vector<128xf32>
    %72 = vector.multi_reduction <add>, %71, %cst_73 [0] : vector<384x128xf32> to vector<128xf32>
    %73 = vector.shape_cast %72 : vector<128xf32> to vector<1x128xf32>
    %c0_74 = arith.constant 0 : index
    %c0_75 = arith.constant 0 : index
    %c0_76 = arith.constant 0 : index
    %74 = vector.load %arg7[%c0_74, %c0_75, %c0_76] : memref<1x1x128xf32, #tpu.memory_space<vmem>>, vector<1x1x128xf32>
    %75 = vector.shape_cast %74 : vector<1x1x128xf32> to vector<1x128xf32>
    %76 = vector.shape_cast %73 : vector<1x128xf32> to vector<1x1x128xf32>
    tpu.vector_store %arg7[%c0_74, %c0_75, %c0_76], %76 {strides = array<i32>} : memref<1x1x128xf32, #tpu.memory_space<vmem>>, vector<1x1x128xf32>,
    return
  }
  func.func @transform_0(%arg0: i32) -> (i32, i32, i32) {
    %c0_i32 = arith.constant 0 : i32
    %c0_i32_0 = arith.constant 0 : i32
    %c0_i32_1 = arith.constant 0 : i32
    return %arg0, %c0_i32, %c0_i32_0 : i32, i32, i32
  }
  func.func @transform_1(%arg0: i32) -> (i32, i32) {
    %c0_i32 = arith.constant 0 : i32
    %c0_i32_0 = arith.constant 0 : i32
    %c0_i32_1 = arith.constant 0 : i32
    return %c0_i32, %c0_i32_0 : i32, i32
  }
  func.func @transform_2(%arg0: i32) -> (i32, i32) {
    %c0_i32 = arith.constant 0 : i32
    %c0_i32_0 = arith.constant 0 : i32
    %c0_i32_1 = arith.constant 0 : i32
    return %c0_i32, %c0_i32_0 : i32, i32
  }
  func.func @transform_3(%arg0: i32) -> (i32, i32, i32) {
    %c0_i32 = arith.constant 0 : i32
    %c0_i32_0 = arith.constant 0 : i32
    %c0_i32_1 = arith.constant 0 : i32
    %c0_i32_2 = arith.constant 0 : i32
    return %c0_i32, %c0_i32_0, %c0_i32_1 : i32, i32, i32
  }
  func.func @transform_4(%arg0: i32) -> (i32, i32, i32) {
    %c0_i32 = arith.constant 0 : i32
    %c0_i32_0 = arith.constant 0 : i32
    %c0_i32_1 = arith.constant 0 : i32
    return %arg0, %c0_i32, %c0_i32_0 : i32, i32, i32
  }
  func.func @transform_5(%arg0: i32) -> (i32, i32, i32) {
    %c0_i32 = arith.constant 0 : i32
    %c0_i32_0 = arith.constant 0 : i32
    %c0_i32_1 = arith.constant 0 : i32
    return %arg0, %c0_i32, %c0_i32_0 : i32, i32, i32
  }
  func.func @transform_6(%arg0: i32) -> (i32, i32, i32) {
    %c0_i32 = arith.constant 0 : i32
    %c0_i32_0 = arith.constant 0 : i32
    %c0_i32_1 = arith.constant 0 : i32
    return %arg0, %c0_i32, %c0_i32_0 : i32, i32, i32
  }
}

</mosaic_0001>

<bundles_post_ra>
// kernel: basic_block_forward.5
= control target key start
LH: loop header
LB: loop body
LE: loop exit
PB: predicated region body
PF: predicated region fallthrough
CT: control target
= control target key end

     0   :  { %s787_s15 = smov 0   ;;  %s1352_s0 = inlined_call_operand.vmem [shape: f32[2,384,128], index: 0, kind: input, shape index: {}, may-alias: {0,4}]   ;;  %s1353_s1 = inlined_call_operand.vmem [shape: f32[2,448,16], index: 1, kind: input, shape index: {}]   ;;  %s1354_s2 = inlined_call_operand.vmem [shape: f32[1,128], index: 2, kind: input, shape index: {}]   ;;  %s1355_s3 = inlined_call_operand.vmem [shape: f32[1,128], index: 3, kind: input, shape index: {}]   ;;  %s1356_s4 = inlined_call_operand.vmem [shape: f32[2,384,128], index: 4, kind: output, shape index: {}, may-alias: {0,4}]  }
   0x1 LB: > { %s732_s16 = sadd.s32 4294967295, %s760_s15   ;;  %p736_p0 = scmp.ge.s32.totalorder %s760_s15, 1  ;;  %s760_s15 = sphi %s787_s15, %s14_s15  }
   0x2   : > { %p172_p1 = scmp.lt.s32.totalorder %s760_s15, 3 }
   0x4   : > { %p173_p2 = pnand %p736_p0, %p172_p1 }
   0x6   : > { %176 = sbr.rel (%p173_p2) target bundleno = 92 (0x5c), region = 36 }
   0xd   : > { %p203_p3 = scmp.lt.s32.totalorder %s732_s16, 1  ;;  %v801_v0 = vld [vmem:[%s1354_s2] ss:$0 sm:$0xff]  ;;  %vm616_vm0 = vcmask 130048  }
   0xe   : > { %v813_v1 = vld [vmem:[%s1355_s3] ss:$0 sm:$0xff] }
   0xf   : > { %s1371_s16 = smov (!%p203_p3, %s732_s16), 1 }
  0x10   : > { %s744_s17 = smul.u32 384, %s1371_s16 }
  0x11   : > { %s745_s25 = smul.u32 448, %s1371_s16 }
  0x12   : > { %s808_s22 = scalar_lea.vmem %s1352_s0, %s744_s17  ;;  %s930_s5 = scalar_lea.vmem %s1356_s4, %s744_s17 }
  0x13   : > { %v218_v2 = vld [vmem:[%s808_s22] sm:$0xff]  ;;  %v219_v3 = vld [vmem:[%s808_s22 + $0x8] sm:$0xff]  ;;  %v220_v4 = vld [vmem:[%s808_s22 + $0x10] sm:$0xff]  ;;  %s923_s28 = scalar_lea.vmem %s1353_s1, %s745_s25 }
  0x14   : > { %v221_v5 = vld [vmem:[%s808_s22 + $0x18] sm:$0xff]  ;;  %v222_v6 = vld [vmem:[%s808_s22 + $0x20] sm:$0xff]  ;;  %v223_v7 = vld [vmem:[%s808_s22 + $0x28] sm:$0xff]  ;;  %v273_v8 = vmul.f32 %v801_v0, %v218_v2  ;;  %v274_v9 = vmul.f32 %v801_v0, %v219_v3  ;;  %v275_v10 = vmul.f32 %v801_v0, %v220_v4 }
  0x15   : > { %v224_v11 = vld [vmem:[%s808_s22 + $0x30] sm:$0xff]  ;;  %v225_v12 = vld [vmem:[%s808_s22 + $0x38] sm:$0xff]  ;;  %v276_v13 = vmul.f32 %v801_v0, %v221_v5  ;;  %v277_v14 = vmul.f32 %v801_v0, %v222_v6  ;;  %v278_v15 = vmul.f32 %v801_v0, %v223_v7  ;;  %v226_v20 = vld [vmem:[%s808_s22 + $0x40] sm:$0xff] }
  0x16   : > { %v830_v16 = vadd.f32 %v813_v1, %v273_v8  ;;  %v833_v17 = vadd.f32 %v813_v1, %v274_v9  ;;  %v836_v18 = vadd.f32 %v813_v1, %v275_v10  ;;  %v279_v19 = vmul.f32 %v801_v0, %v224_v11  ;;  %v227_v21 = vld [vmem:[%s808_s22 + $0x48] sm:$0xff]  ;;  %v228_v22 = vld [vmem:[%s808_s22 + $0x50] sm:$0xff]  ;;  %v229_v27 = vld [vmem:[%s808_s22 + $0x58] sm:$0xff] }
  0x17   : > { %v843_v23 = vadd.f32 %v813_v1, %v276_v13  ;;  %v846_v24 = vadd.f32 %v813_v1, %v277_v14  ;;  %v849_v25 = vadd.f32 %v813_v1, %v278_v15  ;;  %v280_v26 = vmul.f32 %v801_v0, %v225_v12  ;;  %v230_v28 = vld [vmem:[%s808_s22 + $0x60] sm:$0xff]  ;;  %v231_v29 = vld [vmem:[%s808_s22 + $0x68] sm:$0xff]  ;;  %v232_v34 = vld [vmem:[%s808_s22 + $0x70] sm:$0xff] }
  0x18   : > { %v376_v30 = vmax.f32 %v830_v16, 0.0  ;;  %v859_v33 = vadd.f32 %v813_v1, %v279_v19  ;;  %v233_v39 = vld [vmem:[%s808_s22 + $0x78] sm:$0xff]  ;;  %v281_v41 = vmul.f32 %v801_v0, %v226_v20  ;;  %v282_v42 = vmul.f32 %v801_v0, %v227_v21  ;;  %v234_v52 = vld [vmem:[%s808_s22 + $0x80] sm:$0xff]  ;;  %v235_v53 = vld [vmem:[%s808_s22 + $0x88] sm:$0xff] }
  0x19   : > { %v866_v38 = vadd.f32 %v813_v1, %v280_v26  ;;  %v283_v43 = vmul.f32 %v801_v0, %v228_v22  ;;  %v284_v45 = vmul.f32 %v801_v0, %v229_v27  ;;  %v285_v46 = vmul.f32 %v801_v0, %v230_v28  ;;  %v236_v54 = vld [vmem:[%s808_s22 + $0x90] sm:$0xff]  ;;  %v237_v59 = vld [vmem:[%s808_s22 + $0x98] sm:$0xff]  ;;  %v238_v60 = vld [vmem:[%s808_s22 + $0xa0] sm:$0xff] }
  0x1a   : > { %v286_v47 = vmul.f32 %v801_v0, %v231_v29  ;;  %v879_v48 = vadd.f32 %v813_v1, %v281_v41  ;;  %v882_v49 = vadd.f32 %v813_v1, %v282_v42  ;;  %v287_v51 = vmul.f32 %v801_v0, %v232_v34  ;;  %v239_v61 = vld [vmem:[%s808_s22 + $0xa8] sm:$0xff]  ;;  %v240_v4 = vld [vmem:[%s808_s22 + $0xb0] sm:$0xff]  ;;  %v912_v5 = vld [vmem:[%s808_s22 + $0xb8] sm:$0xff] }
  0x1b   : > { %v885_v50 = vadd.f32 %v813_v1, %v283_v43  ;;  %v892_v55 = vadd.f32 %v813_v1, %v284_v45  ;;  %v895_v56 = vadd.f32 %v813_v1, %v285_v46  ;;  %v288_v58 = vmul.f32 %v801_v0, %v233_v39  ;;  %v933_v10 = vld [vmem:[%s808_s22 + $0xc0] sm:$0xff]  ;;  %v936_v11 = vld [vmem:[%s808_s22 + $0xc8] sm:$0xff]  ;;  %v939_v12 = vld [vmem:[%s808_s22 + $0xd0] sm:$0xff] }
  0x1c   : > { %v898_v57 = vadd.f32 %v813_v1, %v286_v47  ;;  %v384_v62 = vmax.f32 %v879_v48, 0.0  ;;  %v385_v63 = vmax.f32 %v882_v49, 0.0  ;;  %v908_v3 = vadd.f32 %v813_v1, %v287_v51  ;;  %v942_v13 = vld [vmem:[%s808_s22 + $0xd8] sm:$0xff]  ;;  %v945_v14 = vld [vmem:[%s808_s22 + $0xe0] sm:$0xff]  ;;  %v948_v15 = vld [vmem:[%s808_s22 + $0xe8] sm:$0xff] }
  0x1d   : > { %v386_v2 = vmax.f32 %v885_v50, 0.0  ;;  %v387_v6 = vmax.f32 %v892_v55, 0.0  ;;  %v388_v7 = vmax.f32 %v895_v56, 0.0  ;;  %v918_v9 = vadd.f32 %v813_v1, %v288_v58  ;;  %v951_v19 = vld [vmem:[%s808_s22 + $0xf0] sm:$0xff]  ;;  %v954_v20 = vld [vmem:[%s808_s22 + $0xf8] sm:$0xff]  ;;  %v957_v21 = vld [vmem:[%s808_s22 + $0x100] sm:$0xff] }
  0x1e   : > { %v389_v8 = vmax.f32 %v898_v57, 0.0  ;;  %v960_v22 = vld [vmem:[%s808_s22 + $0x108] sm:$0xff]  ;;  %v963_v26 = vld [vmem:[%s808_s22 + $0x110] sm:$0xff]  ;;  %v966_v27 = vld [vmem:[%s808_s22 + $0x118] sm:$0xff]  ;;  %v390_v43 = vmax.f32 %v908_v3, 0.0  ;;  %v289_v45 = vmul.f32 %v801_v0, %v234_v52  ;;  %v290_v46 = vmul.f32 %v801_v0, %v235_v53 }
  0x1f   : > { %v969_v28 = vld [vmem:[%s808_s22 + $0x120] sm:$0xff]  ;;  %v972_v29 = vld [vmem:[%s808_s22 + $0x128] sm:$0xff]  ;;  %v975_v34 = vld [vmem:[%s808_s22 + $0x130] sm:$0xff]  ;;  %v291_v47 = vmul.f32 %v801_v0, %v236_v54  ;;  %v391_v40 = vmax.f32 %v918_v9, 0.0  ;;  %v292_v52 = vmul.f32 %v801_v0, %v237_v59  ;;  %v293_v53 = vmul.f32 %v801_v0, %v238_v60 }
  0x20   : > { %v978_v39 = vld [vmem:[%s808_s22 + $0x138] sm:$0xff]  ;;  %v981_v41 = vld [vmem:[%s808_s22 + $0x140] sm:$0xff]  ;;  %v984_v42 = vld [vmem:[%s808_s22 + $0x148] sm:$0xff]  ;;  %v294_v54 = vmul.f32 %v801_v0, %v239_v61  ;;  %v1013_v32 = vadd.f32 %v813_v1, %v289_v45  ;;  %v1016_v59 = vadd.f32 %v813_v1, %v290_v46  ;;  %v1022_v61 = vmul.f32 %v801_v0, %v240_v4 }
  0x21   : > { %v991_v51 = vld [vmem:[%s808_s22 + $0x150] sm:$0xff]  ;;  %v994_v58 = vld [vmem:[%s808_s22 + $0x158] sm:$0xff]  ;;  %v997_v44 = vld [vmem:[%s808_s22 + $0x160] sm:$0xff]  ;;  %v1019_v60 = vadd.f32 %v813_v1, %v291_v47  ;;  %v1360_v45 = vmax.f32 %v833_v17, 0.0  ;;  %v1363_v4 = vmax.f32 %v846_v24, 0.0 }
  0x22   : > { %v1004_v37 = vld [vmem:[%s808_s22 + $0x168] sm:$0xff]  ;;  %v1007_v36 = vld [vmem:[%s808_s22 + $0x170] sm:$0xff]  ;;  %v1010_v35 = vld [vmem:[%s808_s22 + $0x178] sm:$0xff] }
  0x23   : > { %1357 = vst [vmem:[#allocation2_spill] sm:$0xff] %v1004_v37  ;;  %1358 = vst [vmem:[#allocation3_spill] sm:$0xff] %v1007_v36  ;;  %v472_v31 = vld [vmem:[%s923_s28 + $0x20] sm:$0xff]  ;;  %v473_v46 = vld [vmem:[%s923_s28 + $0x28] sm:$0xff]  ;;  %v1362_v36 = vmax.f32 %v843_v23, 0.0  ;;  %v1365_v37 = vmax.f32 %v859_v33, 0.0 }
  0x24   : > { %1359 = vst [vmem:[#allocation4_spill] sm:$0xff] %v1010_v35  ;;  %424 = vst [vmem:[%s930_s5] sm:$0xff] %v376_v30  ;;  %v1361_v35 = vmax.f32 %v836_v18, 0.0  ;;  %v474_v47 = vld [vmem:[%s923_s28 + $0x30] sm:$0xff]  ;;  %v1364_v30 = vmax.f32 %v849_v25, 0.0 }
  0x25   : > { %425 = vst [vmem:[%s930_s5 + $0x8] sm:$0xff] %v1360_v45  ;;  %427 = vst [vmem:[%s930_s5 + $0x18] sm:$0xff] %v1362_v36  ;;  %v1366_v45 = vmax.f32 %v866_v38, 0.0  ;;  %v1063_v36 = vadd.f32 %v813_v1, %v293_v53 }
  0x26   : > { %426 = vst [vmem:[%s930_s5 + $0x10] sm:$0xff] %v1361_v35  ;;  %428 = vst [vmem:[%s930_s5 + $0x20] sm:$0xff] %v1363_v4  ;;  %v1060_v35 = vadd.f32 %v813_v1, %v292_v52 }
  0x27   : > { %429 = vst [vmem:[%s930_s5 + $0x28] sm:$0xff] %v1364_v30  ;;  %430 = vst [vmem:[%s930_s5 + $0x30] sm:$0xff] %v1365_v37  ;;  %v1066_v37 = vadd.f32 %v813_v1, %v294_v54  ;;  %v481_v30 = vld [vmem:[%s923_s28 + $0x68] sm:$0xff] }
  0x28   : > { %431 = vst [vmem:[%s930_s5 + $0x38] sm:$0xff] %v1366_v45  ;;  %432 = vst [vmem:[%s930_s5 + $0x40] sm:$0xff] %v384_v62  ;;  %v1070_v62 = vmul.f32 %v801_v0, %v912_v5 }
  0x29   : > { %433 = vst [vmem:[%s930_s5 + $0x48] sm:$0xff] %v385_v63  ;;  %434 = vst [vmem:[%s930_s5 + $0x50] sm:$0xff] %v386_v2  ;;  %v520_v63 = vadd.f32 %v472_v31, %v830_v16  ;;  %v521_v2 = vadd.f32 %v473_v46, %v833_v17  ;;  %v478_v16 = vld [vmem:[%s923_s28 + $0x50] sm:$0xff]  ;;  %v479_v17 = vld [vmem:[%s923_s28 + $0x58] sm:$0xff]  ;;  %v393_v31 = vmax.f32 %v1016_v59, 0.0 }
  0x2a   : > { %435 = vst [vmem:[%s930_s5 + $0x58] sm:$0xff] %v387_v6  ;;  %436 = vst [vmem:[%s930_s5 + $0x60] sm:$0xff] %v388_v7  ;;  %v475_v6 = vld [vmem:[%s923_s28 + $0x38] sm:$0xff]  ;;  %v476_v7 = vld [vmem:[%s923_s28 + $0x40] sm:$0xff]  ;;  %v526_v4 = vadd.f32 %v478_v16, %v859_v33 }
  0x2b   : > { %437 = vst [vmem:[%s930_s5 + $0x68] sm:$0xff] %v389_v8  ;;  %438 = vst [vmem:[%s930_s5 + $0x70] sm:$0xff] %v390_v43  ;;  %v477_v8 = vld [vmem:[%s923_s28 + $0x48] sm:$0xff]  ;;  %v392_v43 = vmax.f32 %v1013_v32, 0.0  ;;  %v523_v52 = vadd.f32 %v475_v6, %v843_v23  ;;  %v524_v5 = vadd.f32 %v476_v7, %v846_v24  ;;  %v568_v54 = vmax.f32 %v520_v63, 0.0  ;;  %v482_v23 = vld [vmem:[%s923_s28 + $0x70] sm:$0xff] }
  0x2c   : > { %439 = vst [vmem:[%s930_s5 + $0x78] sm:$0xff] %v391_v40  ;;  %v522_v40 = vadd.f32 %v474_v47, %v836_v18  ;;  %v525_v53 = vadd.f32 %v477_v8, %v849_v25  ;;  %v480_v18 = vld [vmem:[%s923_s28 + $0x60] sm:$0xff]  ;;  %v569_v46 = vmax.f32 %v521_v2, 0.0  ;;  %v483_v24 = vld [vmem:[%s923_s28 + $0x78] sm:$0xff]  ;;  %v527_v7 = vadd.f32 %v479_v17, %v866_v38  ;;  %v485_v63 = vld [vmem:[%s923_s28 + $0x88] sm:$0xff] }
  0x2d   : > { %440 = vst [vmem:[%s930_s5 + $0x80] sm:$0xff] %v392_v43  ;;  %v571_v25 = vmax.f32 %v523_v52, 0.0  ;;  %v572_v45 = vmax.f32 %v524_v5, 0.0  ;;  %v484_v8 = vld [vmem:[%s923_s28 + $0x80] sm:$0xff]  ;;  %v486_v2 = vld [vmem:[%s923_s28 + $0x90] sm:$0xff]  ;;  %441 = vst [vmem:[%s930_s5 + $0x88] sm:$0xff] %v393_v31  ;;  %v529_v43 = vadd.f32 %v481_v30, %v882_v49  ;;  %v530_v52 = vadd.f32 %v482_v23, %v885_v50 }
  0x2e   : > { %v570_v47 = vmax.f32 %v522_v40, 0.0  ;;  %v573_v6 = vmax.f32 %v525_v53, 0.0  ;;  %v574_v33 = vmax.f32 %v526_v4, 0.0  ;;  %v528_v40 = vadd.f32 %v480_v18, %v879_v48  ;;  %v487_v5 = vld [vmem:[%s923_s28 + $0x98] sm:$0xff]  ;;  %617 = vst.msk [vmem:[%s930_s5] sm:$0xff] %vm616_vm0, %v568_v54  ;;  %618 = vst.msk [vmem:[%s930_s5 + $0x8] sm:$0xff] %vm616_vm0, %v569_v46 }
  0x2f   : > { %v575_v38 = vmax.f32 %v527_v7, 0.0  ;;  %v531_v53 = vadd.f32 %v483_v24, %v892_v55  ;;  %v532_v16 = vadd.f32 %v484_v8, %v895_v56  ;;  %v533_v48 = vadd.f32 %v485_v63, %v898_v57  ;;  %v488_v49 = vld [vmem:[%s923_s28 + $0xa0] sm:$0xff]  ;;  %v489_v50 = vld [vmem:[%s923_s28 + $0xa8] sm:$0xff]  ;;  %620 = vst.msk [vmem:[%s930_s5 + $0x18] sm:$0xff] %vm616_vm0, %v571_v25  ;;  %621 = vst.msk [vmem:[%s930_s5 + $0x20] sm:$0xff] %vm616_vm0, %v572_v45 }
  0x30   : > { %619 = vst.msk [vmem:[%s930_s5 + $0x10] sm:$0xff] %vm616_vm0, %v570_v47  ;;  %622 = vst.msk [vmem:[%s930_s5 + $0x28] sm:$0xff] %vm616_vm0, %v573_v6  ;;  %v576_v17 = vmax.f32 %v528_v40, 0.0  ;;  %v577_v18 = vmax.f32 %v529_v43, 0.0  ;;  %v578_v31 = vmax.f32 %v530_v52, 0.0  ;;  %v534_v55 = vadd.f32 %v486_v2, %v908_v3  ;;  %v490_v56 = vld [vmem:[%s923_s28 + $0xb0] sm:$0xff] }
  0x31   : > { %v491_v57 = vld [vmem:[%s923_s28 + $0xb8] sm:$0xff]  ;;  %623 = vst.msk [vmem:[%s930_s5 + $0x30] sm:$0xff] %vm616_vm0, %v574_v33  ;;  %v579_v54 = vmax.f32 %v531_v53, 0.0  ;;  %v580_v46 = vmax.f32 %v532_v16, 0.0  ;;  %v581_v47 = vmax.f32 %v533_v48, 0.0  ;;  %v535_v4 = vadd.f32 %v487_v5, %v918_v9  ;;  %v492_v30 = vld [vmem:[%s923_s28 + $0xc0] sm:$0xff] }
  0x32   : > { %624 = vst.msk [vmem:[%s930_s5 + $0x38] sm:$0xff] %vm616_vm0, %v575_v38  ;;  %v582_v23 = vmax.f32 %v534_v55, 0.0  ;;  %v536_v3 = vadd.f32 %v488_v49, %v1013_v32  ;;  %v537_v24 = vadd.f32 %v489_v50, %v1016_v59  ;;  %v394_v25 = vmax.f32 %v1019_v60, 0.0  ;;  %v493_v45 = vld [vmem:[%s923_s28 + $0xc8] sm:$0xff]  ;;  %625 = vst.msk [vmem:[%s930_s5 + $0x40] sm:$0xff] %vm616_vm0, %v576_v17  ;;  %v494_v43 = vld [vmem:[%s923_s28 + $0xd0] sm:$0xff] }
  0x33   : > { %626 = vst.msk [vmem:[%s930_s5 + $0x48] sm:$0xff] %vm616_vm0, %v577_v18  ;;  %627 = vst.msk [vmem:[%s930_s5 + $0x50] sm:$0xff] %vm616_vm0, %v578_v31  ;;  %v583_v9 = vmax.f32 %v535_v4, 0.0  ;;  %v538_v6 = vadd.f32 %v490_v56, %v1019_v60  ;;  %v395_v7 = vmax.f32 %v1060_v35, 0.0  ;;  %v539_v32 = vadd.f32 %v491_v57, %v1060_v35  ;;  %v495_v52 = vld [vmem:[%s923_s28 + $0xd8] sm:$0xff]  ;;  %v496_v17 = vld [vmem:[%s923_s28 + $0xe0] sm:$0xff] }
  0x34   : > { %628 = vst.msk [vmem:[%s930_s5 + $0x58] sm:$0xff] %vm616_vm0, %v579_v54  ;;  %629 = vst.msk [vmem:[%s930_s5 + $0x60] sm:$0xff] %vm616_vm0, %v580_v46  ;;  %v584_v59 = vmax.f32 %v536_v3, 0.0  ;;  %v585_v8 = vmax.f32 %v537_v24, 0.0  ;;  %v396_v63 = vmax.f32 %v1063_v36, 0.0  ;;  %v540_v60 = vadd.f32 %v492_v30, %v1063_v36  ;;  %v498_v31 = vld [vmem:[%s923_s28 + $0xf0] sm:$0xff] }
  0x35   : > { %630 = vst.msk [vmem:[%s930_s5 + $0x68] sm:$0xff] %vm616_vm0, %v581_v47  ;;  %442 = vst [vmem:[%s930_s5 + $0x90] sm:$0xff] %v394_v25  ;;  %v586_v35 = vmax.f32 %v538_v6, 0.0  ;;  %v587_v2 = vmax.f32 %v539_v32, 0.0  ;;  %v397_v33 = vmax.f32 %v1066_v37, 0.0  ;;  %v541_v40 = vadd.f32 %v493_v45, %v1066_v37  ;;  %v499_v56 = vld [vmem:[%s923_s28 + $0xf8] sm:$0xff] }
  0x36   : > { %631 = vst.msk [vmem:[%s930_s5 + $0x70] sm:$0xff] %vm616_vm0, %v582_v23  ;;  %443 = vst [vmem:[%s930_s5 + $0x98] sm:$0xff] %v395_v7  ;;  %v588_v5 = vmax.f32 %v540_v60, 0.0  ;;  %v350_v36 = vadd.f32 %v813_v1, %v1022_v61  ;;  %v351_v38 = vadd.f32 %v813_v1, %v1070_v62  ;;  %v297_v53 = vmul.f32 %v801_v0, %v933_v10  ;;  %v500_v6 = vld [vmem:[%s923_s28 + $0x100] sm:$0xff]  ;;  %v501_v7 = vld [vmem:[%s923_s28 + $0x108] sm:$0xff] }
  0x37   : > { %632 = vst.msk [vmem:[%s930_s5 + $0x78] sm:$0xff] %vm616_vm0, %v583_v9  ;;  %444 = vst [vmem:[%s930_s5 + $0xa0] sm:$0xff] %v396_v63  ;;  %v589_v37 = vmax.f32 %v541_v40, 0.0  ;;  %v298_v16 = vmul.f32 %v801_v0, %v936_v11  ;;  %v299_v61 = vmul.f32 %v801_v0, %v939_v12  ;;  %v300_v62 = vmul.f32 %v801_v0, %v942_v13  ;;  %v497_v11 = vld [vmem:[%s923_s28 + $0xe8] sm:$0xff] }
  0x38   : > { %633 = vst.msk [vmem:[%s930_s5 + $0x80] sm:$0xff] %vm616_vm0, %v584_v59  ;;  %634 = vst.msk [vmem:[%s930_s5 + $0x88] sm:$0xff] %vm616_vm0, %v585_v8  ;;  %v398_v10 = vmax.f32 %v350_v36, 0.0  ;;  %v542_v48 = vadd.f32 %v494_v43, %v350_v36  ;;  %v399_v49 = vmax.f32 %v351_v38, 0.0  ;;  %v543_v50 = vadd.f32 %v495_v52, %v351_v38  ;;  %v502_v52 = vld [vmem:[%s923_s28 + $0x110] sm:$0xff] }
  0x39   : > { %445 = vst [vmem:[%s930_s5 + $0xa8] sm:$0xff] %v397_v33  ;;  %635 = vst.msk [vmem:[%s930_s5 + $0x90] sm:$0xff] %vm616_vm0, %v586_v35  ;;  %v352_v12 = vadd.f32 %v813_v1, %v297_v53  ;;  %v353_v18 = vadd.f32 %v813_v1, %v298_v16  ;;  %v354_v13 = vadd.f32 %v813_v1, %v299_v61 }
  0x3a   : > { %636 = vst.msk [vmem:[%s930_s5 + $0x98] sm:$0xff] %vm616_vm0, %v587_v2  ;;  %637 = vst.msk [vmem:[%s930_s5 + $0xa0] sm:$0xff] %vm616_vm0, %v588_v5  ;;  %v355_v55 = vadd.f32 %v813_v1, %v300_v62  ;;  %v590_v57 = vmax.f32 %v542_v48, 0.0  ;;  %v591_v54 = vmax.f32 %v543_v50, 0.0  ;;  %v301_v46 = vmul.f32 %v801_v0, %v945_v14  ;;  %v503_v5 = vld [vmem:[%s923_s28 + $0x118] sm:$0xff]  ;;  %v504_v48 = vld [vmem:[%s923_s28 + $0x120] sm:$0xff] }
  0x3b   : > { %638 = vst.msk [vmem:[%s930_s5 + $0xa8] sm:$0xff] %vm616_vm0, %v589_v37  ;;  %446 = vst [vmem:[%s930_s5 + $0xb0] sm:$0xff] %v398_v10  ;;  %v302_v47 = vmul.f32 %v801_v0, %v948_v15  ;;  %v400_v4 = vmax.f32 %v352_v12, 0.0  ;;  %v544_v30 = vadd.f32 %v496_v17, %v352_v12  ;;  %v401_v23 = vmax.f32 %v353_v18, 0.0  ;;  %v506_v12 = vld [vmem:[%s923_s28 + $0x130] sm:$0xff] }
  0x3c   : > { %447 = vst [vmem:[%s930_s5 + $0xb8] sm:$0xff] %v399_v49  ;;  %v545_v3 = vadd.f32 %v497_v11, %v353_v18  ;;  %v402_v24 = vmax.f32 %v354_v13, 0.0  ;;  %v546_v25 = vadd.f32 %v498_v31, %v354_v13  ;;  %v403_v45 = vmax.f32 %v355_v55, 0.0  ;;  %639 = vst.msk [vmem:[%s930_s5 + $0xb0] sm:$0xff] %vm616_vm0, %v590_v57  ;;  %v505_v49 = vld [vmem:[%s923_s28 + $0x128] sm:$0xff]  ;;  %v507_v18 = vld [vmem:[%s923_s28 + $0x138] sm:$0xff] }
  0x3d   : > { %v547_v9 = vadd.f32 %v499_v56, %v355_v55  ;;  %640 = vst.msk [vmem:[%s930_s5 + $0xb8] sm:$0xff] %vm616_vm0, %v591_v54  ;;  %448 = vst [vmem:[%s930_s5 + $0xc0] sm:$0xff] %v400_v4  ;;  %v592_v14 = vmax.f32 %v544_v30, 0.0  ;;  %v356_v32 = vadd.f32 %v813_v1, %v301_v46  ;;  %v357_v59 = vadd.f32 %v813_v1, %v302_v47 }
  0x3e   : > { %449 = vst [vmem:[%s930_s5 + $0xc8] sm:$0xff] %v401_v23  ;;  %v593_v15 = vmax.f32 %v545_v3, 0.0  ;;  %450 = vst [vmem:[%s930_s5 + $0xd0] sm:$0xff] %v402_v24  ;;  %v594_v8 = vmax.f32 %v546_v25, 0.0  ;;  %v303_v60 = vmul.f32 %v801_v0, %v951_v19  ;;  %v304_v35 = vmul.f32 %v801_v0, %v954_v20  ;;  %v508_v3 = vld [vmem:[%s923_s28 + $0x140] sm:$0xff]  ;;  %v509_v24 = vld [vmem:[%s923_s28 + $0x148] sm:$0xff] }
  0x3f   : > { %451 = vst [vmem:[%s930_s5 + $0xd8] sm:$0xff] %v403_v45  ;;  %v595_v63 = vmax.f32 %v547_v9, 0.0  ;;  %v404_v2 = vmax.f32 %v356_v32, 0.0  ;;  %v548_v33 = vadd.f32 %v500_v6, %v356_v32  ;;  %v405_v40 = vmax.f32 %v357_v59, 0.0  ;;  %641 = vst.msk [vmem:[%s930_s5 + $0xc0] sm:$0xff] %vm616_vm0, %v592_v14 }
  0x40   : > { %v549_v43 = vadd.f32 %v501_v7, %v357_v59  ;;  %642 = vst.msk [vmem:[%s930_s5 + $0xc8] sm:$0xff] %vm616_vm0, %v593_v15  ;;  %v358_v36 = vadd.f32 %v813_v1, %v303_v60  ;;  %v359_v19 = vadd.f32 %v813_v1, %v304_v35  ;;  %v305_v20 = vmul.f32 %v801_v0, %v957_v21  ;;  %v511_v60 = vld [vmem:[%s923_s28 + $0x158] sm:$0xff] }
  0x41   : > { %v306_v38 = vmul.f32 %v801_v0, %v960_v22  ;;  %643 = vst.msk [vmem:[%s930_s5 + $0xd0] sm:$0xff] %vm616_vm0, %v594_v8  ;;  %644 = vst.msk [vmem:[%s930_s5 + $0xd8] sm:$0xff] %vm616_vm0, %v595_v63  ;;  %v596_v53 = vmax.f32 %v548_v33, 0.0  ;;  %v307_v16 = vmul.f32 %v801_v0, %v963_v26  ;;  %v308_v21 = vmul.f32 %v801_v0, %v966_v27  ;;  %v510_v63 = vld [vmem:[%s923_s28 + $0x150] sm:$0xff] }
  0x42   : > { %452 = vst [vmem:[%s930_s5 + $0xe0] sm:$0xff] %v404_v2  ;;  %453 = vst [vmem:[%s930_s5 + $0xe8] sm:$0xff] %v405_v40  ;;  %v597_v37 = vmax.f32 %v549_v43, 0.0  ;;  %v406_v22 = vmax.f32 %v358_v36, 0.0  ;;  %v550_v61 = vadd.f32 %v502_v52, %v358_v36  ;;  %v407_v62 = vmax.f32 %v359_v19, 0.0 }
  0x43   : > { %v551_v10 = vadd.f32 %v503_v5, %v359_v19  ;;  %v360_v50 = vadd.f32 %v813_v1, %v305_v20  ;;  %v361_v17 = vadd.f32 %v813_v1, %v306_v38  ;;  %v362_v11 = vadd.f32 %v813_v1, %v307_v16  ;;  %645 = vst.msk [vmem:[%s930_s5 + $0xe0] sm:$0xff] %vm616_vm0, %v596_v53  ;;  %v512_v19 = vld [vmem:[%s923_s28 + $0x160] sm:$0xff]  ;;  %v513_v20 = vld [vmem:[%s923_s28 + $0x168] sm:$0xff]  ;;  %v514_v16 = vld [vmem:[%s923_s28 + $0x170] sm:$0xff] }
  0x44   : > { %v363_v26 = vadd.f32 %v813_v1, %v308_v21  ;;  %646 = vst.msk [vmem:[%s930_s5 + $0xe8] sm:$0xff] %vm616_vm0, %v597_v37  ;;  %454 = vst [vmem:[%s930_s5 + $0xf0] sm:$0xff] %v406_v22  ;;  %v598_v27 = vmax.f32 %v550_v61, 0.0  ;;  %v309_v31 = vmul.f32 %v801_v0, %v969_v28  ;;  %v310_v55 = vmul.f32 %v801_v0, %v972_v29  ;;  %v515_v21 = vld [vmem:[%s923_s28 + $0x178] sm:$0xff] }
  0x45   : > { %455 = vst [vmem:[%s930_s5 + $0xf8] sm:$0xff] %v407_v62  ;;  %v599_v13 = vmax.f32 %v551_v10, 0.0  ;;  %v408_v56 = vmax.f32 %v360_v50, 0.0  ;;  %v552_v57 = vadd.f32 %v504_v48, %v360_v50  ;;  %v409_v54 = vmax.f32 %v361_v17, 0.0  ;;  %v1367_v62 = vld [vmem:[#allocation2_spill] sm:$0xff] }
  0x46   : > { %v553_v46 = vadd.f32 %v505_v49, %v361_v17  ;;  %v410_v47 = vmax.f32 %v362_v11, 0.0  ;;  %v554_v4 = vadd.f32 %v506_v12, %v362_v11  ;;  %v411_v30 = vmax.f32 %v363_v26, 0.0  ;;  %647 = vst.msk [vmem:[%s930_s5 + $0xf0] sm:$0xff] %vm616_vm0, %v598_v27  ;;  %v516_v27 = vld [vmem:[%s923_s28 + $0x180] sm:$0xff] }
  0x47   : > { %v555_v23 = vadd.f32 %v507_v18, %v363_v26  ;;  %648 = vst.msk [vmem:[%s930_s5 + $0xf8] sm:$0xff] %vm616_vm0, %v599_v13  ;;  %456 = vst [vmem:[%s930_s5 + $0x100] sm:$0xff] %v408_v56  ;;  %v600_v28 = vmax.f32 %v552_v57, 0.0  ;;  %v364_v25 = vadd.f32 %v813_v1, %v309_v31  ;;  %v365_v45 = vadd.f32 %v813_v1, %v310_v55  ;;  %v517_v13 = vld [vmem:[%s923_s28 + $0x188] sm:$0xff] }
  0x48   : > { %457 = vst [vmem:[%s930_s5 + $0x108] sm:$0xff] %v409_v54  ;;  %v601_v29 = vmax.f32 %v553_v46, 0.0  ;;  %458 = vst [vmem:[%s930_s5 + $0x110] sm:$0xff] %v410_v47  ;;  %v602_v9 = vmax.f32 %v554_v4, 0.0  ;;  %v311_v7 = vmul.f32 %v801_v0, %v975_v34  ;;  %v312_v14 = vmul.f32 %v801_v0, %v978_v39  ;;  %v1368_v46 = vld [vmem:[#allocation3_spill] sm:$0xff]  ;;  %v1369_v4 = vld [vmem:[#allocation4_spill] sm:$0xff] }
  0x49   : > { %459 = vst [vmem:[%s930_s5 + $0x118] sm:$0xff] %v411_v30  ;;  %v603_v6 = vmax.f32 %v555_v23, 0.0  ;;  %v412_v15 = vmax.f32 %v364_v25, 0.0  ;;  %v556_v32 = vadd.f32 %v508_v3, %v364_v25  ;;  %v413_v59 = vmax.f32 %v365_v45, 0.0  ;;  %649 = vst.msk [vmem:[%s930_s5 + $0x100] sm:$0xff] %vm616_vm0, %v600_v28  ;;  %v519_v25 = vld [vmem:[%s923_s28 + $0x198] sm:$0xff] }
  0x4a   : > { %v557_v8 = vadd.f32 %v509_v24, %v365_v45  ;;  %650 = vst.msk [vmem:[%s930_s5 + $0x108] sm:$0xff] %vm616_vm0, %v601_v29  ;;  %v366_v35 = vadd.f32 %v813_v1, %v311_v7  ;;  %v367_v34 = vadd.f32 %v813_v1, %v312_v14  ;;  %v313_v39 = vmul.f32 %v801_v0, %v981_v41  ;;  %v518_v29 = vld [vmem:[%s923_s28 + $0x190] sm:$0xff] }
  0x4b   : > { %v314_v2 = vmul.f32 %v801_v0, %v984_v42  ;;  %651 = vst.msk [vmem:[%s930_s5 + $0x110] sm:$0xff] %vm616_vm0, %v602_v9  ;;  %652 = vst.msk [vmem:[%s930_s5 + $0x118] sm:$0xff] %vm616_vm0, %v603_v6  ;;  %v604_v33 = vmax.f32 %v556_v32, 0.0  ;;  %v315_v43 = vmul.f32 %v801_v0, %v991_v51  ;;  %v316_v41 = vmul.f32 %v801_v0, %v994_v58 }
  0x4c   : > { %460 = vst [vmem:[%s930_s5 + $0x120] sm:$0xff] %v412_v15  ;;  %461 = vst [vmem:[%s930_s5 + $0x128] sm:$0xff] %v413_v59  ;;  %v605_v40 = vmax.f32 %v557_v8, 0.0  ;;  %v414_v42 = vmax.f32 %v366_v35, 0.0  ;;  %v558_v52 = vadd.f32 %v510_v63, %v366_v35  ;;  %v415_v5 = vmax.f32 %v367_v34, 0.0 }
  0x4d   : > { %v559_v36 = vadd.f32 %v511_v60, %v367_v34  ;;  %v368_v38 = vadd.f32 %v813_v1, %v313_v39  ;;  %v369_v53 = vadd.f32 %v813_v1, %v314_v2  ;;  %v370_v37 = vadd.f32 %v813_v1, %v315_v43  ;;  %653 = vst.msk [vmem:[%s930_s5 + $0x120] sm:$0xff] %vm616_vm0, %v604_v33 }
  0x4e   : > { %v371_v51 = vadd.f32 %v813_v1, %v316_v41  ;;  %654 = vst.msk [vmem:[%s930_s5 + $0x128] sm:$0xff] %vm616_vm0, %v605_v40  ;;  %462 = vst [vmem:[%s930_s5 + $0x130] sm:$0xff] %v414_v42  ;;  %v606_v58 = vmax.f32 %v558_v52, 0.0  ;;  %v317_v61 = vmul.f32 %v801_v0, %v997_v44  ;;  %v318_v10 = vmul.f32 %v801_v0, %v1367_v62 }
  0x4f   : > { %463 = vst [vmem:[%s930_s5 + $0x138] sm:$0xff] %v415_v5  ;;  %v607_v22 = vmax.f32 %v559_v36, 0.0  ;;  %v416_v48 = vmax.f32 %v368_v38, 0.0  ;;  %v560_v49 = vadd.f32 %v512_v19, %v368_v38  ;;  %v417_v50 = vmax.f32 %v369_v53, 0.0 }
  0x50   : > { %v561_v17 = vadd.f32 %v513_v20, %v369_v53  ;;  %v418_v11 = vmax.f32 %v370_v37, 0.0  ;;  %v562_v12 = vadd.f32 %v514_v16, %v370_v37  ;;  %v419_v26 = vmax.f32 %v371_v51, 0.0  ;;  %655 = vst.msk [vmem:[%s930_s5 + $0x130] sm:$0xff] %vm616_vm0, %v606_v58 }
  0x51   : > { %v563_v18 = vadd.f32 %v515_v21, %v371_v51  ;;  %656 = vst.msk [vmem:[%s930_s5 + $0x138] sm:$0xff] %vm616_vm0, %v607_v22  ;;  %464 = vst [vmem:[%s930_s5 + $0x140] sm:$0xff] %v416_v48  ;;  %v608_v44 = vmax.f32 %v560_v49, 0.0  ;;  %v372_v55 = vadd.f32 %v813_v1, %v317_v61  ;;  %v373_v56 = vadd.f32 %v813_v1, %v318_v10 }
  0x52   : > { %465 = vst [vmem:[%s930_s5 + $0x148] sm:$0xff] %v417_v50  ;;  %v609_v31 = vmax.f32 %v561_v17, 0.0  ;;  %466 = vst [vmem:[%s930_s5 + $0x150] sm:$0xff] %v418_v11  ;;  %v610_v57 = vmax.f32 %v562_v12, 0.0  ;;  %v319_v47 = vmul.f32 %v801_v0, %v1368_v46  ;;  %v320_v30 = vmul.f32 %v801_v0, %v1369_v4 }
  0x53   : > { %467 = vst [vmem:[%s930_s5 + $0x158] sm:$0xff] %v419_v26  ;;  %v611_v54 = vmax.f32 %v563_v18, 0.0  ;;  %v420_v23 = vmax.f32 %v372_v55, 0.0  ;;  %v564_v3 = vadd.f32 %v516_v27, %v372_v55  ;;  %v421_v24 = vmax.f32 %v373_v56, 0.0  ;;  %657 = vst.msk [vmem:[%s930_s5 + $0x140] sm:$0xff] %vm616_vm0, %v608_v44 }
  0x54   : > { %v565_v28 = vadd.f32 %v517_v13, %v373_v56  ;;  %658 = vst.msk [vmem:[%s930_s5 + $0x148] sm:$0xff] %vm616_vm0, %v609_v31  ;;  %v374_v45 = vadd.f32 %v813_v1, %v319_v47  ;;  %v375_v9 = vadd.f32 %v813_v1, %v320_v30  ;;  %659 = vst.msk [vmem:[%s930_s5 + $0x150] sm:$0xff] %vm616_vm0, %v610_v57 }
  0x55   : > { %660 = vst.msk [vmem:[%s930_s5 + $0x158] sm:$0xff] %vm616_vm0, %v611_v54  ;;  %468 = vst [vmem:[%s930_s5 + $0x160] sm:$0xff] %v420_v23  ;;  %v612_v0 = vmax.f32 %v564_v3, 0.0 }
  0x56   : > { %469 = vst [vmem:[%s930_s5 + $0x168] sm:$0xff] %v421_v24  ;;  %v613_v6 = vmax.f32 %v565_v28, 0.0  ;;  %v422_v7 = vmax.f32 %v374_v45, 0.0  ;;  %v566_v14 = vadd.f32 %v518_v29, %v374_v45  ;;  %v423_v15 = vmax.f32 %v375_v9, 0.0 }
  0x57   : > { %v567_v32 = vadd.f32 %v519_v25, %v375_v9  ;;  %661 = vst.msk [vmem:[%s930_s5 + $0x160] sm:$0xff] %vm616_vm0, %v612_v0 }
  0x58   : > { %662 = vst.msk [vmem:[%s930_s5 + $0x168] sm:$0xff] %vm616_vm0, %v613_v6  ;;  %470 = vst [vmem:[%s930_s5 + $0x170] sm:$0xff] %v422_v7  ;;  %v614_v1 = vmax.f32 %v566_v14, 0.0 }
  0x59   : > { %471 = vst [vmem:[%s930_s5 + $0x178] sm:$0xff] %v423_v15  ;;  %v615_v59 = vmax.f32 %v567_v32, 0.0 }
  0x5a   : > { %663 = vst.msk [vmem:[%s930_s5 + $0x170] sm:$0xff] %vm616_vm0, %v614_v1 }
  0x5b   : > { %664 = vst.msk [vmem:[%s930_s5 + $0x178] sm:$0xff] %vm616_vm0, %v615_v59 }
  0x5c PF: > { %s14_s15 = sadd.s32 1, %s760_s15  }
  0x5d   : > { %p11_p4 = scmp.ge.s32.totalorder %s14_s15, 4  }
  0x5f   :  { %13 = sbr.rel (!%p11_p4) target bundleno = 1 (0x1), region = 69 }

// kernel: basic_block_forward.3
= control target key start
LH: loop header
LB: loop body
LE: loop exit
PB: predicated region body
PF: predicated region fallthrough
CT: control target
= control target key end

     0   :  { %s3106_s15 = smov 0   ;;  %s4536_s0 = inlined_call_operand.vmem [shape: f32[2,448,16], index: 0, kind: input, shape index: {}]   ;;  %s4537_s1 = inlined_call_operand.vmem [shape: bf16[144,128], index: 1, kind: input, shape index: {}]   ;;  %s4538_s2 = inlined_call_operand.vmem [shape: bf16[2,384,128], index: 2, kind: output, shape index: {0}]   ;;  %s4539_s3 = inlined_call_operand.vmem [shape: f32[2,1,128], index: 3, kind: output, shape index: {1}]   ;;  %s4540_s4 = inlined_call_operand.vmem [shape: f32[2,1,128], index: 4, kind: output, shape index: {2}]  }
   0x1 LB: > { %s2739_s16 = sadd.s32 4294967295, %s3071_s15   ;;  %p2743_p0 = scmp.ge.s32.totalorder %s3071_s15, 1  ;;  %s3071_s15 = sphi %s3106_s15, %s15_s15  }
   0x2   : > { %p167_p1 = scmp.lt.s32.totalorder %s3071_s15, 3 }
   0x4   : > { %p168_p2 = pnand %p2743_p0, %p167_p1 }
   0x6   : > { %171 = sbr.rel (%p168_p2) target bundleno = 712 (0x2c8), region = 28 }
   0xd   : > { %p199_p3 = scmp.lt.s32.totalorder %s2739_s16, 1  ;;  %v3056_v0 = vld [vmem:[%s4537_s1] sm:$0xff]   ;;  %v3073_v1 = vmov 0   ;;  %v3057_v2 = vld [vmem:[%s4537_s1 + $0x8] sm:$0xff]   ;;  %v3058_v3 = vld [vmem:[%s4537_s1 + $0x10] sm:$0xff]   ;;  %s3074_s27 = smov 48  }
   0xe   : > { %1952 = vmatprep.subr.bf16.mxu0 %v3073_v1  ;;  %3020 = vmatprep.subr.bf16.mxu1 %v3073_v1  ;;  %s3075_s28 = smov 16   ;;  %v3059_v19 = vld [vmem:[%s4537_s1 + $0x18] sm:$0xff]   ;;  %vm288_vm0 = vcmask 130048   ;;  %v3060_v23 = vld [vmem:[%s4537_s1 + $0x20] sm:$0xff]   ;;  %s3076_s7 = smov 64   ;;  %vm481_vm1 = vcmask 261248  }
   0xf   : > { %s4582_s16 = smov (!%p199_p3, %s2739_s16), 1  ;;  %1953 = vmatpush1.bf16.msra.mxu0 %v3056_v0  ;;  %3029 = vmatpush1.bf16.msra.mxu1 %v3056_v0  ;;  %s3077_s8 = smov 32   ;;  %vm674_vm2 = vcmask 392448   ;;  %vm867_vm3 = vcmask 523648   ;;  %vm1060_vm4 = vcmask 654848   ;;  %vm1253_vm5 = vcmask 786048  }
  0x10   : > { %1954 = vmatprep.subr.bf16.mxu0 %v3073_v1  ;;  %3021 = vmatprep.subr.bf16.mxu1 %v3073_v1  ;;  %s3038_s21 = smul.u32 448, %s4582_s16  ;;  %s3078_s9 = smov 96   ;;  %vm1446_vm6 = vcmask 917248   ;;  %vm1639_vm7 = vcmask 1048448  }
  0x11   : > { %s3079_s10 = smov 80   ;;  %s3080_s11 = smov 112  }
  0x12   : > { %s3130_s24 = scalar_lea.vmem %s4536_s0, %s3038_s21  ;;  %s3039_s22 = smul.u32 192, %s4582_s16 }
  0x13   : > { %1955 = vmatpush1.bf16.msra.mxu0 %v3057_v2  ;;  %3030 = vmatpush1.bf16.msra.mxu1 %v3057_v2  ;;  %v3136_v4 = vld [vmem:[%s3130_s24 + $0x1f] sm:$0xff]  ;;  %v3139_v5 = vld [vmem:[%s3130_s24 + $0x27] sm:$0xff]  ;;  %v314_v8 = vld [vmem:[%s3130_s24 + $0x10] sm:$0xff]  ;;  %s214_s5 = scalar_lea.vmem %s4540_s4, %s4582_s16 }
  0x14   : > { %v313_v6 = vld [vmem:[%s3130_s24 + $0x8] sm:$0xff]  ;;  %1956 = vmatprep.subr.bf16.mxu0 %v3073_v1  ;;  %3022 = vmatprep.subr.bf16.mxu1 %v3073_v1  ;;  %v747_v7 = vpack.c.bf16 %v3139_v5, %v3136_v4  ;;  %v3148_v9 = vld [vmem:[%s3130_s24 + $0x20] sm:$0xff]  ;;  %v507_v13 = vld [vmem:[%s3130_s24 + $0x11] sm:$0xff]  ;;  %s4383_s25 = scalar_lea.vmem %s4538_s2, %s3039_s22 }
  0x15   : > { %v3151_v10 = vld [vmem:[%s3130_s24 + $0x28] sm:$0xff]  ;;  %v361_v11 = vpack.c.bf16 %v314_v8, %v313_v6  ;;  %v3156_v14 = vld [vmem:[%s3130_s24 + $0x37] sm:$0xff]  ;;  %v3162_v16 = vld [vmem:[%s3130_s24 + $0x3f] sm:$0xff] }
  0x16   : > { %v506_v12 = vld [vmem:[%s3130_s24 + $0x9] sm:$0xff]  ;;  %795 = vrot.lane.b32.xlu1 %v747_v7, %s3074_s27  ;;  %v940_v15 = vpack.c.bf16 %v3151_v10, %v3148_v9  ;;  %v1326_v18 = vpack.c.bf16 %v3162_v16, %v3156_v14  ;;  %v3172_v20 = vld [vmem:[%s3130_s24 + $0x21] sm:$0xff]  ;;  %v315_v22 = vld [vmem:[%s3130_s24 + $0x18] sm:$0xff] }
  0x17   : > { %1957 = vmatpush1.bf16.msra.mxu0 %v3058_v3  ;;  %409 = vrot.lane.b32.xlu0 %v361_v11, %s3075_s28  ;;  %v554_v17 = vpack.c.bf16 %v507_v13, %v506_v12  ;;  %v3175_v21 = vld [vmem:[%s3130_s24 + $0x29] sm:$0xff]  ;;  %v3185_v24 = vld [vmem:[%s3130_s24 + $0x39] sm:$0xff]  ;;  %v3207_v31 = vld [vmem:[%s3130_s24 + $0x41] sm:$0xff]  ;;  %v362_v38 = vpack.c.bf16 %v3148_v9, %v315_v22 }
  0x18   : > { %1958 = vmatprep.subr.bf16.mxu0 %v3073_v1  ;;  %3031 = vmatpush1.bf16.msra.mxu1 %v3058_v3  ;;  %292 = vst.msk [vmem:[#allocation2 + $0x30] sm:$0xff] %vm288_vm0, %v1326_v18  ;;  %v3188_v25 = vld [vmem:[%s3130_s24 + $0x47] sm:$0xff]  ;;  %v3191_v26 = vld [vmem:[%s3130_s24 + $0x4f] sm:$0xff]  ;;  %v1133_v27 = vpack.c.bf16 %v3175_v21, %v3172_v20  ;;  %v3201_v29 = vld [vmem:[%s3130_s24 + $0x57] sm:$0xff]  ;;  %v3221_v35 = vpack.c.bf16 %v3207_v31, %v3185_v24 }
  0x19   : > { %3023 = vmatprep.subr.bf16.mxu1 %v3073_v1  ;;  %v3198_v28 = vpack.c.bf16 %v3191_v26, %v3188_v25  ;;  %v3204_v30 = vld [vmem:[%s3130_s24 + $0x5f] sm:$0xff]  ;;  %v3225_v36 = vld [vmem:[%s3130_s24 + $0x49] sm:$0xff]  ;;  %v3228_v37 = vld [vmem:[%s3130_s24 + $0x51] sm:$0xff] }
  0x1a   : > { %988 = vrot.lane.b32.xlu1 %v940_v15, %s3076_s7  ;;  %v3210_v32 = vld [vmem:[%s3130_s24 + $0x38] sm:$0xff]  ;;  %v3213_v33 = vld [vmem:[%s3130_s24 + $0x40] sm:$0xff]  ;;  %v3217_v34 = vpack.c.bf16 %v3204_v30, %v3201_v29  ;;  %v3239_v40 = vld [vmem:[%s3130_s24 + $0x6f] sm:$0xff]  ;;  %v3243_v41 = vpack.c.bf16 %v3228_v37, %v3225_v36  ;;  %1736 = vst.msk [vmem:[#allocation2 + $0x8] sm:$0xff] %vm288_vm0, %v3221_v35 }
  0x1b   : > { %602 = vrot.lane.b32.xlu0 %v554_v17, %s3077_s8  ;;  %1959 = vmatpush1.bf16.msra.mxu0 %v3059_v19  ;;  %293 = vst.msk [vmem:[#allocation2 + $0x40] sm:$0xff] %vm288_vm0, %v3198_v28  ;;  %v3236_v39 = vld [vmem:[%s3130_s24 + $0x67] sm:$0xff]  ;;  %v3252_v42 = vpack.c.bf16 %v3213_v33, %v3210_v32  ;;  %v701_v43 = vld [vmem:[%s3130_s24 + $0x2f] sm:$0xff]  ;;  %v3256_v44 = vld [vmem:[%s3130_s24 + $0x59] sm:$0xff] }
  0x1c   : > { %1960 = vmatprep.subr.bf16.mxu0 %v3073_v1  ;;  %3032 = vmatpush1.bf16.msra.mxu1 %v3059_v19  ;;  %294 = vst.msk [vmem:[#allocation2 + $0x50] sm:$0xff] %vm288_vm0, %v3217_v34  ;;  %v3260_v45 = vpack.c.bf16 %v3239_v40, %v3236_v39  ;;  %v3263_v46 = vld [vmem:[%s3130_s24 + $0x61] sm:$0xff]  ;;  %v508_v47 = vld [vmem:[%s3130_s24 + $0x19] sm:$0xff]  ;;  %1737 = vst.msk [vmem:[#allocation2 + $0x18] sm:$0xff] %vm288_vm0, %v3243_v41  ;;  %v748_v51 = vpack.c.bf16 %v3156_v14, %v701_v43 }
  0x1d   : > { %3024 = vmatprep.subr.bf16.mxu1 %v3073_v1  ;;  %v3268_v48 = vpack.c.bf16 %v3263_v46, %v3256_v44  ;;  %v3274_v49 = vld [vmem:[%s3130_s24 + $0x69] sm:$0xff]  ;;  %v3277_v50 = vld [vmem:[%s3130_s24 + $0x71] sm:$0xff]  ;;  %v555_v53 = vpack.c.bf16 %v3172_v20, %v508_v47  ;;  %v266_v55 = vpack.c.bf16 %v701_v43, %v3139_v5  ;;  %v3302_v58 = vld [vmem:[%s3130_s24 + $0x79] sm:$0xff] }
  0x1e   : > { %1374 = vrot.lane.b32.xlu1 %v1326_v18, %s3078_s9  ;;  %295 = vst.msk [vmem:[#allocation2 + $0x60] sm:$0xff] %vm288_vm0, %v3260_v45  ;;  %v3286_v52 = vpack.c.bf16 %v3277_v50, %v3274_v49  ;;  %v1087_v54 = vld [vmem:[%s3130_s24 + $0x31] sm:$0xff]  ;;  %v3305_v59 = vld [vmem:[%s3130_s24 + $0x81] sm:$0xff]  ;;  %v3308_v60 = vld [vmem:[%s3130_s24 + $0x89] sm:$0xff] }
  0x1f   : > { %1181 = vrot.lane.b32.xlu0 %v1133_v27, %s3079_s10  ;;  %1961 = vmatpush1.bf16.msra.mxu0 %v3060_v23  ;;  %1738 = vst.msk [vmem:[#allocation2 + $0x28] sm:$0xff] %vm288_vm0, %v3268_v48  ;;  %v894_v56 = vld [vmem:[%s3130_s24 + $0x30] sm:$0xff]  ;;  %291 = vst.msk [vmem:[#allocation2 + $0x20] sm:$0xff] %vm288_vm0, %v266_v55  ;;  %v1134_v57 = vpack.c.bf16 %v3185_v24, %v1087_v54  ;;  %v1473_v62 = vld [vmem:[%s3130_s24 + $0x48] sm:$0xff]  ;;  %v1139_v0 = vpack.c.bf16 %v3308_v60, %v3305_v59 }
  0x20   : > { %1962 = vmatprep.subr.bf16.mxu0 %v3073_v1  ;;  %3033 = vmatpush1.bf16.msra.mxu1 %v3060_v23  ;;  %1739 = vst.msk [vmem:[#allocation2 + $0x38] sm:$0xff] %vm288_vm0, %v3286_v52  ;;  %v941_v61 = vpack.c.bf16 %v3210_v32, %v894_v56  ;;  %v3314_v63 = vld [vmem:[%s3130_s24 + $0x50] sm:$0xff]  ;;  %v3320_v2 = vpack.c.bf16 %v3305_v59, %v3302_v58  ;;  %v216_v5 = vld [vmem:[%s3130_s24 + $0x7] sm:$0xff]  ;;  %v3351_v17 = vld [vmem:[%s3130_s24 + $0x99] sm:$0xff] }
  0x21   : > { %3025 = vmatprep.subr.bf16.mxu1 %v3073_v1  ;;  %v3326_v3 = vpack.c.bf16 %v3314_v63, %v1473_v62  ;;  %v217_v6 = vld [vmem:[%s3130_s24 + $0xf] sm:$0xff]  ;;  %v218_v11 = vld [vmem:[%s3130_s24 + $0x17] sm:$0xff]  ;;  %v556_v12 = vpack.c.bf16 %v1087_v54, %v3175_v21  ;;  %v363_v14 = vpack.c.bf16 %v894_v56, %v3151_v10  ;;  %v942_v19 = vpack.c.bf16 %v1473_v62, %v3213_v33  ;;  %v3374_v22 = vld [vmem:[%s3130_s24 + $0x101] sm:$0xff] }
  0x22   : > { %411 = vrot.lane.b32.xlu1 %v362_v38, %s3075_s28  ;;  %1740 = vst.msk [vmem:[#allocation2 + $0x48] sm:$0xff] %vm288_vm0, %v3320_v2  ;;  %v264_v7 = vpack.c.bf16 %v217_v6, %v216_v5  ;;  %v3061_v8 = vld [vmem:[%s4537_s1 + $0x28] sm:$0xff]   ;;  %v3062_v9 = vld [vmem:[%s4537_s1 + $0x30] sm:$0xff]   ;;  %v265_v13 = vpack.c.bf16 %v3136_v4, %v218_v11  ;;  %v3063_v10 = vld [vmem:[%s4537_s1 + $0x38] sm:$0xff]   ;;  %v749_v21 = vpack.c.bf16 %v3188_v25, %v3162_v16 }
  0x23   : > { %1567 = vrot.lane.b32.xlu0 %v3252_v42, %s3080_s11  ;;  %1963 = vmatpush1.bf16.msra.mxu0 %v3061_v8  ;;  %v3348_v15 = vld [vmem:[%s3130_s24 + $0x91] sm:$0xff]  ;;  %v1761_v20 = vld [vmem:[#allocation2 + $0x8] sm:$0xff]  ;;  %v3064_v24 = vld [vmem:[%s4537_s1 + $0x40] sm:$0xff]   ;;  %v1135_v32 = vpack.c.bf16 %v3225_v36, %v3207_v31  ;;  %v750_v31 = vpack.c.bf16 %v3201_v29, %v3191_v26  ;;  %v1136_v26 = vpack.c.bf16 %v3256_v44, %v3228_v37 }
  0x24   : > { %289 = vst.msk [vmem:[#allocation2] sm:$0xff] %vm288_vm0, %v264_v7  ;;  %3034 = vmatpush1.bf16.msra.mxu1 %v3061_v8  ;;  %1964 = vmatprep.subr.bf16.mxu0 %v3073_v1  ;;  %290 = vst.msk [vmem:[#allocation2 + $0x10] sm:$0xff] %vm288_vm0, %v265_v13  ;;  %v1140_v18 = vpack.c.bf16 %v3351_v17, %v3348_v15  ;;  %v3359_v4 = vpack.c.bf16 %v3348_v15, %v3308_v60  ;;  %v3377_v23 = vld [vmem:[%s3130_s24 + $0x109] sm:$0xff]  ;;  %v1475_v33 = vld [vmem:[%s3130_s24 + $0x58] sm:$0xff] }
  0x25   : > { %3026 = vmatprep.subr.bf16.mxu1 %v3073_v1  ;;  %2755 = vmatprep.mubr.msk.bf16.mxu0 %vm288_vm0, %v1761_v20  ;;  %v3389_v16 = vld [vmem:[%s3130_s24 + $0xa9] sm:$0xff]  ;;  %v1476_v38 = vld [vmem:[%s3130_s24 + $0x60] sm:$0xff]  ;;  %v943_v29 = vpack.c.bf16 %v1475_v33, %v3314_v63  ;;  %v3444_v44 = vld [vmem:[%s3130_s24 + $0xb1] sm:$0xff]  ;;  %v751_v56 = vpack.c.bf16 %v3236_v39, %v3204_v30  ;;  %v1138_v8 = vpack.c.bf16 %v3302_v58, %v3277_v50 }
  0x26   : > { %797 = vrot.lane.b32.xlu1 %v748_v51, %s3074_s27  ;;  %1741 = vst.msk [vmem:[#allocation2 + $0x58] sm:$0xff] %vm288_vm0, %v3359_v4  ;;  %v1521_v43 = vpack.c.bf16 %v1476_v38, %v1475_v33  ;;  %v1478_v47 = vld [vmem:[%s3130_s24 + $0x70] sm:$0xff]  ;;  %v3441_v37 = vld [vmem:[%s3130_s24 + $0x119] sm:$0xff]  ;;  %v3462_v62 = vld [vmem:[%s3130_s24 + $0xc7] sm:$0xff] }
  0x27   : > { %604 = vrot.lane.b32.xlu0 %v555_v53, %s3077_s8  ;;  %1965 = vmatpush1.bf16.msra.mxu0 %v3062_v9  ;;  %v3449_v54 = vld [vmem:[%s3130_s24 + $0xb9] sm:$0xff]  ;;  %v3465_v63 = vld [vmem:[%s3130_s24 + $0xcf] sm:$0xff]  ;;  %v1300_v60 = vld [vmem:[%s3130_s24 + $0xe7] sm:$0xff] }
  0x28   : > { %3035 = vmatpush1.bf16.msra.mxu1 %v3062_v9  ;;  %1966 = vmatprep.subr.bf16.mxu0 %v3073_v1  ;;  %v1479_v30 = vld [vmem:[%s3130_s24 + $0x78] sm:$0xff]  ;;  %v1480_v39 = vld [vmem:[%s3130_s24 + $0x80] sm:$0xff]  ;;  %v1481_v9 = vld [vmem:[%s3130_s24 + $0x88] sm:$0xff] }
  0x29   : > { %3027 = vmatprep.subr.bf16.mxu1 %v3073_v1  ;;  %v3481_v6 = vpack.c.bf16 %v1480_v39, %v1479_v30  ;;  %v3502_v11 = vld [vmem:[%s3130_s24 + $0x90] sm:$0xff]  ;;  %v3519_v58 = vld [vmem:[%s3130_s24 + $0xc8] sm:$0xff]  ;;  %v3617_v59 = vld [vmem:[%s3130_s24 + $0xa0] sm:$0xff] }
  0x2a   : > { %1183 = vrot.lane.b32.xlu1 %v1134_v57, %s3079_s10  ;;  %v1286_v57 = vld [vmem:[%s3130_s24 + $0x77] sm:$0xff]  ;;  %v3510_v13 = vld [vmem:[%s3130_s24 + $0x8f] sm:$0xff]  ;;  %v3749_v15 = vld [vmem:[%s3130_s24 + $0x15f] sm:$0xff] }
  0x2b   : > { %990 = vrot.lane.b32.xlu0 %v941_v61, %s3076_s7  ;;  %1967 = vmatpush1.bf16.msra.mxu0 %v3063_v10  ;;  %v1287_v61 = vld [vmem:[%s3130_s24 + $0x7f] sm:$0xff]  ;;  %v752_v7 = vpack.c.bf16 %v1286_v57, %v3239_v40  ;;  %v945_v40 = vpack.c.bf16 %v1479_v30, %v1478_v47  ;;  %v531_v20 = vld [vmem:[%s3130_s24 + $0xd1] sm:$0xff]  ;;  %4553 = vst [vmem:[#allocation6_spill] sm:$0xff] %v3749_v15 }
  0x2c   : > { %3036 = vmatpush1.bf16.msra.mxu1 %v3063_v10  ;;  %1968 = vmatprep.subr.bf16.mxu0 %v3073_v1  ;;  %v1330_v5 = vpack.c.bf16 %v1287_v61, %v1286_v57  ;;  %v3566_v57 = vld [vmem:[%s3130_s24 + $0xf7] sm:$0xff] }
  0x2d   : > { %3028 = vmatprep.subr.bf16.mxu1 %v3073_v1  ;;  %v3410_v1 = vld [vmem:[%s3130_s24 + $0xf9] sm:$0xff]  ;;  %v3673_v53 = vld [vmem:[%s3130_s24 + $0xf0] sm:$0xff] }
  0x2e   : > { %1569 = vrot.lane.b32.xlu1 %v3326_v3, %s3080_s11  ;;  %v3414_v36 = vpack.c.bf16 %v3374_v22, %v3410_v1  ;;  %v3575_v30 = vld [vmem:[%s3130_s24 + $0xd7] sm:$0xff] }
  0x2f   : > { %1376 = vrot.lane.b32.xlu0 %v3198_v28, %s3078_s9  ;;  %v3386_v28 = vld [vmem:[%s3130_s24 + $0xa1] sm:$0xff]  ;;  %1969 = vmatpush1.bf16.msra.mxu0 %v3064_v24  ;;  %v3746_v25 = vld [vmem:[%s3130_s24 + $0x157] sm:$0xff] }
  0x30   : > { %3037 = vmatpush1.bf16.msra.mxu1 %v3064_v24  ;;  %1748 = vst.msk [vmem:[#allocation2 + $0xc8] sm:$0xff] %vm288_vm0, %v3414_v36  ;;  %v3536_v24 = vld [vmem:[%s3130_s24 + $0x129] sm:$0xff]  ;;  %v3761_v27 = vpack.c.bf16 %v3749_v15, %v3746_v25 }
  0x32   : > { %606 = vrot.lane.b32.xlu1 %v556_v12, %s3077_s8  ;;  %v1288_v12 = vld [vmem:[%s3130_s24 + $0x87] sm:$0xff]  ;;  %310 = vst.msk [vmem:[#allocation2 + $0x150] sm:$0xff] %vm288_vm0, %v3761_v27 }
  0x33   : > { %413 = vrot.lane.b32.xlu0 %v363_v14, %s3075_s28  ;;  %v1331_v50 = vpack.c.bf16 %v3510_v13, %v1288_v12  ;;  %v338_v14 = vld [vmem:[%s3130_s24 + $0xd0] sm:$0xff] }
  0x34   : > { %v3525_v10 = vpack.c.bf16 %v338_v14, %v3519_v58 }
  0x36   : > { %992 = vrot.lane.b32.xlu1 %v942_v19, %s3076_s7  ;;  %v3529_v19 = vld [vmem:[%s3130_s24 + $0xc9] sm:$0xff] }
  0x37   : > { %799 = vrot.lane.b32.xlu0 %v749_v21, %s3074_s27  ;;  %v3533_v21 = vld [vmem:[%s3130_s24 + $0x121] sm:$0xff]  ;;  %v566_v33 = vpack.c.bf16 %v531_v20, %v3529_v19 }
  0x3a   : > { %1378 = vrot.lane.b32.xlu1 %v3217_v34, %s3078_s9  ;;  %v3418_v34 = vpack.c.bf16 %v3386_v28, %v3351_v17 }
  0x3b   : > { %1185 = vrot.lane.b32.xlu0 %v1135_v32, %s3079_s10 }
  0x3c   : > { %1742 = vst.msk [vmem:[#allocation2 + $0x68] sm:$0xff] %vm288_vm0, %v3418_v34 }
  0x3e   : > { %415 = vrot.lane.b32.xlu1 %v3252_v42, %s3075_s28  ;;  %v1477_v42 = vld [vmem:[%s3130_s24 + $0x68] sm:$0xff] }
  0x3f   : > { %1571 = vrot.lane.b32.xlu0 %v1521_v43, %s3080_s11  ;;  %v1522_v51 = vpack.c.bf16 %v1478_v47, %v1477_v42  ;;  %v944_v55 = vpack.c.bf16 %v1477_v42, %v1476_v38  ;;  %v3545_v38 = vld [vmem:[%s3130_s24 + $0xdf] sm:$0xff]  ;;  %v3554_v42 = vld [vmem:[%s3130_s24 + $0xe8] sm:$0xff] }
  0x42   : > { %801 = vrot.lane.b32.xlu1 %v750_v31, %s3074_s27 }
  0x43   : > { %608 = vrot.lane.b32.xlu0 %v3221_v35, %s3077_s8  ;;  %v3438_v35 = vld [vmem:[%s3130_s24 + $0x111] sm:$0xff] }
  0x46   : > { %1187 = vrot.lane.b32.xlu1 %v1136_v26, %s3079_s10  ;;  %v753_v26 = vpack.c.bf16 %v1288_v12, %v1287_v61  ;;  %v230_v61 = vld [vmem:[%s3130_s24 + $0x77] sm:$0xff] }
  0x47   : > { %994 = vrot.lane.b32.xlu0 %v943_v29, %s3076_s7  ;;  %v916_v29 = vld [vmem:[%s3130_s24 + $0xe0] sm:$0xff] }
  0x48   : > { %v952_v47 = vpack.c.bf16 %v3554_v42, %v916_v29 }
  0x4a   : > { %1573 = vrot.lane.b32.xlu1 %v1522_v51, %s3080_s11 }
  0x4b   : > { %1380 = vrot.lane.b32.xlu0 %v3260_v45, %s3078_s9  ;;  %v1301_v45 = vld [vmem:[%s3130_s24 + $0xef] sm:$0xff] }
  0x4e   : > { %610 = vrot.lane.b32.xlu1 %v3243_v41, %s3077_s8  ;;  %v3470_v41 = vpack.c.bf16 %v3465_v63, %v3462_v62 }
  0x4f   : > { %417 = vrot.lane.b32.xlu0 %v3326_v3, %s3075_s28  ;;  %v1137_v3 = vpack.c.bf16 %v3274_v49, %v3263_v46  ;;  %v3489_v46 = vpack.c.bf16 %v3438_v35, %v3377_v23  ;;  %v3493_v49 = vpack.c.bf16 %v3444_v44, %v3389_v16 }
  0x50   : > { %301 = vst.msk [vmem:[#allocation2 + $0xc0] sm:$0xff] %vm288_vm0, %v3470_v41 }
  0x51   : > { %1743 = vst.msk [vmem:[#allocation2 + $0x78] sm:$0xff] %vm288_vm0, %v3493_v49  ;;  %1749 = vst.msk [vmem:[#allocation2 + $0xd8] sm:$0xff] %vm288_vm0, %v3489_v46 }
  0x52   : > { %996 = vrot.lane.b32.xlu1 %v944_v55, %s3076_s7  ;;  %v1109_v55 = vld [vmem:[%s3130_s24 + $0xe1] sm:$0xff] }
  0x53   : > { %803 = vrot.lane.b32.xlu0 %v751_v56, %s3074_s27  ;;  %v3561_v56 = vld [vmem:[%s3130_s24 + $0xe9] sm:$0xff] }
  0x56   : > { %1382 = vrot.lane.b32.xlu1 %v1330_v5, %s3078_s9  ;;  %v231_v5 = vld [vmem:[%s3130_s24 + $0x7f] sm:$0xff] }
  0x57   : > { %1189 = vrot.lane.b32.xlu0 %v1137_v3, %s3079_s10  ;;  %v3572_v3 = vld [vmem:[%s3130_s24 + $0xff] sm:$0xff] }
  0x58   : > { %v1338_v20 = vpack.c.bf16 %v3572_v3, %v3566_v57 }
  0x5a   : > { %419 = vrot.lane.b32.xlu1 %v1521_v43, %s3075_s28  ;;  %v724_v43 = vld [vmem:[%s3130_s24 + $0xe7] sm:$0xff] }
  0x5b   : > { %1575 = vrot.lane.b32.xlu0 %v3481_v6, %s3080_s11  ;;  %v759_v31 = vpack.c.bf16 %v724_v43, %v3545_v38  ;;  %v1495_v43 = vld [vmem:[%s3130_s24 + $0xf8] sm:$0xff] }
  0x5e   : > { %805 = vrot.lane.b32.xlu1 %v752_v7, %s3074_s27  ;;  %v271_v7 = vpack.c.bf16 %v231_v5, %v230_v61  ;;  %v532_v5 = vld [vmem:[%s3130_s24 + $0xd9] sm:$0xff] }
  0x5f   : > { %612 = vrot.lane.b32.xlu0 %v3268_v48, %s3077_s8  ;;  %v3514_v48 = vpack.c.bf16 %v3502_v11, %v1481_v9 }
  0x60   : > { %296 = vst.msk [vmem:[#allocation2 + $0x70] sm:$0xff] %vm288_vm0, %v271_v7  ;;  %v3642_v7 = vld [vmem:[%s3130_s24 + $0x139] sm:$0xff] }
  0x62   : > { %1191 = vrot.lane.b32.xlu1 %v1138_v8, %s3079_s10  ;;  %v3579_v8 = vld [vmem:[%s3130_s24 + $0x97] sm:$0xff] }
  0x63   : > { %998 = vrot.lane.b32.xlu0 %v945_v40, %s3076_s7  ;;  %v3582_v40 = vld [vmem:[%s3130_s24 + $0x9f] sm:$0xff] }
  0x66   : > { %1577 = vrot.lane.b32.xlu1 %v3514_v48, %s3080_s11 }
  0x67   : > { %1384 = vrot.lane.b32.xlu0 %v1331_v50, %s3078_s9  ;;  %v3591_v50 = vpack.c.bf16 %v3533_v21, %v3441_v37 }
  0x69   : > { %1750 = vst.msk [vmem:[#allocation2 + $0xe8] sm:$0xff] %vm288_vm0, %v3591_v50 }
  0x6a   : > { %433 = vrot.lane.b32.xlu1 %v3525_v10, %s3075_s28 }
  0x6b   : > { %421 = vrot.lane.b32.xlu0 %v1522_v51, %s3075_s28  ;;  %v946_v51 = vpack.c.bf16 %v1481_v9, %v1480_v39  ;;  %v243_v39 = vld [vmem:[%s3130_s24 + $0xdf] sm:$0xff] }
  0x6c   : > { %v3585_v9 = vld [vmem:[%s3130_s24 + $0xc1] sm:$0xff]  ;;  %v277_v12 = vpack.c.bf16 %v243_v39, %v3575_v30  ;;  %v3639_v39 = vld [vmem:[%s3130_s24 + $0x131] sm:$0xff] }
  0x6d   : > { %v3595_v14 = vpack.c.bf16 %v3585_v9, %v3449_v54 }
  0x6e   : > { %626 = vrot.lane.b32.xlu1 %v566_v33, %s3077_s8  ;;  %302 = vst.msk [vmem:[#allocation2 + $0xd0] sm:$0xff] %vm288_vm0, %v277_v12  ;;  %v1332_v33 = vpack.c.bf16 %v3582_v40, %v3579_v8 }
  0x6f   : > { %614 = vrot.lane.b32.xlu0 %v3286_v52, %s3077_s8  ;;  %v1145_v52 = vpack.c.bf16 %v3561_v56, %v1109_v55  ;;  %1744 = vst.msk [vmem:[#allocation2 + $0x88] sm:$0xff] %vm288_vm0, %v3595_v14 }
  0x72   : > { %819 = vrot.lane.b32.xlu1 %v759_v31, %s3074_s27  ;;  %v3609_v31 = vld [vmem:[%s3130_s24 + $0x100] sm:$0xff] }
  0x73   : > { %807 = vrot.lane.b32.xlu0 %v753_v26, %s3074_s27  ;;  %v1785_v26 = vld [vmem:[#allocation2 + $0xc8] sm:$0xff] }
  0x74   : > { %2767 = vmatprep.mubr.msk.bf16.mxu1 %vm288_vm0, %v1785_v26  ;;  %v3652_v26 = vld [vmem:[%s3130_s24 + $0x147] sm:$0xff] }
  0x75   : > { %4550 = vst [vmem:[#allocation3_spill] sm:$0xff] %v3652_v26 }
  0x76   : > { %1012 = vrot.lane.b32.xlu1 %v952_v47, %s3076_s7  ;;  %v1483_v47 = vld [vmem:[%s3130_s24 + $0x98] sm:$0xff] }
  0x77   : > { %1000 = vrot.lane.b32.xlu0 %v946_v51, %s3076_s7  ;;  %v3628_v51 = vpack.c.bf16 %v3617_v59, %v1483_v47 }
  0x7a   : > { %1205 = vrot.lane.b32.xlu1 %v1145_v52, %s3079_s10  ;;  %v339_v52 = vld [vmem:[%s3130_s24 + $0xd8] sm:$0xff] }
  0x7b   : > { %1193 = vrot.lane.b32.xlu0 %v1139_v0, %s3079_s10  ;;  %v3624_v0 = vpack.c.bf16 %v3609_v31, %v1495_v43  ;;  %v3633_v61 = vpack.c.bf16 %v916_v29, %v339_v52  ;;  %v725_v29 = vld [vmem:[%s3130_s24 + $0xef] sm:$0xff] }
  0x7c   : > { %v3655_v52 = vld [vmem:[%s3130_s24 + $0x14f] sm:$0xff] }
  0x7d   : > { %v3660_v12 = vpack.c.bf16 %v3655_v52, %v3652_v26  ;;  %v1763_v26 = vld [vmem:[#allocation2 + $0x18] sm:$0xff] }
  0x7e   : > { %1398 = vrot.lane.b32.xlu1 %v1338_v20, %s3078_s9  ;;  %v567_v20 = vpack.c.bf16 %v1109_v55, %v532_v5  ;;  %v3666_v55 = vpack.c.bf16 %v1301_v45, %v1300_v60  ;;  %v754_v5 = vpack.c.bf16 %v3579_v8, %v3510_v13  ;;  %v947_v13 = vpack.c.bf16 %v1483_v47, %v3502_v11  ;;  %v232_v47 = vld [vmem:[%s3130_s24 + $0x87] sm:$0xff] }
  0x7f   : > { %1386 = vrot.lane.b32.xlu0 %v1332_v33, %s3078_s9  ;;  %309 = vst.msk [vmem:[#allocation2 + $0x140] sm:$0xff] %vm288_vm0, %v3660_v12  ;;  %v3695_v11 = vpack.c.bf16 %v3639_v39, %v3536_v24 }
  0x80   : > { %4551 = vst [vmem:[#allocation4_spill] sm:$0xff] %v3666_v55  ;;  %303 = vst.msk [vmem:[#allocation2 + $0xe0] sm:$0xff] %vm288_vm0, %v3666_v55 }
  0x81   : > { %4552 = vst [vmem:[#allocation5_spill] sm:$0xff] %v3695_v11  ;;  %1751 = vst.msk [vmem:[#allocation2 + $0xf8] sm:$0xff] %vm288_vm0, %v3695_v11 }
  0x82   : > { %1591 = vrot.lane.b32.xlu1 %v3624_v0, %s3080_s11 }
  0x83   : > { %1579 = vrot.lane.b32.xlu0 %v3628_v51, %s3080_s11 }
  0x86   : > { %435 = vrot.lane.b32.xlu1 %v3633_v61, %s3075_s28 }
  0x87   : > { %423 = vrot.lane.b32.xlu0 %v3481_v6, %s3075_s28  ;;  %v760_v6 = vpack.c.bf16 %v3566_v57, %v725_v29  ;;  %v3686_v57 = vld [vmem:[%s3130_s24 + $0xf1] sm:$0xff]  ;;  %v3702_v29 = vld [vmem:[%s3130_s24 + $0x107] sm:$0xff] }
  0x88   : > { %v796_v33 = vpop.permute.xlu1 %795 }
  0x89   : > { %v410_v32 = vpop.permute.xlu0 %409 }
  0x8a   : > { %482 = vst.msk [vmem:[#allocation2] sm:$0xff] %vm481_vm1, %v410_v32  ;;  %628 = vrot.lane.b32.xlu1 %v567_v20, %s3077_s8  ;;  %v233_v20 = vld [vmem:[%s3130_s24 + $0x8f] sm:$0xff] }
  0x8b   : > { %616 = vrot.lane.b32.xlu0 %v3320_v2, %s3077_s8  ;;  %v953_v2 = vpack.c.bf16 %v1495_v43, %v3673_v53  ;;  %v1146_v43 = vpack.c.bf16 %v3410_v1, %v3686_v57 }
  0x8c   : > { %v989_v32 = vpop.permute.xlu1 %988 }
  0x8d   : > { %v603_v45 = vpop.permute.xlu0 %602 }
  0x8e   : > { %675 = vst.msk [vmem:[#allocation2] sm:$0xff] %vm674_vm2, %v603_v45  ;;  %821 = vrot.lane.b32.xlu1 %v760_v6, %s3074_s27  ;;  %v272_v6 = vpack.c.bf16 %v233_v20, %v232_v47  ;;  %v3734_v20 = vld [vmem:[%s3130_s24 + $0xa8] sm:$0xff] }
  0x8f   : > { %868 = vst.msk [vmem:[#allocation2] sm:$0xff] %vm867_vm3, %v796_v33  ;;  %809 = vrot.lane.b32.xlu0 %v754_v5, %s3074_s27  ;;  %v3705_v33 = vld [vmem:[%s3130_s24 + $0x10f] sm:$0xff]  ;;  %v3708_v5 = vld [vmem:[%s3130_s24 + $0xa7] sm:$0xff] }
  0x90   : > { %v1375_v8 = vpop.permute.xlu1 %1374  ;;  %1061 = vst.msk [vmem:[#allocation2] sm:$0xff] %vm1060_vm4, %v989_v32  ;;  %v3711_v32 = vld [vmem:[%s3130_s24 + $0xaf] sm:$0xff] }
  0x91   : > { %v1182_v60 = vpop.permute.xlu0 %1181  ;;  %297 = vst.msk [vmem:[#allocation2 + $0x80] sm:$0xff] %vm288_vm0, %v272_v6  ;;  %v3737_v6 = vld [vmem:[%s3130_s24 + $0xb0] sm:$0xff] }
  0x92   : > { %1254 = vst.msk [vmem:[#allocation2] sm:$0xff] %vm1253_vm5, %v1182_v60  ;;  %1014 = vrot.lane.b32.xlu1 %v953_v2, %s3076_s7  ;;  %v1339_v2 = vpack.c.bf16 %v3705_v33, %v3702_v29  ;;  %v3731_v60 = vld [vmem:[%s3130_s24 + $0x110] sm:$0xff] }
  0x93   : > { %1002 = vrot.lane.b32.xlu0 %v947_v13, %s3076_s7  ;;  %1447 = vst.msk [vmem:[#allocation2] sm:$0xff] %vm1446_vm6, %v1375_v8  ;;  %v1333_v13 = vpack.c.bf16 %v3711_v32, %v3708_v5  ;;  %v3728_v8 = vld [vmem:[%s3130_s24 + $0x108] sm:$0xff] }
  0x94   : > { %v412_v1 = vpop.permute.xlu1 %411  ;;  %v3755_v17 = vpack.c.bf16 %v3731_v60, %v3728_v8 }
  0x95   : > { %483 = vst.msk [vmem:[#allocation2 + $0x10] sm:$0xff] %vm481_vm1, %v412_v1  ;;  %v1568_v45 = vpop.permute.xlu0 %1567 }
  0x96   : > { %1640 = vst.msk [vmem:[#allocation2] sm:$0xff] %vm1639_vm7, %v1568_v45  ;;  %1207 = vrot.lane.b32.xlu1 %v1146_v43, %s3079_s10  ;;  %v3740_v43 = vld [vmem:[%s3130_s24 + $0x141] sm:$0xff]  ;;  %v3743_v45 = vld [vmem:[%s3130_s24 + $0x149] sm:$0xff] }
  0x97   : > { %1195 = vrot.lane.b32.xlu0 %v1140_v18, %s3079_s10 }
  0x98   : > { %v798_v47 = vpop.permute.xlu1 %797 }
  0x99   : > { %v605_v1 = vpop.permute.xlu0 %604 }
  0x9a   : > { %676 = vst.msk [vmem:[#allocation2 + $0x10] sm:$0xff] %vm674_vm2, %v605_v1  ;;  %1400 = vrot.lane.b32.xlu1 %v1339_v2, %s3078_s9  ;;  %v3767_v1 = vpack.c.bf16 %v3737_v6, %v3734_v20 }
  0x9b   : > { %869 = vst.msk [vmem:[#allocation2 + $0x10] sm:$0xff] %vm867_vm3, %v798_v47  ;;  %1388 = vrot.lane.b32.xlu0 %v1333_v13, %s3078_s9  ;;  %v375_v13 = vpack.c.bf16 %v3673_v53, %v3554_v42  ;;  %v568_v42 = vpack.c.bf16 %v3686_v57, %v3561_v56  ;;  %v761_v56 = vpack.c.bf16 %v3702_v29, %v3572_v3  ;;  %v3896_v57 = vld [vmem:[%s3130_s24 + $0x177] sm:$0xff] }
  0x9c   : > { %v1184_v2 = vpop.permute.xlu1 %1183  ;;  %v948_v29 = vpack.c.bf16 %v3734_v20, %v3617_v59  ;;  %v234_v59 = vld [vmem:[%s3130_s24 + $0x97] sm:$0xff]  ;;  %v235_v20 = vld [vmem:[%s3130_s24 + $0x9f] sm:$0xff] }
  0x9d   : > { %v991_v11 = vpop.permute.xlu0 %990  ;;  %v1760_v55 = vld [vmem:[#allocation2] sm:$0xff] }
  0x9e   : > { %1062 = vst.msk [vmem:[#allocation2 + $0x10] sm:$0xff] %vm1060_vm4, %v991_v11  ;;  %1985 = vmatmul.mubr.bf16.vlgmr.msra.gmra.mrb[0].mxu0 %v1760_v55  ;;  %1593 = vrot.lane.b32.xlu1 %v3755_v17, %s3080_s11  ;;  %v3782_v55 = vpack.c.bf16 %v3740_v43, %v3642_v7  ;;  %v3813_v11 = vld [vmem:[%s3130_s24 + $0x167] sm:$0xff] }
  0x9f   : > { %1255 = vst.msk [vmem:[#allocation2 + $0x10] sm:$0xff] %vm1253_vm5, %v1184_v2  ;;  %1581 = vrot.lane.b32.xlu0 %v3767_v1, %s3080_s11  ;;  %2756 = vmatprep.mubr.msk.bf16.mxu0 %vm288_vm0, %v1763_v26  ;;  %v3796_v2 = vld [vmem:[%s3130_s24 + $0x151] sm:$0xff]  ;;  %4555 = vst [vmem:[#allocation8_spill] sm:$0xff] %v3813_v11 }
  0xa0   : > { %v1570_v47 = vpop.permute.xlu1 %1569  ;;  %4554 = vst [vmem:[#allocation7_spill] sm:$0xff] %v3782_v55  ;;  %1752 = vst.msk [vmem:[#allocation2 + $0x108] sm:$0xff] %vm288_vm0, %v3782_v55  ;;  %v1765_v55 = vld [vmem:[#allocation2 + $0x28] sm:$0xff] }
  0xa1   : > { %v1377_v18 = vpop.permute.xlu0 %1376 }
  0xa2   : > { %1448 = vst.msk [vmem:[#allocation2 + $0x10] sm:$0xff] %vm1446_vm6, %v1377_v18  ;;  %437 = vrot.lane.b32.xlu1 %v375_v13, %s3075_s28  ;;  %v3799_v13 = vld [vmem:[%s3130_s24 + $0x159] sm:$0xff] }
  0xa3   : > { %1641 = vst.msk [vmem:[#allocation2 + $0x10] sm:$0xff] %vm1639_vm7, %v1570_v47  ;;  %425 = vrot.lane.b32.xlu0 %v3514_v48, %s3075_s28  ;;  %v755_v48 = vpack.c.bf16 %v3708_v5, %v3582_v40  ;;  %v954_v40 = vpack.c.bf16 %v3728_v8, %v3609_v31  ;;  %v3836_v8 = vld [vmem:[%s3130_s24 + $0x117] sm:$0xff] }
  0xa4   : > { %v607_v26 = vpop.permute.xlu1 %606 }
  0xa5   : > { %v414_v18 = vpop.permute.xlu0 %413 }
  0xa6   : > { %484 = vst.msk [vmem:[#allocation2 + $0x20] sm:$0xff] %vm481_vm1, %v414_v18  ;;  %630 = vrot.lane.b32.xlu1 %v568_v42, %s3077_s8  ;;  %v3816_v18 = vld [vmem:[%s3130_s24 + $0x16f] sm:$0xff] }
  0xa7   : > { %677 = vst.msk [vmem:[#allocation2 + $0x20] sm:$0xff] %vm674_vm2, %v607_v26  ;;  %618 = vrot.lane.b32.xlu0 %v3359_v4, %s3077_s8  ;;  %v3820_v3 = vpack.c.bf16 %v3816_v18, %v3813_v11  ;;  %v3840_v26 = vpack.c.bf16 %v3796_v2, %v3743_v45  ;;  %v1767_v11 = vld [vmem:[#allocation2 + $0x38] sm:$0xff] }
  0xa8   : > { %v993_v47 = vpop.permute.xlu1 %992 }
  0xa9   : > { %v800_v42 = vpop.permute.xlu0 %799  ;;  %4556 = vst [vmem:[#allocation9_spill] sm:$0xff] %v3820_v3  ;;  %311 = vst.msk [vmem:[#allocation2 + $0x160] sm:$0xff] %vm288_vm0, %v3820_v3 }
  0xaa   : > { %870 = vst.msk [vmem:[#allocation2 + $0x20] sm:$0xff] %vm867_vm3, %v800_v42  ;;  %823 = vrot.lane.b32.xlu1 %v761_v56, %s3074_s27  ;;  %v1762_v4 = vld [vmem:[#allocation2 + $0x10] sm:$0xff]  ;;  %4557 = vst [vmem:[#allocation10_spill] sm:$0xff] %v3840_v26  ;;  %v3847_v56 = vld [vmem:[%s3130_s24 + $0x11f] sm:$0xff] }
  0xab   : > { %1063 = vst.msk [vmem:[#allocation2 + $0x20] sm:$0xff] %vm1060_vm4, %v993_v47  ;;  %811 = vrot.lane.b32.xlu0 %v755_v48, %s3074_s27  ;;  %1993 = vmatmul.mubr.bf16.gmra.mrb[4].mxu0 %v1762_v4  ;;  %v247_v48 = vld [vmem:[%s3130_s24 + $0xff] sm:$0xff]  ;;  %v273_v47 = vpack.c.bf16 %v235_v20, %v234_v59  ;;  %v3852_v4 = vld [vmem:[%s3130_s24 + $0xb7] sm:$0xff]  ;;  %v4558_v59 = vpack.c.bf16 %v3377_v23, %v3374_v22 }
  0xac   : > { %v1379_v5 = vpop.permute.xlu1 %1378  ;;  %2757 = vmatprep.mubr.msk.bf16.mxu0 %vm288_vm0, %v1765_v55  ;;  %v246_v55 = vld [vmem:[%s3130_s24 + $0xf7] sm:$0xff]  ;;  %1753 = vst.msk [vmem:[#allocation2 + $0x118] sm:$0xff] %vm288_vm0, %v3840_v26  ;;  %v1340_v20 = vpack.c.bf16 %v3847_v56, %v3836_v8  ;;  %v3887_v23 = vld [vmem:[%s3130_s24 + $0xc0] sm:$0xff] }
  0xad   : > { %v1186_v31 = vpop.permute.xlu0 %1185  ;;  %298 = vst.msk [vmem:[#allocation2 + $0x90] sm:$0xff] %vm288_vm0, %v273_v47  ;;  %v3878_v47 = vld [vmem:[%s3130_s24 + $0x118] sm:$0xff] }
  0xae   : > { %1256 = vst.msk [vmem:[#allocation2 + $0x20] sm:$0xff] %vm1253_vm5, %v1186_v31  ;;  %1016 = vrot.lane.b32.xlu1 %v954_v40, %s3076_s7  ;;  %v3855_v40 = vld [vmem:[%s3130_s24 + $0xbf] sm:$0xff]  ;;  %v279_v31 = vpack.c.bf16 %v247_v48, %v246_v55  ;;  %v4559_v55 = vpack.c.bf16 %v3389_v16, %v3386_v28 }
  0xaf   : > { %1449 = vst.msk [vmem:[#allocation2 + $0x20] sm:$0xff] %vm1446_vm6, %v1379_v5  ;;  %1004 = vrot.lane.b32.xlu0 %v948_v29, %s3076_s7  ;;  %v1334_v48 = vpack.c.bf16 %v3855_v40, %v3852_v4  ;;  %v3884_v22 = vld [vmem:[%s3130_s24 + $0xb8] sm:$0xff]  ;;  %v3893_v5 = vld [vmem:[%s3130_s24 + $0x169] sm:$0xff] }
  0xb0   : > { %v416_v42 = vpop.permute.xlu1 %415  ;;  %304 = vst.msk [vmem:[#allocation2 + $0xf0] sm:$0xff] %vm288_vm0, %v279_v31  ;;  %v3899_v28 = vld [vmem:[%s3130_s24 + $0x17f] sm:$0xff] }
  0xb1   : > { %485 = vst.msk [vmem:[#allocation2 + $0x30] sm:$0xff] %vm481_vm1, %v416_v42  ;;  %v1572_v29 = vpop.permute.xlu0 %1571  ;;  %v3881_v42 = vld [vmem:[%s3130_s24 + $0x120] sm:$0xff]  ;;  %4560 = vst [vmem:[#allocation11_spill] sm:$0xff] %v3899_v28  ;;  %v3911_v15 = vpack.c.bf16 %v3899_v28, %v3896_v57 }
  0xb2   : > { %1642 = vst.msk [vmem:[#allocation2 + $0x20] sm:$0xff] %vm1639_vm7, %v1572_v29  ;;  %1209 = vrot.lane.b32.xlu1 %v4558_v59, %s3079_s10  ;;  %v3890_v59 = vld [vmem:[%s3130_s24 + $0x161] sm:$0xff]  ;;  %v3905_v16 = vpack.c.bf16 %v3881_v42, %v3878_v47 }
  0xb3   : > { %1197 = vrot.lane.b32.xlu0 %v4559_v55, %s3079_s10  ;;  %312 = vst.msk [vmem:[#allocation2 + $0x170] sm:$0xff] %vm288_vm0, %v3911_v15  ;;  %v3930_v55 = vpack.c.bf16 %v3890_v59, %v3799_v13 }
  0xb4   : > { %v802_v29 = vpop.permute.xlu1 %801 }
  0xb5   : > { %v609_v31 = vpop.permute.xlu0 %608  ;;  %1754 = vst.msk [vmem:[#allocation2 + $0x128] sm:$0xff] %vm288_vm0, %v3930_v55 }
  0xb6   : > { %678 = vst.msk [vmem:[#allocation2 + $0x30] sm:$0xff] %vm674_vm2, %v609_v31  ;;  %1402 = vrot.lane.b32.xlu1 %v1340_v20, %s3078_s9  ;;  %v3917_v31 = vpack.c.bf16 %v3887_v23, %v3884_v22 }
  0xb7   : > { %871 = vst.msk [vmem:[#allocation2 + $0x30] sm:$0xff] %vm867_vm3, %v802_v29  ;;  %1390 = vrot.lane.b32.xlu0 %v1334_v48, %s3078_s9 }
  0xb8   : > { %v1188_v20 = vpop.permute.xlu1 %1187 }
  0xb9   : > { %v995_v26 = vpop.permute.xlu0 %994  ;;  %v1764_v3 = vld [vmem:[#allocation2 + $0x20] sm:$0xff] }
  0xba   : > { %1064 = vst.msk [vmem:[#allocation2 + $0x30] sm:$0xff] %vm1060_vm4, %v995_v26  ;;  %2001 = vmatmul.mubr.bf16.gmra.mrb[8].mxu0 %v1764_v3  ;;  %1595 = vrot.lane.b32.xlu1 %v3905_v16, %s3080_s11 }
  0xbb   : > { %1257 = vst.msk [vmem:[#allocation2 + $0x30] sm:$0xff] %vm1253_vm5, %v1188_v20  ;;  %1583 = vrot.lane.b32.xlu0 %v3917_v31, %s3080_s11  ;;  %2758 = vmatprep.mubr.msk.bf16.mxu0 %vm288_vm0, %v1767_v11  ;;  %v3943_v20 = vld [vmem:[%s3130_s24 + $0x171] sm:$0xff] }
  0xbc   : > { %v1574_v48 = vpop.permute.xlu1 %1573 }
  0xbd   : > { %v1381_v29 = vpop.permute.xlu0 %1380 }
  0xbe   : > { %1450 = vst.msk [vmem:[#allocation2 + $0x30] sm:$0xff] %vm1446_vm6, %v1381_v29  ;;  %439 = vrot.lane.b32.xlu1 %v3624_v0, %s3075_s28  ;;  %v3946_v29 = vld [vmem:[%s3130_s24 + $0x179] sm:$0xff]  ;;  %v762_v0 = vpack.c.bf16 %v3836_v8, %v3705_v33  ;;  %v955_v33 = vpack.c.bf16 %v3878_v47, %v3731_v60  ;;  %v3965_v8 = vld [vmem:[%s3130_s24 + $0xd1] sm:$0xff]  ;;  %v1308_v47 = vld [vmem:[%s3130_s24 + $0x127] sm:$0xff] }
  0xbf   : > { %1643 = vst.msk [vmem:[#allocation2 + $0x30] sm:$0xff] %vm1639_vm7, %v1574_v48  ;;  %427 = vrot.lane.b32.xlu0 %v3628_v51, %s3075_s28  ;;  %v1154_v51 = vpack.c.bf16 %v3946_v29, %v3943_v20  ;;  %v756_v48 = vpack.c.bf16 %v3852_v4, %v3711_v32  ;;  %v949_v32 = vpack.c.bf16 %v3884_v22, %v3737_v6  ;;  %v237_v6 = vld [vmem:[%s3130_s24 + $0xaf] sm:$0xff] }
  0xc0   : > { %v611_v11 = vpop.permute.xlu1 %610  ;;  %v3987_v22 = vld [vmem:[%s3130_s24 + $0x12f] sm:$0xff] }
  0xc1   : > { %v418_v26 = vpop.permute.xlu0 %417 }
  0xc2   : > { %486 = vst.msk [vmem:[#allocation2 + $0x40] sm:$0xff] %vm481_vm1, %v418_v26  ;;  %632 = vrot.lane.b32.xlu1 %v3414_v36, %s3077_s8  ;;  %v1769_v26 = vld [vmem:[#allocation2 + $0x48] sm:$0xff] }
  0xc3   : > { %679 = vst.msk [vmem:[#allocation2 + $0x40] sm:$0xff] %vm674_vm2, %v611_v11  ;;  %620 = vrot.lane.b32.xlu0 %v3418_v34, %s3077_s8  ;;  %v1682_v34 = vld [vmem:[%s3130_s24 + $0xc9] sm:$0xff] }
  0xc4   : > { %v997_v3 = vpop.permute.xlu1 %996  ;;  %v1721_v4 = vpack.c.bf16 %v3965_v8, %v1682_v34  ;;  %v236_v11 = vld [vmem:[%s3130_s24 + $0xa7] sm:$0xff] }
  0xc5   : > { %v804_v28 = vpop.permute.xlu0 %803 }
  0xc6   : > { %872 = vst.msk [vmem:[#allocation2 + $0x40] sm:$0xff] %vm867_vm3, %v804_v28  ;;  %825 = vrot.lane.b32.xlu1 %v762_v0, %s3074_s27  ;;  %v1766_v36 = vld [vmem:[#allocation2 + $0x30] sm:$0xff]  ;;  %v248_v0 = vld [vmem:[%s3130_s24 + $0x107] sm:$0xff] }
  0xc7   : > { %1065 = vst.msk [vmem:[#allocation2 + $0x40] sm:$0xff] %vm1060_vm4, %v997_v3  ;;  %813 = vrot.lane.b32.xlu0 %v756_v48, %s3074_s27  ;;  %2009 = vmatmul.mubr.bf16.gmra.mrb[12].mxu0 %v1766_v36  ;;  %v3980_v3 = vpack.c.bf16 %v3943_v20, %v3893_v5  ;;  %v249_v48 = vld [vmem:[%s3130_s24 + $0x10f] sm:$0xff]  ;;  %v1709_v20 = vld [vmem:[%s3130_s24 + $0x1a1] sm:$0xff] }
  0xc8   : > { %v1383_v28 = vpop.permute.xlu1 %1382  ;;  %2759 = vmatprep.mubr.msk.bf16.mxu0 %vm288_vm0, %v1769_v26  ;;  %1745 = vst.msk [vmem:[#allocation2 + $0x98] sm:$0xff] %vm288_vm0, %v1721_v4  ;;  %v274_v26 = vpack.c.bf16 %v237_v6, %v236_v11  ;;  %v1341_v4 = vpack.c.bf16 %v3987_v22, %v1308_v47  ;;  %v4008_v11 = vld [vmem:[%s3130_s24 + $0x130] sm:$0xff] }
  0xc9   : > { %v1190_v60 = vpop.permute.xlu0 %1189  ;;  %1755 = vst.msk [vmem:[#allocation2 + $0x138] sm:$0xff] %vm288_vm0, %v3980_v3 }
  0xca   : > { %1258 = vst.msk [vmem:[#allocation2 + $0x40] sm:$0xff] %vm1253_vm5, %v1190_v60  ;;  %1018 = vrot.lane.b32.xlu1 %v955_v33, %s3076_s7  ;;  %v280_v33 = vpack.c.bf16 %v249_v48, %v248_v0  ;;  %v1501_v60 = vld [vmem:[%s3130_s24 + $0x128] sm:$0xff] }
  0xcb   : > { %1451 = vst.msk [vmem:[#allocation2 + $0x40] sm:$0xff] %vm1446_vm6, %v1383_v28  ;;  %1006 = vrot.lane.b32.xlu0 %v949_v32, %s3076_s7  ;;  %v4561_v32 = vpack.c.bf16 %v3441_v37, %v3438_v35  ;;  %v4562_v28 = vpack.c.bf16 %v3449_v54, %v3444_v44  ;;  %v4013_v35 = vpack.c.bf16 %v4008_v11, %v1501_v60  ;;  %v1771_v44 = vld [vmem:[#allocation2 + $0x58] sm:$0xff] }
  0xcc   : > { %v420_v36 = vpop.permute.xlu1 %419  ;;  %299 = vst.msk [vmem:[#allocation2 + $0xa0] sm:$0xff] %vm288_vm0, %v274_v26  ;;  %305 = vst.msk [vmem:[#allocation2 + $0x100] sm:$0xff] %vm288_vm0, %v280_v33 }
  0xcd   : > { %487 = vst.msk [vmem:[#allocation2 + $0x50] sm:$0xff] %vm481_vm1, %v420_v36  ;;  %v1576_v34 = vpop.permute.xlu0 %1575  ;;  %v4026_v36 = vld [vmem:[%s3130_s24 + $0x181] sm:$0xff] }
  0xce   : > { %1644 = vst.msk [vmem:[#allocation2 + $0x40] sm:$0xff] %vm1639_vm7, %v1576_v34  ;;  %1211 = vrot.lane.b32.xlu1 %v4561_v32, %s3079_s10  ;;  %v4030_v33 = vpack.c.bf16 %v4026_v36, %v3946_v29 }
  0xcf   : > { %1199 = vrot.lane.b32.xlu0 %v4562_v28, %s3079_s10  ;;  %v1773_v28 = vld [vmem:[#allocation2 + $0x68] sm:$0xff] }
  0xd0   : > { %v806_v6 = vpop.permute.xlu1 %805  ;;  %1756 = vst.msk [vmem:[#allocation2 + $0x148] sm:$0xff] %vm288_vm0, %v4030_v33 }
  0xd1   : > { %v613_v0 = vpop.permute.xlu0 %612 }
  0xd2   : > { %680 = vst.msk [vmem:[#allocation2 + $0x50] sm:$0xff] %vm674_vm2, %v613_v0  ;;  %1404 = vrot.lane.b32.xlu1 %v1341_v4, %s3078_s9  ;;  %v238_v0 = vld [vmem:[%s3130_s24 + $0xb7] sm:$0xff] }
  0xd3   : > { %873 = vst.msk [vmem:[#allocation2 + $0x50] sm:$0xff] %vm867_vm3, %v806_v6  ;;  %1392 = vrot.lane.b32.xlu0 %v3470_v41, %s3078_s9 }
  0xd4   : > { %v1192_v37 = vpop.permute.xlu1 %1191 }
  0xd5   : > { %v999_v54 = vpop.permute.xlu0 %998  ;;  %v1768_v48 = vld [vmem:[#allocation2 + $0x40] sm:$0xff] }
  0xd6   : > { %1066 = vst.msk [vmem:[#allocation2 + $0x50] sm:$0xff] %vm1060_vm4, %v999_v54  ;;  %2017 = vmatmul.mubr.bf16.gmra.mrb[16].mxu0 %v1768_v48  ;;  %1597 = vrot.lane.b32.xlu1 %v4013_v35, %s3080_s11  ;;  %v251_v54 = vld [vmem:[%s3130_s24 + $0x11f] sm:$0xff] }
  0xd7   : > { %1259 = vst.msk [vmem:[#allocation2 + $0x50] sm:$0xff] %vm1253_vm5, %v1192_v37  ;;  %1585 = vrot.lane.b32.xlu0 %v3525_v10, %s3080_s11  ;;  %2760 = vmatprep.mubr.msk.bf16.mxu0 %vm288_vm0, %v1771_v44  ;;  %v239_v37 = vld [vmem:[%s3130_s24 + $0xbf] sm:$0xff]  ;;  %v250_v44 = vld [vmem:[%s3130_s24 + $0x117] sm:$0xff] }
  0xd8   : > { %v1578_v26 = vpop.permute.xlu1 %1577  ;;  %v275_v48 = vpack.c.bf16 %v239_v37, %v238_v0  ;;  %v1787_v37 = vld [vmem:[#allocation2 + $0xd8] sm:$0xff] }
  0xd9   : > { %v1385_v41 = vpop.permute.xlu0 %1384 }
  0xda   : > { %1452 = vst.msk [vmem:[#allocation2 + $0x50] sm:$0xff] %vm1446_vm6, %v1385_v41  ;;  %441 = vrot.lane.b32.xlu1 %v3755_v17, %s3075_s28  ;;  %v763_v17 = vpack.c.bf16 %v1308_v47, %v3847_v56  ;;  %v4054_v56 = vld [vmem:[%s3130_s24 + $0xd9] sm:$0xff]  ;;  %v281_v41 = vpack.c.bf16 %v251_v54, %v250_v44 }
  0xdb   : > { %1645 = vst.msk [vmem:[#allocation2 + $0x50] sm:$0xff] %vm1639_vm7, %v1578_v26  ;;  %429 = vrot.lane.b32.xlu0 %v3767_v1, %s3075_s28  ;;  %v757_v1 = vpack.c.bf16 %v3462_v62, %v3855_v40  ;;  %v950_v62 = vpack.c.bf16 %v3519_v58, %v3887_v23  ;;  %v1143_v58 = vpack.c.bf16 %v3529_v19, %v3585_v9  ;;  %v4073_v23 = vld [vmem:[%s3130_s24 + $0x13f] sm:$0xff] }
  0xdc   : > { %v434_v10 = vpop.permute.xlu1 %433  ;;  %300 = vst.msk [vmem:[#allocation2 + $0xb0] sm:$0xff] %vm288_vm0, %v275_v48  ;;  %v4563_v19 = vpack.c.bf16 %v3536_v24, %v3533_v21  ;;  %306 = vst.msk [vmem:[#allocation2 + $0x110] sm:$0xff] %vm288_vm0, %v281_v41 }
  0xdd   : > { %494 = vst.msk [vmem:[#allocation2 + $0xc0] sm:$0xff] %vm481_vm1, %v434_v10  ;;  %v422_v34 = vpop.permute.xlu0 %421 }
  0xde   : > { %488 = vst.msk [vmem:[#allocation2 + $0x60] sm:$0xff] %vm481_vm1, %v422_v34  ;;  %634 = vrot.lane.b32.xlu1 %v3489_v46, %s3077_s8  ;;  %v956_v46 = vpack.c.bf16 %v1501_v60, %v3881_v42  ;;  %v1310_v60 = vld [vmem:[%s3130_s24 + $0x137] sm:$0xff]  ;;  %v1336_v34 = vpack.c.bf16 %v3545_v38, %v3575_v30 }
  0xdf   : > { %622 = vrot.lane.b32.xlu0 %v3493_v49, %s3077_s8  ;;  %v1685_v49 = vld [vmem:[%s3130_s24 + $0xe1] sm:$0xff]  ;;  %v1342_v9 = vpack.c.bf16 %v4073_v23, %v1310_v60 }
  0xe0   : > { %v627_v32 = vpop.permute.xlu1 %626  ;;  %v1722_v40 = vpack.c.bf16 %v1685_v49, %v4054_v56 }
  0xe1   : > { %687 = vst.msk [vmem:[#allocation2 + $0xc0] sm:$0xff] %vm674_vm2, %v627_v32  ;;  %v615_v4 = vpop.permute.xlu0 %614 }
  0xe2   : > { %681 = vst.msk [vmem:[#allocation2 + $0x60] sm:$0xff] %vm674_vm2, %v615_v4  ;;  %827 = vrot.lane.b32.xlu1 %v763_v17, %s3074_s27  ;;  %v1770_v6 = vld [vmem:[#allocation2 + $0x50] sm:$0xff]  ;;  %v1503_v17 = vld [vmem:[%s3130_s24 + $0x138] sm:$0xff] }
  0xe3   : > { %815 = vrot.lane.b32.xlu0 %v757_v1, %s3074_s27  ;;  %2025 = vmatmul.mubr.bf16.gmra.mrb[20].mxu0 %v1770_v6  ;;  %1746 = vst.msk [vmem:[#allocation2 + $0xa8] sm:$0xff] %vm288_vm0, %v1722_v40  ;;  %v4091_v1 = vld [vmem:[%s3130_s24 + $0x140] sm:$0xff] }
  0xe4   : > { %v820_v47 = vpop.permute.xlu1 %819  ;;  %2761 = vmatprep.mubr.msk.bf16.mxu0 %vm288_vm0, %v1773_v28  ;;  %v4097_v21 = vpack.c.bf16 %v4091_v1, %v1503_v17 }
  0xe5   : > { %880 = vst.msk [vmem:[#allocation2 + $0xc0] sm:$0xff] %vm867_vm3, %v820_v47  ;;  %v808_v42 = vpop.permute.xlu0 %807  ;;  %v1775_v47 = vld [vmem:[#allocation2 + $0x78] sm:$0xff] }
  0xe6   : > { %874 = vst.msk [vmem:[#allocation2 + $0x60] sm:$0xff] %vm867_vm3, %v808_v42  ;;  %1020 = vrot.lane.b32.xlu1 %v956_v46, %s3076_s7 }
  0xe7   : > { %1008 = vrot.lane.b32.xlu0 %v950_v62, %s3076_s7 }
  0xe8   : > { %v1013_v26 = vpop.permute.xlu1 %1012 }
  0xe9   : > { %1073 = vst.msk [vmem:[#allocation2 + $0xc0] sm:$0xff] %vm1060_vm4, %v1013_v26  ;;  %v1001_v10 = vpop.permute.xlu0 %1000 }
  0xea   : > { %1067 = vst.msk [vmem:[#allocation2 + $0x60] sm:$0xff] %vm1060_vm4, %v1001_v10  ;;  %1213 = vrot.lane.b32.xlu1 %v4563_v19, %s3079_s10  ;;  %v4565_v19 = vpack.c.bf16 %v3642_v7, %v3639_v39  ;;  %v4566_v7 = vld [vmem:[#allocation4_spill] sm:$0xff] }
  0xeb   : > { %1201 = vrot.lane.b32.xlu0 %v1143_v58, %s3079_s10 }
  0xec   : > { %v1206_v32 = vpop.permute.xlu1 %1205 }
  0xed   : > { %1266 = vst.msk [vmem:[#allocation2 + $0xc0] sm:$0xff] %vm1253_vm5, %v1206_v32  ;;  %v1194_v4 = vpop.permute.xlu0 %1193 }
  0xee   : > { %1260 = vst.msk [vmem:[#allocation2 + $0x60] sm:$0xff] %vm1253_vm5, %v1194_v4  ;;  %1406 = vrot.lane.b32.xlu1 %v1342_v9, %s3078_s9  ;;  %v1505_v9 = vld [vmem:[%s3130_s24 + $0x148] sm:$0xff] }
  0xef   : > { %1394 = vrot.lane.b32.xlu0 %v1336_v34, %s3078_s9  ;;  %v4152_v34 = vld [vmem:[%s3130_s24 + $0x150] sm:$0xff] }
  0xf0   : > { %v1399_v24 = vpop.permute.xlu1 %1398  ;;  %v4160_v39 = vpack.c.bf16 %v4152_v34, %v1505_v9 }
  0xf1   : > { %1459 = vst.msk [vmem:[#allocation2 + $0xc0] sm:$0xff] %vm1446_vm6, %v1399_v24  ;;  %v1387_v38 = vpop.permute.xlu0 %1386 }
  0xf2   : > { %1453 = vst.msk [vmem:[#allocation2 + $0x60] sm:$0xff] %vm1446_vm6, %v1387_v38  ;;  %1599 = vrot.lane.b32.xlu1 %v4097_v21, %s3080_s11  ;;  %v255_v38 = vld [vmem:[%s3130_s24 + $0x13f] sm:$0xff] }
  0xf3   : > { %1587 = vrot.lane.b32.xlu0 %v3633_v61, %s3080_s11  ;;  %v764_v61 = vpack.c.bf16 %v1310_v60, %v3987_v22  ;;  %v1687_v22 = vld [vmem:[%s3130_s24 + $0xf1] sm:$0xff]  ;;  %v4564_v60 = vpack.c.bf16 %v3575_v30, %v3465_v63  ;;  %v252_v63 = vld [vmem:[%s3130_s24 + $0x127] sm:$0xff] }
  0xf4   : > { %v1592_v28 = vpop.permute.xlu1 %1591  ;;  %v253_v30 = vld [vmem:[%s3130_s24 + $0x12f] sm:$0xff] }
  0xf5   : > { %1652 = vst.msk [vmem:[#allocation2 + $0xc0] sm:$0xff] %vm1639_vm7, %v1592_v28  ;;  %v1580_v6 = vpop.permute.xlu0 %1579  ;;  %v282_v26 = vpack.c.bf16 %v253_v30, %v252_v63  ;;  %v4572_v30 = vpack.c.bf16 %v3799_v13, %v3796_v2 }
  0xf6   : > { %1646 = vst.msk [vmem:[#allocation2 + $0x60] sm:$0xff] %vm1639_vm7, %v1580_v6  ;;  %443 = vrot.lane.b32.xlu1 %v3905_v16, %s3075_s28  ;;  %v914_v16 = vld [vmem:[%s3130_s24 + $0xd0] sm:$0xff] }
  0xf7   : > { %431 = vrot.lane.b32.xlu0 %v3917_v31, %s3075_s28  ;;  %v915_v31 = vld [vmem:[%s3130_s24 + $0xd8] sm:$0xff]  ;;  %307 = vst.msk [vmem:[#allocation2 + $0x120] sm:$0xff] %vm288_vm0, %v282_v26  ;;  %v4573_v26 = vld [vmem:[#allocation9_spill] sm:$0xff] }
  0xf8   : > { %v436_v46 = vpop.permute.xlu1 %435  ;;  %v951_v58 = vpack.c.bf16 %v915_v31, %v914_v16  ;;  %v1507_v31 = vld [vmem:[%s3130_s24 + $0x158] sm:$0xff] }
  0xf9   : > { %495 = vst.msk [vmem:[#allocation2 + $0xd0] sm:$0xff] %vm481_vm1, %v436_v46  ;;  %v424_v49 = vpop.permute.xlu0 %423 }
  0xfa   : > { %489 = vst.msk [vmem:[#allocation2 + $0x70] sm:$0xff] %vm481_vm1, %v424_v49  ;;  %636 = vrot.lane.b32.xlu1 %v3591_v50, %s3077_s8  ;;  %v957_v50 = vpack.c.bf16 %v1503_v17, %v4008_v11  ;;  %v1144_v11 = vpack.c.bf16 %v4054_v56, %v3965_v8  ;;  %v1493_v56 = vld [vmem:[%s3130_s24 + $0xe8] sm:$0xff]  ;;  %v958_v49 = vpack.c.bf16 %v1505_v9, %v4091_v1 }
  0xfb   : > { %624 = vrot.lane.b32.xlu0 %v3595_v14, %s3077_s8  ;;  %v1686_v14 = vld [vmem:[%s3130_s24 + $0xe9] sm:$0xff]  ;;  %v1530_v32 = vpack.c.bf16 %v3673_v53, %v1493_v56 }
  0xfc   : > { %v629_v62 = vpop.permute.xlu1 %628  ;;  %v1784_v40 = vld [vmem:[#allocation2 + $0xc0] sm:$0xff]  ;;  %v1723_v44 = vpack.c.bf16 %v1687_v22, %v1686_v14  ;;  %v4567_v53 = vld [vmem:[#allocation5_spill] sm:$0xff] }
  0xfd   : > { %688 = vst.msk [vmem:[#allocation2 + $0xd0] sm:$0xff] %vm674_vm2, %v629_v62  ;;  %v617_v42 = vpop.permute.xlu0 %616  ;;  %v1772_v0 = vld [vmem:[#allocation2 + $0x60] sm:$0xff]  ;;  %2081 = vmatmul.mubr.bf16.vlgmr.msra.gmra.mrb[0].mxu1 %v1784_v40 }
  0xfe   : > { %682 = vst.msk [vmem:[#allocation2 + $0x70] sm:$0xff] %vm674_vm2, %v617_v42  ;;  %2033 = vmatmul.mubr.bf16.gmra.mrb[24].mxu0 %v1772_v0  ;;  %829 = vrot.lane.b32.xlu1 %v764_v61, %s3074_s27  ;;  %v4568_v61 = vld [vmem:[#allocation3_spill] sm:$0xff]  ;;  %v1777_v0 = vld [vmem:[#allocation2 + $0x88] sm:$0xff] }
  0xff   : > { %817 = vrot.lane.b32.xlu0 %v4564_v60, %s3074_s27  ;;  %2762 = vmatprep.mubr.msk.bf16.mxu0 %vm288_vm0, %v1775_v47  ;;  %1747 = vst.msk [vmem:[#allocation2 + $0xb8] sm:$0xff] %vm288_vm0, %v1723_v44  ;;  %v765_v16 = vpack.c.bf16 %v4568_v61, %v4073_v23  ;;  %v1508_v42 = vld [vmem:[%s3130_s24 + $0x160] sm:$0xff]  ;;  %v1789_v23 = vld [vmem:[#allocation2 + $0xe8] sm:$0xff]  ;;  %v959_v44 = vpack.c.bf16 %v1507_v31, %v4152_v34 }
 0x100   : > { %v822_v54 = vpop.permute.xlu1 %821  ;;  %2768 = vmatprep.mubr.msk.bf16.mxu1 %vm288_vm0, %v1787_v37  ;;  %v4196_v14 = vpack.c.bf16 %v1508_v42, %v1507_v31  ;;  %v4575_v34 = vld [vmem:[#allocation8_spill] sm:$0xff]  ;;  %v4291_v31 = vld [vmem:[%s3130_s24 + $0x190] sm:$0xff] }
 0x101   : > { %881 = vst.msk [vmem:[#allocation2 + $0xd0] sm:$0xff] %vm867_vm3, %v822_v54  ;;  %v810_v48 = vpop.permute.xlu0 %809  ;;  %v4217_v54 = vld [vmem:[%s3130_s24 + $0x170] sm:$0xff] }
 0x102   : > { %875 = vst.msk [vmem:[#allocation2 + $0x70] sm:$0xff] %vm867_vm3, %v810_v48  ;;  %1022 = vrot.lane.b32.xlu1 %v957_v50, %s3076_s7  ;;  %v4569_v50 = vpack.c.bf16 %v3743_v45, %v3740_v43  ;;  %v4570_v45 = vpack.c.bf16 %v3746_v25, %v3655_v52 }
 0x103   : > { %1010 = vrot.lane.b32.xlu0 %v951_v58, %s3076_s7  ;;  %v4571_v58 = vld [vmem:[#allocation7_spill] sm:$0xff] }
 0x104   : > { %v1015_v41 = vpop.permute.xlu1 %1014 }
 0x105   : > { %1074 = vst.msk [vmem:[#allocation2 + $0xd0] sm:$0xff] %vm1060_vm4, %v1015_v41  ;;  %v1003_v10 = vpop.permute.xlu0 %1002  ;;  %v4574_v41 = vld [vmem:[#allocation10_spill] sm:$0xff] }
 0x106   : > { %1068 = vst.msk [vmem:[#allocation2 + $0x70] sm:$0xff] %vm1060_vm4, %v1003_v10  ;;  %1215 = vrot.lane.b32.xlu1 %v4565_v19, %s3079_s10 }
 0x107   : > { %1203 = vrot.lane.b32.xlu0 %v1144_v11, %s3079_s10 }
 0x108   : > { %v1208_v8 = vpop.permute.xlu1 %1207 }
 0x109   : > { %1267 = vst.msk [vmem:[#allocation2 + $0xd0] sm:$0xff] %vm1253_vm5, %v1208_v8  ;;  %v1196_v17 = vpop.permute.xlu0 %1195  ;;  %v4576_v8 = vld [vmem:[#allocation6_spill] sm:$0xff] }
 0x10a   : > { %1261 = vst.msk [vmem:[#allocation2 + $0x70] sm:$0xff] %vm1253_vm5, %v1196_v17  ;;  %1408 = vrot.lane.b32.xlu1 %v3660_v12, %s3078_s9  ;;  %v254_v12 = vld [vmem:[%s3130_s24 + $0x137] sm:$0xff]  ;;  %v4577_v56 = vpack.c.bf16 %v4575_v34, %v4576_v8 }
 0x10b   : > { %1396 = vrot.lane.b32.xlu0 %v4566_v7, %s3078_s9  ;;  %v283_v6 = vpack.c.bf16 %v255_v38, %v254_v12  ;;  %v1511_v17 = vld [vmem:[%s3130_s24 + $0x178] sm:$0xff] }
 0x10c   : > { %v1401_v4 = vpop.permute.xlu1 %1400  ;;  %v1791_v38 = vld [vmem:[#allocation2 + $0xf8] sm:$0xff] }
 0x10d   : > { %1460 = vst.msk [vmem:[#allocation2 + $0xd0] sm:$0xff] %vm1446_vm6, %v1401_v4  ;;  %v1389_v24 = vpop.permute.xlu0 %1388  ;;  %v4250_v4 = vld [vmem:[%s3130_s24 + $0x180] sm:$0xff] }
 0x10e   : > { %1454 = vst.msk [vmem:[#allocation2 + $0x70] sm:$0xff] %vm1446_vm6, %v1389_v24  ;;  %1601 = vrot.lane.b32.xlu1 %v4160_v39, %s3080_s11 }
 0x10f   : > { %1589 = vrot.lane.b32.xlu0 %v1530_v32, %s3080_s11  ;;  %308 = vst.msk [vmem:[#allocation2 + $0x130] sm:$0xff] %vm288_vm0, %v283_v6  ;;  %v4261_v6 = vpack.c.bf16 %v4250_v4, %v1511_v17 }
 0x110   : > { %v1594_v28 = vpop.permute.xlu1 %1593 }
 0x111   : > { %1653 = vst.msk [vmem:[#allocation2 + $0xd0] sm:$0xff] %vm1639_vm7, %v1594_v28  ;;  %v1582_v46 = vpop.permute.xlu0 %1581  ;;  %v4578_v28 = vpack.c.bf16 %v3893_v5, %v3890_v59 }
 0x112   : > { %1647 = vst.msk [vmem:[#allocation2 + $0x70] sm:$0xff] %vm1639_vm7, %v1582_v46  ;;  %638 = vrot.lane.b32.xlu1 %v4567_v53, %s3077_s8  ;;  %v4265_v46 = vld [vmem:[%s3130_s24 + $0x189] sm:$0xff]  ;;  %v4268_v53 = vld [vmem:[%s3130_s24 + $0x191] sm:$0xff] }
 0x113   : > { %445 = vrot.lane.b32.xlu0 %v4013_v35, %s3075_s28 }
 0x114   : > { %v438_v62 = vpop.permute.xlu1 %437 }
 0x115   : > { %496 = vst.msk [vmem:[#allocation2 + $0xe0] sm:$0xff] %vm481_vm1, %v438_v62  ;;  %v426_v40 = vpop.permute.xlu0 %425  ;;  %v961_v62 = vpack.c.bf16 %v1511_v17, %v4217_v54  ;;  %v1518_v17 = vld [vmem:[%s3130_s24 + $0x1b0] sm:$0xff] }
 0x116   : > { %490 = vst.msk [vmem:[#allocation2 + $0x80] sm:$0xff] %vm481_vm1, %v426_v40  ;;  %1024 = vrot.lane.b32.xlu1 %v958_v49, %s3076_s7  ;;  %v1513_v40 = vld [vmem:[%s3130_s24 + $0x188] sm:$0xff] }
 0x117   : > { %831 = vrot.lane.b32.xlu0 %v765_v16, %s3074_s27  ;;  %v4579_v16 = vpack.c.bf16 %v3896_v57, %v3816_v18  ;;  %v1540_v57 = vpack.c.bf16 %v4291_v31, %v1513_v40 }
 0x118   : > { %v631_v1 = vpop.permute.xlu1 %630  ;;  %v1786_v47 = vld [vmem:[#allocation2 + $0xd0] sm:$0xff] }
 0x119   : > { %689 = vst.msk [vmem:[#allocation2 + $0xe0] sm:$0xff] %vm674_vm2, %v631_v1  ;;  %v619_v35 = vpop.permute.xlu0 %618  ;;  %v1774_v37 = vld [vmem:[#allocation2 + $0x70] sm:$0xff]  ;;  %2089 = vmatmul.mubr.bf16.gmra.mrb[4].mxu1 %v1786_v47  ;;  %v1320_v47 = vld [vmem:[%s3130_s24 + $0x187] sm:$0xff] }
 0x11a   : > { %683 = vst.msk [vmem:[#allocation2 + $0x80] sm:$0xff] %vm674_vm2, %v619_v35  ;;  %2041 = vmatmul.mubr.bf16.gmra.mrb[28].mxu0 %v1774_v37  ;;  %1410 = vrot.lane.b32.xlu1 %v3761_v27, %s3078_s9  ;;  %v4310_v37 = vld [vmem:[%s3130_s24 + $0x199] sm:$0xff] }
 0x11b   : > { %1217 = vrot.lane.b32.xlu0 %v4569_v50, %s3079_s10  ;;  %2763 = vmatprep.mubr.msk.bf16.mxu0 %vm288_vm0, %v1777_v0  ;;  %v1734_v29 = vpack.c.bf16 %v1709_v20, %v4310_v37  ;;  %v962_v50 = vpack.c.bf16 %v1513_v40, %v4250_v4  ;;  %v1156_v34 = vpack.c.bf16 %v4310_v37, %v4268_v53  ;;  %v1325_v4 = vld [vmem:[%s3130_s24 + $0x1af] sm:$0xff] }
 0x11c   : > { %v824_v22 = vpop.permute.xlu1 %823  ;;  %2769 = vmatprep.mubr.msk.bf16.mxu1 %vm288_vm0, %v1789_v23 }
 0x11d   : > { %882 = vst.msk [vmem:[#allocation2 + $0xe0] sm:$0xff] %vm867_vm3, %v824_v22  ;;  %v812_v60 = vpop.permute.xlu0 %811 }
 0x11e   : > { %876 = vst.msk [vmem:[#allocation2 + $0x80] sm:$0xff] %vm867_vm3, %v812_v60  ;;  %447 = vrot.lane.b32.xlu1 %v4097_v21, %s3075_s28  ;;  %v1509_v21 = vld [vmem:[%s3130_s24 + $0x168] sm:$0xff]  ;;  %v1322_v60 = vld [vmem:[%s3130_s24 + $0x197] sm:$0xff] }
 0x11f   : > { %1603 = vrot.lane.b32.xlu0 %v4196_v14, %s3080_s11  ;;  %v4226_v25 = vpack.c.bf16 %v4217_v54, %v1509_v21  ;;  %v960_v10 = vpack.c.bf16 %v1509_v21, %v1508_v42  ;;  %v4295_v42 = vld [vmem:[%s3130_s24 + $0x18f] sm:$0xff]  ;;  %1758 = vst.msk [vmem:[#allocation2 + $0x168] sm:$0xff] %vm288_vm0, %v1734_v29 }
 0x120   : > { %v1017_v27 = vpop.permute.xlu1 %1016  ;;  %v1347_v18 = vpack.c.bf16 %v4295_v42, %v1320_v47 }
 0x121   : > { %1075 = vst.msk [vmem:[#allocation2 + $0xe0] sm:$0xff] %vm1060_vm4, %v1017_v27  ;;  %v1005_v43 = vpop.permute.xlu0 %1004  ;;  %v1323_v27 = vld [vmem:[%s3130_s24 + $0x19f] sm:$0xff] }
 0x122   : > { %1069 = vst.msk [vmem:[#allocation2 + $0x80] sm:$0xff] %vm1060_vm4, %v1005_v43  ;;  %833 = vrot.lane.b32.xlu1 %v4570_v45, %s3074_s27 }
 0x123   : > { %640 = vrot.lane.b32.xlu0 %v4571_v58, %s3077_s8  ;;  %v1348_v58 = vpack.c.bf16 %v1323_v27, %v1322_v60 }
 0x124   : > { %v1210_v48 = vpop.permute.xlu1 %1209 }
 0x125   : > { %1268 = vst.msk [vmem:[#allocation2 + $0xe0] sm:$0xff] %vm1253_vm5, %v1210_v48  ;;  %v1198_v63 = vpop.permute.xlu0 %1197  ;;  %v1516_v48 = vld [vmem:[%s3130_s24 + $0x1a0] sm:$0xff] }
 0x126   : > { %1262 = vst.msk [vmem:[#allocation2 + $0x80] sm:$0xff] %vm1253_vm5, %v1198_v63  ;;  %1219 = vrot.lane.b32.xlu1 %v4572_v30, %s3079_s10  ;;  %v1781_v63 = vld [vmem:[#allocation2 + $0xa8] sm:$0xff] }
 0x127   : > { %1026 = vrot.lane.b32.xlu0 %v959_v44, %s3076_s7  ;;  %v1515_v44 = vld [vmem:[%s3130_s24 + $0x198] sm:$0xff] }
 0x128   : > { %v1403_v52 = vpop.permute.xlu1 %1402  ;;  %v963_v8 = vpack.c.bf16 %v1515_v44, %v4291_v31 }
 0x129   : > { %1461 = vst.msk [vmem:[#allocation2 + $0xe0] sm:$0xff] %vm1446_vm6, %v1403_v52  ;;  %v1391_v11 = vpop.permute.xlu0 %1390  ;;  %v1793_v52 = vld [vmem:[#allocation2 + $0x108] sm:$0xff] }
 0x12a   : > { %1455 = vst.msk [vmem:[#allocation2 + $0x80] sm:$0xff] %vm1446_vm6, %v1391_v11  ;;  %1605 = vrot.lane.b32.xlu1 %v4226_v25, %s3080_s11 }
 0x12b   : > { %1412 = vrot.lane.b32.xlu0 %v4573_v26, %s3078_s9  ;;  %v1710_v26 = vld [vmem:[%s3130_s24 + $0x1a9] sm:$0xff] }
 0x12c   : > { %v1596_v2 = vpop.permute.xlu1 %1595 }
 0x12d   : > { %1654 = vst.msk [vmem:[#allocation2 + $0xe0] sm:$0xff] %vm1639_vm7, %v1596_v2  ;;  %v1584_v13 = vpop.permute.xlu0 %1583  ;;  %v1711_v2 = vld [vmem:[%s3130_s24 + $0x1b1] sm:$0xff] }
 0x12e   : > { %1648 = vst.msk [vmem:[#allocation2 + $0x80] sm:$0xff] %vm1639_vm7, %v1584_v13  ;;  %642 = vrot.lane.b32.xlu1 %v4574_v41, %s3077_s8  ;;  %v1735_v41 = vpack.c.bf16 %v1711_v2, %v1710_v26 }
 0x12f   : > { %449 = vrot.lane.b32.xlu0 %v4160_v39, %s3075_s28  ;;  %v1779_v39 = vld [vmem:[#allocation2 + $0x98] sm:$0xff] }
 0x130   : > { %v440_v19 = vpop.permute.xlu1 %439  ;;  %1759 = vst.msk [vmem:[#allocation2 + $0x178] sm:$0xff] %vm288_vm0, %v1735_v41 }
 0x131   : > { %497 = vst.msk [vmem:[#allocation2 + $0xf0] sm:$0xff] %vm481_vm1, %v440_v19  ;;  %v428_v9 = vpop.permute.xlu0 %427 }
 0x132   : > { %491 = vst.msk [vmem:[#allocation2 + $0x90] sm:$0xff] %vm481_vm1, %v428_v9  ;;  %1028 = vrot.lane.b32.xlu1 %v960_v10, %s3076_s7  ;;  %v770_v10 = vpack.c.bf16 %v1322_v60, %v4295_v42 }
 0x133   : > { %835 = vrot.lane.b32.xlu0 %v4577_v56, %s3074_s27  ;;  %v1517_v56 = vld [vmem:[%s3130_s24 + $0x1a8] sm:$0xff] }
 0x134   : > { %v633_v7 = vpop.permute.xlu1 %632  ;;  %v1788_v32 = vld [vmem:[#allocation2 + $0xe0] sm:$0xff] }
 0x135   : > { %690 = vst.msk [vmem:[#allocation2 + $0xf0] sm:$0xff] %vm674_vm2, %v633_v7  ;;  %v621_v24 = vpop.permute.xlu0 %620  ;;  %v1776_v12 = vld [vmem:[#allocation2 + $0x80] sm:$0xff]  ;;  %2097 = vmatmul.mubr.bf16.gmra.mrb[8].mxu1 %v1788_v32 }
 0x136   : > { %684 = vst.msk [vmem:[#allocation2 + $0x90] sm:$0xff] %vm674_vm2, %v621_v24  ;;  %2049 = vmatmul.mubr.bf16.gmra.mrb[32].mxu0 %v1776_v12  ;;  %1414 = vrot.lane.b32.xlu1 %v3911_v15, %s3078_s9  ;;  %v1733_v15 = vpack.c.bf16 %v4268_v53, %v4265_v46  ;;  %v1324_v32 = vld [vmem:[%s3130_s24 + $0x1a7] sm:$0xff]  ;;  %v1542_v24 = vpack.c.bf16 %v1518_v17, %v1517_v56 }
 0x137   : > { %1221 = vrot.lane.b32.xlu0 %v4578_v28, %s3079_s10  ;;  %2764 = vmatprep.mubr.msk.bf16.mxu0 %vm288_vm0, %v1779_v39  ;;  %v1349_v12 = vpack.c.bf16 %v1325_v4, %v1324_v32 }
 0x138   : > { %v826_v49 = vpop.permute.xlu1 %825  ;;  %2770 = vmatprep.mubr.msk.bf16.mxu1 %vm288_vm0, %v1791_v38  ;;  %1757 = vst.msk [vmem:[#allocation2 + $0x158] sm:$0xff] %vm288_vm0, %v1733_v15 }
 0x139   : > { %883 = vst.msk [vmem:[#allocation2 + $0xf0] sm:$0xff] %vm867_vm3, %v826_v49  ;;  %v814_v5 = vpop.permute.xlu0 %813  ;;  %v1795_v49 = vld [vmem:[#allocation2 + $0x118] sm:$0xff] }
 0x13a   : > { %877 = vst.msk [vmem:[#allocation2 + $0x90] sm:$0xff] %vm867_vm3, %v814_v5  ;;  %451 = vrot.lane.b32.xlu1 %v4196_v14, %s3075_s28  ;;  %v4580_v14 = vld [vmem:[#allocation11_spill] sm:$0xff] }
 0x13b   : > { %1607 = vrot.lane.b32.xlu0 %v4261_v6, %s3080_s11  ;;  %v769_v22 = vpack.c.bf16 %v1320_v47, %v4580_v14 }
 0x13c   : > { %v1019_v59 = vpop.permute.xlu1 %1018 }
 0x13d   : > { %1076 = vst.msk [vmem:[#allocation2 + $0xf0] sm:$0xff] %vm1060_vm4, %v1019_v59  ;;  %v1007_v61 = vpop.permute.xlu0 %1006  ;;  %v1783_v59 = vld [vmem:[#allocation2 + $0xb8] sm:$0xff] }
 0x13e   : > { %1070 = vst.msk [vmem:[#allocation2 + $0x90] sm:$0xff] %vm1060_vm4, %v1007_v61  ;;  %837 = vrot.lane.b32.xlu1 %v4579_v16, %s3074_s27 }
 0x13f   : > { %644 = vrot.lane.b32.xlu0 %v3930_v55, %s3077_s8 }
 0x140   : > { %v1212_v1 = vpop.permute.xlu1 %1211 }
 0x141   : > { %1269 = vst.msk [vmem:[#allocation2 + $0xf0] sm:$0xff] %vm1253_vm5, %v1212_v1  ;;  %v1200_v0 = vpop.permute.xlu0 %1199 }
 0x142   : > { %1263 = vst.msk [vmem:[#allocation2 + $0x90] sm:$0xff] %vm1253_vm5, %v1200_v0  ;;  %1223 = vrot.lane.b32.xlu1 %v1154_v51, %s3079_s10 }
 0x143   : > { %1030 = vrot.lane.b32.xlu0 %v961_v62, %s3076_s7 }
 0x144   : > { %v1405_v55 = vpop.permute.xlu1 %1404 }
 0x145   : > { %1462 = vst.msk [vmem:[#allocation2 + $0xf0] sm:$0xff] %vm1446_vm6, %v1405_v55  ;;  %v1393_v35 = vpop.permute.xlu0 %1392 }
 0x146   : > { %1456 = vst.msk [vmem:[#allocation2 + $0x90] sm:$0xff] %vm1446_vm6, %v1393_v35  ;;  %1609 = vrot.lane.b32.xlu1 %v1540_v57, %s3080_s11 }
 0x147   : > { %1416 = vrot.lane.b32.xlu0 %v1347_v18, %s3078_s9 }
 0x148   : > { %v1598_v51 = vpop.permute.xlu1 %1597 }
 0x149   : > { %1655 = vst.msk [vmem:[#allocation2 + $0xf0] sm:$0xff] %vm1639_vm7, %v1598_v51  ;;  %v1586_v23 = vpop.permute.xlu0 %1585 }
 0x14a   : > { %1649 = vst.msk [vmem:[#allocation2 + $0x90] sm:$0xff] %vm1639_vm7, %v1586_v23  ;;  %646 = vrot.lane.b32.xlu1 %v3980_v3, %s3077_s8  ;;  %v1155_v3 = vpack.c.bf16 %v4265_v46, %v4026_v36  ;;  %v1541_v36 = vpack.c.bf16 %v1516_v48, %v1515_v44 }
 0x14b   : > { %453 = vrot.lane.b32.xlu0 %v4226_v25, %s3075_s28 }
 0x14c   : > { %v442_v43 = vpop.permute.xlu1 %441 }
 0x14d   : > { %498 = vst.msk [vmem:[#allocation2 + $0x100] sm:$0xff] %vm481_vm1, %v442_v43  ;;  %v430_v45 = vpop.permute.xlu0 %429 }
 0x14e   : > { %492 = vst.msk [vmem:[#allocation2 + $0xa0] sm:$0xff] %vm481_vm1, %v430_v45  ;;  %1032 = vrot.lane.b32.xlu1 %v962_v50, %s3076_s7 }
 0x14f   : > { %839 = vrot.lane.b32.xlu0 %v769_v22, %s3074_s27 }
 0x150   : > { %v635_v21 = vpop.permute.xlu1 %634  ;;  %v1790_v54 = vld [vmem:[#allocation2 + $0xf0] sm:$0xff] }
 0x151   : > { %691 = vst.msk [vmem:[#allocation2 + $0x100] sm:$0xff] %vm674_vm2, %v635_v21  ;;  %v623_v30 = vpop.permute.xlu0 %622  ;;  %v1778_v25 = vld [vmem:[#allocation2 + $0x90] sm:$0xff]  ;;  %2105 = vmatmul.mubr.bf16.gmra.mrb[12].mxu1 %v1790_v54 }
 0x152   : > { %685 = vst.msk [vmem:[#allocation2 + $0xa0] sm:$0xff] %vm674_vm2, %v623_v30  ;;  %2057 = vmatmul.mubr.bf16.gmra.mrb[36].mxu0 %v1778_v25  ;;  %1418 = vrot.lane.b32.xlu1 %v1348_v58, %s3078_s9 }
 0x153   : > { %1225 = vrot.lane.b32.xlu0 %v1155_v3, %s3079_s10  ;;  %2765 = vmatprep.mubr.msk.bf16.mxu0 %vm288_vm0, %v1781_v63 }
 0x154   : > { %v828_v11 = vpop.permute.xlu1 %827  ;;  %2771 = vmatprep.mubr.msk.bf16.mxu1 %vm288_vm0, %v1793_v52 }
 0x155   : > { %884 = vst.msk [vmem:[#allocation2 + $0x100] sm:$0xff] %vm867_vm3, %v828_v11  ;;  %v816_v13 = vpop.permute.xlu0 %815 }
 0x156   : > { %878 = vst.msk [vmem:[#allocation2 + $0xa0] sm:$0xff] %vm867_vm3, %v816_v13  ;;  %455 = vrot.lane.b32.xlu1 %v4261_v6, %s3075_s28  ;;  %s211_s28 = scalar_lea.vmem %s4539_s3, %s4582_s16 }
 0x157   : > { %1611 = vrot.lane.b32.xlu0 %v1541_v36, %s3080_s11  ;;  %v1797_v36 = vld [vmem:[#allocation2 + $0x128] sm:$0xff] }
 0x158   : > { %v1021_v19 = vpop.permute.xlu1 %1020 }
 0x159   : > { %1077 = vst.msk [vmem:[#allocation2 + $0x100] sm:$0xff] %vm1060_vm4, %v1021_v19  ;;  %v1009_v9 = vpop.permute.xlu0 %1008 }
 0x15a   : > { %1071 = vst.msk [vmem:[#allocation2 + $0xa0] sm:$0xff] %vm1060_vm4, %v1009_v9  ;;  %841 = vrot.lane.b32.xlu1 %v770_v10, %s3074_s27 }
 0x15b   : > { %648 = vrot.lane.b32.xlu0 %v4030_v33, %s3077_s8 }
 0x15c   : > { %v1214_v7 = vpop.permute.xlu1 %1213 }
 0x15d   : > { %1270 = vst.msk [vmem:[#allocation2 + $0x100] sm:$0xff] %vm1253_vm5, %v1214_v7  ;;  %v1202_v39 = vpop.permute.xlu0 %1201 }
 0x15e   : > { %1264 = vst.msk [vmem:[#allocation2 + $0xa0] sm:$0xff] %vm1253_vm5, %v1202_v39  ;;  %1227 = vrot.lane.b32.xlu1 %v1156_v34, %s3079_s10 }
 0x15f   : > { %1034 = vrot.lane.b32.xlu0 %v963_v8, %s3076_s7 }
 0x160   : > { %v1407_v38 = vpop.permute.xlu1 %1406 }
 0x161   : > { %1463 = vst.msk [vmem:[#allocation2 + $0x100] sm:$0xff] %vm1446_vm6, %v1407_v38  ;;  %v1395_v33 = vpop.permute.xlu0 %1394 }
 0x162   : > { %1457 = vst.msk [vmem:[#allocation2 + $0xa0] sm:$0xff] %vm1446_vm6, %v1395_v33  ;;  %1613 = vrot.lane.b32.xlu1 %v1542_v24, %s3080_s11 }
 0x163   : > { %1420 = vrot.lane.b32.xlu0 %v1349_v12, %s3078_s9 }
 0x164   : > { %v1600_v28 = vpop.permute.xlu1 %1599 }
 0x165   : > { %1656 = vst.msk [vmem:[#allocation2 + $0x100] sm:$0xff] %vm1639_vm7, %v1600_v28  ;;  %v1588_v6 = vpop.permute.xlu0 %1587 }
 0x166   : > { %1650 = vst.msk [vmem:[#allocation2 + $0xa0] sm:$0xff] %vm1639_vm7, %v1588_v6 }
 0x168   : > { %v444_v46 = vpop.permute.xlu1 %443 }
 0x169   : > { %499 = vst.msk [vmem:[#allocation2 + $0x110] sm:$0xff] %vm481_vm1, %v444_v46  ;;  %v432_v53 = vpop.permute.xlu0 %431 }
 0x16a   : > { %493 = vst.msk [vmem:[#allocation2 + $0xb0] sm:$0xff] %vm481_vm1, %v432_v53  ;;  %v1799_v53 = vld [vmem:[#allocation2 + $0x138] sm:$0xff] }
 0x16c   : > { %v637_v15 = vpop.permute.xlu1 %636  ;;  %v1792_v5 = vld [vmem:[#allocation2 + $0x100] sm:$0xff] }
 0x16d   : > { %692 = vst.msk [vmem:[#allocation2 + $0x110] sm:$0xff] %vm674_vm2, %v637_v15  ;;  %v625_v61 = vpop.permute.xlu0 %624  ;;  %v1780_v16 = vld [vmem:[#allocation2 + $0xa0] sm:$0xff]  ;;  %2113 = vmatmul.mubr.bf16.gmra.mrb[16].mxu1 %v1792_v5 }
 0x16e   : > { %686 = vst.msk [vmem:[#allocation2 + $0xb0] sm:$0xff] %vm674_vm2, %v625_v61  ;;  %2065 = vmatmul.mubr.bf16.gmra.mrb[40].mxu0 %v1780_v16  ;;  %2772 = vmatprep.mubr.msk.bf16.mxu1 %vm288_vm0, %v1795_v49 }
 0x16f   : > { %2766 = vmatprep.mubr.msk.bf16.mxu0 %vm288_vm0, %v1783_v59 }
 0x170   : > { %v830_v62 = vpop.permute.xlu1 %829 }
 0x171   : > { %885 = vst.msk [vmem:[#allocation2 + $0x110] sm:$0xff] %vm867_vm3, %v830_v62  ;;  %v818_v40 = vpop.permute.xlu0 %817  ;;  %v1986_v31 = vpop.f32.mrb[0].mxu0 }
 0x172   : > { %879 = vst.msk [vmem:[#allocation2 + $0xb0] sm:$0xff] %vm867_vm3, %v818_v40  ;;  %v1988_v1 = vpop.f32.mrb[1].mxu0  ;;  %v2532_v42 = vmul.f32 %v1986_v31, %v1986_v31 }
 0x173   : > { %v1989_v47 = vpop.f32.mrb[2].mxu0 }
 0x174   : > { %v2880_v0 = vpack.c.bf16 %v1989_v47, %v1986_v31  ;;  %v2478_v57 = vadd.f32 %v1989_v47, %v1986_v31  ;;  %v2533_v18 = vmul.f32 %v1989_v47, %v1989_v47  ;;  %v1991_v55 = vpop.f32.mrb[3].mxu0  ;;  %v1023_v35 = vpop.permute.xlu1 %1022 }
 0x175   : > { %1078 = vst.msk [vmem:[#allocation2 + $0x110] sm:$0xff] %vm1060_vm4, %v1023_v35  ;;  %v1011_v37 = vpop.permute.xlu0 %1010 }
 0x176   : > { %2881 = vst [vmem:[%s4383_s25] sm:$0xff] %v2880_v0   ;;  %v2580_v20 = vadd.f32 %v2533_v18, %v2532_v42  ;;  %1072 = vst.msk [vmem:[#allocation2 + $0xb0] sm:$0xff] %vm1060_vm4, %v1011_v37 }
 0x178   : > { %v1216_v29 = vpop.permute.xlu1 %1215 }
 0x179   : > { %1271 = vst.msk [vmem:[#allocation2 + $0x110] sm:$0xff] %vm1253_vm5, %v1216_v29  ;;  %v1204_v51 = vpop.permute.xlu0 %1203  ;;  %v1801_v29 = vld [vmem:[#allocation2 + $0x148] sm:$0xff] }
 0x17a   : > { %1265 = vst.msk [vmem:[#allocation2 + $0xb0] sm:$0xff] %vm1253_vm5, %v1204_v51 }
 0x17c   : > { %v1409_v23 = vpop.permute.xlu1 %1408 }
 0x17d   : > { %1464 = vst.msk [vmem:[#allocation2 + $0x110] sm:$0xff] %vm1446_vm6, %v1409_v23  ;;  %v1397_v50 = vpop.permute.xlu0 %1396 }
 0x17e   : > { %1458 = vst.msk [vmem:[#allocation2 + $0xb0] sm:$0xff] %vm1446_vm6, %v1397_v50  ;;  %v1994_v14 = vpop.f32.mrb[4].mxu0 }
 0x17f   : > { %v2192_v22 = vmul.f32 0.0, %v1994_v14  ;;  %v1996_v60 = vpop.f32.mrb[5].mxu0 }
 0x180   : > { %v1997_v27 = vpop.f32.mrb[6].mxu0  ;;  %v1602_v43 = vpop.permute.xlu1 %1601 }
 0x181   : > { %v2479_v45 = vadd.f32 %v2478_v57, %v2192_v22  ;;  %v2534_v58 = vmul.f32 %v2192_v22, %v2192_v22  ;;  %v2885_v3 = vpack.c.bf16 %v1997_v27, %v2192_v22  ;;  %1657 = vst.msk [vmem:[#allocation2 + $0x110] sm:$0xff] %vm1639_vm7, %v1602_v43  ;;  %v1590_v44 = vpop.permute.xlu0 %1589  ;;  %v1999_v21 = vpop.f32.mrb[7].mxu0  ;;  %v2535_v63 = vmul.f32 %v1997_v27, %v1997_v27 }
 0x182   : > { %1651 = vst.msk [vmem:[#allocation2 + $0xb0] sm:$0xff] %vm1639_vm7, %v1590_v44 }
 0x183   : > { %v2581_v54 = vadd.f32 %v2580_v20, %v2534_v58  ;;  %2997 = vst [vmem:[%s4383_s25 + $0x8] sm:$0xff] %v2885_v3   ;;  %v2480_v48 = vadd.f32 %v2479_v45, %v1997_v27 }
 0x184   : > { %v639_v30 = vpop.permute.xlu1 %638 }
 0x185   : > { %v2582_v25 = vadd.f32 %v2581_v54, %v2535_v63  ;;  %v446_v52 = vpop.permute.xlu0 %445 }
 0x186   : > { %500 = vst.msk [vmem:[#allocation2 + $0x120] sm:$0xff] %vm481_vm1, %v446_v52 }
 0x187   : > { %693 = vst.msk [vmem:[#allocation2 + $0x120] sm:$0xff] %vm674_vm2, %v639_v30 }
 0x188   : > { %v1025_v11 = vpop.permute.xlu1 %1024  ;;  %v1794_v26 = vld [vmem:[#allocation2 + $0x110] sm:$0xff] }
 0x189   : > { %v832_v2 = vpop.permute.xlu0 %831  ;;  %v1782_v13 = vld [vmem:[#allocation2 + $0xb0] sm:$0xff]  ;;  %2121 = vmatmul.mubr.bf16.gmra.mrb[20].mxu1 %v1794_v26 }
 0x18a   : > { %886 = vst.msk [vmem:[#allocation2 + $0x120] sm:$0xff] %vm867_vm3, %v832_v2  ;;  %2073 = vmatmul.mubr.bf16.gmra.mrb[44].mxu0 %v1782_v13  ;;  %2773 = vmatprep.mubr.msk.bf16.mxu1 %vm288_vm0, %v1797_v36 }
 0x18b   : > { %1079 = vst.msk [vmem:[#allocation2 + $0x120] sm:$0xff] %vm1060_vm4, %v1025_v11  ;;  %v1803_v11 = vld [vmem:[#allocation2 + $0x158] sm:$0xff] }
 0x18c   : > { %v1411_v41 = vpop.permute.xlu1 %1410 }
 0x18d   : > { %v1218_v10 = vpop.permute.xlu0 %1217  ;;  %v2002_v19 = vpop.f32.mrb[8].mxu0 }
 0x18e   : > { %1272 = vst.msk [vmem:[#allocation2 + $0x120] sm:$0xff] %vm1253_vm5, %v1218_v10  ;;  %v2481_v9 = vadd.f32 %v2480_v48, %v2002_v19  ;;  %v2536_v34 = vmul.f32 %v2002_v19, %v2002_v19  ;;  %v2004_v8 = vpop.f32.mrb[9].mxu0 }
 0x18f   : > { %1465 = vst.msk [vmem:[#allocation2 + $0x120] sm:$0xff] %vm1446_vm6, %v1411_v41  ;;  %v2005_v56 = vpop.f32.mrb[10].mxu0 }
 0x190   : > { %v2583_v17 = vadd.f32 %v2582_v25, %v2536_v34  ;;  %v2195_v7 = vmul.f32 0.0, %v2005_v56  ;;  %v2007_v32 = vpop.f32.mrb[11].mxu0  ;;  %v448_v4 = vpop.permute.xlu1 %447 }
 0x191   : > { %v1604_v39 = vpop.permute.xlu0 %1603  ;;  %501 = vst.msk [vmem:[#allocation2 + $0x130] sm:$0xff] %vm481_vm1, %v448_v4 }
 0x192   : > { %v2890_v24 = vpack.c.bf16 %v2195_v7, %v2002_v19  ;;  %v2482_v12 = vadd.f32 %v2481_v9, %v2195_v7  ;;  %v2537_v38 = vmul.f32 %v2195_v7, %v2195_v7  ;;  %1658 = vst.msk [vmem:[#allocation2 + $0x120] sm:$0xff] %vm1639_vm7, %v1604_v39 }
 0x194   : > { %2998 = vst [vmem:[%s4383_s25 + $0x10] sm:$0xff] %v2890_v24   ;;  %v2584_v33 = vadd.f32 %v2583_v17, %v2537_v38  ;;  %v834_v28 = vpop.permute.xlu1 %833 }
 0x195   : > { %v641_v6 = vpop.permute.xlu0 %640 }
 0x196   : > { %694 = vst.msk [vmem:[#allocation2 + $0x130] sm:$0xff] %vm674_vm2, %v641_v6  ;;  %v1805_v6 = vld [vmem:[#allocation2 + $0x168] sm:$0xff] }
 0x197   : > { %887 = vst.msk [vmem:[#allocation2 + $0x130] sm:$0xff] %vm867_vm3, %v834_v28 }
 0x198   : > { %v1220_v46 = vpop.permute.xlu1 %1219 }
 0x199   : > { %v1027_v49 = vpop.permute.xlu0 %1026  ;;  %v1796_v15 = vld [vmem:[#allocation2 + $0x120] sm:$0xff] }
 0x19a   : > { %1080 = vst.msk [vmem:[#allocation2 + $0x130] sm:$0xff] %vm1060_vm4, %v1027_v49  ;;  %v2010_v5 = vpop.f32.mrb[12].mxu0  ;;  %2129 = vmatmul.mubr.bf16.gmra.mrb[24].mxu1 %v1796_v15 }
 0x19b   : > { %1273 = vst.msk [vmem:[#allocation2 + $0x130] sm:$0xff] %vm1253_vm5, %v1220_v46  ;;  %v2483_v59 = vadd.f32 %v2482_v12, %v2010_v5  ;;  %v2538_v61 = vmul.f32 %v2010_v5, %v2010_v5  ;;  %v2012_v16 = vpop.f32.mrb[13].mxu0  ;;  %2774 = vmatprep.mubr.msk.bf16.mxu1 %vm288_vm0, %v1799_v53 }
 0x19c   : > { %v2013_v62 = vpop.f32.mrb[14].mxu0  ;;  %v1606_v40 = vpop.permute.xlu1 %1605 }
 0x19d   : > { %v2585_v31 = vadd.f32 %v2584_v33, %v2538_v61  ;;  %v2895_v1 = vpack.c.bf16 %v2013_v62, %v2010_v5  ;;  %v2484_v47 = vadd.f32 %v2483_v59, %v2013_v62  ;;  %v2539_v42 = vmul.f32 %v2013_v62, %v2013_v62  ;;  %v1413_v0 = vpop.permute.xlu0 %1412  ;;  %v2015_v57 = vpop.f32.mrb[15].mxu0 }
 0x19e   : > { %1466 = vst.msk [vmem:[#allocation2 + $0x130] sm:$0xff] %vm1446_vm6, %v1413_v0 }
 0x19f   : > { %2999 = vst [vmem:[%s4383_s25 + $0x18] sm:$0xff] %v2895_v1   ;;  %v2586_v18 = vadd.f32 %v2585_v31, %v2539_v42  ;;  %1659 = vst.msk [vmem:[#allocation2 + $0x130] sm:$0xff] %vm1639_vm7, %v1606_v40  ;;  %v1807_v40 = vld [vmem:[#allocation2 + $0x178] sm:$0xff] }
 0x1a0   : > { %v643_v55 = vpop.permute.xlu1 %642 }
 0x1a1   : > { %v450_v35 = vpop.permute.xlu0 %449 }
 0x1a2   : > { %502 = vst.msk [vmem:[#allocation2 + $0x140] sm:$0xff] %vm481_vm1, %v450_v35 }
 0x1a3   : > { %695 = vst.msk [vmem:[#allocation2 + $0x140] sm:$0xff] %vm674_vm2, %v643_v55 }
 0x1a4   : > { %v1029_v37 = vpop.permute.xlu1 %1028 }
 0x1a5   : > { %v836_v20 = vpop.permute.xlu0 %835 }
 0x1a6   : > { %888 = vst.msk [vmem:[#allocation2 + $0x140] sm:$0xff] %vm867_vm3, %v836_v20  ;;  %v1798_v51 = vld [vmem:[#allocation2 + $0x130] sm:$0xff] }
 0x1a7   : > { %1081 = vst.msk [vmem:[#allocation2 + $0x140] sm:$0xff] %vm1060_vm4, %v1029_v37  ;;  %2137 = vmatmul.mubr.bf16.gmra.mrb[28].mxu1 %v1798_v51 }
 0x1a8   : > { %v1415_v23 = vpop.permute.xlu1 %1414  ;;  %2775 = vmatprep.mubr.msk.bf16.mxu1 %vm288_vm0, %v1801_v29 }
 0x1a9   : > { %v1222_v50 = vpop.permute.xlu0 %1221  ;;  %v2018_v14 = vpop.f32.mrb[16].mxu0 }
 0x1aa   : > { %1274 = vst.msk [vmem:[#allocation2 + $0x140] sm:$0xff] %vm1253_vm5, %v1222_v50  ;;  %v2198_v22 = vmul.f32 0.0, %v2018_v14  ;;  %v2020_v60 = vpop.f32.mrb[17].mxu0 }
 0x1ab   : > { %1467 = vst.msk [vmem:[#allocation2 + $0x140] sm:$0xff] %vm1446_vm6, %v1415_v23  ;;  %v2021_v27 = vpop.f32.mrb[18].mxu0 }
 0x1ac   : > { %v2485_v43 = vadd.f32 %v2484_v47, %v2198_v22  ;;  %v2540_v45 = vmul.f32 %v2198_v22, %v2198_v22  ;;  %v2900_v58 = vpack.c.bf16 %v2021_v27, %v2198_v22  ;;  %v2023_v3 = vpop.f32.mrb[19].mxu0  ;;  %v452_v44 = vpop.permute.xlu1 %451  ;;  %v2541_v63 = vmul.f32 %v2021_v27, %v2021_v27 }
 0x1ad   : > { %v1608_v21 = vpop.permute.xlu0 %1607  ;;  %503 = vst.msk [vmem:[#allocation2 + $0x150] sm:$0xff] %vm481_vm1, %v452_v44 }
 0x1ae   : > { %v2587_v54 = vadd.f32 %v2586_v18, %v2540_v45  ;;  %3000 = vst [vmem:[%s4383_s25 + $0x20] sm:$0xff] %v2900_v58   ;;  %v2486_v48 = vadd.f32 %v2485_v43, %v2021_v27  ;;  %1660 = vst.msk [vmem:[#allocation2 + $0x140] sm:$0xff] %vm1639_vm7, %v1608_v21 }
 0x1b0   : > { %v2588_v30 = vadd.f32 %v2587_v54, %v2541_v63  ;;  %v838_v25 = vpop.permute.xlu1 %837 }
 0x1b1   : > { %v645_v52 = vpop.permute.xlu0 %644 }
 0x1b2   : > { %696 = vst.msk [vmem:[#allocation2 + $0x150] sm:$0xff] %vm674_vm2, %v645_v52 }
 0x1b3   : > { %889 = vst.msk [vmem:[#allocation2 + $0x150] sm:$0xff] %vm867_vm3, %v838_v25 }
 0x1b4   : > { %v1224_v36 = vpop.permute.xlu1 %1223 }
 0x1b5   : > { %v1031_v26 = vpop.permute.xlu0 %1030  ;;  %v1800_v2 = vld [vmem:[#allocation2 + $0x140] sm:$0xff] }
 0x1b6   : > { %1082 = vst.msk [vmem:[#allocation2 + $0x150] sm:$0xff] %vm1060_vm4, %v1031_v26  ;;  %v2026_v13 = vpop.f32.mrb[20].mxu0  ;;  %2145 = vmatmul.mubr.bf16.gmra.mrb[32].mxu1 %v1800_v2 }
 0x1b7   : > { %1275 = vst.msk [vmem:[#allocation2 + $0x150] sm:$0xff] %vm1253_vm5, %v1224_v36  ;;  %v2487_v41 = vadd.f32 %v2486_v48, %v2026_v13  ;;  %v2542_v10 = vmul.f32 %v2026_v13, %v2026_v13  ;;  %v2028_v19 = vpop.f32.mrb[21].mxu0  ;;  %2776 = vmatprep.mubr.msk.bf16.mxu1 %vm288_vm0, %v1803_v11 }
 0x1b8   : > { %v2029_v9 = vpop.f32.mrb[22].mxu0  ;;  %v1610_v34 = vpop.permute.xlu1 %1609 }
 0x1b9   : > { %v2589_v8 = vadd.f32 %v2588_v30, %v2542_v10  ;;  %v2201_v56 = vmul.f32 0.0, %v2029_v9  ;;  %v1417_v17 = vpop.permute.xlu0 %1416  ;;  %v2031_v7 = vpop.f32.mrb[23].mxu0 }
 0x1ba   : > { %1468 = vst.msk [vmem:[#allocation2 + $0x150] sm:$0xff] %vm1446_vm6, %v1417_v17 }
 0x1bb   : > { %v2905_v32 = vpack.c.bf16 %v2201_v56, %v2026_v13  ;;  %v2488_v4 = vadd.f32 %v2487_v41, %v2201_v56  ;;  %v2543_v39 = vmul.f32 %v2201_v56, %v2201_v56  ;;  %1661 = vst.msk [vmem:[#allocation2 + $0x150] sm:$0xff] %vm1639_vm7, %v1610_v34 }
 0x1bc   : > { %v647_v24 = vpop.permute.xlu1 %646 }
 0x1bd   : > { %3001 = vst [vmem:[%s4383_s25 + $0x28] sm:$0xff] %v2905_v32   ;;  %v2590_v12 = vadd.f32 %v2589_v8, %v2543_v39  ;;  %v454_v38 = vpop.permute.xlu0 %453 }
 0x1be   : > { %504 = vst.msk [vmem:[#allocation2 + $0x160] sm:$0xff] %vm481_vm1, %v454_v38 }
 0x1bf   : > { %697 = vst.msk [vmem:[#allocation2 + $0x160] sm:$0xff] %vm674_vm2, %v647_v24 }
 0x1c0   : > { %v1033_v33 = vpop.permute.xlu1 %1032 }
 0x1c1   : > { %v840_v28 = vpop.permute.xlu0 %839 }
 0x1c2   : > { %890 = vst.msk [vmem:[#allocation2 + $0x160] sm:$0xff] %vm867_vm3, %v840_v28  ;;  %v1802_v46 = vld [vmem:[#allocation2 + $0x150] sm:$0xff] }
 0x1c3   : > { %1083 = vst.msk [vmem:[#allocation2 + $0x160] sm:$0xff] %vm1060_vm4, %v1033_v33  ;;  %2153 = vmatmul.mubr.bf16.gmra.mrb[36].mxu1 %v1802_v46 }
 0x1c4   : > { %v1419_v53 = vpop.permute.xlu1 %1418  ;;  %2777 = vmatprep.mubr.msk.bf16.mxu1 %vm288_vm0, %v1805_v6 }
 0x1c5   : > { %v1226_v49 = vpop.permute.xlu0 %1225 }
 0x1c6   : > { %1276 = vst.msk [vmem:[#allocation2 + $0x160] sm:$0xff] %vm1253_vm5, %v1226_v49 }
 0x1c7   : > { %1469 = vst.msk [vmem:[#allocation2 + $0x160] sm:$0xff] %vm1446_vm6, %v1419_v53 }
 0x1c8   : > { %v456_v15 = vpop.permute.xlu1 %455 }
 0x1c9   : > { %v1612_v5 = vpop.permute.xlu0 %1611  ;;  %505 = vst.msk [vmem:[#allocation2 + $0x170] sm:$0xff] %vm481_vm1, %v456_v15 }
 0x1ca   : > { %1662 = vst.msk [vmem:[#allocation2 + $0x160] sm:$0xff] %vm1639_vm7, %v1612_v5 }
 0x1cc   : > { %v842_v59 = vpop.permute.xlu1 %841 }
 0x1cd   : > { %v649_v61 = vpop.permute.xlu0 %648 }
 0x1ce   : > { %698 = vst.msk [vmem:[#allocation2 + $0x170] sm:$0xff] %vm674_vm2, %v649_v61 }
 0x1cf   : > { %891 = vst.msk [vmem:[#allocation2 + $0x170] sm:$0xff] %vm867_vm3, %v842_v59 }
 0x1d0   : > { %v4442_v16 = vpop.f32.mrb[0].mxu1  ;;  %v1228_v62 = vpop.permute.xlu1 %1227 }
 0x1d1   : > { %v1035_v31 = vpop.permute.xlu0 %1034  ;;  %v2034_v1 = vpop.f32.mrb[24].mxu0  ;;  %v1804_v47 = vld [vmem:[#allocation2 + $0x160] sm:$0xff] }
 0x1d2   : > { %1084 = vst.msk [vmem:[#allocation2 + $0x170] sm:$0xff] %vm1060_vm4, %v1035_v31  ;;  %v2489_v42 = vadd.f32 %v2488_v4, %v2034_v1  ;;  %v2544_v0 = vmul.f32 %v2034_v1, %v2034_v1  ;;  %v2036_v57 = vpop.f32.mrb[25].mxu0  ;;  %v2084_v18 = vpop.f32.mrb[1].mxu1  ;;  %2161 = vmatmul.mubr.bf16.gmra.mrb[40].mxu1 %v1804_v47 }
 0x1d3   : > { %1277 = vst.msk [vmem:[#allocation2 + $0x170] sm:$0xff] %vm1253_vm5, %v1228_v62  ;;  %v2037_v55 = vpop.f32.mrb[26].mxu0  ;;  %v4446_v35 = vpop.f32.mrb[2].mxu1  ;;  %2778 = vmatprep.mubr.msk.bf16.mxu1 %vm288_vm0, %v1807_v40 }
 0x1d4   : > { %v2591_v37 = vadd.f32 %v2590_v12, %v2544_v0  ;;  %v2910_v20 = vpack.c.bf16 %v2037_v55, %v2034_v1  ;;  %v2490_v29 = vadd.f32 %v2489_v42, %v2037_v55  ;;  %v2545_v51 = vmul.f32 %v2037_v55, %v2037_v55  ;;  %v2039_v23 = vpop.f32.mrb[27].mxu0  ;;  %v2087_v50 = vpop.f32.mrb[3].mxu1 }
 0x1d5   : > { %v2940_v14 = vpack.c.bf16 %v4446_v35, %v4442_v16  ;;  %v1421_v22 = vpop.permute.xlu0 %1420  ;;  %v1614_v60 = vpop.permute.xlu1 %1613 }
 0x1d6   : > { %3002 = vst [vmem:[%s4383_s25 + $0x30] sm:$0xff] %v2910_v20   ;;  %v2592_v27 = vadd.f32 %v2591_v37, %v2545_v51  ;;  %1470 = vst.msk [vmem:[#allocation2 + $0x170] sm:$0xff] %vm1446_vm6, %v1421_v22 }
 0x1d7   : > { %3008 = vst [vmem:[%s4383_s25 + $0x60] sm:$0xff] %v2940_v14   ;;  %1663 = vst.msk [vmem:[#allocation2 + $0x170] sm:$0xff] %vm1639_vm7, %v1614_v60 }
 0x1de   : > { %v1806_v43 = vld [vmem:[#allocation2 + $0x170] sm:$0xff] }
 0x1df   : > { %2169 = vmatmul.mubr.bf16.gmra.mrb[44].mxu1 %v1806_v43 }
 0x1ec   : > { %v2090_v45 = vpop.f32.mrb[4].mxu1 }
 0x1ed   : > { %v2042_v58 = vpop.f32.mrb[28].mxu0  ;;  %v4455_v3 = vmul.f32 0.0, %v2090_v45  ;;  %v2092_v44 = vpop.f32.mrb[5].mxu1 }
 0x1ee   : > { %v2204_v21 = vmul.f32 0.0, %v2042_v58  ;;  %v2044_v54 = vpop.f32.mrb[29].mxu0  ;;  %v4457_v48 = vpop.f32.mrb[6].mxu1 }
 0x1ef   : > { %v2045_v63 = vpop.f32.mrb[30].mxu0  ;;  %v2945_v30 = vpack.c.bf16 %v4457_v48, %v4455_v3  ;;  %v2095_v25 = vpop.f32.mrb[7].mxu1 }
 0x1f0   : > { %v2491_v52 = vadd.f32 %v2490_v29, %v2204_v21  ;;  %v2546_v36 = vmul.f32 %v2204_v21, %v2204_v21  ;;  %v2915_v11 = vpack.c.bf16 %v2045_v63, %v2204_v21  ;;  %v2047_v26 = vpop.f32.mrb[31].mxu0  ;;  %v2547_v41 = vmul.f32 %v2045_v63, %v2045_v63 }
 0x1f1   : > { %3009 = vst [vmem:[%s4383_s25 + $0x68] sm:$0xff] %v2945_v30  }
 0x1f2   : > { %v2593_v2 = vadd.f32 %v2592_v27, %v2546_v36  ;;  %3003 = vst [vmem:[%s4383_s25 + $0x38] sm:$0xff] %v2915_v11   ;;  %v2492_v13 = vadd.f32 %v2491_v52, %v2045_v63 }
 0x1f4   : > { %v2594_v10 = vadd.f32 %v2593_v2, %v2547_v41 }
 0x208   : > { %v4463_v19 = vpop.f32.mrb[8].mxu1 }
 0x209   : > { %v2050_v9 = vpop.f32.mrb[32].mxu0  ;;  %v2100_v34 = vpop.f32.mrb[9].mxu1 }
 0x20a   : > { %v2493_v8 = vadd.f32 %v2492_v13, %v2050_v9  ;;  %v2548_v56 = vmul.f32 %v2050_v9, %v2050_v9  ;;  %v2052_v17 = vpop.f32.mrb[33].mxu0  ;;  %v2101_v7 = vpop.f32.mrb[10].mxu1 }
 0x20b   : > { %v2053_v32 = vpop.f32.mrb[34].mxu0  ;;  %v4465_v4 = vmul.f32 0.0, %v2101_v7  ;;  %v2103_v39 = vpop.f32.mrb[11].mxu1 }
 0x20c   : > { %v2595_v24 = vadd.f32 %v2594_v10, %v2548_v56  ;;  %v2207_v12 = vmul.f32 0.0, %v2053_v32  ;;  %v2055_v38 = vpop.f32.mrb[35].mxu0 }
 0x20d   : > { %v2950_v33 = vpack.c.bf16 %v4465_v4, %v4463_v19 }
 0x20e   : > { %v2920_v28 = vpack.c.bf16 %v2207_v12, %v2050_v9  ;;  %v2494_v6 = vadd.f32 %v2493_v8, %v2207_v12  ;;  %v2549_v46 = vmul.f32 %v2207_v12, %v2207_v12  ;;  %v2556_v12 = vmul.f32 %v4442_v16, %v4442_v16 }
 0x20f   : > { %3010 = vst [vmem:[%s4383_s25 + $0x70] sm:$0xff] %v2950_v33  }
 0x210   : > { %3004 = vst [vmem:[%s4383_s25 + $0x40] sm:$0xff] %v2920_v28   ;;  %v2596_v53 = vadd.f32 %v2595_v24, %v2549_v46  ;;  %v2557_v28 = vmul.f32 %v4446_v35, %v4446_v35 }
 0x224   : > { %v4471_v49 = vpop.f32.mrb[12].mxu1 }
 0x225   : > { %v2058_v15 = vpop.f32.mrb[36].mxu0  ;;  %v2108_v5 = vpop.f32.mrb[13].mxu1 }
 0x226   : > { %v2495_v59 = vadd.f32 %v2494_v6, %v2058_v15  ;;  %v2550_v61 = vmul.f32 %v2058_v15, %v2058_v15  ;;  %v2060_v62 = vpop.f32.mrb[37].mxu0  ;;  %v4473_v40 = vpop.f32.mrb[14].mxu1 }
 0x227   : > { %v2061_v31 = vpop.f32.mrb[38].mxu0  ;;  %v2955_v1 = vpack.c.bf16 %v4473_v40, %v4471_v49  ;;  %v2111_v47 = vpop.f32.mrb[15].mxu1 }
 0x228   : > { %v2597_v42 = vadd.f32 %v2596_v53, %v2550_v61  ;;  %v2925_v0 = vpack.c.bf16 %v2061_v31, %v2058_v15  ;;  %v2496_v57 = vadd.f32 %v2495_v59, %v2061_v31  ;;  %v2551_v18 = vmul.f32 %v2061_v31, %v2061_v31  ;;  %v2063_v55 = vpop.f32.mrb[39].mxu0 }
 0x229   : > { %3011 = vst [vmem:[%s4383_s25 + $0x78] sm:$0xff] %v2955_v1   ;;  %v2558_v53 = vmul.f32 %v4455_v3, %v4455_v3  ;;  %v2559_v59 = vmul.f32 %v4457_v48, %v4457_v48  ;;  %v2561_v47 = vmul.f32 %v4465_v4, %v4465_v4 }
 0x22a   : > { %3005 = vst [vmem:[%s4383_s25 + $0x48] sm:$0xff] %v2925_v0   ;;  %v2598_v37 = vadd.f32 %v2597_v42, %v2551_v18 }
 0x240   : > { %v2114_v20 = vpop.f32.mrb[16].mxu1 }
 0x241   : > { %v2066_v29 = vpop.f32.mrb[40].mxu0  ;;  %v4479_v51 = vmul.f32 0.0, %v2114_v20  ;;  %v2116_v23 = vpop.f32.mrb[17].mxu1 }
 0x242   : > { %v2210_v50 = vmul.f32 0.0, %v2066_v29  ;;  %v2068_v14 = vpop.f32.mrb[41].mxu0  ;;  %v4481_v22 = vpop.f32.mrb[18].mxu1 }
 0x243   : > { %v2069_v60 = vpop.f32.mrb[42].mxu0  ;;  %v2960_v27 = vpack.c.bf16 %v4481_v22, %v4479_v51  ;;  %v2119_v43 = vpop.f32.mrb[19].mxu1 }
 0x244   : > { %v2497_v45 = vadd.f32 %v2496_v57, %v2210_v50  ;;  %v2552_v58 = vmul.f32 %v2210_v50, %v2210_v50  ;;  %v2930_v44 = vpack.c.bf16 %v2069_v60, %v2210_v50  ;;  %v2071_v21 = vpop.f32.mrb[43].mxu0  ;;  %v2553_v30 = vmul.f32 %v2069_v60, %v2069_v60 }
 0x245   : > { %3012 = vst [vmem:[%s4383_s25 + $0x80] sm:$0xff] %v2960_v27  }
 0x246   : > { %v2599_v54 = vadd.f32 %v2598_v37, %v2552_v58  ;;  %3006 = vst [vmem:[%s4383_s25 + $0x50] sm:$0xff] %v2930_v44   ;;  %v2498_v63 = vadd.f32 %v2497_v45, %v2069_v60  ;;  %v2565_v60 = vmul.f32 %v4481_v22, %v4481_v22 }
 0x248   : > { %v2600_v25 = vadd.f32 %v2599_v54, %v2553_v30 }
 0x25c   : > { %v2122_v52 = vpop.f32.mrb[20].mxu1 }
 0x25d   : > { %v2074_v36 = vpop.f32.mrb[44].mxu0  ;;  %v2124_v11 = vpop.f32.mrb[21].mxu1  ;;  %v2566_v43 = vmul.f32 %v2122_v52, %v2122_v52 }
 0x25e   : > { %v2499_v26 = vadd.f32 %v2498_v63, %v2074_v36  ;;  %v2554_v2 = vmul.f32 %v2074_v36, %v2074_v36  ;;  %v2076_v13 = vpop.f32.mrb[45].mxu0  ;;  %v2125_v41 = vpop.f32.mrb[22].mxu1 }
 0x25f   : > { %v2077_v10 = vpop.f32.mrb[46].mxu0  ;;  %v2225_v9 = vmul.f32 0.0, %v2125_v41  ;;  %v2127_v34 = vpop.f32.mrb[23].mxu1 }
 0x260   : > { %v2601_v8 = vadd.f32 %v2600_v25, %v2554_v2  ;;  %v2213_v56 = vmul.f32 0.0, %v2077_v10  ;;  %v2079_v17 = vpop.f32.mrb[47].mxu0 }
 0x261   : > { %v2965_v7 = vpack.c.bf16 %v2225_v9, %v2122_v52 }
 0x262   : > { %v2935_v32 = vpack.c.bf16 %v2213_v56, %v2074_v36  ;;  %v2500_v39 = vadd.f32 %v2499_v26, %v2213_v56  ;;  %v2555_v24 = vmul.f32 %v2213_v56, %v2213_v56 }
 0x263   : > { %3013 = vst [vmem:[%s4383_s25 + $0x88] sm:$0xff] %v2965_v7  }
 0x264   : > { %3007 = vst [vmem:[%s4383_s25 + $0x58] sm:$0xff] %v2935_v32   ;;  %v2501_v38 = vadd.f32 %v2500_v39, %v4442_v16  ;;  %v2602_v33 = vadd.f32 %v2601_v8, %v2555_v24  ;;  %v2560_v16 = vmul.f32 %v4463_v19, %v4463_v19 }
 0x266   : > { %v2502_v6 = vadd.f32 %v2501_v38, %v4446_v35  ;;  %v2603_v46 = vadd.f32 %v2602_v33, %v2556_v12 }
 0x268   : > { %v2503_v15 = vadd.f32 %v2502_v6, %v4455_v3  ;;  %v2604_v5 = vadd.f32 %v2603_v46, %v2557_v28 }
 0x26a   : > { %v2504_v61 = vadd.f32 %v2503_v15, %v4457_v48  ;;  %v2605_v62 = vadd.f32 %v2604_v5, %v2558_v53  ;;  %v2562_v48 = vmul.f32 %v4471_v49, %v4471_v49 }
 0x26c   : > { %v2505_v31 = vadd.f32 %v2504_v61, %v4463_v19  ;;  %v2606_v35 = vadd.f32 %v2605_v62, %v2559_v59  ;;  %v2563_v19 = vmul.f32 %v4473_v40, %v4473_v40 }
 0x26d   : > { %v2130_v1 = vpop.f32.mrb[24].mxu1 }
 0x26e   : > { %v2607_v42 = vadd.f32 %v2606_v35, %v2560_v16  ;;  %v2506_v3 = vadd.f32 %v2505_v31, %v4465_v4  ;;  %v2132_v0 = vpop.f32.mrb[25].mxu1  ;;  %v2564_v4 = vmul.f32 %v4479_v51, %v4479_v51 }
 0x26f   : > { %v2133_v57 = vpop.f32.mrb[26].mxu1 }
 0x270   : > { %v2507_v18 = vadd.f32 %v2506_v3, %v4471_v49  ;;  %v2608_v55 = vadd.f32 %v2607_v42, %v2561_v47  ;;  %v2970_v37 = vpack.c.bf16 %v2133_v57, %v2130_v1  ;;  %v2135_v20 = vpop.f32.mrb[27].mxu1 }
 0x272   : > { %v2508_v29 = vadd.f32 %v2507_v18, %v4473_v40  ;;  %v2609_v23 = vadd.f32 %v2608_v55, %v2562_v48  ;;  %3014 = vst [vmem:[%s4383_s25 + $0x90] sm:$0xff] %v2970_v37   ;;  %v2567_v40 = vmul.f32 %v2225_v9, %v2225_v9 }
 0x274   : > { %v2509_v50 = vadd.f32 %v2508_v29, %v4479_v51  ;;  %v2610_v14 = vadd.f32 %v2609_v23, %v2563_v19  ;;  %v2568_v51 = vmul.f32 %v2130_v1, %v2130_v1 }
 0x276   : > { %v2510_v49 = vadd.f32 %v2509_v50, %v4481_v22  ;;  %v2611_v27 = vadd.f32 %v2610_v14, %v2564_v4  ;;  %v2569_v22 = vmul.f32 %v2133_v57, %v2133_v57 }
 0x278   : > { %v2511_v45 = vadd.f32 %v2510_v49, %v2122_v52  ;;  %v2612_v58 = vadd.f32 %v2611_v27, %v2565_v60 }
 0x27a   : > { %v2512_v44 = vadd.f32 %v2511_v45, %v2225_v9  ;;  %v2613_v21 = vadd.f32 %v2612_v58, %v2566_v43  ;;  %v2138_v54 = vpop.f32.mrb[28].mxu1 }
 0x27b   : > { %v2228_v63 = vmul.f32 0.0, %v2138_v54  ;;  %v2140_v30 = vpop.f32.mrb[29].mxu1 }
 0x27c   : > { %v2614_v25 = vadd.f32 %v2613_v21, %v2567_v40  ;;  %v2513_v36 = vadd.f32 %v2512_v44, %v2130_v1  ;;  %v2141_v11 = vpop.f32.mrb[30].mxu1 }
 0x27d   : > { %v2975_v26 = vpack.c.bf16 %v2141_v11, %v2228_v63  ;;  %v2143_v2 = vpop.f32.mrb[31].mxu1  ;;  %v2570_v34 = vmul.f32 %v2228_v63, %v2228_v63  ;;  %v2571_v56 = vmul.f32 %v2141_v11, %v2141_v11 }
 0x27e   : > { %v2615_v13 = vadd.f32 %v2614_v25, %v2568_v51  ;;  %v2514_v41 = vadd.f32 %v2513_v36, %v2133_v57 }
 0x27f   : > { %3015 = vst [vmem:[%s4383_s25 + $0x98] sm:$0xff] %v2975_v26  }
 0x280   : > { %v2616_v10 = vadd.f32 %v2615_v13, %v2569_v22  ;;  %v2515_v52 = vadd.f32 %v2514_v41, %v2228_v63 }
 0x282   : > { %v2617_v8 = vadd.f32 %v2616_v10, %v2570_v34  ;;  %v2516_v9 = vadd.f32 %v2515_v52, %v2141_v11 }
 0x284   : > { %v2618_v17 = vadd.f32 %v2617_v8, %v2571_v56 }
 0x289   : > { %v2146_v7 = vpop.f32.mrb[32].mxu1 }
 0x28a   : > { %v2517_v32 = vadd.f32 %v2516_v9, %v2146_v7  ;;  %v2572_v39 = vmul.f32 %v2146_v7, %v2146_v7  ;;  %v2148_v24 = vpop.f32.mrb[33].mxu1 }
 0x28b   : > { %v2149_v12 = vpop.f32.mrb[34].mxu1 }
 0x28c   : > { %v2619_v38 = vadd.f32 %v2618_v17, %v2572_v39  ;;  %v2231_v33 = vmul.f32 0.0, %v2149_v12  ;;  %v2151_v28 = vpop.f32.mrb[35].mxu1 }
 0x28e   : > { %v2980_v6 = vpack.c.bf16 %v2231_v33, %v2146_v7  ;;  %v2518_v46 = vadd.f32 %v2517_v32, %v2231_v33  ;;  %v2573_v53 = vmul.f32 %v2231_v33, %v2231_v33 }
 0x290   : > { %3016 = vst [vmem:[%s4383_s25 + $0xa0] sm:$0xff] %v2980_v6   ;;  %v2620_v15 = vadd.f32 %v2619_v38, %v2573_v53 }
 0x296   : > { %v2154_v5 = vpop.f32.mrb[36].mxu1 }
 0x297   : > { %v2519_v59 = vadd.f32 %v2518_v46, %v2154_v5  ;;  %v2574_v61 = vmul.f32 %v2154_v5, %v2154_v5  ;;  %v2156_v62 = vpop.f32.mrb[37].mxu1 }
 0x298   : > { %v2157_v16 = vpop.f32.mrb[38].mxu1 }
 0x299   : > { %v2621_v31 = vadd.f32 %v2620_v15, %v2574_v61  ;;  %v2985_v35 = vpack.c.bf16 %v2157_v16, %v2154_v5  ;;  %v2520_v1 = vadd.f32 %v2519_v59, %v2157_v16  ;;  %v2575_v47 = vmul.f32 %v2157_v16, %v2157_v16  ;;  %v2159_v42 = vpop.f32.mrb[39].mxu1 }
 0x29b   : > { %3017 = vst [vmem:[%s4383_s25 + $0xa8] sm:$0xff] %v2985_v35   ;;  %v2622_v3 = vadd.f32 %v2621_v31, %v2575_v47 }
 0x2a5   : > { %v2162_v0 = vpop.f32.mrb[40].mxu1 }
 0x2a6   : > { %v2234_v57 = vmul.f32 0.0, %v2162_v0  ;;  %v2164_v48 = vpop.f32.mrb[41].mxu1 }
 0x2a7   : > { %v2165_v18 = vpop.f32.mrb[42].mxu1 }
 0x2a8   : > { %v2521_v55 = vadd.f32 %v2520_v1, %v2234_v57  ;;  %v2576_v37 = vmul.f32 %v2234_v57, %v2234_v57  ;;  %v2990_v20 = vpack.c.bf16 %v2165_v18, %v2234_v57  ;;  %v2167_v19 = vpop.f32.mrb[43].mxu1  ;;  %v2577_v4 = vmul.f32 %v2165_v18, %v2165_v18 }
 0x2aa   : > { %v2623_v29 = vadd.f32 %v2622_v3, %v2576_v37  ;;  %3018 = vst [vmem:[%s4383_s25 + $0xb0] sm:$0xff] %v2990_v20   ;;  %v2522_v23 = vadd.f32 %v2521_v55, %v2165_v18 }
 0x2ac   : > { %v2624_v50 = vadd.f32 %v2623_v29, %v2577_v4 }
 0x2b2   : > { %v2170_v14 = vpop.f32.mrb[44].mxu1 }
 0x2b3   : > { %v2523_v60 = vadd.f32 %v2522_v23, %v2170_v14  ;;  %v2578_v49 = vmul.f32 %v2170_v14, %v2170_v14  ;;  %v2172_v27 = vpop.f32.mrb[45].mxu1 }
 0x2b4   : > { %v2173_v43 = vpop.f32.mrb[46].mxu1 }
 0x2b5   : > { %v2625_v45 = vadd.f32 %v2624_v50, %v2578_v49  ;;  %v2237_v58 = vmul.f32 0.0, %v2173_v43  ;;  %v2175_v44 = vpop.f32.mrb[47].mxu1 }
 0x2b7   : > { %v2995_v40 = vpack.c.bf16 %v2237_v58, %v2170_v14  ;;  %v2524_v21 = vadd.f32 %v2523_v60, %v2237_v58  ;;  %v2579_v54 = vmul.f32 %v2237_v58, %v2237_v58 }
 0x2b9   : > { %3019 = vst [vmem:[%s4383_s25 + $0xb8] sm:$0xff] %v2995_v40   ;;  %v2525_v63 = vrot.slane %v2524_v21, 4  ;;  %v2626_v30 = vadd.f32 %v2625_v45, %v2579_v54 }
 0x2bb   : > { %v2526_v25 = vadd.f32 %v2525_v63, %v2524_v21  ;;  %v2627_v36 = vrot.slane %v2626_v30, 4 }
 0x2bd   : > { %v2527_v51 = vrot.slane %v2526_v25, 2  ;;  %v2628_v11 = vadd.f32 %v2627_v36, %v2626_v30 }
 0x2bf   : > { %v2528_v26 = vadd.f32 %v2527_v51, %v2526_v25  ;;  %v2629_v2 = vrot.slane %v2628_v11, 2 }
 0x2c1   : > { %v2529_v13 = vrot.slane %v2528_v26, 1  ;;  %v2630_v41 = vadd.f32 %v2629_v2, %v2628_v11 }
 0x2c3   : > { %v2530_v22 = vadd.f32 %v2529_v13, %v2528_v26  ;;  %v2631_v10 = vrot.slane %v2630_v41, 1 }
 0x2c5   : > { %2531 = vst [vmem:[%s211_s28] sm:$0x1] %v2530_v22  ;;  %v2632_v52 = vadd.f32 %v2631_v10, %v2630_v41 }
 0x2c7   : > { %2633 = vst [vmem:[%s214_s5] sm:$0x1] %v2632_v52 }
 0x2c8 PF: > { %s15_s15 = sadd.s32 1, %s3071_s15  }
 0x2c9   : > { %p12_p4 = scmp.ge.s32.totalorder %s15_s15, 4  }
 0x2cb   :  { %14 = sbr.rel (!%p12_p4) target bundleno = 1 (0x1), region = 82 }

// kernel: basic_block_forward.4
= control target key start
LH: loop header
LB: loop body
LE: loop exit
PB: predicated region body
PF: predicated region fallthrough
CT: control target
= control target key end

     0   :  { %s6332_s21 = smov 0   ;;  %s8455_s0 = inlined_call_operand.vmem [shape: bf16[2,384,128], index: 0, kind: input, shape index: {}]   ;;  %s8456_s1 = inlined_call_operand.vmem [shape: f32[1,128], index: 1, kind: input, shape index: {}]   ;;  %s8457_s2 = inlined_call_operand.vmem [shape: f32[1,128], index: 2, kind: input, shape index: {}]   ;;  %s8458_s3 = inlined_call_operand.vmem [shape: bf16[3,384,128], index: 3, kind: input, shape index: {}]   ;;  %s8459_s4 = inlined_call_operand.vmem [shape: f32[2,384,128], index: 4, kind: output, shape index: {0}]   ;;  %s8460_s5 = inlined_call_operand.vmem [shape: f32[2,1,128], index: 5, kind: output, shape index: {1}]   ;;  %s8461_s6 = inlined_call_operand.vmem [shape: f32[2,1,128], index: 6, kind: output, shape index: {2}]  }
   0x1 LB: > { %s5595_s22 = sadd.s32 4294967295, %s6294_s21   ;;  %p5599_p0 = scmp.ge.s32.totalorder %s6294_s21, 1  ;;  %s6294_s21 = sphi %s6332_s21, %s17_s21  }
   0x2   : > { %p217_p1 = scmp.lt.s32.totalorder %s6294_s21, 3 }
   0x4   : > { %p218_p2 = pnand %p5599_p0, %p217_p1 }
   0x6   : > { %221 = sbr.rel (%p218_p2) target bundleno = 743 (0x2e7), region = 36 }
   0xd   : > { %v6208_v0 = vld [vmem:[%s8458_s3] sm:$0xff]   ;;  %v6296_v1 = vmov 0   ;;  %v6210_v3 = vld [vmem:[%s8458_s3 + $0x8] sm:$0xff]   ;;  %p253_p3 = scmp.lt.s32.totalorder %s5595_s22, 1  ;;  %v6368_v5 = vld [vmem:[%s8458_s3 + $0x90] sm:$0xff]   ;;  %vm985_vm1 = vcmask 1043456  }
   0xe   : > { %1645 = vmatprep.subr.bf16.mxu0 %v6296_v1  ;;  %585 = vst [vmem:[#allocation2] sm:$0xff] %v6296_v1  ;;  %586 = vst [vmem:[#allocation2 + $0x8] sm:$0xff] %v6296_v1  ;;  %v6351_v2 = vld [vmem:[%s8458_s3 + $0x80] sm:$0xff]   ;;  %v6361_v4 = vld [vmem:[%s8458_s3 + $0x88] sm:$0xff]   ;;  %v6411_v12 = vrot.slane %v6296_v1, 4  ;;  %v674_v16 = vrot.slane %v6296_v1, 3 }
   0xf   : > { %635 = vst [vmem:[#allocation2 + $0xd0] sm:$0xff] %v6296_v1  ;;  %636 = vst [vmem:[#allocation2 + $0xd8] sm:$0xff] %v6296_v1  ;;  %1646 = vmatpush1.bf16.msra.mxu0 %v6208_v0  ;;  %6181 = vmatprep.subr.bf16.mxu1 %v6351_v2  ;;  %v6212_v6 = vld [vmem:[%s8458_s3 + $0x10] sm:$0xff]   ;;  %s8740_s22 = smov (!%p253_p3, %s5595_s22), 1  ;;  %v6381_v7 = vld [vmem:[%s8458_s3 + $0x98] sm:$0xff]  }
  0x10   : > { %1647 = vmatprep.subr.bf16.mxu0 %v6296_v1  ;;  %6189 = vmatpush3.bf16.msra.mxu1 %v6351_v2  ;;  %v6214_v8 = vld [vmem:[%s8458_s3 + $0x18] sm:$0xff]   ;;  %s6197_s15 = smul.u32 192, %s8740_s22  ;;  %v6393_v9 = vld [vmem:[%s8458_s3 + $0xa0] sm:$0xff]   ;;  %v6408_v11 = vld [vmem:[%s8458_s3 + $0xa8] sm:$0xff]   ;;  %vm1108_vm0 = vsmask.f32 3328  ;;  %v6471_v61 = vor.u32 %v6411_v12, %v674_v16  ;;  %s265_s17 = scalar_lea.vmem %s8460_s5, %s8740_s22 }
  0x11   : > { %6182 = vmatprep.subr.bf16.mxu1 %v6361_v4  ;;  %v6216_v10 = vld [vmem:[%s8458_s3 + $0x20] sm:$0xff]   ;;  %v6218_v17 = vld [vmem:[%s8458_s3 + $0x28] sm:$0xff]   ;;  %v6441_v30 = vld [vmem:[%s8458_s3 + $0xb0] sm:$0xff]   ;;  %vm662_vm2 = vsmask.f32 4352  ;;  %s6198_s11 = smul.u32 384, %s8740_s22  ;;  %s268_s20 = scalar_lea.vmem %s8461_s6, %s8740_s22 }
  0x12   : > { %s6401_s24 = scalar_lea.vmem %s8455_s0, %s6197_s15  ;;  %v6419_v15 = vld [vmem:[%s8456_s1] ss:$0 sm:$0xff]  ;;  %v6220_v33 = vld [vmem:[%s8458_s3 + $0x30] sm:$0xff]   ;;  %v6223_v44 = vld [vmem:[%s8458_s3 + $0xb8] sm:$0xff]   ;;  %vm2168_vm3 = vsmask.f32 256 }
  0x13   : > { %1648 = vmatpush1.bf16.msra.mxu0 %v6210_v3  ;;  %v5875_v13 = vld [vmem:[%s6401_s24 + $0x30] sm:$0xff]   ;;  %v5876_v14 = vld [vmem:[%s6401_s24 + $0x38] sm:$0xff]   ;;  %v5877_v22 = vld [vmem:[%s6401_s24 + $0x40] sm:$0xff]   ;;  %vm2486_vm4 = vsmask.f32 7424  ;;  %s8290_s14 = scalar_lea.vmem %s8459_s4, %s6198_s11 }
  0x14   : > { %1649 = vmatprep.subr.bf16.mxu0 %v6296_v1  ;;  %6190 = vmatpush3.bf16.msra.mxu1 %v6361_v4  ;;  %v5800_v18 = vunpack.c.l.bf16 %v5875_v13  ;;  %v5801_v19 = vunpack.c.h.bf16 %v5875_v13  ;;  %v5804_v20 = vunpack.c.l.bf16 %v5876_v14  ;;  %v5805_v21 = vunpack.c.h.bf16 %v5876_v14  ;;  %v6430_v23 = vld [vmem:[%s8457_s2] ss:$0 sm:$0xff]  ;;  %v5878_v38 = vld [vmem:[%s6401_s24 + $0x48] sm:$0xff]   ;;  %v5879_v43 = vld [vmem:[%s6401_s24 + $0x50] sm:$0xff]  }
  0x15   : > { %6183 = vmatprep.subr.bf16.mxu1 %v6368_v5  ;;  %v5808_v24 = vunpack.c.l.bf16 %v5877_v22  ;;  %v5809_v25 = vunpack.c.h.bf16 %v5877_v22  ;;  %v5812_v41 = vunpack.c.l.bf16 %v5878_v38  ;;  %v5813_v42 = vunpack.c.h.bf16 %v5878_v38  ;;  %v6222_v53 = vld [vmem:[%s8458_s3 + $0x38] sm:$0xff]   ;;  %v6226_v38 = vld [vmem:[%s8458_s3 + $0x48] sm:$0xff]  }
  0x16   : > { %v398_v26 = vmul.f32 %v5800_v18, %v6419_v15  ;;  %v399_v27 = vmul.f32 %v5801_v19, %v6419_v15  ;;  %v400_v28 = vmul.f32 %v5804_v20, %v6419_v15  ;;  %v401_v29 = vmul.f32 %v5805_v21, %v6419_v15 }
  0x17   : > { %1650 = vmatpush1.bf16.msra.mxu0 %v6212_v6  ;;  %v402_v31 = vmul.f32 %v5808_v24, %v6419_v15  ;;  %v403_v32 = vmul.f32 %v5809_v25, %v6419_v15  ;;  %v404_v51 = vmul.f32 %v5812_v41, %v6419_v15  ;;  %v405_v52 = vmul.f32 %v5813_v42, %v6419_v15  ;;  %v6224_v6 = vld [vmem:[%s8458_s3 + $0x40] sm:$0xff]   ;;  %v5882_v42 = vld [vmem:[%s6401_s24 + $0x68] sm:$0xff]  }
  0x18   : > { %1651 = vmatprep.subr.bf16.mxu0 %v6296_v1  ;;  %6191 = vmatpush3.bf16.msra.mxu1 %v6368_v5  ;;  %v453_v34 = vadd.f32 %v6430_v23, %v398_v26  ;;  %v454_v35 = vadd.f32 %v6430_v23, %v399_v27  ;;  %v455_v36 = vadd.f32 %v6430_v23, %v400_v28  ;;  %v5816_v56 = vunpack.c.l.bf16 %v5879_v43 }
  0x19   : > { %6184 = vmatprep.subr.bf16.mxu1 %v6381_v7  ;;  %v456_v37 = vadd.f32 %v6430_v23, %v401_v29  ;;  %v457_v39 = vadd.f32 %v6430_v23, %v402_v31  ;;  %v458_v40 = vadd.f32 %v6430_v23, %v403_v32  ;;  %v5817_v57 = vunpack.c.h.bf16 %v5879_v43  ;;  %v5880_v29 = vld [vmem:[%s6401_s24 + $0x58] sm:$0xff]   ;;  %v5881_v31 = vld [vmem:[%s6401_s24 + $0x60] sm:$0xff]  }
  0x1a   : > { %v501_v45 = vmax.f32 %v453_v34, 0.0  ;;  %v502_v46 = vmax.f32 %v454_v35, 0.0  ;;  %v503_v47 = vmax.f32 %v455_v36, 0.0  ;;  %v459_v59 = vadd.f32 %v6430_v23, %v404_v51  ;;  %v6225_v34 = vld [vmem:[%s8458_s3 + $0xc0] sm:$0xff]  }
  0x1b   : > { %1652 = vmatpush1.bf16.msra.mxu0 %v6214_v8  ;;  %v504_v48 = vmax.f32 %v456_v37, 0.0  ;;  %v505_v49 = vmax.f32 %v457_v39, 0.0  ;;  %v506_v50 = vmax.f32 %v458_v40, 0.0  ;;  %v460_v60 = vadd.f32 %v6430_v23, %v405_v52 }
  0x1c   : > { %1653 = vmatprep.subr.bf16.mxu0 %v6296_v1  ;;  %6192 = vmatpush3.bf16.msra.mxu1 %v6381_v7  ;;  %v551_v54 = vmul.f32 0.0, %v503_v47  ;;  %v593_v55 = vpack.c.bf16 %v502_v46, %v501_v45  ;;  %v406_v3 = vmul.f32 %v5816_v56, %v6419_v15  ;;  %v407_v14 = vmul.f32 %v5817_v57, %v6419_v15 }
  0x1d   : > { %6185 = vmatprep.subr.bf16.mxu1 %v6393_v9  ;;  %v554_v58 = vmul.f32 0.0, %v506_v50  ;;  %v508_v13 = vmax.f32 %v460_v60, 0.0  ;;  %v5820_v41 = vunpack.c.l.bf16 %v5880_v29  ;;  %v5821_v46 = vunpack.c.h.bf16 %v5880_v29  ;;  %v6227_v60 = vld [vmem:[%s8458_s3 + $0xc8] sm:$0xff]  }
  0x1e   : > { %v594_v62 = vpack.c.bf16 %v504_v48, %v551_v54  ;;  %617 = vst [vmem:[#allocation2 + $0x40] sm:$0xff] %v593_v55  ;;  %v1181_v63 = vshrl.u32 %v593_v55, 16  ;;  %v1184_v0 = vshll.u32 %v593_v55, 16  ;;  %v461_v24 = vadd.f32 %v6430_v23, %v406_v3  ;;  %v6228_v55 = vld [vmem:[%s8458_s3 + $0x50] sm:$0xff]  }
  0x1f   : > { %1654 = vmatpush1.bf16.msra.mxu0 %v6216_v10  ;;  %v595_v8 = vpack.c.bf16 %v554_v58, %v505_v49  ;;  %v507_v10 = vmax.f32 %v459_v59, 0.0  ;;  %v462_v28 = vadd.f32 %v6430_v23, %v407_v14  ;;  %v408_v49 = vmul.f32 %v5820_v41, %v6419_v15 }
  0x20   : > { %1655 = vmatprep.subr.bf16.mxu0 %v6296_v1  ;;  %6193 = vmatpush3.bf16.msra.mxu1 %v6393_v9  ;;  %618 = vst [vmem:[#allocation2 + $0x48] sm:$0xff] %v594_v62  ;;  %v1183_v16 = vrot.slane %v1181_v63, 4  ;;  %v1190_v18 = vshrl.u32 %v594_v62, 16  ;;  %v1193_v19 = vshll.u32 %v594_v62, 16  ;;  %v509_v39 = vmax.f32 %v461_v24, 0.0  ;;  %v6230_v24 = vld [vmem:[%s8458_s3 + $0x58] sm:$0xff]  }
  0x21   : > { %6186 = vmatprep.subr.bf16.mxu1 %v6408_v11  ;;  %619 = vst [vmem:[#allocation2 + $0x50] sm:$0xff] %v595_v8  ;;  %v1199_v20 = vshrl.u32 %v595_v8, 16  ;;  %v1202_v21 = vshll.u32 %v595_v8, 16  ;;  %v596_v22 = vpack.c.bf16 %v508_v13, %v507_v10  ;;  %v510_v40 = vmax.f32 %v462_v28, 0.0 }
  0x22   : > { %v1192_v26 = vrot.slane %v1190_v18, 4  ;;  %v1195_v27 = vrot.slane %v1193_v19, 5  ;;  %v557_v48 = vmul.f32 0.0, %v509_v39  ;;  %v5824_v50 = vunpack.c.l.bf16 %v5881_v31 }
  0x23   : > { %1656 = vmatpush1.bf16.msra.mxu0 %v6218_v17  ;;  %v1186_v17 = vrot.slane %v1184_v0, 5  ;;  %v1201_v32 = vrot.slane %v1199_v20, 4  ;;  %620 = vst [vmem:[#allocation2 + $0x58] sm:$0xff] %v596_v22  ;;  %v1208_v35 = vshrl.u32 %v596_v22, 16  ;;  %v1211_v36 = vshll.u32 %v596_v22, 16  ;;  %v5883_v20 = vld [vmem:[%s6401_s24 + $0x70] sm:$0xff]  }
  0x24   : > { %1657 = vmatprep.subr.bf16.mxu0 %v6296_v1  ;;  %6194 = vmatpush3.bf16.msra.mxu1 %v6408_v11  ;;  %v1196_v37 = vor.u32 %v1195_v27, %v1192_v26  ;;  %v5825_v54 = vunpack.c.h.bf16 %v5881_v31  ;;  %v597_v56 = vpack.c.bf16 %v510_v40, %v557_v48  ;;  %v463_v57 = vadd.f32 %v6430_v23, %v408_v49  ;;  %v6231_v48 = vld [vmem:[%s8458_s3 + $0xd8] sm:$0xff]  }
  0x25   : > { %6187 = vmatprep.subr.bf16.mxu1 %v6441_v30  ;;  %v6481_v25 = vor.u32 %v1186_v17, %v1183_v16  ;;  %v1213_v45 = vrot.slane %v1211_v36, 5  ;;  %v410_v58 = vmul.f32 %v5824_v50, %v6419_v15  ;;  %v5828_v59 = vunpack.c.l.bf16 %v5882_v42 }
  0x26   : > { %v411_v0 = vmul.f32 %v5825_v54, %v6419_v15  ;;  %v5829_v3 = vunpack.c.h.bf16 %v5882_v42  ;;  %621 = vst [vmem:[#allocation2 + $0x60] sm:$0xff] %v597_v56  ;;  %v1217_v8 = vshrl.u32 %v597_v56, 16  ;;  %v1220_v10 = vshll.u32 %v597_v56, 16 }
  0x27   : > { %1658 = vmatpush1.bf16.msra.mxu0 %v6220_v33  ;;  %v1204_v33 = vrot.slane %v1202_v21, 5  ;;  %v1197_v47 = vsel %vm1108_vm0, %v6481_v25, %v1196_v37  ;;  %v511_v13 = vmax.f32 %v463_v57, 0.0  ;;  %v465_v14 = vadd.f32 %v6430_v23, %v410_v58 }
  0x28   : > { %1659 = vmatprep.subr.bf16.mxu0 %v6296_v1  ;;  %6195 = vmatpush3.bf16.msra.mxu1 %v6441_v30  ;;  %v466_v17 = vadd.f32 %v6430_v23, %v411_v0  ;;  %v412_v18 = vmul.f32 %v5828_v59, %v6419_v15  ;;  %v413_v19 = vmul.f32 %v5829_v3, %v6419_v15  ;;  %v1219_v21 = vrot.slane %v1217_v8, 4 }
  0x29   : > { %6188 = vmatprep.subr.bf16.mxu1 %v6223_v44  ;;  %v1205_v43 = vor.u32 %v1204_v33, %v1201_v32  ;;  %6021 = vmatprep.mubr.bf16.mxu1 %v1197_v47  ;;  %v1222_v22 = vrot.slane %v1220_v10, 5  ;;  %v513_v26 = vmax.f32 %v465_v14, 0.0  ;;  %v5832_v27 = vunpack.c.l.bf16 %v5883_v20  ;;  %v637_v47 = vld [vmem:[#allocation2] sm:$0xf8] }
  0x2a   : > { %v514_v29 = vmax.f32 %v466_v17, 0.0  ;;  %v467_v31 = vadd.f32 %v6430_v23, %v412_v18  ;;  %v468_v32 = vadd.f32 %v6430_v23, %v413_v19  ;;  %v664_v3 = vshrl.u32 %v637_v47, 16 }
  0x2b   : > { %1660 = vmatpush1.bf16.msra.mxu0 %v6222_v53  ;;  %v1206_v51 = vsel %vm1108_vm0, %v1196_v37, %v1205_v43  ;;  %v409_v53 = vmul.f32 %v5821_v46, %v6419_v15  ;;  %v1223_v33 = vor.u32 %v1222_v22, %v1219_v21  ;;  %v414_v36 = vmul.f32 %v5832_v27, %v6419_v15  ;;  %v5885_v21 = vld [vmem:[%s6401_s24 + $0x80] sm:$0xff]  }
  0x2c   : > { %1661 = vmatprep.subr.bf16.mxu0 %v6296_v1  ;;  %6196 = vmatpush3.bf16.msra.mxu1 %v6223_v44  ;;  %v1210_v44 = vrot.slane %v1208_v35, 4  ;;  %v5833_v35 = vunpack.c.h.bf16 %v5883_v20  ;;  %v599_v40 = vpack.c.bf16 %v514_v29, %v513_v26  ;;  %v515_v41 = vmax.f32 %v467_v31, 0.0 }
  0x2d   : > { %2996 = vmatprep.subr.bf16.mxu1 %v6296_v1  ;;  %v464_v63 = vadd.f32 %v6430_v23, %v409_v53  ;;  %v516_v42 = vmax.f32 %v468_v32, 0.0  ;;  %v5884_v53 = vld [vmem:[%s6401_s24 + $0x78] sm:$0xff]   ;;  %v666_v20 = vrot.slane %v664_v3, 3 }
  0x2e   : > { %v1214_v52 = vor.u32 %v1213_v45, %v1210_v44  ;;  %v415_v44 = vmul.f32 %v5833_v35, %v6419_v15  ;;  %v469_v45 = vadd.f32 %v6430_v23, %v414_v36  ;;  %623 = vst [vmem:[#allocation2 + $0x70] sm:$0xff] %v599_v40  ;;  %v563_v54 = vmul.f32 0.0, %v515_v41 }
  0x2f   : > { %1662 = vmatpush1.bf16.msra.mxu0 %v6224_v6  ;;  %6022 = vmatmul.mubr.bf16.vlgmr.msra.gmra.mrb[0].mxu1 %v1206_v51  ;;  %v935_v6 = vld [vmem:[#allocation2] sm:$0xf0]  ;;  %v512_v16 = vmax.f32 %v464_v63, 0.0  ;;  %v1235_v51 = vshrl.u32 %v599_v40, 16  ;;  %v5837_v14 = vunpack.c.h.bf16 %v5884_v53 }
  0x30   : > { %1663 = vmatprep.subr.bf16.mxu0 %v6296_v1  ;;  %2997 = vmatpush1.bf16.msra.mxu1 %v6225_v34  ;;  %v1215_v62 = vsel %vm1108_vm0, %v1205_v43, %v1214_v52  ;;  %v6229_v34 = vld [vmem:[%s8458_s3 + $0xd0] sm:$0xff]   ;;  %v986_v37 = vrot.slane %v935_v6, 4  ;;  %v1224_v43 = vsel %vm1108_vm0, %v1214_v52, %v1223_v33  ;;  %v1238_v52 = vshll.u32 %v599_v40, 16 }
  0x31   : > { %2998 = vmatprep.subr.bf16.mxu1 %v6296_v1  ;;  %6025 = vmatprep.mubr.bf16.mxu1 %v1215_v62  ;;  %v560_v28 = vmul.f32 0.0, %v512_v16  ;;  %v517_v56 = vmax.f32 %v469_v45, 0.0  ;;  %v1237_v59 = vrot.slane %v1235_v51, 4  ;;  %v6234_v62 = vld [vmem:[%s8458_s3 + $0x68] sm:$0xff]   ;;  %v600_v63 = vpack.c.bf16 %v516_v42, %v563_v54  ;;  %v6233_v16 = vld [vmem:[%s8458_s3 + $0xe0] sm:$0xff]  }
  0x32   : > { %v988_v46 = vsel %vm985_vm1, %v986_v37, %v6411_v12  ;;  %v667_v6 = vshll.u32 %v637_v47, 16  ;;  %v5840_v37 = vunpack.c.l.bf16 %v5885_v21 }
  0x33   : > { %1664 = vmatpush1.bf16.msra.mxu0 %v6226_v38  ;;  %v6232_v38 = vld [vmem:[%s8458_s3 + $0x60] sm:$0xff]   ;;  %v598_v39 = vpack.c.bf16 %v560_v28, %v511_v13  ;;  %1677 = vmatprep.mubr.bf16.mxu0 %v988_v46  ;;  %v5836_v13 = vunpack.c.l.bf16 %v5884_v53  ;;  %624 = vst [vmem:[#allocation2 + $0x78] sm:$0xff] %v600_v63  ;;  %v1244_v17 = vshrl.u32 %v600_v63, 16  ;;  %v1247_v18 = vshll.u32 %v600_v63, 16  ;;  %v6236_v28 = vld [vmem:[%s8458_s3 + $0x70] sm:$0xff]  }
  0x34   : > { %1665 = vmatprep.subr.bf16.mxu0 %v6296_v1  ;;  %2999 = vmatpush1.bf16.msra.mxu1 %v6227_v60  ;;  %v1240_v60 = vrot.slane %v1238_v52, 5  ;;  %v669_v26 = vrot.slane %v667_v6, 4  ;;  %v418_v46 = vmul.f32 %v5840_v37, %v6419_v15  ;;  %v6238_v52 = vld [vmem:[%s8458_s3 + $0x78] sm:$0xff]  }
  0x35   : > { %3000 = vmatprep.subr.bf16.mxu1 %v6296_v1  ;;  %622 = vst [vmem:[#allocation2 + $0x68] sm:$0xff] %v598_v39  ;;  %v1226_v49 = vshrl.u32 %v598_v39, 16  ;;  %v1229_v50 = vshll.u32 %v598_v39, 16  ;;  %v416_v27 = vmul.f32 %v5836_v13, %v6419_v15  ;;  %v1246_v29 = vrot.slane %v1244_v17, 4  ;;  %v5775_v39 = vld [vmem:[%s6401_s24] sm:$0xff]  }
  0x36   : > { %v1241_v10 = vor.u32 %v1240_v60, %v1237_v59  ;;  %v1249_v31 = vrot.slane %v1247_v18, 5  ;;  %v670_v35 = vor.u32 %v669_v26, %v666_v20  ;;  %v473_v54 = vadd.f32 %v6430_v23, %v418_v46  ;;  %v6237_v59 = vld [vmem:[%s8458_s3 + $0xf0] sm:$0xff]  }
  0x37   : > { %1666 = vmatpush1.bf16.msra.mxu0 %v6228_v55  ;;  %6026 = vmatmul.mubr.bf16.gmra.mrb[4].mxu1 %v1224_v43  ;;  %v470_v55 = vadd.f32 %v6430_v23, %v415_v44  ;;  %v1228_v57 = vrot.slane %v1226_v49, 4  ;;  %v1231_v58 = vrot.slane %v1229_v50, 5  ;;  %v471_v36 = vadd.f32 %v6430_v23, %v416_v27 }
  0x38   : > { %1667 = vmatprep.subr.bf16.mxu0 %v6296_v1  ;;  %3001 = vmatpush1.bf16.msra.mxu1 %v6229_v34  ;;  %v417_v34 = vmul.f32 %v5837_v14, %v6419_v15  ;;  %v1250_v40 = vor.u32 %v1249_v31, %v1246_v29  ;;  %v679_v44 = vsel %vm662_vm2, %v670_v35, %v6471_v61  ;;  %v521_v3 = vmax.f32 %v473_v54, 0.0  ;;  %v5870_v29 = vld [vmem:[%s6401_s24 + $0x8] sm:$0xff]  }
  0x39   : > { %3002 = vmatprep.subr.bf16.mxu1 %v6296_v1  ;;  %v518_v0 = vmax.f32 %v470_v55, 0.0  ;;  %v1232_v8 = vor.u32 %v1231_v58, %v1228_v57  ;;  %v519_v45 = vmax.f32 %v471_v36, 0.0  ;;  %v5777_v57 = vunpack.c.h.bf16 %v5775_v39 }
  0x3a   : > { %v472_v43 = vadd.f32 %v6430_v23, %v417_v34  ;;  %v1251_v49 = vsel %vm1108_vm0, %v1241_v10, %v1250_v40  ;;  %v569_v18 = vmul.f32 0.0, %v521_v3  ;;  %v5780_v46 = vunpack.c.l.bf16 %v5870_v29 }
  0x3b   : > { %1668 = vmatpush1.bf16.msra.mxu0 %v6230_v24  ;;  %v566_v19 = vmul.f32 0.0, %v518_v0  ;;  %v1233_v22 = vsel %vm1108_vm0, %v1223_v33, %v1232_v8  ;;  %v1242_v24 = vsel %vm1108_vm0, %v1232_v8, %v1241_v10  ;;  %v6235_v33 = vld [vmem:[%s8458_s3 + $0xe8] sm:$0xff]   ;;  %v5887_v0 = vld [vmem:[%s6401_s24 + $0x90] sm:$0xff]   ;;  %v387_v10 = vmul.f32 %v5777_v57, %v6419_v15 }
  0x3c   : > { %1669 = vmatprep.subr.bf16.mxu0 %v6296_v1  ;;  %3003 = vmatpush1.bf16.msra.mxu1 %v6231_v48  ;;  %v5886_v48 = vld [vmem:[%s6401_s24 + $0x88] sm:$0xff]   ;;  %v520_v53 = vmax.f32 %v472_v43, 0.0  ;;  %v5849_v37 = vunpack.c.h.bf16 %v5887_v0 }
  0x3d   : > { %3004 = vmatprep.subr.bf16.mxu1 %v6296_v1  ;;  %6029 = vmatprep.mubr.bf16.mxu1 %v1233_v22  ;;  %v601_v32 = vpack.c.bf16 %v566_v19, %v517_v56  ;;  %v5776_v56 = vunpack.c.l.bf16 %v5775_v39  ;;  %v5845_v63 = vunpack.c.h.bf16 %v5886_v48  ;;  %v442_v20 = vadd.f32 %v6430_v23, %v387_v10  ;;  %v6239_v22 = vld [vmem:[%s8458_s3 + $0xf8] sm:$0xff]  }
  0x3e   : > { %v602_v60 = vpack.c.bf16 %v520_v53, %v519_v45 }
  0x3f   : > { %1670 = vmatpush1.bf16.msra.mxu0 %v6232_v38  ;;  %6030 = vmatmul.mubr.bf16.gmra.mrb[8].mxu1 %v1242_v24  ;;  %v5841_v38 = vunpack.c.h.bf16 %v5885_v21  ;;  %625 = vst [vmem:[#allocation2 + $0x80] sm:$0xff] %v601_v32  ;;  %v1253_v41 = vshrl.u32 %v601_v32, 16  ;;  %v1256_v42 = vshll.u32 %v601_v32, 16  ;;  %v386_v8 = vmul.f32 %v5776_v56, %v6419_v15 }
  0x40   : > { %1671 = vmatprep.subr.bf16.mxu0 %v6296_v1  ;;  %3005 = vmatpush1.bf16.msra.mxu1 %v6233_v16  ;;  %626 = vst [vmem:[#allocation2 + $0x88] sm:$0xff] %v602_v60  ;;  %v1262_v14 = vshrl.u32 %v602_v60, 16  ;;  %v1265_v16 = vshll.u32 %v602_v60, 16  ;;  %v421_v21 = vmul.f32 %v5845_v63, %v6419_v15  ;;  %v490_v34 = vmax.f32 %v442_v20, 0.0 }
  0x41   : > { %3006 = vmatprep.subr.bf16.mxu1 %v6296_v1  ;;  %v419_v47 = vmul.f32 %v5841_v38, %v6419_v15  ;;  %v1255_v50 = vrot.slane %v1253_v41, 4  ;;  %v1258_v51 = vrot.slane %v1256_v42, 5  ;;  %6033 = vmatprep.mubr.bf16.mxu1 %v1251_v49  ;;  %v441_v19 = vadd.f32 %v6430_v23, %v386_v8 }
  0x42   : > { %v1264_v24 = vrot.slane %v1262_v14, 4  ;;  %v1267_v26 = vrot.slane %v1265_v16, 5  ;;  %v5781_v60 = vunpack.c.h.bf16 %v5870_v29 }
  0x43   : > { %1672 = vmatpush1.bf16.msra.mxu0 %v6234_v62  ;;  %v474_v55 = vadd.f32 %v6430_v23, %v419_v47  ;;  %v1259_v58 = vor.u32 %v1258_v51, %v1255_v50  ;;  %v5844_v62 = vunpack.c.l.bf16 %v5886_v48  ;;  %v489_v32 = vmax.f32 %v441_v19, 0.0 }
  0x44   : > { %1673 = vmatprep.subr.bf16.mxu0 %v6296_v1  ;;  %3007 = vmatpush1.bf16.msra.mxu1 %v6235_v33  ;;  %v476_v33 = vadd.f32 %v6430_v23, %v421_v21  ;;  %v1268_v35 = vor.u32 %v1267_v26, %v1264_v24  ;;  %v389_v3 = vmul.f32 %v5781_v60, %v6419_v15  ;;  %v5889_v26 = vld [vmem:[%s6401_s24 + $0xa0] sm:$0xff]  }
  0x45   : > { %3008 = vmatprep.subr.bf16.mxu1 %v6296_v1  ;;  %v522_v6 = vmax.f32 %v474_v55, 0.0  ;;  %v1260_v13 = vsel %vm1108_vm0, %v1250_v40, %v1259_v58  ;;  %v420_v17 = vmul.f32 %v5844_v62, %v6419_v15  ;;  %v6602_v41 = vpack.c.bf16 %v490_v34, %v489_v32  ;;  %v5888_v55 = vld [vmem:[%s6401_s24 + $0x98] sm:$0xff]  }
  0x46   : > { %v524_v42 = vmax.f32 %v476_v33, 0.0  ;;  %v1269_v43 = vsel %vm1108_vm0, %v1259_v58, %v1268_v35  ;;  %v6241_v58 = vld [vmem:[%s8458_s3 + $0x108] sm:$0xff]   ;;  %v5853_v8 = vunpack.c.h.bf16 %v5888_v55 }
  0x47   : > { %1674 = vmatpush1.bf16.msra.mxu0 %v6236_v28  ;;  %6034 = vmatmul.mubr.bf16.gmra.mrb[12].mxu1 %v1260_v13  ;;  %v475_v27 = vadd.f32 %v6430_v23, %v420_v17  ;;  %v5848_v28 = vunpack.c.l.bf16 %v5887_v0  ;;  %v603_v31 = vpack.c.bf16 %v522_v6, %v569_v18  ;;  %611 = vst [vmem:[#allocation2 + $0x10] sm:$0xff] %v6602_v41  ;;  %v989_v49 = vrot.slane %v6602_v41, 4  ;;  %v6242_v17 = vld [vmem:[%s8458_s3 + $0x110] sm:$0xff]  }
  0x48   : > { %1675 = vmatprep.subr.bf16.mxu0 %v6296_v1  ;;  %3009 = vmatpush1.bf16.msra.mxu1 %v6237_v59  ;;  %v681_v50 = vshrl.u32 %v6602_v41, 16  ;;  %v684_v51 = vshll.u32 %v6602_v41, 16  ;;  %v388_v0 = vmul.f32 %v5780_v46, %v6419_v15  ;;  %v5852_v6 = vunpack.c.l.bf16 %v5888_v55 }
  0x49   : > { %3010 = vmatprep.subr.bf16.mxu1 %v6296_v1  ;;  %v523_v36 = vmax.f32 %v475_v27, 0.0  ;;  %v422_v38 = vmul.f32 %v5848_v28, %v6419_v15  ;;  %627 = vst [vmem:[#allocation2 + $0x90] sm:$0xff] %v603_v31  ;;  %v1271_v39 = vshrl.u32 %v603_v31, 16  ;;  %v1274_v40 = vshll.u32 %v603_v31, 16  ;;  %6037 = vmatprep.mubr.bf16.mxu1 %v1269_v43  ;;  %v6650_v28 = vld [vmem:[#allocation2] sm:$0xff] }
  0x4a   : > { %v990_v57 = vsel %vm985_vm1, %v6411_v12, %v989_v49  ;;  %v683_v59 = vrot.slane %v681_v50, 3  ;;  %v444_v18 = vadd.f32 %v6430_v23, %v389_v3  ;;  %v424_v19 = vmul.f32 %v5852_v6, %v6419_v15  ;;  %v6244_v3 = vld [vmem:[%s8458_s3 + $0x120] sm:$0xff]  }
  0x4b   : > { %1676 = vmatpush1.bf16.msra.mxu0 %v6238_v52  ;;  %v477_v45 = vadd.f32 %v6430_v23, %v422_v38  ;;  %v1273_v47 = vrot.slane %v1271_v39, 4  ;;  %v1276_v48 = vrot.slane %v1274_v40, 5  ;;  %v572_v52 = vmul.f32 0.0, %v524_v42  ;;  %v5890_v42 = vld [vmem:[%s6401_s24 + $0xa8] sm:$0xff]  }
  0x4c   : > { %5989 = vmatprep.subr.bf16.mxu0 %v6351_v2  ;;  %3011 = vmatpush1.bf16.msra.mxu1 %v6239_v22  ;;  %v425_v20 = vmul.f32 %v5853_v8, %v6419_v15  ;;  %v492_v31 = vmax.f32 %v444_v18, 0.0  ;;  %v479_v32 = vadd.f32 %v6430_v23, %v424_v19  ;;  %v5857_v40 = vunpack.c.h.bf16 %v5889_v26  ;;  %v6706_v19 = vld [vmem:[%s8456_s1] ss:$0 sm:$0xff] }
  0x4d   : > { %3012 = vmatprep.subr.bf16.mxu1 %v6296_v1  ;;  %v525_v54 = vmax.f32 %v477_v45, 0.0  ;;  %v1277_v56 = vor.u32 %v1276_v48, %v1273_v47  ;;  %v604_v62 = vpack.c.bf16 %v572_v52, %v523_v36  ;;  %v5871_v36 = vld [vmem:[%s6401_s24 + $0x10] sm:$0xff]   ;;  %v6243_v47 = vld [vmem:[%s8458_s3 + $0x118] sm:$0xff]   ;;  %v5861_v18 = vunpack.c.h.bf16 %v5890_v42 }
  0x4e   : > { %1678 = vmatmul.mubr.bf16.vlgmr.msra.gmra.mrb[0].mxu0 %v679_v44  ;;  %v423_v44 = vmul.f32 %v5849_v37, %v6419_v15  ;;  %v527_v39 = vmax.f32 %v479_v32, 0.0  ;;  %v5784_v45 = vunpack.c.l.bf16 %v5871_v36  ;;  %v427_v52 = vmul.f32 %v5857_v40, %v6419_v15 }
  0x4f   : > { %5990 = vmatpush3.bf16.msra.mxu0 %v6351_v2  ;;  %v6240_v2 = vld [vmem:[%s8458_s3 + $0x100] sm:$0xff]   ;;  %1685 = vmatprep.mubr.bf16.mxu0 %v990_v57  ;;  %v1278_v12 = vsel %vm1108_vm0, %v1268_v35, %v1277_v56  ;;  %628 = vst [vmem:[#allocation2 + $0x98] sm:$0xff] %v604_v62  ;;  %v1280_v13 = vshrl.u32 %v604_v62, 16  ;;  %v1283_v14 = vshll.u32 %v604_v62, 16  ;;  %v5856_v35 = vunpack.c.l.bf16 %v5889_v26 }
  0x50   : > { %5991 = vmatprep.subr.bf16.mxu0 %v6361_v4  ;;  %v478_v53 = vadd.f32 %v6430_v23, %v423_v44  ;;  %3013 = vmatpush1.bf16.msra.mxu1 %v6240_v2  ;;  %v575_v48 = vmul.f32 0.0, %v527_v39  ;;  %v390_v55 = vmul.f32 %v5784_v45, %v6419_v15  ;;  %v482_v62 = vadd.f32 %v6430_v23, %v427_v52  ;;  %v6284_v39 = vld [vmem:[%s8458_s3 + $0xb0] sm:$0xff]  }
  0x51   : > { %3014 = vmatprep.subr.bf16.mxu1 %v6296_v1  ;;  %6038 = vmatmul.mubr.bf16.gmra.mrb[16].mxu1 %v1278_v12  ;;  %v443_v1 = vadd.f32 %v6430_v23, %v388_v0  ;;  %v1282_v22 = vrot.slane %v1280_v13, 4  ;;  %v1285_v24 = vrot.slane %v1283_v14, 5  ;;  %v426_v44 = vmul.f32 %v5856_v35, %v6419_v15  ;;  %v5891_v14 = vld [vmem:[%s6401_s24 + $0xb0] sm:$0xff]  }
  0x52   : > { %v526_v63 = vmax.f32 %v478_v53, 0.0  ;;  %v530_v13 = vmax.f32 %v482_v62, 0.0  ;;  %v5865_v35 = vunpack.c.h.bf16 %v5891_v14 }
  0x53   : > { %5992 = vmatpush3.bf16.msra.mxu0 %v6361_v4  ;;  %v686_v4 = vrot.slane %v684_v51, 4  ;;  %v491_v29 = vmax.f32 %v443_v1, 0.0  ;;  %v1286_v34 = vor.u32 %v1285_v24, %v1282_v22  ;;  %v481_v53 = vadd.f32 %v6430_v23, %v426_v44  ;;  %v6245_v1 = vld [vmem:[%s8458_s3 + $0x128] sm:$0xff]   ;;  %v6285_v44 = vld [vmem:[%s8458_s3 + $0xb8] sm:$0xff]  }
  0x54   : > { %5993 = vmatprep.subr.bf16.mxu0 %v6368_v5  ;;  %v605_v16 = vpack.c.bf16 %v526_v63, %v525_v54  ;;  %3015 = vmatpush1.bf16.msra.mxu1 %v6241_v58  ;;  %v5785_v54 = vunpack.c.h.bf16 %v5871_v36 }
  0x55   : > { %v6635_v10 = vor.u32 %v686_v4, %v683_v59  ;;  %3016 = vmatprep.subr.bf16.mxu1 %v6650_v28  ;;  %v539_v38 = vmul.f32 0.0, %v491_v29  ;;  %v1287_v43 = vsel %vm1108_vm0, %v1277_v56, %v1286_v34  ;;  %v5860_v56 = vunpack.c.l.bf16 %v5890_v42 }
  0x56   : > { %629 = vst [vmem:[#allocation2 + $0xa0] sm:$0xff] %v605_v16  ;;  %v1292_v27 = vshll.u32 %v605_v16, 16  ;;  %6041 = vmatprep.mubr.bf16.mxu1 %v1287_v43  ;;  %v529_v63 = vmax.f32 %v481_v53, 0.0  ;;  %v429_v29 = vmul.f32 %v6706_v19, %v5861_v18 }
  0x57   : > { %5994 = vmatpush3.bf16.msra.mxu0 %v6368_v5  ;;  %v688_v21 = vsel %vm662_vm2, %v6471_v61, %v6635_v10  ;;  %v1289_v5 = vshrl.u32 %v605_v16, 16  ;;  %v480_v61 = vadd.f32 %v6430_v23, %v425_v20  ;;  %v428_v20 = vmul.f32 %v6706_v19, %v5860_v56 }
  0x58   : > { %5995 = vmatprep.subr.bf16.mxu0 %v6381_v7  ;;  %1686 = vmatmul.mubr.bf16.gmra.mrb[4].mxu0 %v688_v21  ;;  %v1294_v37 = vrot.slane %v1292_v27, 5  ;;  %v6710_v21 = vld [vmem:[%s6401_s24 + $0x18] sm:$0xff]  }
  0x59   : > { %v1291_v33 = vrot.slane %v1289_v5, 4  ;;  %3017 = vmatpush1.bf16.msra.mxu1 %v6242_v17  ;;  %v528_v2 = vmax.f32 %v480_v61, 0.0  ;;  %v578_v5 = vmul.f32 0.0, %v530_v13  ;;  %v5789_v52 = vunpack.c.h.bf16 %v6710_v21  ;;  %v6247_v13 = vld [vmem:[%s8458_s3 + $0x138] sm:$0xff]  }
  0x5a   : > { %3018 = vmatprep.subr.bf16.mxu1 %v6650_v28 }
  0x5b   : > { %5996 = vmatpush3.bf16.msra.mxu0 %v6381_v7  ;;  %v6661_v46 = vor.u32 %v1294_v37, %v1291_v33  ;;  %v6664_v7 = vpack.c.bf16 %v492_v31, %v539_v38  ;;  %v606_v4 = vpack.c.bf16 %v528_v2, %v575_v48  ;;  %v6723_v31 = vld [vmem:[%s8457_s2] ss:$0 sm:$0xff]  ;;  %v607_v61 = vpack.c.bf16 %v578_v5, %v529_v63 }
  0x5c   : > { %5997 = vmatprep.subr.bf16.mxu0 %v6393_v9  ;;  %v483_v32 = vadd.f32 %v6723_v31, %v428_v20  ;;  %v5788_v38 = vunpack.c.l.bf16 %v6710_v21 }
  0x5d   : > { %v1296_v57 = vsel %vm1108_vm0, %v1286_v34, %v6661_v46  ;;  %612 = vst [vmem:[#allocation2 + $0x18] sm:$0xff] %v6664_v7  ;;  %v991_v58 = vrot.slane %v6664_v7, 4  ;;  %v690_v59 = vshrl.u32 %v6664_v7, 16  ;;  %v693_v60 = vshll.u32 %v6664_v7, 16  ;;  %3019 = vmatpush1.bf16.msra.mxu1 %v6243_v47  ;;  %630 = vst [vmem:[#allocation2 + $0xa8] sm:$0xff] %v606_v4 }
  0x5e   : > { %6042 = vmatmul.mubr.bf16.gmra.mrb[20].mxu1 %v1296_v57  ;;  %v1298_v6 = vshrl.u32 %v606_v4, 16  ;;  %v1301_v8 = vshll.u32 %v606_v4, 16  ;;  %3020 = vmatprep.subr.bf16.mxu1 %v6650_v28  ;;  %v5864_v34 = vunpack.c.l.bf16 %v5891_v14  ;;  %v531_v36 = vmax.f32 %v483_v32, 0.0  ;;  %631 = vst [vmem:[#allocation2 + $0xb0] sm:$0xff] %v607_v61 }
  0x5f   : > { %5998 = vmatpush3.bf16.msra.mxu0 %v6393_v9  ;;  %v391_v9 = vmul.f32 %v5785_v54, %v6419_v15  ;;  %v992_v0 = vsel %vm985_vm1, %v989_v49, %v991_v58  ;;  %v692_v12 = vrot.slane %v690_v59, 3  ;;  %v445_v15 = vadd.f32 %v6430_v23, %v390_v55 }
  0x60   : > { %5999 = vmatprep.subr.bf16.mxu0 %v6408_v11  ;;  %v695_v11 = vrot.slane %v693_v60, 4  ;;  %1693 = vmatprep.mubr.bf16.mxu0 %v992_v0  ;;  %v1300_v22 = vrot.slane %v1298_v6, 4  ;;  %v1303_v24 = vrot.slane %v1301_v8, 5  ;;  %v430_v37 = vmul.f32 %v6706_v19, %v5864_v34 }
  0x61   : > { %v446_v49 = vadd.f32 %v6430_v23, %v391_v9  ;;  %v493_v17 = vmax.f32 %v445_v15, 0.0  ;;  %v6282_v23 = vld [vmem:[%s8458_s3 + $0xa8] sm:$0xff]   ;;  %3021 = vmatpush1.bf16.msra.mxu1 %v6244_v3  ;;  %v1307_v42 = vshrl.u32 %v607_v61, 16  ;;  %v1310_v43 = vshll.u32 %v607_v61, 16 }
  0x62   : > { %v6698_v16 = vor.u32 %v695_v11, %v692_v12  ;;  %v1304_v33 = vor.u32 %v1303_v24, %v1300_v22  ;;  %3022 = vmatprep.subr.bf16.mxu1 %v6650_v28  ;;  %v431_v47 = vmul.f32 %v6706_v19, %v5865_v35  ;;  %v485_v48 = vadd.f32 %v6723_v31, %v430_v37 }
  0x63   : > { %6000 = vmatpush3.bf16.msra.mxu0 %v6282_v23  ;;  %v494_v26 = vmax.f32 %v446_v49, 0.0  ;;  %v1309_v53 = vrot.slane %v1307_v42, 4  ;;  %v1312_v54 = vrot.slane %v1310_v43, 5  ;;  %v392_v11 = vmul.f32 %v6706_v19, %v5788_v38 }
  0x64   : > { %6001 = vmatprep.subr.bf16.mxu0 %v6441_v30  ;;  %v697_v27 = vsel %vm662_vm2, %v6635_v10, %v6698_v16  ;;  %v484_v10 = vadd.f32 %v6723_v31, %v429_v29  ;;  %v1305_v40 = vsel %vm1108_vm0, %v6661_v46, %v1304_v33  ;;  %v6246_v46 = vld [vmem:[%s8458_s3 + $0x130] sm:$0xff]   ;;  %v486_v62 = vadd.f32 %v6723_v31, %v431_v47  ;;  %v5874_v29 = vld [vmem:[%s6401_s24 + $0x28] sm:$0xff]  }
  0x65   : > { %1694 = vmatmul.mubr.bf16.gmra.mrb[8].mxu0 %v697_v27  ;;  %v542_v30 = vmul.f32 0.0, %v494_v26  ;;  %6045 = vmatprep.mubr.bf16.mxu1 %v1305_v40  ;;  %v533_v63 = vmax.f32 %v485_v48, 0.0  ;;  %v1313_v9 = vor.u32 %v1312_v54, %v1309_v53  ;;  %v393_v14 = vmul.f32 %v6706_v19, %v5789_v52 }
  0x66   : > { %3023 = vmatpush1.bf16.msra.mxu1 %v6245_v1  ;;  %v532_v45 = vmax.f32 %v484_v10, 0.0  ;;  %v534_v8 = vmax.f32 %v486_v62, 0.0  ;;  %v5873_v1 = vld [vmem:[%s6401_s24 + $0x20] sm:$0xff]   ;;  %v5797_v10 = vunpack.c.h.bf16 %v5874_v29 }
  0x67   : > { %6002 = vmatpush3.bf16.msra.mxu0 %v6284_v39  ;;  %v6735_v2 = vpack.c.bf16 %v542_v30, %v493_v17  ;;  %3024 = vmatprep.subr.bf16.mxu1 %v6650_v28  ;;  %v581_v49 = vmul.f32 0.0, %v533_v63  ;;  %v447_v17 = vadd.f32 %v6723_v31, %v392_v11  ;;  %v448_v22 = vadd.f32 %v6723_v31, %v393_v14 }
  0x68   : > { %6003 = vmatprep.subr.bf16.mxu0 %v6285_v44  ;;  %v608_v4 = vpack.c.bf16 %v532_v45, %v531_v36  ;;  %v5792_v27 = vunpack.c.l.bf16 %v5873_v1  ;;  %v5793_v34 = vunpack.c.h.bf16 %v5873_v1  ;;  %v5796_v30 = vunpack.c.l.bf16 %v5874_v29 }
  0x69   : > { %613 = vst [vmem:[#allocation2 + $0x20] sm:$0xff] %v6735_v2  ;;  %v993_v55 = vrot.slane %v6735_v2, 4  ;;  %v699_v56 = vshrl.u32 %v6735_v2, 16  ;;  %v702_v57 = vshll.u32 %v6735_v2, 16  ;;  %v609_v23 = vpack.c.bf16 %v534_v8, %v581_v49 }
  0x6a   : > { %632 = vst [vmem:[#allocation2 + $0xb8] sm:$0xff] %v608_v4  ;;  %v1316_v15 = vshrl.u32 %v608_v4, 16  ;;  %v1319_v6 = vshll.u32 %v608_v4, 16  ;;  %3025 = vmatpush1.bf16.msra.mxu1 %v6246_v46  ;;  %v495_v24 = vmax.f32 %v447_v17, 0.0  ;;  %v496_v32 = vmax.f32 %v448_v22, 0.0 }
  0x6b   : > { %6004 = vmatpush3.bf16.msra.mxu0 %v6285_v44  ;;  %v994_v0 = vsel %vm985_vm1, %v991_v58, %v993_v55  ;;  %v701_v12 = vrot.slane %v699_v56, 3  ;;  %v704_v3 = vrot.slane %v702_v57, 4  ;;  %v1314_v58 = vsel %vm1108_vm0, %v1304_v33, %v1313_v9  ;;  %3026 = vmatprep.subr.bf16.mxu1 %v6650_v28  ;;  %633 = vst [vmem:[#allocation2 + $0xc0] sm:$0xff] %v609_v23 }
  0x6c   : > { %1701 = vmatprep.mubr.bf16.mxu0 %v994_v0  ;;  %6046 = vmatmul.mubr.bf16.gmra.mrb[24].mxu1 %v1314_v58  ;;  %v1318_v20 = vrot.slane %v1316_v15, 4  ;;  %v1321_v21 = vrot.slane %v1319_v6, 5  ;;  %v394_v61 = vmul.f32 %v6706_v19, %v5792_v27  ;;  %v6775_v35 = vpack.c.bf16 %v496_v32, %v495_v24  ;;  %v2143_v0 = vld [vmem:[#allocation2 + $0x8] sm:$0x80] }
  0x6d   : > { %v705_v18 = vor.u32 %v704_v3, %v701_v12  ;;  %v396_v37 = vmul.f32 %v6706_v19, %v5796_v30  ;;  %v397_v44 = vmul.f32 %v6706_v19, %v5797_v10  ;;  %v2170_v17 = vshrl.u32 %v2143_v0, 16  ;;  %v6823_v30 = vld [vmem:[#allocation2 + $0x40] sm:$0xff]  ;;  %v6251_v0 = vld [vmem:[%s8458_s3 + $0x198] sm:$0xff]  }
  0x6e   : > { %v1322_v26 = vor.u32 %v1321_v21, %v1318_v20  ;;  %3027 = vmatpush1.bf16.msra.mxu1 %v6247_v13  ;;  %v449_v36 = vadd.f32 %v6723_v31, %v394_v61  ;;  %614 = vst [vmem:[#allocation2 + $0x28] sm:$0xff] %v6775_v35  ;;  %v995_v38 = vrot.slane %v6775_v35, 4  ;;  %v708_v39 = vshrl.u32 %v6775_v35, 16 }
  0x6f   : > { %v706_v5 = vsel %vm662_vm2, %v6698_v16, %v705_v18  ;;  %4596 = vmatprep.subr.bf16.mxu1 %v6650_v28  ;;  %v395_v16 = vmul.f32 %v6706_v19, %v5793_v34  ;;  %v711_v40 = vshll.u32 %v6775_v35, 16  ;;  %v451_v45 = vadd.f32 %v6723_v31, %v396_v37 }
  0x70   : > { %1702 = vmatmul.mubr.bf16.gmra.mrb[12].mxu0 %v706_v5  ;;  %v1323_v33 = vsel %vm1108_vm0, %v1313_v9, %v1322_v26  ;;  %v497_v43 = vmax.f32 %v449_v36, 0.0  ;;  %v996_v47 = vsel %vm985_vm1, %v993_v55, %v995_v38  ;;  %v710_v48 = vrot.slane %v708_v39, 3 }
  0x71   : > { %6049 = vmatprep.mubr.bf16.mxu1 %v1323_v33  ;;  %v450_v42 = vadd.f32 %v6723_v31, %v395_v16  ;;  %v713_v46 = vrot.slane %v711_v40, 4  ;;  %1709 = vmatprep.mubr.bf16.mxu0 %v996_v47  ;;  %v452_v4 = vadd.f32 %v6723_v31, %v397_v44  ;;  %v499_v11 = vmax.f32 %v451_v45, 0.0 }
  0x72   : > { %v1107_v53 = vld [vmem:[#allocation2 + $0xc0] sm:$0x1f]  ;;  %v545_v54 = vmul.f32 0.0, %v497_v43  ;;  %v2176_v1 = vrot.slane %v681_v50, 7  ;;  %v2172_v29 = vrot.slane %v2170_v17, 7  ;;  %v2184_v16 = vrot.slane %v690_v59, 7 }
  0x73   : > { %v498_v52 = vmax.f32 %v450_v42, 0.0  ;;  %v1325_v62 = vshrl.u32 %v1107_v53, 16  ;;  %v1328_v63 = vshll.u32 %v1107_v53, 16  ;;  %v714_v9 = vor.u32 %v713_v46, %v710_v48  ;;  %v6249_v43 = vld [vmem:[%s8458_s3 + $0x188] sm:$0xff]  }
  0x74   : > { %v500_v55 = vmax.f32 %v452_v4, 0.0  ;;  %v2179_v32 = vor.u32 %v2176_v1, %v684_v51  ;;  %v735_v36 = vshrl.u32 %v6823_v30, 16  ;;  %v738_v37 = vshll.u32 %v6823_v30, 16  ;;  %v6847_v48 = vld [vmem:[#allocation2 + $0x48] sm:$0xff] }
  0x75   : > { %v6793_v12 = vpack.c.bf16 %v498_v52, %v545_v54  ;;  %v1327_v3 = vrot.slane %v1325_v62, 4  ;;  %v1330_v15 = vrot.slane %v1328_v63, 5  ;;  %v715_v6 = vsel %vm662_vm2, %v705_v18, %v714_v9  ;;  %v6250_v52 = vld [vmem:[%s8458_s3 + $0x190] sm:$0xff]  }
  0x76   : > { %v548_v49 = vmul.f32 0.0, %v500_v55  ;;  %v2180_v10 = vsel %vm2168_vm3, %v2172_v29, %v2179_v32  ;;  %v2187_v59 = vor.u32 %v2184_v16, %v693_v60  ;;  %v737_v44 = vrot.slane %v735_v36, 3  ;;  %v6871_v55 = vld [vmem:[#allocation2 + $0x50] sm:$0xff] }
  0x77   : > { %615 = vst [vmem:[#allocation2 + $0x30] sm:$0xff] %v6793_v12  ;;  %v997_v8 = vrot.slane %v6793_v12, 4  ;;  %v717_v13 = vshrl.u32 %v6793_v12, 16  ;;  %v720_v58 = vshll.u32 %v6793_v12, 16  ;;  %v1331_v14 = vor.u32 %v1330_v15, %v1327_v3  ;;  %v6254_v29 = vld [vmem:[%s8458_s3 + $0x1b0] sm:$0xff]  }
  0x78   : > { %1710 = vmatmul.mubr.bf16.gmra.mrb[16].mxu0 %v715_v6  ;;  %v6807_v23 = vpack.c.bf16 %v548_v49, %v499_v11  ;;  %v740_v45 = vrot.slane %v738_v37, 4  ;;  %v2188_v60 = vsel %vm2168_vm3, %v2176_v1, %v2187_v59  ;;  %v744_v53 = vshrl.u32 %v6847_v48, 16 }
  0x79   : > { %v998_v20 = vsel %vm985_vm1, %v995_v38, %v997_v8  ;;  %v719_v18 = vrot.slane %v717_v13, 3  ;;  %v722_v21 = vrot.slane %v720_v58, 4  ;;  %v1332_v22 = vsel %vm1108_vm0, %v1322_v26, %v1331_v14 }
  0x7a   : > { %1717 = vmatprep.mubr.bf16.mxu0 %v998_v20  ;;  %6050 = vmatmul.mubr.bf16.gmra.mrb[28].mxu1 %v1332_v22  ;;  %616 = vst [vmem:[#allocation2 + $0x38] sm:$0xff] %v6807_v23  ;;  %v999_v5 = vrot.slane %v6807_v23, 4  ;;  %v726_v50 = vshrl.u32 %v6807_v23, 16  ;;  %v729_v27 = vshll.u32 %v6807_v23, 16  ;;  %v1001_v38 = vrot.slane %v6823_v30, 4  ;;  %v6253_v20 = vld [vmem:[%s8458_s3 + $0x1a8] sm:$0xff]  }
  0x7b   : > { %v723_v24 = vor.u32 %v722_v21, %v719_v18  ;;  %3028 = vmatprep.mubr.bf16.mxu1 %v6602_v41  ;;  %v6248_v41 = vld [vmem:[%s8458_s3 + $0x180] sm:$0xff]   ;;  %v741_v46 = vor.u32 %v740_v45, %v737_v44  ;;  %v747_v54 = vshll.u32 %v6847_v48, 16  ;;  %v1003_v4 = vrot.slane %v6847_v48, 4  ;;  %v6896_v21 = vld [vmem:[#allocation2 + $0x58] sm:$0xff] }
  0x7c   : > { %v1000_v34 = vsel %vm985_vm1, %v997_v8, %v999_v5  ;;  %v728_v33 = vrot.slane %v726_v50, 3  ;;  %v731_v61 = vrot.slane %v729_v27, 4  ;;  %v1002_v47 = vsel %vm985_vm1, %v999_v5, %v1001_v38  ;;  %v6252_v8 = vld [vmem:[%s8458_s3 + $0x1a0] sm:$0xff]  }
  0x7d   : > { %v724_v26 = vsel %vm662_vm2, %v714_v9, %v723_v24  ;;  %v746_v63 = vrot.slane %v744_v53, 3  ;;  %v749_v9 = vrot.slane %v747_v54, 4  ;;  %v1004_v11 = vsel %vm985_vm1, %v1001_v38, %v1003_v4 }
  0x7e   : > { %v732_v51 = vor.u32 %v731_v61, %v728_v33  ;;  %v753_v15 = vshrl.u32 %v6871_v55, 16  ;;  %v756_v6 = vshll.u32 %v6871_v55, 16  ;;  %v1005_v49 = vrot.slane %v6871_v55, 4 }
  0x7f   : > { %v750_v3 = vor.u32 %v749_v9, %v746_v63  ;;  %v765_v5 = vshll.u32 %v6896_v21, 16  ;;  %v1007_v32 = vrot.slane %v6896_v21, 4 }
  0x80   : > { %1718 = vmatmul.mubr.bf16.gmra.mrb[20].mxu0 %v724_v26  ;;  %v733_v42 = vsel %vm662_vm2, %v723_v24, %v732_v51  ;;  %v742_v62 = vsel %vm662_vm2, %v732_v51, %v741_v46  ;;  %v755_v17 = vrot.slane %v753_v15, 3  ;;  %v758_v1 = vrot.slane %v756_v6, 4 }
  0x81   : > { %1725 = vmatprep.mubr.bf16.mxu0 %v1000_v34  ;;  %v751_v14 = vsel %vm662_vm2, %v741_v46, %v750_v3  ;;  %v1006_v18 = vsel %vm985_vm1, %v1003_v4, %v1005_v49  ;;  %v762_v24 = vshrl.u32 %v6896_v21, 16  ;;  %v767_v61 = vrot.slane %v765_v5, 4  ;;  %v6952_v46 = vld [vmem:[#allocation2 + $0x68] sm:$0xff] }
  0x82   : > { %3029 = vmatmul.mubr.bf16.vlgmr.msra.gmra.mrb[32].mxu1 %v2180_v10  ;;  %v759_v22 = vor.u32 %v758_v1, %v755_v17  ;;  %v1008_v10 = vsel %vm985_vm1, %v1005_v49, %v1007_v32  ;;  %v780_v4 = vshrl.u32 %v6952_v46, 16  ;;  %v1011_v63 = vrot.slane %v6952_v46, 4  ;;  %v5892_v1 = vld [vmem:[%s6401_s24 + $0xb8] sm:$0xff]  }
  0x83   : > { %4597 = vmatpush1.bf16.msra.mxu1 %v6248_v41  ;;  %3036 = vmatprep.mubr.bf16.mxu1 %v6664_v7  ;;  %v2192_v7 = vrot.slane %v699_v56, 7  ;;  %v764_v33 = vrot.slane %v762_v24, 3  ;;  %v6926_v41 = vld [vmem:[#allocation2 + $0x60] sm:$0xff] }
  0x84   : > { %4598 = vmatprep.subr.bf16.mxu1 %v6650_v28  ;;  %v760_v34 = vsel %vm662_vm2, %v750_v3, %v759_v22  ;;  %v771_v38 = vshrl.u32 %v6926_v41, 16  ;;  %v774_v59 = vshll.u32 %v6926_v41, 16  ;;  %v6977_v3 = vld [vmem:[#allocation2 + $0x70] sm:$0xff] }
  0x85   : > { %v2195_v56 = vor.u32 %v2192_v7, %v702_v57  ;;  %v768_v51 = vor.u32 %v767_v61, %v764_v33  ;;  %v789_v49 = vshrl.u32 %v6977_v3, 16  ;;  %v1013_v17 = vrot.slane %v6977_v3, 4 }
  0x86   : > { %v773_v45 = vrot.slane %v771_v38, 3 }
  0x87   : > { %4599 = vmatpush1.bf16.msra.mxu1 %v6249_v43  ;;  %v2196_v57 = vsel %vm2168_vm3, %v2184_v16, %v2195_v56  ;;  %v6255_v16 = vld [vmem:[%s8458_s3 + $0x1b8] sm:$0xff]   ;;  %v1009_v43 = vrot.slane %v6926_v41, 4  ;;  %v769_v44 = vsel %vm662_vm2, %v759_v22, %v768_v51  ;;  %v783_v56 = vshll.u32 %v6952_v46, 16 }
  0x88   : > { %1726 = vmatmul.mubr.bf16.gmra.mrb[24].mxu0 %v733_v42  ;;  %4600 = vmatprep.subr.bf16.mxu1 %v6650_v28  ;;  %v6256_v42 = vld [vmem:[%s8458_s3 + $0x1c0] sm:$0xff]   ;;  %v1014_v22 = vsel %vm985_vm1, %v1011_v63, %v1013_v17 }
  0x89   : > { %1733 = vmatprep.mubr.bf16.mxu0 %v1002_v47  ;;  %v776_v47 = vrot.slane %v774_v59, 4 }
  0x8a   : > { %3037 = vmatmul.mubr.bf16.gmra.mrb[36].mxu1 %v2188_v60  ;;  %v1010_v60 = vsel %vm985_vm1, %v1007_v32, %v1009_v43 }
  0x8b   : > { %3044 = vmatprep.mubr.bf16.mxu1 %v6735_v2  ;;  %4601 = vmatpush1.bf16.msra.mxu1 %v6250_v52  ;;  %v2200_v2 = vrot.slane %v708_v39, 7  ;;  %v777_v52 = vor.u32 %v776_v47, %v773_v45 }
  0x8c   : > { %4602 = vmatprep.subr.bf16.mxu1 %v6650_v28 }
  0x8d   : > { %v2203_v39 = vor.u32 %v2200_v2, %v711_v40  ;;  %v2208_v40 = vrot.slane %v717_v13, 7  ;;  %v6912_v13 = vld [vmem:[%s8458_s3 + $0x140] sm:$0xff]   ;;  %v778_v9 = vsel %vm662_vm2, %v768_v51, %v777_v52 }
  0x8e   : > { %6053 = vmatprep.subr.bf16.mxu0 %v6912_v13 }
  0x8f   : > { %4603 = vmatpush1.bf16.msra.mxu1 %v6251_v0  ;;  %v2211_v26 = vor.u32 %v2208_v40, %v720_v58  ;;  %v782_v0 = vrot.slane %v780_v4, 3 }
  0x90   : > { %1734 = vmatmul.mubr.bf16.gmra.mrb[28].mxu0 %v742_v62  ;;  %4604 = vmatprep.subr.bf16.mxu1 %v6650_v28  ;;  %v6258_v62 = vld [vmem:[%s8458_s3 + $0x1d0] sm:$0xff]  }
  0x91   : > { %1741 = vmatprep.mubr.bf16.mxu0 %v1004_v11  ;;  %v2212_v58 = vsel %vm2168_vm3, %v2200_v2, %v2211_v26  ;;  %v785_v11 = vrot.slane %v783_v56, 4  ;;  %v6259_v2 = vld [vmem:[%s8458_s3 + $0x1d8] sm:$0xff]   ;;  %v2240_v26 = vrot.slane %v753_v15, 7 }
  0x92   : > { %3045 = vmatmul.mubr.bf16.gmra.mrb[40].mxu1 %v2196_v57  ;;  %v1012_v57 = vsel %vm985_vm1, %v1009_v43, %v1011_v63 }
  0x93   : > { %3052 = vmatprep.mubr.bf16.mxu1 %v6775_v35  ;;  %4605 = vmatpush1.bf16.msra.mxu1 %v6252_v8  ;;  %v2204_v35 = vsel %vm2168_vm3, %v2192_v7, %v2203_v39  ;;  %v6257_v7 = vld [vmem:[%s8458_s3 + $0x1c8] sm:$0xff]   ;;  %v786_v8 = vor.u32 %v785_v11, %v782_v0  ;;  %v792_v39 = vshll.u32 %v6977_v3, 16  ;;  %v2243_v51 = vor.u32 %v2240_v26, %v756_v6  ;;  %v7032_v6 = vld [vmem:[#allocation2 + $0x80] sm:$0xff] }
  0x94   : > { %4606 = vmatprep.subr.bf16.mxu1 %v6650_v28  ;;  %v7053_v11 = vld [vmem:[#allocation2 + $0x88] sm:$0xff] }
  0x97   : > { %4607 = vmatpush1.bf16.msra.mxu1 %v6253_v20  ;;  %v787_v20 = vsel %vm662_vm2, %v777_v52, %v786_v8  ;;  %v810_v52 = vshll.u32 %v7032_v6, 16 }
  0x98   : > { %1742 = vmatmul.mubr.bf16.gmra.mrb[32].mxu0 %v751_v14  ;;  %4608 = vmatprep.subr.bf16.mxu1 %v6650_v28  ;;  %v6260_v14 = vld [vmem:[%s8458_s3 + $0x1e0] sm:$0xff]  }
  0x99   : > { %1749 = vmatprep.mubr.bf16.mxu0 %v1006_v18  ;;  %v791_v18 = vrot.slane %v789_v49, 3 }
  0x9a   : > { %3053 = vmatmul.mubr.bf16.gmra.mrb[44].mxu1 %v2204_v35  ;;  %v794_v35 = vrot.slane %v792_v39, 4 }
  0x9b   : > { %3060 = vmatprep.mubr.bf16.mxu1 %v6793_v12  ;;  %4609 = vmatpush1.bf16.msra.mxu1 %v6254_v29  ;;  %v2216_v12 = vrot.slane %v726_v50, 7  ;;  %v7003_v29 = vld [vmem:[#allocation2 + $0x78] sm:$0xff] }
  0x9c   : > { %4610 = vmatprep.subr.bf16.mxu1 %v6650_v28  ;;  %v798_v33 = vshrl.u32 %v7003_v29, 16  ;;  %v801_v61 = vshll.u32 %v7003_v29, 16 }
  0x9d   : > { %v2219_v50 = vor.u32 %v2216_v12, %v729_v27 }
  0x9f   : > { %4611 = vmatpush1.bf16.msra.mxu1 %v6255_v16  ;;  %v2220_v27 = vsel %vm2168_vm3, %v2208_v40, %v2219_v50  ;;  %v6262_v40 = vld [vmem:[%s8458_s3 + $0x1e8] sm:$0xff]   ;;  %v6266_v16 = vld [vmem:[%s8458_s3 + $0x1f0] sm:$0xff]   ;;  %v800_v50 = vrot.slane %v798_v33, 3 }
  0xa0   : > { %1750 = vmatmul.mubr.bf16.gmra.mrb[36].mxu0 %v760_v34  ;;  %4612 = vmatprep.subr.bf16.mxu1 %v6650_v28  ;;  %v795_v34 = vor.u32 %v794_v35, %v791_v18 }
  0xa1   : > { %1757 = vmatprep.mubr.bf16.mxu0 %v1008_v10 }
  0xa2   : > { %3061 = vmatmul.mubr.bf16.gmra.mrb[48].mxu1 %v2212_v58  ;;  %v796_v43 = vsel %vm662_vm2, %v786_v8, %v795_v34 }
  0xa3   : > { %3068 = vmatprep.mubr.bf16.mxu1 %v6807_v23  ;;  %4613 = vmatpush1.bf16.msra.mxu1 %v6256_v42  ;;  %v2224_v23 = vrot.slane %v735_v36, 7 }
  0xa4   : > { %4614 = vmatprep.subr.bf16.mxu1 %v6650_v28 }
  0xa5   : > { %v2227_v36 = vor.u32 %v2224_v23, %v738_v37 }
  0xa7   : > { %4615 = vmatpush1.bf16.msra.mxu1 %v6257_v7  ;;  %v2228_v37 = vsel %vm2168_vm3, %v2216_v12, %v2227_v36  ;;  %v1015_v12 = vrot.slane %v7003_v29, 4 }
  0xa8   : > { %1758 = vmatmul.mubr.bf16.gmra.mrb[40].mxu0 %v769_v44  ;;  %4616 = vmatprep.subr.bf16.mxu1 %v6650_v28  ;;  %v803_v44 = vrot.slane %v801_v61, 4 }
  0xa9   : > { %1765 = vmatprep.mubr.bf16.mxu0 %v1010_v60  ;;  %v1016_v45 = vsel %vm985_vm1, %v1013_v17, %v1015_v12  ;;  %v2248_v60 = vrot.slane %v762_v24, 7 }
  0xaa   : > { %3069 = vmatmul.mubr.bf16.gmra.mrb[52].mxu1 %v2220_v27  ;;  %v807_v27 = vshrl.u32 %v7032_v6, 16 }
  0xab   : > { %3076 = vmatprep.mubr.bf16.mxu1 %v6823_v30  ;;  %4617 = vmatpush1.bf16.msra.mxu1 %v6258_v62  ;;  %v2232_v30 = vrot.slane %v744_v53, 7  ;;  %v1017_v62 = vrot.slane %v7032_v6, 4 }
  0xac   : > { %4618 = vmatprep.subr.bf16.mxu1 %v6650_v28  ;;  %v809_v36 = vrot.slane %v807_v27, 3 }
  0xad   : > { %v2235_v53 = vor.u32 %v2232_v30, %v747_v54  ;;  %v5869_v54 = vunpack.c.h.bf16 %v5892_v1  ;;  %v1018_v0 = vsel %vm985_vm1, %v1015_v12, %v1017_v62 }
  0xaf   : > { %4619 = vmatpush1.bf16.msra.mxu1 %v6259_v2  ;;  %v2236_v32 = vsel %vm2168_vm3, %v2224_v23, %v2235_v53  ;;  %v433_v58 = vmul.f32 %v6706_v19, %v5869_v54  ;;  %v804_v23 = vor.u32 %v803_v44, %v800_v50  ;;  %v2256_v2 = vrot.slane %v771_v38, 7 }
  0xb0   : > { %1766 = vmatmul.mubr.bf16.gmra.mrb[44].mxu0 %v778_v9  ;;  %4620 = vmatprep.subr.bf16.mxu1 %v6650_v28  ;;  %v812_v9 = vrot.slane %v810_v52, 4  ;;  %v2280_v50 = vrot.slane %v798_v33, 7 }
  0xb1   : > { %1773 = vmatprep.mubr.bf16.mxu0 %v1012_v57  ;;  %v488_v42 = vadd.f32 %v6723_v31, %v433_v58  ;;  %v805_v24 = vsel %vm662_vm2, %v795_v34, %v804_v23  ;;  %v2259_v8 = vor.u32 %v2256_v2, %v774_v59  ;;  %v2272_v34 = vrot.slane %v789_v49, 7 }
  0xb2   : > { %3077 = vmatmul.mubr.bf16.gmra.mrb[56].mxu1 %v2228_v37  ;;  %v1019_v37 = vrot.slane %v7053_v11, 4 }
  0xb3   : > { %3084 = vmatprep.mubr.bf16.mxu1 %v6847_v48  ;;  %4621 = vmatpush1.bf16.msra.mxu1 %v6260_v14  ;;  %v5868_v48 = vunpack.c.l.bf16 %v5892_v1  ;;  %v536_v47 = vmax.f32 %v488_v42, 0.0  ;;  %v7070_v1 = vld [vmem:[#allocation2 + $0x90] sm:$0xff]  ;;  %v2260_v18 = vsel %vm2168_vm3, %v2248_v60, %v2259_v8  ;;  %v2275_v58 = vor.u32 %v2272_v34, %v792_v39 }
  0xb4   : > { %4622 = vmatprep.subr.bf16.mxu1 %v6650_v28  ;;  %v1020_v53 = vsel %vm985_vm1, %v1017_v62, %v1019_v37  ;;  %v825_v59 = vshrl.u32 %v7070_v1, 16  ;;  %v828_v35 = vshll.u32 %v7070_v1, 16 }
  0xb5   : > { %v432_v10 = vmul.f32 %v6706_v19, %v5868_v48  ;;  %v6270_v19 = vld [vmem:[%s8458_s3 + $0x1f8] sm:$0xff]   ;;  %v584_v7 = vmul.f32 0.0, %v536_v47 }
  0xb6   : > { %v830_v54 = vrot.slane %v828_v35, 4 }
  0xb7   : > { %4623 = vmatpush1.bf16.msra.mxu1 %v6262_v40  ;;  %v487_v15 = vadd.f32 %v6723_v31, %v432_v10  ;;  %v1021_v40 = vrot.slane %v7070_v1, 4 }
  0xb8   : > { %1774 = vmatmul.mubr.bf16.gmra.mrb[48].mxu0 %v787_v20  ;;  %4624 = vmatprep.subr.bf16.mxu1 %v6650_v28  ;;  %v2264_v20 = vrot.slane %v780_v4, 7  ;;  %v827_v4 = vrot.slane %v825_v59, 3 }
  0xb9   : > { %1781 = vmatprep.mubr.bf16.mxu0 %v1014_v22  ;;  %v535_v31 = vmax.f32 %v487_v15, 0.0 }
  0xba   : > { %3085 = vmatmul.mubr.bf16.gmra.mrb[60].mxu1 %v2236_v32  ;;  %v2267_v22 = vor.u32 %v2264_v20, %v783_v56  ;;  %v1022_v32 = vsel %vm985_vm1, %v1019_v37, %v1021_v40  ;;  %v2276_v44 = vsel %vm2168_vm3, %v2264_v20, %v2275_v58 }
  0xbb   : > { %3092 = vmatprep.mubr.bf16.mxu1 %v6871_v55  ;;  %4625 = vmatpush1.bf16.msra.mxu1 %v6266_v16  ;;  %v2244_v55 = vsel %vm2168_vm3, %v2232_v30, %v2243_v51  ;;  %v7041_v63 = vpack.c.bf16 %v584_v7, %v535_v31  ;;  %v819_v30 = vshll.u32 %v7053_v11, 16  ;;  %v2283_v31 = vor.u32 %v2280_v50, %v801_v61 }
  0xbc   : > { %4626 = vmatprep.subr.bf16.mxu1 %v6650_v28  ;;  %v2251_v28 = vor.u32 %v2248_v60, %v765_v5  ;;  %v816_v5 = vshrl.u32 %v7053_v11, 16  ;;  %v2268_v16 = vsel %vm2168_vm3, %v2256_v2, %v2267_v22  ;;  %v7121_v60 = vld [vmem:[#allocation2 + $0xa8] sm:$0xff] }
  0xbd   : > { %634 = vst [vmem:[#allocation2 + $0xc8] sm:$0xff] %v7041_v63  ;;  %v821_v17 = vrot.slane %v819_v30, 4  ;;  %v2284_v62 = vsel %vm2168_vm3, %v2272_v34, %v2283_v31  ;;  %v852_v61 = vshrl.u32 %v7121_v60, 16  ;;  %v6286_v31 = vld [vmem:[#allocation2] sm:$0xff] }
  0xbe   : > { %v2252_v57 = vsel %vm2168_vm3, %v2240_v26, %v2251_v28  ;;  %v818_v38 = vrot.slane %v816_v5, 3  ;;  %v7087_v26 = vld [vmem:[#allocation2 + $0x98] sm:$0xff]  ;;  %v855_v28 = vshll.u32 %v7121_v60, 16 }
  0xbf   : > { %4627 = vmatpush1.bf16.msra.mxu1 %v6270_v19  ;;  %v834_v56 = vshrl.u32 %v7087_v26, 16  ;;  %v837_v10 = vshll.u32 %v7087_v26, 16  ;;  %v1023_v12 = vrot.slane %v7087_v26, 4 }
  0xc0   : > { %1782 = vmatmul.mubr.bf16.gmra.mrb[52].mxu0 %v796_v43  ;;  %v7104_v43 = vld [vmem:[#allocation2 + $0xa0] sm:$0xff] }
  0xc1   : > { %1789 = vmatprep.mubr.bf16.mxu0 %v1016_v45  ;;  %v836_v49 = vrot.slane %v834_v56, 3  ;;  %v839_v51 = vrot.slane %v837_v10, 4  ;;  %v1024_v42 = vsel %vm985_vm1, %v1021_v40, %v1023_v12  ;;  %v843_v39 = vshrl.u32 %v7104_v43, 16 }
  0xc2   : > { %3093 = vmatmul.mubr.bf16.gmra.mrb[64].mxu1 %v2244_v55  ;;  %v846_v19 = vshll.u32 %v7104_v43, 16  ;;  %v1025_v45 = vrot.slane %v7104_v43, 4 }
  0xc3   : > { %3100 = vmatprep.mubr.bf16.mxu1 %v6896_v21  ;;  %v813_v21 = vor.u32 %v812_v9, %v809_v36  ;;  %v845_v33 = vrot.slane %v843_v39, 3 }
  0xc4   : > { %v848_v55 = vrot.slane %v846_v19, 4  ;;  %v1026_v7 = vsel %vm985_vm1, %v1023_v12, %v1025_v45  ;;  %v1083_v12 = vld [vmem:[#allocation2] sm:$0xf0] }
  0xc5   : > { %v814_v14 = vsel %vm662_vm2, %v804_v23, %v813_v21  ;;  %v2288_v23 = vrot.slane %v807_v27, 7  ;;  %v854_v27 = vrot.slane %v852_v61, 3 }
  0xc7   : > { %v2291_v36 = vor.u32 %v2288_v23, %v810_v52 }
  0xc8   : > { %1790 = vmatmul.mubr.bf16.gmra.mrb[56].mxu0 %v805_v24  ;;  %v1027_v24 = vrot.slane %v7121_v60, 4 }
  0xc9   : > { %1797 = vmatprep.mubr.bf16.mxu0 %v1018_v0  ;;  %v857_v0 = vrot.slane %v855_v28, 4  ;;  %v2292_v37 = vsel %vm2168_vm3, %v2280_v50, %v2291_v36 }
  0xca   : > { %3101 = vmatmul.mubr.bf16.gmra.mrb[68].mxu1 %v2252_v57  ;;  %v1028_v2 = vsel %vm985_vm1, %v1025_v45, %v1027_v24  ;;  %v7138_v57 = vld [vmem:[#allocation2 + $0xb0] sm:$0xff]  ;;  %v1113_v45 = vshll.u32 %v1083_v12, 16 }
  0xcb   : > { %3108 = vmatprep.mubr.bf16.mxu1 %v6926_v41  ;;  %v822_v41 = vor.u32 %v821_v17, %v818_v38  ;;  %v861_v52 = vshrl.u32 %v7138_v57, 16  ;;  %v864_v8 = vshll.u32 %v7138_v57, 16 }
  0xcc   : > { %v1115_v36 = vrot.slane %v1113_v45, 5 }
  0xcd   : > { %v823_v48 = vsel %vm662_vm2, %v813_v21, %v822_v41  ;;  %v2296_v21 = vrot.slane %v816_v5, 7  ;;  %v863_v5 = vrot.slane %v861_v52, 3 }
  0xcf   : > { %v2299_v38 = vor.u32 %v2296_v21, %v819_v30 }
  0xd0   : > { %1798 = vmatmul.mubr.bf16.gmra.mrb[60].mxu0 %v814_v14  ;;  %v1029_v14 = vrot.slane %v7138_v57, 4 }
  0xd1   : > { %1805 = vmatprep.mubr.bf16.mxu0 %v1020_v53  ;;  %v866_v53 = vrot.slane %v864_v8, 4  ;;  %v2300_v40 = vsel %vm2168_vm3, %v2288_v23, %v2299_v38 }
  0xd2   : > { %3109 = vmatmul.mubr.bf16.gmra.mrb[72].mxu1 %v2260_v18  ;;  %v1030_v20 = vsel %vm985_vm1, %v1027_v24, %v1029_v14  ;;  %v7155_v18 = vld [vmem:[#allocation2 + $0xb8] sm:$0xff] }
  0xd3   : > { %3116 = vmatprep.mubr.bf16.mxu1 %v6952_v46  ;;  %v831_v46 = vor.u32 %v830_v54, %v827_v4  ;;  %v870_v30 = vshrl.u32 %v7155_v18, 16  ;;  %v873_v22 = vshll.u32 %v7155_v18, 16 }
  0xd5   : > { %v832_v15 = vsel %vm662_vm2, %v822_v41, %v831_v46  ;;  %v2304_v41 = vrot.slane %v825_v59, 7  ;;  %v872_v59 = vrot.slane %v870_v30, 3 }
  0xd7   : > { %v2307_v4 = vor.u32 %v2304_v41, %v828_v35  ;;  %v2312_v35 = vrot.slane %v834_v56, 7 }
  0xd8   : > { %1806 = vmatmul.mubr.bf16.gmra.mrb[64].mxu0 %v823_v48  ;;  %v1031_v48 = vrot.slane %v7155_v18, 4 }
  0xd9   : > { %1813 = vmatprep.mubr.bf16.mxu0 %v1022_v32  ;;  %v875_v32 = vrot.slane %v873_v22, 4  ;;  %v2308_v58 = vsel %vm2168_vm3, %v2296_v21, %v2307_v4  ;;  %v2315_v56 = vor.u32 %v2312_v35, %v837_v10  ;;  %v2320_v10 = vrot.slane %v843_v39, 7 }
  0xda   : > { %3117 = vmatmul.mubr.bf16.gmra.mrb[76].mxu1 %v2268_v16  ;;  %v1032_v34 = vsel %vm985_vm1, %v1029_v14, %v1031_v48  ;;  %v959_v16 = vld [vmem:[#allocation2 + $0xc0] sm:$0xf] }
  0xdb   : > { %3124 = vmatprep.mubr.bf16.mxu1 %v6977_v3  ;;  %v840_v3 = vor.u32 %v839_v51, %v836_v49  ;;  %v1033_v49 = vrot.slane %v959_v16, 4 }
  0xdd   : > { %v841_v47 = vsel %vm662_vm2, %v831_v46, %v840_v3  ;;  %v661_v46 = vld [vmem:[#allocation2 + $0xc0] sm:$0xf]  ;;  %v1034_v23 = vsel %vm985_vm1, %v1031_v48, %v1033_v49 }
  0xde   : > { %v882_v50 = vshll.u32 %v661_v46, 16 }
  0xe0   : > { %1814 = vmatmul.mubr.bf16.gmra.mrb[68].mxu0 %v832_v15  ;;  %v876_v15 = vor.u32 %v875_v32, %v872_v59 }
  0xe1   : > { %1821 = vmatprep.mubr.bf16.mxu0 %v1024_v42  ;;  %v879_v42 = vshrl.u32 %v661_v46, 16 }
  0xe2   : > { %3125 = vmatmul.mubr.bf16.gmra.mrb[80].mxu1 %v2276_v44 }
  0xe3   : > { %3132 = vmatprep.mubr.bf16.mxu1 %v7003_v29  ;;  %v849_v29 = vor.u32 %v848_v55, %v845_v33  ;;  %v1121_v33 = vshll.u32 %v6286_v31, 16 }
  0xe5   : > { %v850_v9 = vsel %vm662_vm2, %v840_v3, %v849_v29  ;;  %v1110_v3 = vshrl.u32 %v1083_v12, 16 }
  0xe7   : > { %v1112_v24 = vrot.slane %v1110_v3, 4 }
  0xe8   : > { %1822 = vmatmul.mubr.bf16.gmra.mrb[72].mxu0 %v841_v47  ;;  %v1118_v47 = vshrl.u32 %v6286_v31, 16 }
  0xe9   : > { %1829 = vmatprep.mubr.bf16.mxu0 %v1026_v7  ;;  %v1116_v38 = vor.u32 %v1115_v36, %v1112_v24  ;;  %v2336_v24 = vrot.slane %v861_v52, 7 }
  0xea   : > { %3133 = vmatmul.mubr.bf16.gmra.mrb[84].mxu1 %v2284_v62  ;;  %v881_v62 = vrot.slane %v879_v42, 3 }
  0xeb   : > { %3140 = vmatprep.mubr.bf16.mxu1 %v7032_v6  ;;  %v858_v6 = vor.u32 %v857_v0, %v854_v27  ;;  %v1123_v27 = vrot.slane %v1121_v33, 5  ;;  %v7188_v0 = vld [vmem:[#allocation2 + $0x10] sm:$0xff] }
  0xec   : > { %v1130_v14 = vshll.u32 %v7188_v0, 16 }
  0xed   : > { %v859_v17 = vsel %vm662_vm2, %v849_v29, %v858_v6  ;;  %v884_v29 = vrot.slane %v882_v50, 4 }
  0xee   : > { %v1132_v4 = vrot.slane %v1130_v14, 5 }
  0xef   : > { %v885_v21 = vor.u32 %v884_v29, %v881_v62  ;;  %v7259_v62 = vld [vmem:[#allocation2 + $0x30] sm:$0xff]  ;;  %v7261_v29 = vld [vmem:[#allocation2 + $0x38] sm:$0xff] }
  0xf0   : > { %1830 = vmatmul.mubr.bf16.gmra.mrb[76].mxu0 %v850_v9  ;;  %v1120_v9 = vrot.slane %v1118_v47, 4  ;;  %v7281_v52 = vshrl.u32 %v7261_v29, 16 }
  0xf1   : > { %1837 = vmatprep.mubr.bf16.mxu0 %v1028_v2  ;;  %v7190_v2 = vld [vmem:[#allocation2 + $0x18] sm:$0xff] }
  0xf2   : > { %3141 = vmatmul.mubr.bf16.gmra.mrb[88].mxu1 %v2292_v37 }
  0xf3   : > { %3148 = vmatprep.mubr.bf16.mxu1 %v7053_v11  ;;  %v867_v11 = vor.u32 %v866_v53, %v863_v5  ;;  %v1136_v53 = vshrl.u32 %v7190_v2, 16 }
  0xf5   : > { %v868_v54 = vsel %vm662_vm2, %v858_v6, %v867_v11  ;;  %v877_v7 = vsel %vm662_vm2, %v867_v11, %v876_v15  ;;  %v1127_v6 = vshrl.u32 %v7188_v0, 16  ;;  %v886_v11 = vsel %vm662_vm2, %v876_v15, %v885_v21  ;;  %v6271_v0 = vld [vmem:[%s8458_s3 + $0x178] sm:$0xff]  }
  0xf6   : > { %v1138_v59 = vrot.slane %v1136_v53, 4 }
  0xf7   : > { %v1129_v48 = vrot.slane %v1127_v6, 4 }
  0xf8   : > { %1838 = vmatmul.mubr.bf16.gmra.mrb[80].mxu0 %v859_v17  ;;  %v1124_v17 = vor.u32 %v1123_v27, %v1120_v9  ;;  %v7270_v27 = vshrl.u32 %v7259_v62, 16 }
  0xf9   : > { %1845 = vmatprep.mubr.bf16.mxu0 %v1030_v20  ;;  %v1139_v20 = vshll.u32 %v7190_v2, 16  ;;  %v1133_v46 = vor.u32 %v1132_v4, %v1129_v48  ;;  %v2339_v4 = vor.u32 %v2336_v24, %v864_v8 }
  0xfa   : > { %3149 = vmatmul.mubr.bf16.gmra.mrb[92].mxu1 %v2300_v40 }
  0xfb   : > { %3156 = vmatprep.mubr.bf16.mxu1 %v7070_v1  ;;  %v1141_v32 = vrot.slane %v1139_v20, 5  ;;  %v1134_v31 = vsel %vm1108_vm0, %v1124_v17, %v1133_v46 }
  0xfd   : > { %v1142_v49 = vor.u32 %v1141_v32, %v1138_v59  ;;  %v1165_v59 = vrot.slane %v7270_v27, 4 }
 0x100   : > { %1846 = vmatmul.mubr.bf16.gmra.mrb[84].mxu0 %v868_v54  ;;  %v1125_v54 = vsel %vm1108_vm0, %v1116_v38, %v1124_v17  ;;  %v7284_v38 = vshll.u32 %v7261_v29, 16 }
 0x101   : > { %1853 = vmatprep.mubr.bf16.mxu0 %v1032_v34  ;;  %v7220_v34 = vld [vmem:[#allocation2 + $0x20] sm:$0xff] }
 0x102   : > { %v7175_v1 = vpop.f32.mrb[0].mxu1  ;;  %3157 = vmatmul.mubr.bf16.gmra.mrb[96].mxu1 %v2308_v58  ;;  %v7230_v58 = vshrl.u32 %v7220_v34, 16  ;;  %v7233_v15 = vshll.u32 %v7220_v34, 16  ;;  %v1177_v8 = vrot.slane %v7284_v38, 5 }
 0x103   : > { %v7177_v51 = vpop.f32.mrb[1].mxu1  ;;  %3164 = vmatprep.mubr.bf16.mxu1 %v7087_v26  ;;  %v2316_v26 = vsel %vm2168_vm3, %v2304_v41, %v2315_v56  ;;  %v2323_v41 = vor.u32 %v2320_v10, %v846_v19  ;;  %v2328_v19 = vrot.slane %v852_v61, 7  ;;  %v6263_v56 = vld [vmem:[%s8458_s3 + $0x148] sm:$0xff]  }
 0x104   : > { %v7179_v44 = vpop.f32.mrb[2].mxu1  ;;  %v1147_v47 = vrot.slane %v7230_v58, 4  ;;  %v1150_v33 = vrot.slane %v7233_v15, 5 }
 0x105   : > { %v7181_v55 = vpop.f32.mrb[3].mxu1  ;;  %v2324_v16 = vsel %vm2168_vm3, %v2312_v35, %v2323_v41  ;;  %v2331_v3 = vor.u32 %v2328_v19, %v855_v28 }
 0x106   : > { %v1151_v36 = vor.u32 %v1150_v33, %v1147_v47  ;;  %v2344_v47 = vrot.slane %v870_v30, 7 }
 0x108   : > { %1854 = vmatmul.mubr.bf16.gmra.mrb[88].mxu0 %v877_v7  ;;  %v1143_v7 = vsel %vm1108_vm0, %v1133_v46, %v1142_v49  ;;  %v6265_v46 = vld [vmem:[%s8458_s3 + $0x158] sm:$0xff]  }
 0x109   : > { %1861 = vmatprep.mubr.bf16.mxu0 %v1034_v23 }
 0x10a   : > { %v7195_v37 = vpop.f32.mrb[4].mxu1  ;;  %3165 = vmatmul.mubr.bf16.gmra.mrb[100].mxu1 %v2316_v26  ;;  %v7273_v26 = vshll.u32 %v7259_v62, 16 }
 0x10b   : > { %v7199_v5 = vpop.f32.mrb[5].mxu1  ;;  %3172 = vmatprep.mubr.bf16.mxu1 %v7104_v43  ;;  %v7222_v43 = vld [vmem:[#allocation2 + $0x28] sm:$0xff] }
 0x10c   : > { %v7203_v40 = vpop.f32.mrb[6].mxu1  ;;  %v7238_v50 = vshrl.u32 %v7222_v43, 16  ;;  %v7241_v61 = vshll.u32 %v7222_v43, 16  ;;  %v1168_v32 = vrot.slane %v7273_v26, 5 }
 0x10d   : > { %v7205_v39 = vpop.f32.mrb[7].mxu1 }
 0x10e   : > { %v1156_v23 = vrot.slane %v7238_v50, 4  ;;  %v1159_v28 = vrot.slane %v7241_v61, 5  ;;  %v1169_v33 = vor.u32 %v1168_v32, %v1165_v59 }
 0x110   : > { %1862 = vmatmul.mubr.bf16.gmra.mrb[92].mxu0 %v886_v11  ;;  %v1160_v21 = vor.u32 %v1159_v28, %v1156_v23 }
 0x111   : > { %6005 = vmatprep.mubr.bf16.mxu0 %v1125_v54  ;;  %v1152_v54 = vsel %vm1108_vm0, %v1142_v49, %v1151_v36  ;;  %v2340_v49 = vsel %vm2168_vm3, %v2328_v19, %v2339_v4  ;;  %v2347_v19 = vor.u32 %v2344_v47, %v873_v22 }
 0x112   : > { %v7227_v12 = vpop.f32.mrb[8].mxu1  ;;  %3173 = vmatmul.mubr.bf16.gmra.mrb[104].mxu1 %v2324_v16  ;;  %v1170_v30 = vsel %vm1108_vm0, %v1160_v21, %v1169_v33 }
 0x113   : > { %v7235_v42 = vpop.f32.mrb[9].mxu1  ;;  %3180 = vmatprep.mubr.bf16.mxu1 %v7121_v60  ;;  %v2332_v60 = vsel %vm2168_vm3, %v2320_v10, %v2331_v3  ;;  %v6264_v10 = vld [vmem:[%s8458_s3 + $0x150] sm:$0xff]   ;;  %v1161_v3 = vsel %vm1108_vm0, %v1151_v36, %v1160_v21  ;;  %v2348_v59 = vsel %vm2168_vm3, %v2336_v24, %v2347_v19  ;;  %v2497_v24 = vrot.slane %v1139_v20, 1 }
 0x114   : > { %v7243_v35 = vpop.f32.mrb[10].mxu1 }
 0x115   : > { %v7247_v45 = vpop.f32.mrb[11].mxu1 }
 0x118   : > { %6006 = vmatmul.mubr.bf16.vlgmr.msra.gmra.mrb[96].mxu0 %v1134_v31 }
 0x119   : > { %6054 = vmatpush3.bf16.msra.mxu0 %v6912_v13  ;;  %6009 = vmatprep.mubr.bf16.mxu0 %v1143_v7  ;;  %v7312_v7 = vld [vmem:[#allocation2 + $0xc0] sm:$0xff] }
 0x11a   : > { %v7267_v9 = vpop.f32.mrb[12].mxu1  ;;  %6055 = vmatprep.subr.bf16.mxu0 %v6263_v56  ;;  %3181 = vmatmul.mubr.bf16.gmra.mrb[108].mxu1 %v2332_v60  ;;  %v8463_v60 = vshrl.u32 %v7312_v7, 16 }
 0x11b   : > { %8492 = vst [vmem:[#allocation5_spill] sm:$0xff] %v7267_v9  ;;  %v7278_v13 = vpop.f32.mrb[13].mxu1  ;;  %3188 = vmatprep.mubr.bf16.mxu1 %v7138_v57  ;;  %v1174_v57 = vrot.slane %v7281_v52, 4 }
 0x11c   : > { %v7286_v17 = vpop.f32.mrb[14].mxu1  ;;  %v2352_v32 = vrot.slane %v8463_v60, 7 }
 0x11d   : > { %8493 = vst [vmem:[#allocation6_spill] sm:$0xff] %v7286_v17  ;;  %v7290_v11 = vpop.f32.mrb[15].mxu1  ;;  %6056 = vmatpush3.bf16.msra.mxu0 %v6263_v56  ;;  %v6267_v56 = vld [vmem:[%s8458_s3 + $0x160] sm:$0xff]   ;;  %v1178_v23 = vor.u32 %v1177_v8, %v1174_v57 }
 0x11e   : > { %6057 = vmatprep.subr.bf16.mxu0 %v6264_v10 }
 0x120   : > { %6010 = vmatmul.mubr.bf16.gmra.mrb[100].mxu0 %v1152_v54 }
 0x121   : > { %v7288_v41 = vpop.f32.mrb[0].mxu0  ;;  %6058 = vmatpush3.bf16.msra.mxu0 %v6264_v10  ;;  %6013 = vmatprep.mubr.bf16.mxu0 %v1161_v3  ;;  %v6268_v10 = vld [vmem:[%s8458_s3 + $0x168] sm:$0xff]  }
 0x122   : > { %8494 = vst [vmem:[#allocation7_spill] sm:$0xff] %v7288_v41  ;;  %v1681_v48 = vpop.f32.mrb[1].mxu0  ;;  %6059 = vmatprep.subr.bf16.mxu0 %v6265_v46  ;;  %3189 = vmatmul.mubr.bf16.gmra.mrb[112].mxu1 %v2340_v49  ;;  %v1188_v49 = vsel %vm1108_vm0, %v1178_v23, %v6481_v25  ;;  %v7449_v41 = vld [vmem:[#allocation2 + $0x50] sm:$0xff] }
 0x123   : > { %v7298_v16 = vpop.f32.mrb[2].mxu0  ;;  %3196 = vmatprep.mubr.bf16.mxu1 %v7155_v18  ;;  %v1179_v48 = vsel %vm1108_vm0, %v1169_v33, %v1178_v23  ;;  %v2492_v18 = vrot.slane %v1130_v14, 1  ;;  %v6269_v14 = vld [vmem:[%s8458_s3 + $0x170] sm:$0xff]   ;;  %v8462_v33 = vshrl.u32 %v7041_v63, 16 }
 0x124   : > { %8495 = vst [vmem:[#allocation8_spill] sm:$0xff] %v7298_v16  ;;  %v1684_v31 = vpop.f32.mrb[3].mxu0  ;;  %v7314_v28 = vpop.f32.mrb[16].mxu1 }
 0x125   : > { %8496 = vst [vmem:[#allocation9_spill] sm:$0xff] %v7314_v28  ;;  %6060 = vmatpush3.bf16.msra.mxu0 %v6265_v46  ;;  %v7321_v36 = vpop.f32.mrb[17].mxu1  ;;  %v8464_v46 = vshll.u32 %v7312_v7, 16  ;;  %v2493_v57 = vor.u32 %v2492_v18, %v1127_v6  ;;  %v2360_v23 = vrot.slane %v8462_v33, 7  ;;  %v3938_v33 = vrot.slane %v7220_v34, 4 }
 0x126   : > { %8497 = vst [vmem:[#allocation10_spill] sm:$0xff] %v7321_v36  ;;  %6061 = vmatprep.subr.bf16.mxu0 %v6267_v56  ;;  %v7327_v4 = vpop.f32.mrb[18].mxu1  ;;  %v2521_v34 = vrot.slane %v7273_v26, 1 }
 0x127   : > { %8498 = vst [vmem:[#allocation11_spill] sm:$0xff] %v7327_v4  ;;  %v7331_v22 = vpop.f32.mrb[19].mxu1  ;;  %v2355_v8 = vor.u32 %v8464_v46, %v2352_v32  ;;  %v2498_v20 = vsel %vm2486_vm4, %v2493_v57, %v2497_v24  ;;  %v6273_v46 = vld [vmem:[%s8458_s3 + $0x208] sm:$0xff]  }
 0x128   : > { %8499 = vst [vmem:[#allocation12_spill] sm:$0xff] %v7331_v22  ;;  %6014 = vmatmul.mubr.bf16.gmra.mrb[104].mxu0 %v1170_v30  ;;  %v2505_v30 = vrot.slane %v7233_v15, 1 }
 0x129   : > { %6062 = vmatpush3.bf16.msra.mxu0 %v6267_v56  ;;  %6017 = vmatprep.mubr.bf16.mxu0 %v1179_v48  ;;  %v2356_v25 = vsel %vm2168_vm3, %v2344_v47, %v2355_v8  ;;  %v2501_v48 = vor.u32 %v2497_v24, %v1136_v53 }
 0x12a   : > { %6063 = vmatprep.subr.bf16.mxu0 %v6268_v10  ;;  %3197 = vmatmul.mubr.bf16.gmra.mrb[116].mxu1 %v2348_v59  ;;  %v3590_v59 = vld [vmem:[#allocation2 + $0x18] sm:$0xf8]  ;;  %v2509_v47 = vor.u32 %v2505_v30, %v7230_v58 }
 0x12b   : > { %v7333_v54 = vpop.f32.mrb[4].mxu0  ;;  %3204 = vmatprep.mubr.bf16.mxu1 %v7312_v7  ;;  %v2506_v53 = vsel %vm2486_vm4, %v2501_v48, %v2505_v30  ;;  %v3616_v24 = vshrl.u32 %v3590_v59, 16  ;;  %v3619_v8 = vshll.u32 %v3590_v59, 16  ;;  %v7394_v30 = vld [vmem:[#allocation2 + $0x98] sm:$0xff]  ;;  %v3629_v48 = vrot.slane %v7233_v15, 4  ;;  %v6274_v59 = vld [vmem:[%s8458_s3 + $0x210] sm:$0xff]  }
 0x12c   : > { %8500 = vst [vmem:[#allocation13_spill] sm:$0xff] %v7333_v54  ;;  %v1689_v21 = vpop.f32.mrb[5].mxu0  ;;  %8509 = vst [vmem:[#allocation22_spill] sm:$0xff] %v7394_v30  ;;  %v2525_v15 = vor.u32 %v2521_v34, %v7270_v27 }
 0x12d   : > { %v7339_v3 = vpop.f32.mrb[6].mxu0  ;;  %6064 = vmatpush3.bf16.msra.mxu0 %v6268_v10  ;;  %v8465_v10 = vshll.u32 %v7041_v63, 16  ;;  %v6272_v21 = vld [vmem:[%s8458_s3 + $0x200] sm:$0xff]  }
 0x12e   : > { %8501 = vst [vmem:[#allocation14_spill] sm:$0xff] %v7339_v3  ;;  %v1692_v31 = vpop.f32.mrb[7].mxu0  ;;  %6065 = vmatprep.subr.bf16.mxu0 %v6269_v14  ;;  %v3940_v3 = vrot.slane %v7222_v43, 4 }
 0x12f   : > { %v3887_v31 = vld [vmem:[#allocation2 + $0x18] sm:$0xf0]  ;;  %v2363_v2 = vor.u32 %v8465_v10, %v2360_v23  ;;  %v3626_v23 = vrot.slane %v7230_v58, 3  ;;  %v7392_v10 = vld [vmem:[#allocation2 + $0x90] sm:$0xff] }
 0x130   : > { %6018 = vmatmul.mubr.bf16.gmra.mrb[108].mxu0 %v1188_v49  ;;  %8508 = vst [vmem:[#allocation21_spill] sm:$0xff] %v7392_v10 }
 0x131   : > { %v7357_v6 = vpop.f32.mrb[20].mxu1  ;;  %6066 = vmatpush3.bf16.msra.mxu0 %v6269_v14  ;;  %6069 = vmatprep.mubr.bf16.mxu0 %v2498_v20  ;;  %v2513_v14 = vrot.slane %v7241_v61, 1  ;;  %v3937_v20 = vrot.slane %v3887_v31, 4  ;;  %v2364_v31 = vsel %vm2168_vm3, %v2352_v32, %v2363_v2  ;;  %v8510_v32 = vrot.slane %v7392_v10, 4 }
 0x132   : > { %8502 = vst [vmem:[#allocation15_spill] sm:$0xff] %v7357_v6  ;;  %v7360_v56 = vpop.f32.mrb[21].mxu1  ;;  %6067 = vmatprep.subr.bf16.mxu0 %v6271_v0  ;;  %3205 = vmatmul.mubr.bf16.gmra.mrb[120].mxu1 %v2356_v25 }
 0x133   : > { %8503 = vst [vmem:[#allocation16_spill] sm:$0xff] %v7360_v56  ;;  %v7362_v19 = vpop.f32.mrb[22].mxu1  ;;  %3212 = vmatprep.mubr.bf16.mxu1 %v7041_v63  ;;  %v2514_v25 = vsel %vm2486_vm4, %v2509_v47, %v2513_v14  ;;  %v8466_v47 = vrot.slane %v7394_v30, 4  ;;  %v2517_v58 = vor.u32 %v2513_v14, %v7238_v50  ;;  %v7417_v14 = vld [vmem:[#allocation2 + $0x48] sm:$0xff] }
 0x134   : > { %8504 = vst [vmem:[#allocation17_spill] sm:$0xff] %v7362_v19  ;;  %v7371_v18 = vpop.f32.mrb[23].mxu1  ;;  %v3948_v22 = vrot.slane %v7417_v14, 4 }
 0x135   : > { %8505 = vst [vmem:[#allocation18_spill] sm:$0xff] %v7371_v18  ;;  %6068 = vmatpush3.bf16.msra.mxu0 %v6271_v0 }
 0x136   : > { %6117 = vmatprep.subr.bf16.mxu0 %v6272_v21 }
 0x138   : > { %v7378_v57 = vpop.f32.mrb[8].mxu0  ;;  %6070 = vmatmul.mubr.bf16.vlgmr.msra.gmra.mrb[112].mxu0 %v2506_v53  ;;  %v3939_v53 = vsel %vm985_vm1, %v3937_v20, %v3938_v33 }
 0x139   : > { %8506 = vst [vmem:[#allocation19_spill] sm:$0xff] %v7378_v57  ;;  %v1697_v49 = vpop.f32.mrb[9].mxu0  ;;  %6118 = vmatpush3.bf16.msra.mxu0 %v6272_v21  ;;  %6073 = vmatprep.mubr.bf16.mxu0 %v2514_v25  ;;  %v2529_v57 = vrot.slane %v7284_v38, 1  ;;  %v7415_v21 = vsel %vm985_vm1, %v8510_v32, %v8466_v47  ;;  %v2522_v25 = vsel %vm2486_vm4, %v2517_v58, %v2521_v34  ;;  %v3638_v58 = vrot.slane %v7241_v61, 4 }
 0x13a   : > { %v7385_v60 = vpop.f32.mrb[10].mxu0  ;;  %v3618_v49 = vrot.slane %v3616_v24, 3  ;;  %6119 = vmatprep.subr.bf16.mxu0 %v6273_v46  ;;  %8511 = vst [vmem:[#allocation23_spill] sm:$0xff] %v7415_v21  ;;  %3213 = vmatmul.mubr.bf16.gmra.mrb[124].mxu1 %v2364_v31  ;;  %v7433_v31 = vshll.u32 %v7417_v14, 16 }
 0x13b   : > { %8507 = vst [vmem:[#allocation20_spill] sm:$0xff] %v7385_v60  ;;  %v1700_v0 = vpop.f32.mrb[11].mxu0  ;;  %v3621_v60 = vrot.slane %v3619_v8, 4  ;;  %4628 = vmatprep.mubr.bf16.mxu1 %v3939_v53  ;;  %v3630_v8 = vor.u32 %v3629_v48, %v3626_v23  ;;  %v2530_v32 = vsel %vm2486_vm4, %v2525_v15, %v2529_v57  ;;  %v2533_v15 = vor.u32 %v2529_v57, %v7281_v52 }
 0x13c   : > { %v7402_v0 = vld [vmem:[#allocation2 + $0x40] sm:$0xff]  ;;  %v7462_v57 = vshll.u32 %v7449_v41, 16 }
 0x13d   : > { %v7420_v2 = vshll.u32 %v7402_v0, 16  ;;  %v3622_v24 = vor.u32 %v3621_v60, %v3618_v49  ;;  %6120 = vmatpush3.bf16.msra.mxu0 %v6273_v46  ;;  %v7430_v47 = vshrl.u32 %v7402_v0, 16  ;;  %v6275_v60 = vld [vmem:[%s8458_s3 + $0x218] sm:$0xff]   ;;  %v3635_v49 = vrot.slane %v7238_v50, 3  ;;  %v6276_v50 = vld [vmem:[%s8458_s3 + $0x220] sm:$0xff]  }
 0x13e   : > { %6121 = vmatprep.subr.bf16.mxu0 %v6274_v59 }
 0x13f   : > { %v7422_v20 = vpop.f32.mrb[24].mxu1  ;;  %v2537_v43 = vrot.slane %v7420_v2, 1  ;;  %v3631_v34 = vsel %vm662_vm2, %v3622_v24, %v3630_v8  ;;  %v7459_v24 = vld [vmem:[#allocation2 + $0x58] sm:$0xff] }
 0x140   : > { %8512 = vst [vmem:[#allocation24_spill] sm:$0xff] %v7422_v20  ;;  %v7425_v16 = vpop.f32.mrb[25].mxu1  ;;  %6074 = vmatmul.mubr.bf16.gmra.mrb[116].mxu0 %v2522_v25  ;;  %v3941_v25 = vsel %vm985_vm1, %v3938_v33, %v3940_v3  ;;  %v3639_v33 = vor.u32 %v3638_v58, %v3635_v49  ;;  %v6277_v49 = vld [vmem:[%s8458_s3 + $0x228] sm:$0xff]  }
 0x141   : > { %8513 = vst [vmem:[#allocation25_spill] sm:$0xff] %v7425_v16  ;;  %v7438_v23 = vpop.f32.mrb[26].mxu1  ;;  %6077 = vmatprep.mubr.bf16.mxu0 %v2530_v32  ;;  %6122 = vmatpush3.bf16.msra.mxu0 %v6274_v59  ;;  %v2538_v59 = vsel %vm2486_vm4, %v2533_v15, %v2537_v43  ;;  %v7466_v32 = vshrl.u32 %v7417_v14, 16  ;;  %v7484_v15 = vld [vmem:[#allocation2 + $0x60] sm:$0xff]  ;;  %v7503_v16 = vshrl.u32 %v7459_v24, 16 }
 0x142   : > { %8514 = vst [vmem:[#allocation26_spill] sm:$0xff] %v7438_v23  ;;  %v7440_v46 = vpop.f32.mrb[27].mxu1  ;;  %v2545_v23 = vrot.slane %v7433_v31, 1  ;;  %6123 = vmatprep.subr.bf16.mxu0 %v6275_v60  ;;  %4629 = vmatmul.mubr.bf16.vlgmr.msra.gmra.mrb[128].mxu1 %v3631_v34  ;;  %v7474_v34 = vshll.u32 %v7459_v24, 16 }
 0x143   : > { %8515 = vst [vmem:[#allocation27_spill] sm:$0xff] %v7440_v46  ;;  %v7442_v48 = vpop.f32.mrb[12].mxu0  ;;  %4636 = vmatprep.mubr.bf16.mxu1 %v3941_v25  ;;  %v3671_v14 = vrot.slane %v7466_v32, 3 }
 0x144   : > { %8516 = vst [vmem:[#allocation28_spill] sm:$0xff] %v7442_v48  ;;  %v1705_v53 = vpop.f32.mrb[13].mxu0  ;;  %v2541_v48 = vor.u32 %v7430_v47, %v2537_v43  ;;  %v2553_v43 = vrot.slane %v7462_v57, 1  ;;  %v2549_v58 = vor.u32 %v7466_v32, %v2545_v23 }
 0x145   : > { %v7452_v54 = vpop.f32.mrb[14].mxu0  ;;  %6124 = vmatpush3.bf16.msra.mxu0 %v6275_v60  ;;  %v3942_v53 = vrot.slane %v7259_v62, 4  ;;  %v3640_v60 = vsel %vm662_vm2, %v3630_v8, %v3639_v33  ;;  %v3644_v62 = vrot.slane %v7270_v27, 3  ;;  %v6278_v8 = vld [vmem:[%s8458_s3 + $0x230] sm:$0xff]  }
 0x146   : > { %8517 = vst [vmem:[#allocation29_spill] sm:$0xff] %v7452_v54  ;;  %v1708_v61 = vpop.f32.mrb[15].mxu0  ;;  %v2546_v54 = vsel %vm2486_vm4, %v2541_v48, %v2545_v23  ;;  %6125 = vmatprep.subr.bf16.mxu0 %v6276_v50  ;;  %v3647_v48 = vrot.slane %v7273_v26, 4  ;;  %v7494_v26 = vld [vmem:[#allocation2 + $0x68] sm:$0xff]  ;;  %v7497_v23 = vshll.u32 %v7484_v15, 16  ;;  %v2554_v46 = vsel %vm2486_vm4, %v2549_v58, %v2553_v43 }
 0x147   : > { %v7471_v61 = vshrl.u32 %v7449_v41, 16  ;;  %v3943_v25 = vsel %vm985_vm1, %v3940_v3, %v3942_v53  ;;  %v3656_v58 = vrot.slane %v7284_v38, 4 }
 0x148   : > { %6078 = vmatmul.mubr.bf16.gmra.mrb[120].mxu0 %v2538_v59  ;;  %v2561_v59 = vrot.slane %v7474_v34, 1  ;;  %v3648_v3 = vor.u32 %v3647_v48, %v3644_v62 }
 0x149   : > { %6081 = vmatprep.mubr.bf16.mxu0 %v2546_v54  ;;  %6126 = vmatpush3.bf16.msra.mxu0 %v6276_v50  ;;  %v2557_v20 = vor.u32 %v7471_v61, %v2553_v43  ;;  %v6279_v43 = vld [vmem:[%s8458_s3 + $0x238] sm:$0xff]  }
 0x14a   : > { %6127 = vmatprep.subr.bf16.mxu0 %v6277_v49  ;;  %4637 = vmatmul.mubr.bf16.gmra.mrb[132].mxu1 %v3640_v60  ;;  %v7508_v60 = vshrl.u32 %v7484_v15, 16 }
 0x14b   : > { %v7492_v27 = vpop.f32.mrb[16].mxu0  ;;  %4644 = vmatprep.mubr.bf16.mxu1 %v3943_v25  ;;  %v2562_v6 = vsel %vm2486_vm4, %v2557_v20, %v2561_v59  ;;  %v3649_v20 = vsel %vm662_vm2, %v3639_v33, %v3648_v3  ;;  %v2565_v25 = vor.u32 %v7503_v16, %v2561_v59 }
 0x14c   : > { %8518 = vst [vmem:[#allocation30_spill] sm:$0xff] %v7492_v27  ;;  %v1713_v54 = vpop.f32.mrb[17].mxu0  ;;  %v3944_v27 = vrot.slane %v7261_v29, 4  ;;  %v2569_v29 = vrot.slane %v7497_v23, 1 }
 0x14d   : > { %v7499_v50 = vpop.f32.mrb[18].mxu0  ;;  %6128 = vmatpush3.bf16.msra.mxu0 %v6277_v49  ;;  %v7511_v54 = vshll.u32 %v7494_v26, 16  ;;  %v7516_v62 = vpop.f32.mrb[28].mxu1  ;;  %v3653_v49 = vrot.slane %v7281_v52, 3  ;;  %v7536_v52 = vld [vmem:[#allocation2 + $0x78] sm:$0xff] }
 0x14e   : > { %8519 = vst [vmem:[#allocation31_spill] sm:$0xff] %v7499_v50  ;;  %v1716_v19 = vpop.f32.mrb[19].mxu0  ;;  %6129 = vmatprep.subr.bf16.mxu0 %v6278_v8  ;;  %8520 = vst [vmem:[#allocation32_spill] sm:$0xff] %v7516_v62  ;;  %v7518_v48 = vpop.f32.mrb[29].mxu1  ;;  %v7527_v50 = vld [vmem:[#allocation2 + $0x70] sm:$0xff] }
 0x14f   : > { %8521 = vst [vmem:[#allocation33_spill] sm:$0xff] %v7518_v48  ;;  %v7521_v19 = vpop.f32.mrb[30].mxu1  ;;  %v2573_v48 = vor.u32 %v7508_v60, %v2569_v29  ;;  %v3657_v59 = vor.u32 %v3656_v58, %v3653_v49 }
 0x150   : > { %6082 = vmatmul.mubr.bf16.gmra.mrb[124].mxu0 %v2554_v46  ;;  %8522 = vst [vmem:[#allocation34_spill] sm:$0xff] %v7521_v19  ;;  %v7529_v62 = vpop.f32.mrb[31].mxu1  ;;  %v3945_v46 = vsel %vm985_vm1, %v3942_v53, %v3944_v27  ;;  %v2577_v19 = vrot.slane %v7511_v54, 1  ;;  %v2570_v53 = vsel %vm2486_vm4, %v2565_v25, %v2569_v29 }
 0x151   : > { %6085 = vmatprep.mubr.bf16.mxu0 %v2562_v6  ;;  %6130 = vmatpush3.bf16.msra.mxu0 %v6278_v8  ;;  %8523 = vst [vmem:[#allocation35_spill] sm:$0xff] %v7529_v62  ;;  %v7539_v6 = vshll.u32 %v7527_v50, 16  ;;  %v7545_v62 = vshrl.u32 %v7494_v26, 16 }
 0x152   : > { %6131 = vmatprep.subr.bf16.mxu0 %v6279_v43  ;;  %4645 = vmatmul.mubr.bf16.gmra.mrb[136].mxu1 %v3649_v20  ;;  %v2578_v56 = vsel %vm2486_vm4, %v2573_v48, %v2577_v19  ;;  %v7550_v20 = vshrl.u32 %v7527_v50, 16 }
 0x153   : > { %v7534_v33 = vpop.f32.mrb[20].mxu0  ;;  %4652 = vmatprep.mubr.bf16.mxu1 %v3945_v46  ;;  %v2585_v29 = vrot.slane %v7539_v6, 1  ;;  %v2581_v48 = vor.u32 %v7545_v62, %v2577_v19  ;;  %v7564_v46 = vld [vmem:[#allocation2 + $0x80] sm:$0xff] }
 0x154   : > { %8524 = vst [vmem:[#allocation36_spill] sm:$0xff] %v7534_v33  ;;  %v1721_v38 = vpop.f32.mrb[21].mxu0  ;;  %v3946_v33 = vrot.slane %v7402_v0, 4  ;;  %v3662_v0 = vrot.slane %v7430_v47, 3  ;;  %v7574_v21 = vshll.u32 %v7564_v46, 16 }
 0x155   : > { %v7541_v8 = vpop.f32.mrb[22].mxu0  ;;  %6132 = vmatpush3.bf16.msra.mxu0 %v6279_v43  ;;  %v7553_v38 = vshll.u32 %v7536_v52, 16  ;;  %v7555_v49 = vpop.f32.mrb[32].mxu1  ;;  %v3665_v43 = vrot.slane %v7420_v2, 4 }
 0x156   : > { %8525 = vst [vmem:[#allocation37_spill] sm:$0xff] %v7541_v8  ;;  %v1724_v18 = vpop.f32.mrb[23].mxu0  ;;  %8526 = vst [vmem:[#allocation38_spill] sm:$0xff] %v7555_v49  ;;  %v3032_v58 = vpop.f32.mrb[33].mxu1  ;;  %v3947_v49 = vsel %vm985_vm1, %v3944_v27, %v3946_v33  ;;  %v7580_v27 = vshrl.u32 %v7536_v52, 16  ;;  %v3949_v36 = vsel %vm985_vm1, %v3946_v33, %v3948_v22 }
 0x157   : > { %v7558_v25 = vpop.f32.mrb[34].mxu1  ;;  %v3658_v18 = vsel %vm662_vm2, %v3648_v3, %v3657_v59  ;;  %v2593_v58 = vrot.slane %v7553_v38, 1 }
 0x158   : > { %6086 = vmatmul.mubr.bf16.gmra.mrb[128].mxu0 %v2570_v53  ;;  %8527 = vst [vmem:[#allocation39_spill] sm:$0xff] %v7558_v25  ;;  %v3035_v8 = vpop.f32.mrb[35].mxu1  ;;  %v2589_v53 = vor.u32 %v7550_v20, %v2585_v29  ;;  %v7571_v25 = vld [vmem:[#allocation2 + $0x88] sm:$0xff] }
 0x159   : > { %6089 = vmatprep.mubr.bf16.mxu0 %v2578_v56  ;;  %v3666_v56 = vor.u32 %v3665_v43, %v3662_v0  ;;  %v2586_v8 = vsel %vm2486_vm4, %v2581_v48, %v2585_v29  ;;  %v2601_v29 = vrot.slane %v7574_v21, 1  ;;  %v3674_v48 = vrot.slane %v7433_v31, 4 }
 0x15a   : > { %4653 = vmatmul.mubr.bf16.gmra.mrb[140].mxu1 %v3658_v18  ;;  %v7585_v18 = vshrl.u32 %v7564_v46, 16 }
 0x15b   : > { %v7569_v4 = vpop.f32.mrb[24].mxu0  ;;  %4660 = vmatprep.mubr.bf16.mxu1 %v3947_v49  ;;  %v3675_v17 = vor.u32 %v3674_v48, %v3671_v14 }
 0x15c   : > { %8528 = vst [vmem:[#allocation40_spill] sm:$0xff] %v7569_v4  ;;  %v1729_v3 = vpop.f32.mrb[25].mxu0  ;;  %v2594_v4 = vsel %vm2486_vm4, %v2589_v53, %v2593_v58  ;;  %v2597_v53 = vor.u32 %v7580_v27, %v2593_v58  ;;  %v7611_v58 = vshrl.u32 %v7571_v25, 16 }
 0x15d   : > { %v7576_v19 = vpop.f32.mrb[26].mxu0  ;;  %v7588_v3 = vshll.u32 %v7571_v25, 16  ;;  %v7590_v49 = vpop.f32.mrb[36].mxu1 }
 0x15e   : > { %8529 = vst [vmem:[#allocation41_spill] sm:$0xff] %v7576_v19  ;;  %v1732_v28 = vpop.f32.mrb[27].mxu0  ;;  %8531 = vst [vmem:[#allocation43_spill] sm:$0xff] %v7590_v49  ;;  %v3040_v0 = vpop.f32.mrb[37].mxu1  ;;  %v2605_v49 = vor.u32 %v7585_v18, %v2601_v29 }
 0x15f   : > { %8530 = vst [vmem:[#allocation42_spill] sm:$0xff] %v7588_v3  ;;  %v7593_v43 = vpop.f32.mrb[38].mxu1  ;;  %v3667_v28 = vsel %vm662_vm2, %v3657_v59, %v3666_v56  ;;  %v7605_v59 = vshll.u32 %v7392_v10, 16  ;;  %8536 = vst [vmem:[#allocation48_spill] sm:$0xff] %v7611_v58 }
 0x160   : > { %6090 = vmatmul.mubr.bf16.gmra.mrb[132].mxu0 %v2586_v8  ;;  %8532 = vst [vmem:[#allocation44_spill] sm:$0xff] %v7593_v43  ;;  %v3043_v19 = vpop.f32.mrb[39].mxu1  ;;  %v2609_v8 = vrot.slane %v7588_v3, 1 }
 0x161   : > { %6093 = vmatprep.mubr.bf16.mxu0 %v2594_v4  ;;  %8534 = vst [vmem:[#allocation46_spill] sm:$0xff] %v7605_v59  ;;  %v2602_v4 = vsel %vm2486_vm4, %v2597_v53, %v2601_v29  ;;  %v3950_v19 = vrot.slane %v7449_v41, 4  ;;  %v2617_v29 = vrot.slane %v7605_v59, 1  ;;  %v3676_v53 = vsel %vm662_vm2, %v3666_v56, %v3675_v17 }
 0x162   : > { %4661 = vmatmul.mubr.bf16.gmra.mrb[144].mxu1 %v3667_v28  ;;  %v2610_v3 = vsel %vm2486_vm4, %v2605_v49, %v2609_v8  ;;  %v7616_v28 = vshrl.u32 %v7392_v10, 16  ;;  %v3680_v41 = vrot.slane %v7471_v61, 3  ;;  %v3683_v49 = vrot.slane %v7462_v57, 4 }
 0x163   : > { %v7602_v0 = vpop.f32.mrb[28].mxu0  ;;  %4668 = vmatprep.mubr.bf16.mxu1 %v3949_v36 }
 0x164   : > { %8533 = vst [vmem:[#allocation45_spill] sm:$0xff] %v7602_v0  ;;  %v1737_v43 = vpop.f32.mrb[29].mxu0  ;;  %8537 = vst [vmem:[#allocation49_spill] sm:$0xff] %v7616_v28 }
 0x165   : > { %v7607_v9 = vpop.f32.mrb[30].mxu0  ;;  %v7619_v43 = vshll.u32 %v7394_v30, 16  ;;  %v7621_v36 = vpop.f32.mrb[40].mxu1 }
 0x166   : > { %8535 = vst [vmem:[#allocation47_spill] sm:$0xff] %v7607_v9  ;;  %v1740_v33 = vpop.f32.mrb[31].mxu0  ;;  %8539 = vst [vmem:[#allocation51_spill] sm:$0xff] %v7621_v36  ;;  %v3048_v14 = vpop.f32.mrb[41].mxu1  ;;  %v7630_v9 = vld [vmem:[#allocation2 + $0xa0] sm:$0xff]  ;;  %v3951_v36 = vsel %vm985_vm1, %v3948_v22, %v3950_v19 }
 0x167   : > { %8538 = vst [vmem:[#allocation50_spill] sm:$0xff] %v7619_v43  ;;  %v7624_v48 = vpop.f32.mrb[42].mxu1  ;;  %v2613_v33 = vor.u32 %v7611_v58, %v2609_v8  ;;  %v2625_v14 = vrot.slane %v7619_v43, 1  ;;  %v3684_v8 = vor.u32 %v3683_v49, %v3680_v41  ;;  %v7646_v43 = vshrl.u32 %v7394_v30, 16 }
 0x168   : > { %6094 = vmatmul.mubr.bf16.gmra.mrb[136].mxu0 %v2602_v4  ;;  %8540 = vst [vmem:[#allocation52_spill] sm:$0xff] %v7624_v48  ;;  %v3051_v0 = vpop.f32.mrb[43].mxu1  ;;  %v2621_v4 = vor.u32 %v7616_v28, %v2617_v29  ;;  %v7635_v48 = vld [vmem:[#allocation2 + $0xa8] sm:$0xff]  ;;  %v3952_v28 = vrot.slane %v7459_v24, 4  ;;  %v3689_v49 = vrot.slane %v7503_v16, 3  ;;  %v3954_v30 = vrot.slane %v7484_v15, 4 }
 0x169   : > { %6097 = vmatprep.mubr.bf16.mxu0 %v2610_v3  ;;  %v7641_v3 = vshll.u32 %v7630_v9, 16  ;;  %v2618_v22 = vsel %vm2486_vm4, %v2613_v33, %v2617_v29  ;;  %v3692_v33 = vrot.slane %v7474_v34, 4  ;;  %v3698_v15 = vrot.slane %v7508_v60, 3 }
 0x16a   : > { %4669 = vmatmul.mubr.bf16.gmra.mrb[148].mxu1 %v3676_v53 }
 0x16b   : > { %v1743_v10 = vpop.f32.mrb[32].mxu0  ;;  %8542 = vst [vmem:[#allocation54_spill] sm:$0xff] %v7641_v3  ;;  %4676 = vmatprep.mubr.bf16.mxu1 %v3951_v36  ;;  %v2633_v24 = vrot.slane %v7641_v3, 1 }
 0x16c   : > { %v7638_v56 = vadd.f32 %v7177_v51, %v1743_v10  ;;  %v1745_v59 = vpop.f32.mrb[33].mxu0  ;;  %v2626_v51 = vsel %vm2486_vm4, %v2621_v4, %v2625_v14  ;;  %v7653_v10 = vshrl.u32 %v7630_v9, 16  ;;  %v2629_v4 = vor.u32 %v7646_v43, %v2625_v14 }
 0x16d   : > { %v1746_v0 = vpop.f32.mrb[34].mxu0  ;;  %v7656_v59 = vshll.u32 %v7635_v48, 16  ;;  %v7658_v36 = vpop.f32.mrb[44].mxu1  ;;  %v3693_v14 = vor.u32 %v3692_v33, %v3689_v49  ;;  %v3701_v49 = vrot.slane %v7497_v23, 4 }
 0x16e   : > { %8541 = vst [vmem:[#allocation53_spill] sm:$0xff] %v7638_v56  ;;  %v7649_v58 = vadd.f32 %v7181_v55, %v1746_v0  ;;  %v1748_v53 = vpop.f32.mrb[35].mxu0  ;;  %8545 = vst [vmem:[#allocation57_spill] sm:$0xff] %v7658_v36  ;;  %v3056_v29 = vpop.f32.mrb[45].mxu1  ;;  %v3685_v55 = vsel %vm662_vm2, %v3675_v17, %v3684_v8  ;;  %v7667_v0 = vld [vmem:[#allocation2 + $0xb0] sm:$0xff] }
 0x16f   : > { %8544 = vst [vmem:[#allocation56_spill] sm:$0xff] %v7656_v59  ;;  %v7661_v41 = vpop.f32.mrb[46].mxu1  ;;  %v2641_v29 = vrot.slane %v7656_v59, 1  ;;  %v7683_v59 = vshrl.u32 %v7635_v48, 16 }
 0x170   : > { %8543 = vst [vmem:[#allocation55_spill] sm:$0xff] %v7649_v58  ;;  %6098 = vmatmul.mubr.bf16.gmra.mrb[140].mxu0 %v2618_v22  ;;  %8546 = vst [vmem:[#allocation58_spill] sm:$0xff] %v7661_v41  ;;  %v3059_v53 = vpop.f32.mrb[47].mxu1  ;;  %v3953_v58 = vsel %vm985_vm1, %v3950_v19, %v3952_v28  ;;  %v2637_v22 = vor.u32 %v7653_v10, %v2633_v24  ;;  %v7672_v41 = vld [vmem:[#allocation2 + $0xb8] sm:$0xff]  ;;  %v2634_v19 = vsel %vm2486_vm4, %v2629_v4, %v2633_v24 }
 0x171   : > { %6101 = vmatprep.mubr.bf16.mxu0 %v2626_v51  ;;  %8547 = vst [vmem:[#allocation59_spill] sm:$0xff] %v7672_v41  ;;  %v7678_v51 = vshll.u32 %v7667_v0, 16  ;;  %v3694_v4 = vsel %vm662_vm2, %v3684_v8, %v3693_v14 }
 0x172   : > { %4677 = vmatmul.mubr.bf16.gmra.mrb[152].mxu1 %v3685_v55 }
 0x173   : > { %v1751_v56 = vpop.f32.mrb[36].mxu0  ;;  %8549 = vst [vmem:[#allocation61_spill] sm:$0xff] %v7678_v51  ;;  %4684 = vmatprep.mubr.bf16.mxu1 %v3953_v58  ;;  %v7693_v58 = vshll.u32 %v7672_v41, 16 }
 0x174   : > { %v7675_v17 = vadd.f32 %v7175_v1, %v1751_v56  ;;  %v1753_v36 = vpop.f32.mrb[37].mxu0  ;;  %v2642_v1 = vsel %vm2486_vm4, %v2637_v22, %v2641_v29  ;;  %v7690_v56 = vshrl.u32 %v7667_v0, 16  ;;  %v2645_v22 = vor.u32 %v7683_v59, %v2641_v29 }
 0x175   : > { %v1754_v53 = vpop.f32.mrb[38].mxu0  ;;  %8552 = vst [vmem:[#allocation64_spill] sm:$0xff] %v7693_v58  ;;  %v7695_v36 = vpop.f32.mrb[48].mxu1  ;;  %v7712_v29 = vshrl.u32 %v7672_v41, 16 }
 0x176   : > { %8548 = vst [vmem:[#allocation60_spill] sm:$0xff] %v7675_v17  ;;  %v7686_v3 = vadd.f32 %v7179_v44, %v1754_v53  ;;  %v1756_v55 = vpop.f32.mrb[39].mxu0  ;;  %8551 = vst [vmem:[#allocation63_spill] sm:$0xff] %v7690_v56  ;;  %v3064_v24 = vpop.f32.mrb[49].mxu1  ;;  %v2649_v44 = vrot.slane %v7678_v51, 1  ;;  %v3702_v17 = vor.u32 %v3701_v49, %v3698_v15 }
 0x177   : > { %8553 = vst [vmem:[#allocation65_spill] sm:$0xff] %v7695_v36  ;;  %v7700_v33 = vpop.f32.mrb[50].mxu1  ;;  %v3955_v55 = vsel %vm985_vm1, %v3952_v28, %v3954_v30  ;;  %8556 = vst [vmem:[#allocation68_spill] sm:$0xff] %v7712_v29  ;;  %v4034_v15 = vld [vmem:[#allocation2 + $0x18] sm:$0xf0] }
 0x178   : > { %8550 = vst [vmem:[#allocation62_spill] sm:$0xff] %v7686_v3  ;;  %6102 = vmatmul.mubr.bf16.gmra.mrb[144].mxu0 %v2634_v19  ;;  %8554 = vst [vmem:[#allocation66_spill] sm:$0xff] %v7700_v33  ;;  %v3067_v53 = vpop.f32.mrb[51].mxu1  ;;  %v2653_v3 = vor.u32 %v7690_v56, %v2649_v44  ;;  %v2657_v19 = vrot.slane %v7693_v58, 1  ;;  %v2650_v8 = vsel %vm2486_vm4, %v2645_v22, %v2649_v44  ;;  %v3707_v22 = vrot.slane %v7545_v62, 3 }
 0x179   : > { %6105 = vmatprep.mubr.bf16.mxu0 %v2642_v1  ;;  %v3956_v53 = vrot.slane %v7494_v26, 4  ;;  %v3703_v44 = vsel %vm662_vm2, %v3693_v14, %v3702_v17 }
 0x17a   : > { %4685 = vmatmul.mubr.bf16.gmra.mrb[156].mxu1 %v3694_v4  ;;  %v2658_v4 = vsel %vm2486_vm4, %v2653_v3, %v2657_v19  ;;  %v2661_v26 = vor.u32 %v7712_v29, %v2657_v19  ;;  %v8561_v3 = vshrl.u32 %v7312_v7, 16 }
 0x17b   : > { %v1759_v24 = vpop.f32.mrb[40].mxu0  ;;  %4692 = vmatprep.mubr.bf16.mxu1 %v3955_v55  ;;  %v4035_v55 = vld [vmem:[#allocation2 + $0x20] sm:$0xff]  ;;  %v3957_v14 = vsel %vm985_vm1, %v3954_v30, %v3956_v53 }
 0x17c   : > { %v7708_v36 = vadd.f32 %v7199_v5, %v1759_v24  ;;  %v1761_v51 = vpop.f32.mrb[41].mxu0  ;;  %v8559_v5 = vshll.u32 %v7312_v7, 16  ;;  %v4068_v58 = vshrl.u32 %v4035_v55, 16  ;;  %v4071_v41 = vshll.u32 %v4035_v55, 16 }
 0x17d   : > { %v1762_v33 = vpop.f32.mrb[42].mxu0  ;;  %v7719_v49 = vpop.f32.mrb[52].mxu1  ;;  %v3958_v7 = vrot.slane %v7527_v50, 4 }
 0x17e   : > { %8555 = vst [vmem:[#allocation67_spill] sm:$0xff] %v7708_v36  ;;  %v7715_v28 = vadd.f32 %v7205_v39, %v1762_v33  ;;  %v1764_v1 = vpop.f32.mrb[43].mxu0  ;;  %8558 = vst [vmem:[#allocation70_spill] sm:$0xff] %v7719_v49  ;;  %v2665_v51 = vrot.slane %v8559_v5, 1  ;;  %v3072_v24 = vpop.f32.mrb[53].mxu1  ;;  %v3710_v39 = vrot.slane %v7511_v54, 4 }
 0x17f   : > { %v7726_v33 = vpop.f32.mrb[54].mxu1  ;;  %v4060_v36 = vshrl.u32 %v4034_v15, 16  ;;  %v4063_v49 = vshll.u32 %v4034_v15, 16 }
 0x180   : > { %8557 = vst [vmem:[#allocation69_spill] sm:$0xff] %v7715_v28  ;;  %6106 = vmatmul.mubr.bf16.gmra.mrb[148].mxu0 %v2650_v8  ;;  %8560 = vst [vmem:[#allocation71_spill] sm:$0xff] %v7726_v33  ;;  %v2669_v1 = vor.u32 %v2665_v51, %v8561_v3  ;;  %v8562_v28 = vshll.u32 %v7041_v63, 16  ;;  %v3075_v24 = vpop.f32.mrb[55].mxu1  ;;  %v2485_v8 = vld [vmem:[#allocation2 + $0xd0] sm:$0x1]  ;;  %v3711_v33 = vor.u32 %v3710_v39, %v3707_v22 }
 0x181   : > { %6109 = vmatprep.mubr.bf16.mxu0 %v2658_v4  ;;  %v2679_v30 = vshll.u32 %v2485_v8, 16  ;;  %v4062_v29 = vrot.slane %v4060_v36, 4  ;;  %v4070_v22 = vrot.slane %v4068_v58, 4  ;;  %v4073_v39 = vrot.slane %v4071_v41, 5 }
 0x182   : > { %v2673_v5 = vrot.slane %v8562_v28, 1  ;;  %4693 = vmatmul.mubr.bf16.gmra.mrb[160].mxu1 %v3703_v44  ;;  %v2666_v28 = vsel %vm2486_vm4, %v2661_v26, %v2665_v51  ;;  %v4065_v44 = vrot.slane %v4063_v49, 5  ;;  %v3959_v51 = vsel %vm985_vm1, %v3956_v53, %v3958_v7 }
 0x183   : > { %v1767_v56 = vpop.f32.mrb[44].mxu0  ;;  %4700 = vmatprep.mubr.bf16.mxu1 %v3957_v14  ;;  %v3712_v14 = vsel %vm662_vm2, %v3702_v17, %v3711_v33  ;;  %v3716_v26 = vrot.slane %v7550_v20, 3  ;;  %v3719_v36 = vrot.slane %v7539_v6, 4  ;;  %v8566_v58 = vshrl.u32 %v7041_v63, 16 }
 0x184   : > { %v7735_v4 = vadd.f32 %v7195_v37, %v1767_v56  ;;  %v1769_v19 = vpop.f32.mrb[45].mxu0  ;;  %v2674_v24 = vsel %vm2486_vm4, %v2669_v1, %v2673_v5  ;;  %v4036_v37 = vld [vmem:[#allocation2 + $0x28] sm:$0xff]  ;;  %v2681_v49 = vrot.slane %v2679_v30, 1 }
 0x185   : > { %v1770_v3 = vpop.f32.mrb[46].mxu0  ;;  %v7743_v56 = vpop.f32.mrb[56].mxu1  ;;  %v4037_v19 = vld [vmem:[#allocation2 + $0x30] sm:$0xff]  ;;  %v2677_v41 = vor.u32 %v2673_v5, %v8566_v58  ;;  %v4077_v1 = vshrl.u32 %v4036_v37, 16  ;;  %v4080_v8 = vshll.u32 %v4036_v37, 16  ;;  %v3720_v53 = vor.u32 %v3719_v36, %v3716_v26 }
 0x186   : > { %8563 = vst [vmem:[#allocation72_spill] sm:$0xff] %v7735_v4  ;;  %v7741_v15 = vadd.f32 %v7203_v40, %v1770_v3  ;;  %v1772_v55 = vpop.f32.mrb[47].mxu0  ;;  %8565 = vst [vmem:[#allocation74_spill] sm:$0xff] %v7743_v56  ;;  %v3080_v50 = vpop.f32.mrb[57].mxu1  ;;  %v4086_v17 = vshrl.u32 %v4037_v19, 16  ;;  %v3960_v5 = vrot.slane %v7536_v52, 4 }
 0x187   : > { %v7749_v40 = vpop.f32.mrb[58].mxu1  ;;  %v4066_v55 = vor.u32 %v4065_v44, %v4062_v29  ;;  %v4074_v50 = vor.u32 %v4073_v39, %v4070_v22  ;;  %v2682_v63 = vsel %vm2486_vm4, %v2677_v41, %v2681_v49  ;;  %v4079_v30 = vrot.slane %v4077_v1, 4 }
 0x188   : > { %8564 = vst [vmem:[#allocation73_spill] sm:$0xff] %v7741_v15  ;;  %6110 = vmatmul.mubr.bf16.gmra.mrb[152].mxu0 %v2666_v28  ;;  %v3083_v3 = vpop.f32.mrb[59].mxu1  ;;  %v4089_v28 = vshll.u32 %v4037_v19, 16  ;;  %v4082_v37 = vrot.slane %v4080_v8, 5  ;;  %v4088_v39 = vrot.slane %v4086_v17, 4  ;;  %v3721_v26 = vsel %vm662_vm2, %v3711_v33, %v3720_v53 }
 0x189   : > { %6113 = vmatprep.mubr.bf16.mxu0 %v2674_v24  ;;  %v4075_v22 = vsel %vm1108_vm0, %v4066_v55, %v4074_v50  ;;  %v3961_v49 = vsel %vm985_vm1, %v3958_v7, %v3960_v5  ;;  %v3962_v33 = vrot.slane %v7564_v46, 4  ;;  %v3737_v46 = vrot.slane %v7574_v21, 4 }
 0x18a   : > { %4701 = vmatmul.mubr.bf16.gmra.mrb[164].mxu1 %v3712_v14  ;;  %v4091_v19 = vrot.slane %v4089_v28, 5  ;;  %v4038_v14 = vld [vmem:[#allocation2 + $0x38] sm:$0xff] }
 0x18b   : > { %v1775_v15 = vpop.f32.mrb[48].mxu0  ;;  %4708 = vmatprep.mubr.bf16.mxu1 %v3959_v51  ;;  %v3728_v51 = vrot.slane %v7553_v38, 4  ;;  %v4095_v36 = vshrl.u32 %v4038_v14, 16  ;;  %v4098_v58 = vshll.u32 %v4038_v14, 16 }
 0x18c   : > { %v7754_v4 = vadd.f32 %v7235_v42, %v1775_v15  ;;  %v1777_v56 = vpop.f32.mrb[49].mxu0  ;;  %v4092_v1 = vor.u32 %v4091_v19, %v4088_v39 }
 0x18d   : > { %v1778_v24 = vpop.f32.mrb[50].mxu0  ;;  %v7762_v42 = vpop.f32.mrb[60].mxu1  ;;  %v3725_v56 = vrot.slane %v7580_v27, 3 }
 0x18e   : > { %v7759_v29 = vadd.f32 %v7247_v45, %v1778_v24  ;;  %v1780_v44 = vpop.f32.mrb[51].mxu0  ;;  %v3088_v15 = vpop.f32.mrb[61].mxu1  ;;  %v4083_v45 = vor.u32 %v4082_v37, %v4079_v30  ;;  %v4100_v30 = vrot.slane %v4098_v58, 5 }
 0x18f   : > { %v7766_v52 = vpop.f32.mrb[62].mxu1  ;;  %v3729_v3 = vor.u32 %v3728_v51, %v3725_v56  ;;  %v3963_v51 = vsel %vm985_vm1, %v3960_v5, %v3962_v33 }
 0x190   : > { %6114 = vmatmul.mubr.bf16.gmra.mrb[156].mxu0 %v2682_v63  ;;  %v3091_v41 = vpop.f32.mrb[63].mxu1  ;;  %v4084_v24 = vsel %vm1108_vm0, %v4074_v50, %v4083_v45  ;;  %v4097_v63 = vrot.slane %v4095_v36, 4  ;;  %v4093_v44 = vsel %vm1108_vm0, %v4083_v45, %v4092_v1  ;;  %v3734_v50 = vrot.slane %v7585_v18, 3 }
 0x191   : > { %6133 = vmatprep.mubr.bf16.mxu0 %v4075_v22  ;;  %v4106_v22 = vrot.slane %v7430_v47, 4 }
 0x192   : > { %4709 = vmatmul.mubr.bf16.gmra.mrb[168].mxu1 %v3721_v26  ;;  %v4101_v15 = vor.u32 %v4100_v30, %v4097_v63 }
 0x193   : > { %v1783_v8 = vpop.f32.mrb[52].mxu0  ;;  %4716 = vmatprep.mubr.bf16.mxu1 %v3961_v49  ;;  %v3964_v49 = vrot.slane %v7571_v25, 4  ;;  %v8567_v25 = vld [vmem:[#allocation48_spill] sm:$0xff] }
 0x194   : > { %v7771_v55 = vadd.f32 %v7227_v12, %v1783_v8  ;;  %v1785_v17 = vpop.f32.mrb[53].mxu0  ;;  %v4109_v12 = vrot.slane %v7420_v2, 5  ;;  %v3738_v2 = vor.u32 %v3737_v46, %v3734_v50  ;;  %v4102_v41 = vsel %vm1108_vm0, %v4092_v1, %v4101_v15 }
 0x195   : > { %v1786_v28 = vpop.f32.mrb[54].mxu0  ;;  %v7781_v39 = vpop.f32.mrb[64].mxu1  ;;  %v4118_v8 = vrot.slane %v7433_v31, 5  ;;  %v3743_v31 = vrot.slane %v8567_v25, 3 }
 0x196   : > { %v7776_v37 = vadd.f32 %v7243_v35, %v1786_v28  ;;  %v1788_v7 = vpop.f32.mrb[55].mxu0  ;;  %v3096_v19 = vpop.f32.mrb[65].mxu1  ;;  %v3730_v35 = vsel %vm662_vm2, %v3720_v53, %v3729_v3  ;;  %v4110_v47 = vor.u32 %v4109_v12, %v4106_v22  ;;  %v4115_v53 = vrot.slane %v7466_v32, 4 }
 0x197   : > { %v7785_v14 = vpop.f32.mrb[66].mxu1  ;;  %v3739_v32 = vsel %vm662_vm2, %v3729_v3, %v3738_v2  ;;  %v8568_v7 = vld [vmem:[#allocation42_spill] sm:$0xff]  ;;  %v3965_v12 = vsel %vm985_vm1, %v3962_v33, %v3964_v49 }
 0x198   : > { %6134 = vmatmul.mubr.bf16.vlgmr.msra.gmra.mrb[160].mxu0 %v4084_v24  ;;  %v3099_v56 = vpop.f32.mrb[67].mxu1  ;;  %v4111_v28 = vsel %vm1108_vm0, %v4101_v15, %v4110_v47  ;;  %v4127_v24 = vrot.slane %v7462_v57, 5  ;;  %v8569_v57 = vld [vmem:[#allocation5_spill] sm:$0xff] }
 0x199   : > { %6137 = vmatprep.mubr.bf16.mxu0 %v4093_v44  ;;  %v4119_v44 = vor.u32 %v4118_v8, %v4115_v53  ;;  %v4133_v56 = vrot.slane %v7503_v16, 4  ;;  %v4145_v53 = vrot.slane %v7497_v23, 5 }
 0x19a   : > { %4717 = vmatmul.mubr.bf16.gmra.mrb[172].mxu1 %v3730_v35 }
 0x19b   : > { %v1791_v26 = vpop.f32.mrb[56].mxu0  ;;  %4724 = vmatprep.mubr.bf16.mxu1 %v3963_v51  ;;  %v4120_v3 = vsel %vm1108_vm0, %v4110_v47, %v4119_v44  ;;  %v4136_v51 = vrot.slane %v7474_v34, 5  ;;  %v8571_v47 = vld [vmem:[#allocation49_spill] sm:$0xff] }
 0x19c   : > { %v7790_v45 = vadd.f32 %v7278_v13, %v1791_v26  ;;  %v1793_v36 = vpop.f32.mrb[57].mxu0  ;;  %v4124_v13 = vrot.slane %v7471_v61, 4  ;;  %v8570_v26 = vld [vmem:[#allocation6_spill] sm:$0xff]  ;;  %v3752_v34 = vrot.slane %v8571_v47, 3 }
 0x19d   : > { %v1794_v58 = vpop.f32.mrb[58].mxu0  ;;  %v7802_v63 = vpop.f32.mrb[68].mxu1 }
 0x19e   : > { %v7797_v5 = vadd.f32 %v7290_v11, %v1794_v58  ;;  %v1796_v17 = vpop.f32.mrb[59].mxu0  ;;  %v3104_v30 = vpop.f32.mrb[69].mxu1  ;;  %v3746_v11 = vrot.slane %v8568_v7, 4  ;;  %v4128_v61 = vor.u32 %v4127_v24, %v4124_v13  ;;  %v8572_v13 = vld [vmem:[#allocation46_spill] sm:$0xff] }
 0x19f   : > { %v7804_v1 = vpop.f32.mrb[70].mxu1  ;;  %v3755_v24 = vrot.slane %v8572_v13, 4  ;;  %v4137_v30 = vor.u32 %v4136_v51, %v4133_v56  ;;  %v8577_v56 = vld [vmem:[#allocation12_spill] sm:$0xff] }
 0x1a0   : > { %6138 = vmatmul.mubr.bf16.gmra.mrb[164].mxu0 %v4102_v41  ;;  %v3107_v22 = vpop.f32.mrb[71].mxu1  ;;  %v3747_v35 = vor.u32 %v3746_v11, %v3743_v31  ;;  %v4129_v58 = vsel %vm1108_vm0, %v4119_v44, %v4128_v61  ;;  %v4142_v41 = vrot.slane %v7508_v60, 4  ;;  %v8573_v31 = vld [vmem:[#allocation21_spill] sm:$0xff] }
 0x1a1   : > { %6141 = vmatprep.mubr.bf16.mxu0 %v4111_v28  ;;  %v8574_v11 = vrot.slane %v8573_v31, 4  ;;  %v8575_v22 = vld [vmem:[#allocation10_spill] sm:$0xff] }
 0x1a2   : > { %4725 = vmatmul.mubr.bf16.gmra.mrb[176].mxu1 %v3739_v32  ;;  %v3748_v16 = vsel %vm662_vm2, %v3738_v2, %v3747_v35  ;;  %v4146_v23 = vor.u32 %v4145_v53, %v4142_v41  ;;  %v3756_v2 = vor.u32 %v3755_v24, %v3752_v34 }
 0x1a3   : > { %v1799_v19 = vpop.f32.mrb[60].mxu0  ;;  %4732 = vmatprep.mubr.bf16.mxu1 %v3965_v12  ;;  %v3967_v60 = vsel %vm985_vm1, %v3964_v49, %v8574_v11 }
 0x1a4   : > { %v7811_v50 = vadd.f32 %v8569_v57, %v1799_v19  ;;  %v1801_v46 = vpop.f32.mrb[61].mxu0 }
 0x1a5   : > { %v1802_v15 = vpop.f32.mrb[62].mxu0  ;;  %v7822_v8 = vpop.f32.mrb[72].mxu1  ;;  %v4138_v46 = vsel %vm1108_vm0, %v4128_v61, %v4137_v30  ;;  %v3761_v61 = vrot.slane %v7646_v43, 3 }
 0x1a6   : > { %v7817_v36 = vadd.f32 %v8570_v26, %v1802_v15  ;;  %v1804_v33 = vpop.f32.mrb[63].mxu0  ;;  %v3112_v17 = vpop.f32.mrb[73].mxu1  ;;  %v4151_v15 = vrot.slane %v7545_v62, 4  ;;  %v4147_v26 = vsel %vm1108_vm0, %v4137_v30, %v4146_v23 }
 0x1a7   : > { %v7824_v28 = vpop.f32.mrb[74].mxu1  ;;  %v4160_v33 = vrot.slane %v7550_v20, 4  ;;  %v8579_v17 = vld [vmem:[#allocation50_spill] sm:$0xff] }
 0x1a8   : > { %6142 = vmatmul.mubr.bf16.gmra.mrb[168].mxu0 %v4120_v3  ;;  %v3115_v32 = vpop.f32.mrb[75].mxu1  ;;  %v4154_v3 = vrot.slane %v7511_v54, 5  ;;  %v3764_v62 = vrot.slane %v8579_v17, 4  ;;  %v3757_v54 = vsel %vm662_vm2, %v3747_v35, %v3756_v2  ;;  %v4169_v35 = vrot.slane %v7580_v27, 4 }
 0x1a9   : > { %6145 = vmatprep.mubr.bf16.mxu0 %v4129_v58  ;;  %v4163_v58 = vrot.slane %v7539_v6, 5  ;;  %v8580_v6 = vld [vmem:[#allocation9_spill] sm:$0xff] }
 0x1aa   : > { %4733 = vmatmul.mubr.bf16.gmra.mrb[180].mxu1 %v3748_v16  ;;  %v4155_v34 = vor.u32 %v4154_v3, %v4151_v15  ;;  %v3765_v20 = vor.u32 %v3764_v62, %v3761_v61 }
 0x1ab   : > { %v1807_v44 = vpop.f32.mrb[64].mxu0  ;;  %4740 = vmatprep.mubr.bf16.mxu1 %v3967_v60  ;;  %v4164_v30 = vor.u32 %v4163_v58, %v4160_v33  ;;  %v8581_v60 = vld [vmem:[#allocation23_spill] sm:$0xff] }
 0x1ac   : > { %v7833_v12 = vadd.f32 %v8575_v22, %v1807_v44  ;;  %v1809_v19 = vpop.f32.mrb[65].mxu0  ;;  %v4156_v22 = vsel %vm1108_vm0, %v4146_v23, %v4155_v34  ;;  %v8584_v23 = vld [vmem:[#allocation54_spill] sm:$0xff] }
 0x1ad   : > { %v1810_v57 = vpop.f32.mrb[66].mxu0  ;;  %v7844_v41 = vpop.f32.mrb[76].mxu1  ;;  %v3970_v19 = vrot.slane %v7630_v9, 4  ;;  %v3770_v9 = vrot.slane %v7653_v10, 3  ;;  %v3773_v27 = vrot.slane %v8584_v23, 4 }
 0x1ae   : > { %8576 = vst [vmem:[#allocation48_spill] sm:$0xff] %v7833_v12  ;;  %v7839_v51 = vadd.f32 %v8577_v56, %v1810_v57  ;;  %v1812_v49 = vpop.f32.mrb[67].mxu0  ;;  %v3120_v53 = vpop.f32.mrb[77].mxu1  ;;  %v4172_v57 = vrot.slane %v7553_v38, 5  ;;  %v4165_v56 = vsel %vm1108_vm0, %v4155_v34, %v4164_v30  ;;  %v3766_v38 = vsel %vm662_vm2, %v3756_v2, %v3765_v20 }
 0x1af   : > { %v7848_v16 = vpop.f32.mrb[78].mxu1  ;;  %v4178_v49 = vrot.slane %v7585_v18, 4  ;;  %v3972_v2 = vrot.slane %v7635_v48, 4  ;;  %v3779_v48 = vrot.slane %v7683_v59, 3 }
 0x1b0   : > { %8578 = vst [vmem:[#allocation42_spill] sm:$0xff] %v7839_v51  ;;  %6146 = vmatmul.mubr.bf16.gmra.mrb[172].mxu0 %v4138_v46  ;;  %v3123_v24 = vpop.f32.mrb[79].mxu1  ;;  %v8582_v46 = vld [vmem:[#allocation11_spill] sm:$0xff]  ;;  %v4173_v61 = vor.u32 %v4172_v57, %v4169_v35  ;;  %v4187_v35 = vrot.slane %v8567_v25, 4  ;;  %v4190_v57 = vrot.slane %v8568_v7, 5 }
 0x1b1   : > { %6149 = vmatprep.mubr.bf16.mxu0 %v4147_v26  ;;  %v4181_v26 = vrot.slane %v7574_v21, 5 }
 0x1b2   : > { %4741 = vmatmul.mubr.bf16.gmra.mrb[184].mxu1 %v3757_v54  ;;  %v8585_v54 = vld [vmem:[#allocation22_spill] sm:$0xff] }
 0x1b3   : > { %v1815_v32 = vpop.f32.mrb[68].mxu0  ;;  %4748 = vmatprep.mubr.bf16.mxu1 %v8581_v60  ;;  %v8586_v34 = vrot.slane %v8585_v54, 4  ;;  %v4182_v21 = vor.u32 %v4181_v26, %v4178_v49  ;;  %v4196_v26 = vrot.slane %v8571_v47, 4 }
 0x1b4   : > { %v7852_v31 = vadd.f32 %v8580_v6, %v1815_v32  ;;  %v1817_v11 = vpop.f32.mrb[69].mxu0  ;;  %v3774_v32 = vor.u32 %v3773_v27, %v3770_v9  ;;  %v8587_v6 = vld [vmem:[#allocation16_spill] sm:$0xff] }
 0x1b5   : > { %v1818_v44 = vpop.f32.mrb[70].mxu0  ;;  %v7865_v33 = vpop.f32.mrb[80].mxu1  ;;  %v3971_v18 = vsel %vm985_vm1, %v8586_v34, %v3970_v19  ;;  %v4183_v49 = vsel %vm1108_vm0, %v4173_v61, %v4182_v21 }
 0x1b6   : > { %v7860_v15 = vadd.f32 %v8582_v46, %v1818_v44  ;;  %v1820_v3 = vpop.f32.mrb[71].mxu0  ;;  %v3128_v58 = vpop.f32.mrb[81].mxu1  ;;  %v8589_v46 = vld [vmem:[#allocation18_spill] sm:$0xff]  ;;  %v3775_v7 = vsel %vm662_vm2, %v3765_v20, %v3774_v32  ;;  %v4205_v20 = vrot.slane %v7646_v43, 4 }
 0x1b7   : > { %v7869_v53 = vpop.f32.mrb[82].mxu1  ;;  %v4199_v58 = vrot.slane %v8572_v13, 5 }
 0x1b8   : > { %8583 = vst [vmem:[#allocation5_spill] sm:$0xff] %v7860_v15  ;;  %6150 = vmatmul.mubr.bf16.gmra.mrb[176].mxu0 %v4156_v22  ;;  %v3131_v62 = vpop.f32.mrb[83].mxu1  ;;  %v4174_v22 = vsel %vm1108_vm0, %v4164_v30, %v4173_v61  ;;  %v8591_v30 = vld [vmem:[#allocation56_spill] sm:$0xff]  ;;  %v3973_v61 = vsel %vm985_vm1, %v3970_v19, %v3972_v2 }
 0x1b9   : > { %6153 = vmatprep.mubr.bf16.mxu0 %v4165_v56  ;;  %v3782_v25 = vrot.slane %v8591_v30, 4  ;;  %v4191_v62 = vor.u32 %v4190_v57, %v4187_v35  ;;  %v4200_v47 = vor.u32 %v4199_v58, %v4196_v26  ;;  %v4208_v35 = vrot.slane %v8579_v17, 5  ;;  %v8594_v57 = vld [vmem:[#allocation17_spill] sm:$0xff] }
 0x1ba   : > { %4749 = vmatmul.mubr.bf16.gmra.mrb[188].mxu1 %v3766_v38  ;;  %v4217_v26 = vrot.slane %v8584_v23, 5 }
 0x1bb   : > { %v1823_v24 = vpop.f32.mrb[72].mxu0  ;;  %4756 = vmatprep.mubr.bf16.mxu1 %v3971_v18  ;;  %v3783_v13 = vor.u32 %v3782_v25, %v3779_v48  ;;  %v8592_v18 = vld [vmem:[#allocation15_spill] sm:$0xff]  ;;  %v8597_v48 = vld [vmem:[#allocation61_spill] sm:$0xff] }
 0x1bc   : > { %v7876_v11 = vadd.f32 %v8587_v6, %v1823_v24  ;;  %v1825_v60 = vpop.f32.mrb[73].mxu0  ;;  %v3791_v43 = vrot.slane %v8597_v48, 4 }
 0x1bd   : > { %v1826_v44 = vpop.f32.mrb[74].mxu0  ;;  %v7888_v9 = vpop.f32.mrb[84].mxu1  ;;  %v3784_v17 = vsel %vm662_vm2, %v3774_v32, %v3783_v13  ;;  %v4223_v32 = vrot.slane %v7683_v59, 4 }
 0x1be   : > { %8588 = vst [vmem:[#allocation6_spill] sm:$0xff] %v7876_v11  ;;  %v7883_v3 = vadd.f32 %v8589_v46, %v1826_v44  ;;  %v1828_v56 = vpop.f32.mrb[75].mxu0  ;;  %v3136_v27 = vpop.f32.mrb[85].mxu1  ;;  %v4192_v44 = vsel %vm1108_vm0, %v4182_v21, %v4191_v62  ;;  %v8596_v21 = vld [vmem:[#allocation63_spill] sm:$0xff] }
 0x1bf   : > { %v7892_v38 = vpop.f32.mrb[86].mxu1  ;;  %v4201_v56 = vsel %vm1108_vm0, %v4191_v62, %v4200_v47 }
 0x1c0   : > { %8590 = vst [vmem:[#allocation49_spill] sm:$0xff] %v7883_v3  ;;  %6154 = vmatmul.mubr.bf16.gmra.mrb[180].mxu0 %v4174_v22  ;;  %v3139_v54 = vpop.f32.mrb[87].mxu1  ;;  %v3974_v22 = vrot.slane %v7667_v0, 4  ;;  %v3788_v0 = vrot.slane %v8596_v21, 3 }
 0x1c1   : > { %6157 = vmatprep.mubr.bf16.mxu0 %v4183_v49  ;;  %v4214_v49 = vrot.slane %v7653_v10, 4 }
 0x1c2   : > { %4757 = vmatmul.mubr.bf16.gmra.mrb[192].mxu1 %v3775_v7  ;;  %v4209_v7 = vor.u32 %v4208_v35, %v4205_v20  ;;  %v3975_v62 = vsel %vm985_vm1, %v3972_v2, %v3974_v22  ;;  %v3792_v23 = vor.u32 %v3791_v43, %v3788_v0  ;;  %v4226_v20 = vrot.slane %v8591_v30, 5  ;;  %v8601_v35 = vld [vmem:[#allocation27_spill] sm:$0xff] }
 0x1c3   : > { %v1831_v34 = vpop.f32.mrb[76].mxu0  ;;  %4764 = vmatprep.mubr.bf16.mxu1 %v3973_v61  ;;  %v4218_v10 = vor.u32 %v4217_v26, %v4214_v49  ;;  %v4232_v26 = vrot.slane %v8596_v21, 4 }
 0x1c4   : > { %v7897_v24 = vadd.f32 %v8592_v18, %v1831_v34  ;;  %v1833_v6 = vpop.f32.mrb[77].mxu0  ;;  %v8598_v34 = vld [vmem:[#allocation25_spill] sm:$0xff]  ;;  %v3793_v30 = vsel %vm662_vm2, %v3783_v13, %v3792_v23 }
 0x1c5   : > { %v1834_v60 = vpop.f32.mrb[78].mxu0  ;;  %v7909_v58 = vpop.f32.mrb[88].mxu1  ;;  %v4219_v49 = vsel %vm1108_vm0, %v4209_v7, %v4218_v10 }
 0x1c6   : > { %8593 = vst [vmem:[#allocation46_spill] sm:$0xff] %v7897_v24  ;;  %v7904_v19 = vadd.f32 %v8594_v57, %v1834_v60  ;;  %v1836_v46 = vpop.f32.mrb[79].mxu0  ;;  %v3144_v27 = vpop.f32.mrb[89].mxu1  ;;  %v8600_v57 = vld [vmem:[#allocation59_spill] sm:$0xff]  ;;  %v8614_v24 = vld [vmem:[#allocation32_spill] sm:$0xff] }
 0x1c7   : > { %v7913_v25 = vpop.f32.mrb[90].mxu1  ;;  %v3976_v46 = vrot.slane %v8600_v57, 4  ;;  %v4235_v27 = vrot.slane %v8597_v48, 5 }
 0x1c8   : > { %8595 = vst [vmem:[#allocation21_spill] sm:$0xff] %v7904_v19  ;;  %6158 = vmatmul.mubr.bf16.gmra.mrb[184].mxu0 %v4192_v44  ;;  %v3147_v54 = vpop.f32.mrb[91].mxu1  ;;  %v4210_v44 = vsel %vm1108_vm0, %v4200_v47, %v4209_v7  ;;  %v8603_v47 = vld [vmem:[#allocation68_spill] sm:$0xff] }
 0x1c9   : > { %6161 = vmatprep.mubr.bf16.mxu0 %v4201_v56  ;;  %v8604_v54 = vld [vmem:[#allocation64_spill] sm:$0xff]  ;;  %v3977_v21 = vsel %vm985_vm1, %v3974_v22, %v3976_v46  ;;  %v4236_v48 = vor.u32 %v4235_v27, %v4232_v26  ;;  %v4241_v22 = vrot.slane %v8603_v47, 4  ;;  %v8607_v26 = vld [vmem:[#allocation26_spill] sm:$0xff] }
 0x1ca   : > { %4765 = vmatmul.mubr.bf16.gmra.mrb[196].mxu1 %v3784_v17  ;;  %v3797_v17 = vrot.slane %v8603_v47, 3  ;;  %v3800_v59 = vrot.slane %v8604_v54, 4 }
 0x1cb   : > { %v1839_v61 = vpop.f32.mrb[80].mxu0  ;;  %4772 = vmatprep.mubr.bf16.mxu1 %v3975_v62 }
 0x1cc   : > { %v7918_v18 = vadd.f32 %v8598_v34, %v1839_v61  ;;  %v1841_v6 = vpop.f32.mrb[81].mxu0  ;;  %v4227_v61 = vor.u32 %v4226_v20, %v4223_v32  ;;  %v7937_v34 = vld [vmem:[#allocation2 + $0xc0] sm:$0xff] }
 0x1cd   : > { %v1842_v60 = vpop.f32.mrb[82].mxu0  ;;  %v7930_v0 = vpop.f32.mrb[92].mxu1  ;;  %v3978_v20 = vrot.slane %v7937_v34, 4 }
 0x1ce   : > { %8599 = vst [vmem:[#allocation10_spill] sm:$0xff] %v7918_v18  ;;  %v7925_v2 = vadd.f32 %v8601_v35, %v1842_v60  ;;  %v1844_v56 = vpop.f32.mrb[83].mxu0  ;;  %v3152_v43 = vpop.f32.mrb[93].mxu1  ;;  %v3801_v60 = vor.u32 %v3800_v59, %v3797_v17  ;;  %v4228_v32 = vsel %vm1108_vm0, %v4218_v10, %v4227_v61  ;;  %v4237_v59 = vsel %vm1108_vm0, %v4227_v61, %v4236_v48  ;;  %v7966_v18 = vld [vmem:[#allocation2] sm:$0xff] }
 0x1cf   : > { %v7934_v62 = vpop.f32.mrb[94].mxu1  ;;  %v3804_v56 = vshrl.u32 %v7937_v34, 16  ;;  %v3807_v43 = vshll.u32 %v7937_v34, 16 }
 0x1d0   : > { %8602 = vst [vmem:[#allocation12_spill] sm:$0xff] %v7925_v2  ;;  %6162 = vmatmul.mubr.bf16.gmra.mrb[188].mxu0 %v4210_v44  ;;  %v3155_v7 = vpop.f32.mrb[95].mxu1  ;;  %v8605_v44 = vld [vmem:[#allocation24_spill] sm:$0xff]  ;;  %v3802_v47 = vsel %vm662_vm2, %v3792_v23, %v3801_v60  ;;  %v3822_v23 = vshrl.u32 %v7966_v18, 16 }
 0x1d1   : > { %6165 = vmatprep.mubr.bf16.mxu0 %v4219_v49  ;;  %v4244_v49 = vrot.slane %v8604_v54, 5  ;;  %v4253_v7 = vrot.slane %v3807_v43, 5  ;;  %v3809_v10 = vrot.slane %v3807_v43, 4  ;;  %v8610_v43 = vld [vmem:[#allocation33_spill] sm:$0xff] }
 0x1d2   : > { %4773 = vmatmul.mubr.bf16.gmra.mrb[200].mxu1 %v3793_v30  ;;  %v4250_v30 = vrot.slane %v3804_v56, 4 }
 0x1d3   : > { %v1847_v6 = vpop.f32.mrb[84].mxu0  ;;  %4780 = vmatprep.mubr.bf16.mxu1 %v3977_v21  ;;  %v4245_v54 = vor.u32 %v4244_v49, %v4241_v22  ;;  %v3825_v22 = vshll.u32 %v7966_v18, 16 }
 0x1d4   : > { %v7941_v57 = vadd.f32 %v8605_v44, %v1847_v6  ;;  %v1849_v35 = vpop.f32.mrb[85].mxu0  ;;  %v3806_v44 = vrot.slane %v3804_v56, 3  ;;  %v4254_v61 = vor.u32 %v4253_v7, %v4250_v30 }
 0x1d5   : > { %v1850_v13 = vpop.f32.mrb[86].mxu0  ;;  %v7953_v6 = vpop.f32.mrb[96].mxu1  ;;  %v7955_v35 = vld [vmem:[#allocation2 + $0xc8] sm:$0xff]  ;;  %v4246_v49 = vsel %vm1108_vm0, %v4236_v48, %v4245_v54 }
 0x1d6   : > { %8606 = vst [vmem:[#allocation50_spill] sm:$0xff] %v7941_v57  ;;  %v7950_v27 = vadd.f32 %v8607_v26, %v1850_v13  ;;  %v1852_v17 = vpop.f32.mrb[87].mxu0  ;;  %v3160_v21 = vpop.f32.mrb[97].mxu1  ;;  %v3979_v26 = vsel %vm985_vm1, %v3976_v46, %v3978_v20  ;;  %v3813_v2 = vshrl.u32 %v7955_v35, 16  ;;  %v3810_v56 = vor.u32 %v3809_v10, %v3806_v44 }
 0x1d7   : > { %v7957_v34 = vpop.f32.mrb[98].mxu1  ;;  %v3816_v21 = vshll.u32 %v7955_v35, 16 }
 0x1d8   : > { %8608 = vst [vmem:[#allocation9_spill] sm:$0xff] %v7950_v27  ;;  %6166 = vmatmul.mubr.bf16.gmra.mrb[192].mxu0 %v4228_v32  ;;  %8609 = vst [vmem:[#allocation23_spill] sm:$0xff] %v7957_v34  ;;  %v3163_v13 = vpop.f32.mrb[99].mxu1  ;;  %v4259_v30 = vrot.slane %v3813_v2, 4  ;;  %v3815_v48 = vrot.slane %v3813_v2, 3 }
 0x1d9   : > { %6169 = vmatprep.mubr.bf16.mxu0 %v4237_v59  ;;  %v3980_v59 = vrot.slane %v7955_v35, 4  ;;  %v4262_v7 = vrot.slane %v3816_v21, 5  ;;  %v4268_v13 = vrot.slane %v3822_v23, 4  ;;  %v3818_v35 = vrot.slane %v3816_v21, 4 }
 0x1da   : > { %4781 = vmatmul.mubr.bf16.gmra.mrb[204].mxu1 %v3802_v47  ;;  %v8612_v47 = vld [vmem:[#allocation35_spill] sm:$0xff] }
 0x1db   : > { %v1855_v17 = vpop.f32.mrb[88].mxu0  ;;  %4788 = vmatprep.mubr.bf16.mxu1 %v3979_v26  ;;  %v3811_v26 = vsel %vm662_vm2, %v3801_v60, %v3810_v56  ;;  %v4263_v19 = vor.u32 %v4262_v7, %v4259_v30  ;;  %v3819_v60 = vor.u32 %v3818_v35, %v3815_v48  ;;  %v8616_v30 = vld [vmem:[#allocation34_spill] sm:$0xff] }
 0x1dc   : > { %v7964_v32 = vadd.f32 %v8610_v43, %v1855_v17  ;;  %v1857_v27 = vpop.f32.mrb[89].mxu0  ;;  %v4271_v17 = vrot.slane %v3825_v22, 5  ;;  %v4058_v43 = vld [vmem:[#allocation2 + $0xd8] sm:$0x1f] }
 0x1dd   : > { %v1858_v46 = vpop.f32.mrb[90].mxu0  ;;  %v4255_v27 = vsel %vm1108_vm0, %v4245_v54, %v4254_v61  ;;  %v3981_v54 = vsel %vm985_vm1, %v3978_v20, %v3980_v59  ;;  %v3982_v20 = vrot.slane %v7966_v18, 4  ;;  %v3911_v18 = vld [vmem:[#allocation2 + $0xd8] sm:$0xf] }
 0x1de   : > { %8611 = vst [vmem:[#allocation11_spill] sm:$0xff] %v7964_v32  ;;  %v7973_v44 = vadd.f32 %v8612_v47, %v1858_v46  ;;  %v1860_v10 = vpop.f32.mrb[91].mxu0  ;;  %v7976_v32 = vpop.f32.mrb[100].mxu1  ;;  %v4275_v46 = vshrl.u32 %v4058_v43, 16  ;;  %v4278_v47 = vshll.u32 %v4058_v43, 16 }
 0x1df   : > { %v3168_v57 = vpop.f32.mrb[101].mxu1 }
 0x1e0   : > { %8613 = vst [vmem:[#allocation54_spill] sm:$0xff] %v7973_v44  ;;  %6170 = vmatmul.mubr.bf16.gmra.mrb[196].mxu0 %v4246_v49  ;;  %v7979_v3 = vpop.f32.mrb[102].mxu1  ;;  %v4272_v44 = vor.u32 %v4271_v17, %v4268_v13  ;;  %v4264_v49 = vsel %vm1108_vm0, %v4254_v61, %v4263_v19  ;;  %v4277_v21 = vrot.slane %v4275_v46, 4  ;;  %v3820_v61 = vsel %vm662_vm2, %v3810_v56, %v3819_v60 }
 0x1e1   : > { %6173 = vmatprep.mubr.bf16.mxu0 %v4255_v27  ;;  %v3171_v10 = vpop.f32.mrb[103].mxu1  ;;  %v4280_v27 = vrot.slane %v4278_v47, 5  ;;  %v3983_v47 = vsel %vm985_vm1, %v3980_v59, %v3982_v20 }
 0x1e2   : > { %4789 = vmatmul.mubr.bf16.gmra.mrb[208].mxu1 %v3811_v26  ;;  %v4273_v13 = vsel %vm1108_vm0, %v4263_v19, %v4272_v44  ;;  %v3827_v26 = vrot.slane %v3825_v22, 4  ;;  %v3614_v10 = vld [vmem:[#allocation2 + $0xd8] sm:$0xf] }
 0x1e3   : > { %v1863_v11 = vpop.f32.mrb[92].mxu0  ;;  %4796 = vmatprep.mubr.bf16.mxu1 %v3981_v54  ;;  %v4281_v35 = vor.u32 %v4280_v27, %v4277_v21  ;;  %v3831_v21 = vshrl.u32 %v3614_v10, 16  ;;  %v3834_v27 = vshll.u32 %v3614_v10, 16 }
 0x1e4   : > { %v7983_v51 = vadd.f32 %v8614_v24, %v1863_v11  ;;  %v1865_v57 = vpop.f32.mrb[93].mxu0  ;;  %v3824_v24 = vrot.slane %v3822_v23, 3  ;;  %v8621_v23 = vld [vmem:[#allocation7_spill] sm:$0xff] }
 0x1e5   : > { %v1866_v2 = vpop.f32.mrb[94].mxu0  ;;  %v7991_v17 = vpop.f32.mrb[104].mxu1  ;;  %v8620_v57 = vld [vmem:[#allocation13_spill] sm:$0xff]  ;;  %v4282_v56 = vsel %vm1108_vm0, %v4272_v44, %v4281_v35  ;;  %v3836_v44 = vrot.slane %v3834_v27, 4 }
 0x1e6   : > { %8615 = vst [vmem:[#allocation22_spill] sm:$0xff] %v7983_v51  ;;  %v7987_v7 = vadd.f32 %v8616_v30, %v1866_v2  ;;  %v1868_v43 = vpop.f32.mrb[95].mxu0  ;;  %8618 = vst [vmem:[#allocation18_spill] sm:$0xff] %v7991_v17  ;;  %v3176_v11 = vpop.f32.mrb[105].mxu1  ;;  %v3828_v19 = vor.u32 %v3827_v26, %v3824_v24  ;;  %v8624_v24 = vld [vmem:[#allocation8_spill] sm:$0xff] }
 0x1e7   : > { %v7993_v48 = vpop.f32.mrb[106].mxu1  ;;  %v8622_v43 = vld [vmem:[#allocation14_spill] sm:$0xff]  ;;  %v3984_v11 = vrot.slane %v3911_v18, 4 }
 0x1e8   : > { %8617 = vst [vmem:[#allocation16_spill] sm:$0xff] %v7987_v7  ;;  %6174 = vmatmul.mubr.bf16.gmra.mrb[200].mxu0 %v4264_v49  ;;  %8619 = vst [vmem:[#allocation56_spill] sm:$0xff] %v7993_v48  ;;  %v3179_v46 = vpop.f32.mrb[107].mxu1 }
 0x1e9   : > { %6177 = vmatprep.mubr.bf16.mxu0 %v4273_v13  ;;  %v3985_v10 = vsel %vm985_vm1, %v3982_v20, %v3984_v11 }
 0x1ea   : > { %4797 = vmatmul.mubr.bf16.gmra.mrb[212].mxu1 %v3820_v61 }
 0x1eb   : > { %v6007_v54 = vpop.f32.mrb[96].mxu0  ;;  %4804 = vmatprep.mubr.bf16.mxu1 %v3983_v47 }
 0x1ec   : > { %v7998_v2 = vadd.f32 %v6007_v54, %v8620_v57  ;;  %v1904_v49 = vpop.f32.mrb[97].mxu0  ;;  %v3829_v54 = vsel %vm662_vm2, %v3819_v60, %v3828_v19  ;;  %v3833_v57 = vrot.slane %v3831_v21, 3  ;;  %v8630_v60 = vld [vmem:[#allocation20_spill] sm:$0xff] }
 0x1ed   : > { %v8001_v22 = vadd.f32 %v1904_v49, %v8621_v23  ;;  %v6008_v30 = vpop.f32.mrb[98].mxu0  ;;  %v8007_v61 = vpop.f32.mrb[108].mxu1  ;;  %v8626_v23 = vld [vmem:[#allocation28_spill] sm:$0xff] }
 0x1ee   : > { %v8005_v59 = vadd.f32 %v6008_v30, %v8622_v43  ;;  %v1907_v13 = vpop.f32.mrb[99].mxu0  ;;  %8623 = vst [vmem:[#allocation15_spill] sm:$0xff] %v8007_v61  ;;  %v3184_v46 = vpop.f32.mrb[109].mxu1  ;;  %v3837_v43 = vor.u32 %v3836_v44, %v3833_v57 }
 0x1ef   : > { %v8010_v26 = vadd.f32 %v1907_v13, %v8624_v24  ;;  %v8012_v47 = vpop.f32.mrb[110].mxu1  ;;  %v8627_v13 = vld [vmem:[#allocation19_spill] sm:$0xff] }
 0x1f0   : > { %6178 = vmatmul.mubr.bf16.gmra.mrb[204].mxu0 %v4282_v56  ;;  %8625 = vst [vmem:[#allocation17_spill] sm:$0xff] %v8012_v47  ;;  %v3187_v35 = vpop.f32.mrb[111].mxu1  ;;  %v8628_v56 = vld [vmem:[#allocation29_spill] sm:$0xff]  ;;  %v3838_v20 = vsel %vm662_vm2, %v3828_v19, %v3837_v43 }
 0x1f2   : > { %4805 = vmatmul.mubr.bf16.gmra.mrb[216].mxu1 %v3829_v54 }
 0x1f3   : > { %v6011_v49 = vpop.f32.mrb[100].mxu0  ;;  %4812 = vmatprep.mubr.bf16.mxu1 %v3985_v10  ;;  %v8632_v10 = vld [vmem:[#allocation36_spill] sm:$0xff] }
 0x1f4   : > { %v1929_v18 = vadd.f32 %v6011_v49, %v8626_v23  ;;  %v1920_v30 = vpop.f32.mrb[101].mxu0  ;;  %v8633_v49 = vld [vmem:[#allocation30_spill] sm:$0xff] }
 0x1f5   : > { %v1921_v24 = vadd.f32 %v1920_v30, %v8627_v13  ;;  %v6012_v46 = vpop.f32.mrb[102].mxu0  ;;  %v8019_v48 = vpop.f32.mrb[112].mxu1  ;;  %v8634_v13 = vld [vmem:[#allocation37_spill] sm:$0xff] }
 0x1f6   : > { %v1932_v7 = vadd.f32 %v6012_v46, %v8628_v56  ;;  %v1923_v51 = vpop.f32.mrb[103].mxu0  ;;  %8629 = vst [vmem:[#allocation63_spill] sm:$0xff] %v8019_v48  ;;  %v3192_v27 = vpop.f32.mrb[113].mxu1 }
 0x1f7   : > { %v1924_v21 = vadd.f32 %v1923_v51, %v8630_v60  ;;  %v8022_v35 = vpop.f32.mrb[114].mxu1  ;;  %v8636_v51 = vld [vmem:[#allocation31_spill] sm:$0xff] }
 0x1f8   : > { %8631 = vst [vmem:[#allocation61_spill] sm:$0xff] %v8022_v35  ;;  %v3195_v11 = vpop.f32.mrb[115].mxu1 }
 0x1fa   : > { %4813 = vmatmul.mubr.bf16.gmra.mrb[220].mxu1 %v3838_v20  ;;  %v8638_v20 = vld [vmem:[#allocation45_spill] sm:$0xff] }
 0x1fb   : > { %v6015_v54 = vpop.f32.mrb[104].mxu0 }
 0x1fc   : > { %v1945_v57 = vadd.f32 %v6015_v54, %v8632_v10  ;;  %v1936_v44 = vpop.f32.mrb[105].mxu0  ;;  %v8639_v10 = vld [vmem:[#allocation40_spill] sm:$0xff] }
 0x1fd   : > { %v1937_v23 = vadd.f32 %v1936_v44, %v8633_v49  ;;  %v6016_v30 = vpop.f32.mrb[106].mxu0  ;;  %v8030_v48 = vpop.f32.mrb[116].mxu1 }
 0x1fe   : > { %v8028_v46 = vadd.f32 %v6016_v30, %v8634_v13  ;;  %v1939_v56 = vpop.f32.mrb[107].mxu0  ;;  %8635 = vst [vmem:[#allocation25_spill] sm:$0xff] %v8030_v48  ;;  %v3200_v27 = vpop.f32.mrb[117].mxu1  ;;  %v8640_v30 = vld [vmem:[#allocation47_spill] sm:$0xff] }
 0x1ff   : > { %v1940_v60 = vadd.f32 %v1939_v56, %v8636_v51  ;;  %v8033_v35 = vpop.f32.mrb[118].mxu1  ;;  %v8642_v56 = vld [vmem:[#allocation41_spill] sm:$0xff] }
 0x200   : > { %8637 = vst [vmem:[#allocation59_spill] sm:$0xff] %v8033_v35  ;;  %v3203_v19 = vpop.f32.mrb[119].mxu1 }
 0x203   : > { %v6019_v43 = vpop.f32.mrb[108].mxu0 }
 0x204   : > { %v8036_v11 = vadd.f32 %v6019_v43, %v8638_v20  ;;  %v1952_v54 = vpop.f32.mrb[109].mxu0  ;;  %v8644_v20 = vld [vmem:[#allocation43_spill] sm:$0xff] }
 0x205   : > { %v8039_v44 = vadd.f32 %v1952_v54, %v8639_v10  ;;  %v6020_v49 = vpop.f32.mrb[110].mxu0  ;;  %v8044_v48 = vpop.f32.mrb[120].mxu1  ;;  %v8645_v54 = vld [vmem:[#allocation38_spill] sm:$0xff] }
 0x206   : > { %v8042_v13 = vadd.f32 %v6020_v49, %v8640_v30  ;;  %v1955_v47 = vpop.f32.mrb[111].mxu0  ;;  %8641 = vst [vmem:[#allocation27_spill] sm:$0xff] %v8044_v48  ;;  %v3208_v27 = vpop.f32.mrb[121].mxu1  ;;  %v8647_v30 = vld [vmem:[#allocation44_spill] sm:$0xff] }
 0x207   : > { %v8047_v51 = vadd.f32 %v1955_v47, %v8642_v56  ;;  %v8049_v19 = vpop.f32.mrb[122].mxu1  ;;  %v8649_v56 = vld [vmem:[#allocation39_spill] sm:$0xff] }
 0x208   : > { %8643 = vst [vmem:[#allocation68_spill] sm:$0xff] %v8049_v19  ;;  %v3211_v35 = vpop.f32.mrb[123].mxu1 }
 0x20b   : > { %v6071_v43 = vpop.f32.mrb[112].mxu0 }
 0x20c   : > { %v3264_v17 = vadd.f32 %v6071_v43, %v8644_v20  ;;  %v3255_v61 = vpop.f32.mrb[113].mxu0 }
 0x20d   : > { %v3256_v10 = vadd.f32 %v3255_v61, %v8645_v54  ;;  %v6072_v15 = vpop.f32.mrb[114].mxu0  ;;  %v8057_v12 = vpop.f32.mrb[124].mxu1 }
 0x20e   : > { %v8054_v49 = vadd.f32 %v3264_v17, %v7998_v2  ;;  %v3267_v34 = vadd.f32 %v6072_v15, %v8647_v30  ;;  %v3258_v48 = vpop.f32.mrb[115].mxu0  ;;  %v3216_v27 = vpop.f32.mrb[125].mxu1  ;;  %v8652_v15 = vld [vmem:[#allocation57_spill] sm:$0xff] }
 0x20f   : > { %v8060_v47 = vadd.f32 %v3256_v10, %v8001_v22  ;;  %v3259_v35 = vadd.f32 %v3258_v48, %v8649_v56  ;;  %v8066_v20 = vpop.f32.mrb[126].mxu1  ;;  %v8655_v48 = vld [vmem:[#allocation58_spill] sm:$0xff] }
 0x210   : > { %8646 = vst [vmem:[#allocation64_spill] sm:$0xff] %v8054_v49  ;;  %v8064_v43 = vadd.f32 %v3267_v34, %v8005_v59  ;;  %v3219_v17 = vpop.f32.mrb[127].mxu1  ;;  %v8653_v49 = vld [vmem:[#allocation51_spill] sm:$0xff] }
 0x211   : > { %8648 = vst [vmem:[#allocation24_spill] sm:$0xff] %v8060_v47  ;;  %v8069_v61 = vadd.f32 %v3259_v35, %v8010_v26 }
 0x212   : > { %8650 = vst [vmem:[#allocation26_spill] sm:$0xff] %v8064_v43  ;;  %v8656_v43 = vld [vmem:[#allocation52_spill] sm:$0xff] }
 0x213   : > { %8651 = vst [vmem:[#allocation33_spill] sm:$0xff] %v8069_v61  ;;  %v6075_v2 = vpop.f32.mrb[116].mxu0 }
 0x214   : > { %v3280_v54 = vadd.f32 %v6075_v2, %v8652_v15  ;;  %v3271_v30 = vpop.f32.mrb[117].mxu0 }
 0x215   : > { %v3272_v19 = vadd.f32 %v3271_v30, %v8653_v49  ;;  %v6076_v22 = vpop.f32.mrb[118].mxu0  ;;  %v8076_v34 = vpop.f32.mrb[128].mxu1 }
 0x216   : > { %v8073_v10 = vadd.f32 %v3280_v54, %v1929_v18  ;;  %v3283_v56 = vadd.f32 %v6076_v22, %v8655_v48  ;;  %v3274_v27 = vpop.f32.mrb[119].mxu0  ;;  %v4632_v35 = vpop.f32.mrb[129].mxu1  ;;  %v8657_v18 = vld [vmem:[#allocation70_spill] sm:$0xff]  ;;  %v8658_v22 = vld [vmem:[#allocation65_spill] sm:$0xff] }
 0x217   : > { %v8078_v59 = vadd.f32 %v3272_v19, %v1921_v24  ;;  %v3275_v26 = vadd.f32 %v3274_v27, %v8656_v43  ;;  %v8083_v61 = vpop.f32.mrb[130].mxu1  ;;  %v8659_v24 = vld [vmem:[#allocation71_spill] sm:$0xff] }
 0x218   : > { %8654 = vst [vmem:[#allocation35_spill] sm:$0xff] %v8073_v10  ;;  %v8081_v17 = vadd.f32 %v3283_v56, %v1932_v7  ;;  %v4635_v49 = vpop.f32.mrb[131].mxu1  ;;  %v8660_v56 = vld [vmem:[#allocation66_spill] sm:$0xff] }
 0x219   : > { %v8085_v2 = vadd.f32 %v3275_v26, %v1924_v21 }
 0x21b   : > { %v6079_v15 = vpop.f32.mrb[120].mxu0 }
 0x21c   : > { %v3296_v54 = vadd.f32 %v6079_v15, %v8657_v18  ;;  %v3287_v30 = vpop.f32.mrb[121].mxu0 }
 0x21d   : > { %v3288_v48 = vadd.f32 %v3287_v30, %v8658_v22  ;;  %v6080_v10 = vpop.f32.mrb[122].mxu0  ;;  %v8092_v27 = vpop.f32.mrb[132].mxu1  ;;  %v8661_v30 = vld [vmem:[#allocation74_spill] sm:$0xff] }
 0x21e   : > { %v8089_v47 = vadd.f32 %v3296_v54, %v1945_v57  ;;  %v3299_v19 = vadd.f32 %v6080_v10, %v8659_v24  ;;  %v3290_v43 = vpop.f32.mrb[123].mxu0  ;;  %v4640_v26 = vpop.f32.mrb[133].mxu1 }
 0x21f   : > { %v8094_v7 = vadd.f32 %v3288_v48, %v1937_v23  ;;  %v3291_v21 = vadd.f32 %v3290_v43, %v8660_v56  ;;  %v8100_v49 = vpop.f32.mrb[134].mxu1 }
 0x220   : > { %v8098_v35 = vadd.f32 %v3299_v19, %v8028_v46  ;;  %v4643_v18 = vpop.f32.mrb[135].mxu1 }
 0x221   : > { %v8102_v15 = vadd.f32 %v3291_v21, %v1940_v60 }
 0x223   : > { %v6083_v57 = vpop.f32.mrb[124].mxu0 }
 0x224   : > { %v3312_v54 = vadd.f32 %v6083_v57, %v7762_v42  ;;  %v3303_v10 = vpop.f32.mrb[125].mxu0 }
 0x225   : > { %v3304_v22 = vadd.f32 %v3303_v10, %v8661_v30  ;;  %v6084_v24 = vpop.f32.mrb[126].mxu0  ;;  %v8110_v46 = vpop.f32.mrb[136].mxu1  ;;  %v8662_v10 = vld [vmem:[#allocation60_spill] sm:$0xff] }
 0x226   : > { %v8107_v23 = vadd.f32 %v3312_v54, %v8036_v11  ;;  %v3315_v48 = vadd.f32 %v6084_v24, %v7766_v52  ;;  %v3306_v43 = vpop.f32.mrb[127].mxu0  ;;  %v4648_v56 = vpop.f32.mrb[137].mxu1  ;;  %v8663_v24 = vld [vmem:[#allocation53_spill] sm:$0xff] }
 0x227   : > { %v8113_v19 = vadd.f32 %v3304_v22, %v8039_v44  ;;  %v3307_v60 = vadd.f32 %v3306_v43, %v7749_v40  ;;  %v8119_v21 = vpop.f32.mrb[138].mxu1 }
 0x228   : > { %v8117_v42 = vadd.f32 %v3315_v48, %v8042_v13  ;;  %v4651_v11 = vpop.f32.mrb[139].mxu1 }
 0x229   : > { %v8122_v26 = vadd.f32 %v3307_v60, %v8047_v51  ;;  %v8664_v60 = vld [vmem:[#allocation62_spill] sm:$0xff] }
 0x22b   : > { %v6087_v18 = vpop.f32.mrb[128].mxu0 }
 0x22c   : > { %v3328_v52 = vadd.f32 %v6087_v18, %v7802_v63  ;;  %v3319_v57 = vpop.f32.mrb[129].mxu0 }
 0x22d   : > { %v3320_v54 = vadd.f32 %v3319_v57, %v7781_v39  ;;  %v6088_v44 = vpop.f32.mrb[130].mxu0  ;;  %v8130_v22 = vpop.f32.mrb[140].mxu1  ;;  %v8665_v39 = vld [vmem:[#allocation55_spill] sm:$0xff] }
 0x22e   : > { %v8127_v30 = vadd.f32 %v3328_v52, %v8662_v10  ;;  %v3331_v40 = vadd.f32 %v6088_v44, %v7804_v1  ;;  %v3322_v13 = vpop.f32.mrb[131].mxu0  ;;  %v4656_v43 = vpop.f32.mrb[141].mxu1  ;;  %v8666_v10 = vld [vmem:[#allocation72_spill] sm:$0xff] }
 0x22f   : > { %v8133_v48 = vadd.f32 %v3320_v54, %v8663_v24  ;;  %v3323_v51 = vadd.f32 %v3322_v13, %v7785_v14  ;;  %v8139_v56 = vpop.f32.mrb[142].mxu1  ;;  %v8668_v43 = vld [vmem:[#allocation67_spill] sm:$0xff] }
 0x230   : > { %v8137_v63 = vadd.f32 %v3331_v40, %v8664_v60  ;;  %v4659_v18 = vpop.f32.mrb[143].mxu1 }
 0x231   : > { %v8142_v11 = vadd.f32 %v3323_v51, %v8665_v39  ;;  %v8669_v18 = vld [vmem:[#allocation73_spill] sm:$0xff] }
 0x233   : > { %v6091_v52 = vpop.f32.mrb[132].mxu0 }
 0x234   : > { %v3344_v1 = vadd.f32 %v6091_v52, %v7844_v41  ;;  %v3335_v57 = vpop.f32.mrb[133].mxu0 }
 0x235   : > { %v3336_v44 = vadd.f32 %v3335_v57, %v7822_v8  ;;  %v6092_v54 = vpop.f32.mrb[134].mxu0  ;;  %v8150_v13 = vpop.f32.mrb[144].mxu1  ;;  %v8670_v8 = vld [vmem:[#allocation69_spill] sm:$0xff] }
 0x236   : > { %v8147_v24 = vadd.f32 %v3344_v1, %v8666_v10  ;;  %v3347_v14 = vadd.f32 %v6092_v54, %v7848_v16  ;;  %v3338_v40 = vpop.f32.mrb[135].mxu0  ;;  %v4664_v39 = vpop.f32.mrb[145].mxu1 }
 0x237   : > { %v8153_v60 = vadd.f32 %v3336_v44, %v8668_v43  ;;  %v3339_v51 = vadd.f32 %v3338_v40, %v7824_v28  ;;  %v8159_v52 = vpop.f32.mrb[146].mxu1 }
 0x238   : > { %8667 = vst [vmem:[#allocation32_spill] sm:$0xff] %v8147_v24  ;;  %v8157_v41 = vadd.f32 %v3347_v14, %v8669_v18  ;;  %v4667_v1 = vpop.f32.mrb[147].mxu1 }
 0x239   : > { %v8162_v57 = vadd.f32 %v3339_v51, %v8670_v8 }
 0x23b   : > { %v6095_v10 = vpop.f32.mrb[136].mxu0 }
 0x23c   : > { %v3360_v16 = vadd.f32 %v6095_v10, %v7888_v9  ;;  %v3351_v54 = vpop.f32.mrb[137].mxu0 }
 0x23d   : > { %v3352_v24 = vadd.f32 %v3351_v54, %v7865_v33  ;;  %v6096_v44 = vpop.f32.mrb[138].mxu0  ;;  %v8170_v40 = vpop.f32.mrb[148].mxu1 }
 0x23e   : > { %v8167_v43 = vadd.f32 %v3360_v16, %v7771_v55  ;;  %v3363_v28 = vadd.f32 %v6096_v44, %v7892_v38  ;;  %v3354_v14 = vpop.f32.mrb[139].mxu0  ;;  %v4672_v18 = vpop.f32.mrb[149].mxu1 }
 0x23f   : > { %v8173_v39 = vadd.f32 %v3352_v24, %v7754_v4  ;;  %v3355_v51 = vadd.f32 %v3354_v14, %v7869_v53  ;;  %v8179_v8 = vpop.f32.mrb[150].mxu1 }
 0x240   : > { %v8177_v9 = vadd.f32 %v3363_v28, %v7776_v37  ;;  %v4675_v55 = vpop.f32.mrb[151].mxu1 }
 0x241   : > { %v8182_v33 = vadd.f32 %v3355_v51, %v7759_v29 }
 0x243   : > { %v6099_v1 = vpop.f32.mrb[140].mxu0 }
 0x244   : > { %v3376_v38 = vadd.f32 %v6099_v1, %v7930_v0  ;;  %v3367_v10 = vpop.f32.mrb[141].mxu0 }
 0x245   : > { %v3368_v16 = vadd.f32 %v3367_v10, %v7909_v58  ;;  %v6100_v4 = vpop.f32.mrb[142].mxu0  ;;  %v8190_v54 = vpop.f32.mrb[152].mxu1  ;;  %v8674_v10 = vld [vmem:[#allocation48_spill] sm:$0xff] }
 0x246   : > { %v8187_v24 = vadd.f32 %v3376_v38, %v7811_v50  ;;  %v3379_v53 = vadd.f32 %v6100_v4, %v7934_v62  ;;  %v3370_v37 = vpop.f32.mrb[143].mxu0  ;;  %v4680_v28 = vpop.f32.mrb[153].mxu1 }
 0x247   : > { %v8193_v44 = vadd.f32 %v3368_v16, %v7790_v45  ;;  %v3371_v29 = vadd.f32 %v3370_v37, %v7913_v25  ;;  %v8199_v14 = vpop.f32.mrb[154].mxu1  ;;  %v8677_v37 = vld [vmem:[#allocation5_spill] sm:$0xff] }
 0x248   : > { %v8197_v0 = vadd.f32 %v3379_v53, %v7817_v36  ;;  %v4683_v50 = vpop.f32.mrb[155].mxu1 }
 0x249   : > { %v8202_v58 = vadd.f32 %v3371_v29, %v7797_v5  ;;  %v8676_v5 = vld [vmem:[#allocation23_spill] sm:$0xff] }
 0x24a   : > { %8671 = vst [vmem:[#allocation34_spill] sm:$0xff] %v8197_v0 }
 0x24b   : > { %8672 = vst [vmem:[#allocation13_spill] sm:$0xff] %v8202_v58  ;;  %v6103_v51 = vpop.f32.mrb[144].mxu0 }
 0x24c   : > { %v3392_v62 = vadd.f32 %v6103_v51, %v7976_v32  ;;  %v3383_v18 = vpop.f32.mrb[145].mxu0 }
 0x24d   : > { %v3384_v55 = vadd.f32 %v3383_v18, %v7953_v6  ;;  %v6104_v45 = vpop.f32.mrb[146].mxu0  ;;  %v8210_v38 = vpop.f32.mrb[156].mxu1  ;;  %v8679_v6 = vld [vmem:[#allocation42_spill] sm:$0xff] }
 0x24e   : > { %v8207_v1 = vadd.f32 %v3392_v62, %v7852_v31  ;;  %v3395_v25 = vadd.f32 %v6104_v45, %v7979_v3  ;;  %v3386_v36 = vpop.f32.mrb[147].mxu0  ;;  %v4688_v53 = vpop.f32.mrb[157].mxu1  ;;  %v8681_v3 = vld [vmem:[#allocation15_spill] sm:$0xff]  ;;  %v8682_v18 = vld [vmem:[#allocation18_spill] sm:$0xff] }
 0x24f   : > { %v8213_v16 = vadd.f32 %v3384_v55, %v8674_v10  ;;  %v3387_v4 = vadd.f32 %v3386_v36, %v8676_v5  ;;  %v8219_v29 = vpop.f32.mrb[158].mxu1  ;;  %v8683_v10 = vld [vmem:[#allocation46_spill] sm:$0xff]  ;;  %v8685_v36 = vld [vmem:[#allocation17_spill] sm:$0xff] }
 0x250   : > { %8673 = vst [vmem:[#allocation7_spill] sm:$0xff] %v8207_v1  ;;  %v8217_v32 = vadd.f32 %v3395_v25, %v8677_v37  ;;  %v4691_v31 = vpop.f32.mrb[159].mxu1  ;;  %v8686_v37 = vld [vmem:[#allocation6_spill] sm:$0xff]  ;;  %v8694_v1 = vld [vmem:[#allocation63_spill] sm:$0xff] }
 0x251   : > { %8675 = vst [vmem:[#allocation14_spill] sm:$0xff] %v8213_v16  ;;  %v8222_v28 = vadd.f32 %v3387_v4, %v8679_v6  ;;  %v8688_v4 = vld [vmem:[#allocation56_spill] sm:$0xff] }
 0x252   : > { %8678 = vst [vmem:[#allocation8_spill] sm:$0xff] %v8217_v32 }
 0x253   : > { %8680 = vst [vmem:[#allocation28_spill] sm:$0xff] %v8222_v28  ;;  %v6107_v50 = vpop.f32.mrb[148].mxu0  ;;  %v8689_v28 = vld [vmem:[#allocation21_spill] sm:$0xff] }
 0x254   : > { %v3408_v51 = vadd.f32 %v6107_v50, %v8681_v3  ;;  %v3399_v62 = vpop.f32.mrb[149].mxu0 }
 0x255   : > { %v3400_v45 = vadd.f32 %v3399_v62, %v8682_v18  ;;  %v6108_v55 = vpop.f32.mrb[150].mxu0  ;;  %v8230_v53 = vpop.f32.mrb[160].mxu1  ;;  %v8691_v62 = vld [vmem:[#allocation49_spill] sm:$0xff] }
 0x256   : > { %v8227_v16 = vadd.f32 %v3408_v51, %v8683_v10  ;;  %v3411_v5 = vadd.f32 %v6108_v55, %v8685_v36  ;;  %v3402_v25 = vpop.f32.mrb[151].mxu0  ;;  %v4696_v31 = vpop.f32.mrb[161].mxu1  ;;  %v8693_v55 = vld [vmem:[#allocation25_spill] sm:$0xff] }
 0x257   : > { %v8233_v32 = vadd.f32 %v3400_v45, %v8686_v37  ;;  %v3403_v6 = vadd.f32 %v3402_v25, %v8688_v4  ;;  %v8239_v3 = vpop.f32.mrb[162].mxu1  ;;  %v8695_v37 = vld [vmem:[#allocation50_spill] sm:$0xff]  ;;  %v8697_v25 = vld [vmem:[#allocation59_spill] sm:$0xff] }
 0x258   : > { %8684 = vst [vmem:[#allocation19_spill] sm:$0xff] %v8227_v16  ;;  %v8237_v50 = vadd.f32 %v3411_v5, %v8689_v28  ;;  %v4699_v51 = vpop.f32.mrb[163].mxu1  ;;  %v8698_v31 = vld [vmem:[#allocation10_spill] sm:$0xff] }
 0x259   : > { %8687 = vst [vmem:[#allocation29_spill] sm:$0xff] %v8233_v32  ;;  %v8242_v18 = vadd.f32 %v3403_v6, %v8691_v62  ;;  %v8700_v6 = vld [vmem:[#allocation61_spill] sm:$0xff] }
 0x25a   : > { %8690 = vst [vmem:[#allocation20_spill] sm:$0xff] %v8237_v50 }
 0x25b   : > { %8692 = vst [vmem:[#allocation36_spill] sm:$0xff] %v8242_v18  ;;  %v6111_v10 = vpop.f32.mrb[152].mxu0  ;;  %v8701_v18 = vld [vmem:[#allocation9_spill] sm:$0xff] }
 0x25c   : > { %v3424_v36 = vadd.f32 %v6111_v10, %v8693_v55  ;;  %v3415_v16 = vpop.f32.mrb[153].mxu0 }
 0x25d   : > { %v3416_v58 = vadd.f32 %v3415_v16, %v8694_v1  ;;  %v6112_v45 = vpop.f32.mrb[154].mxu0  ;;  %v8250_v5 = vpop.f32.mrb[164].mxu1  ;;  %v8703_v1 = vld [vmem:[#allocation12_spill] sm:$0xff] }
 0x25e   : > { %v8247_v32 = vadd.f32 %v3424_v36, %v8695_v37  ;;  %v3427_v4 = vadd.f32 %v6112_v45, %v8697_v25  ;;  %v3418_v28 = vpop.f32.mrb[155].mxu0  ;;  %v4704_v51 = vpop.f32.mrb[165].mxu1 }
 0x25f   : > { %v8253_v50 = vadd.f32 %v3416_v58, %v8698_v31  ;;  %v3419_v62 = vadd.f32 %v3418_v28, %v8700_v6  ;;  %v8259_v55 = vpop.f32.mrb[166].mxu1  ;;  %v8708_v51 = vld [vmem:[#allocation11_spill] sm:$0xff] }
 0x260   : > { %8696 = vst [vmem:[#allocation30_spill] sm:$0xff] %v8247_v32  ;;  %v8257_v10 = vadd.f32 %v3427_v4, %v8701_v18  ;;  %v4707_v36 = vpop.f32.mrb[167].mxu1  ;;  %v8705_v32 = vld [vmem:[#allocation27_spill] sm:$0xff] }
 0x261   : > { %8699 = vst [vmem:[#allocation37_spill] sm:$0xff] %v8253_v50  ;;  %v8262_v16 = vadd.f32 %v3419_v62, %v8703_v1  ;;  %v8706_v50 = vld [vmem:[#allocation22_spill] sm:$0xff]  ;;  %v8710_v1 = vld [vmem:[#allocation68_spill] sm:$0xff] }
 0x262   : > { %8702 = vst [vmem:[#allocation31_spill] sm:$0xff] %v8257_v10 }
 0x263   : > { %8704 = vst [vmem:[#allocation45_spill] sm:$0xff] %v8262_v16  ;;  %v6115_v45 = vpop.f32.mrb[156].mxu0  ;;  %v8711_v16 = vld [vmem:[#allocation16_spill] sm:$0xff] }
 0x264   : > { %v3440_v37 = vadd.f32 %v6115_v45, %v8057_v12  ;;  %v3431_v25 = vpop.f32.mrb[157].mxu0 }
 0x265   : > { %v3432_v58 = vadd.f32 %v3431_v25, %v8705_v32  ;;  %v6116_v31 = vpop.f32.mrb[158].mxu0  ;;  %v8270_v6 = vpop.f32.mrb[168].mxu1  ;;  %v8713_v32 = vld [vmem:[#allocation54_spill] sm:$0xff] }
 0x266   : > { %v8267_v28 = vadd.f32 %v3440_v37, %v8706_v50  ;;  %v3443_v18 = vadd.f32 %v6116_v31, %v8066_v20  ;;  %v3434_v4 = vpop.f32.mrb[159].mxu0  ;;  %v4712_v10 = vpop.f32.mrb[169].mxu1 }
 0x267   : > { %v8273_v62 = vadd.f32 %v3432_v58, %v8708_v51  ;;  %v3435_v36 = vadd.f32 %v3434_v4, %v8710_v1  ;;  %v8279_v45 = vpop.f32.mrb[170].mxu1  ;;  %v8715_v10 = vld [vmem:[#allocation64_spill] sm:$0xff] }
 0x268   : > { %8707 = vst [vmem:[#allocation40_spill] sm:$0xff] %v8267_v28  ;;  %v8277_v12 = vadd.f32 %v3443_v18, %v8711_v16  ;;  %v4715_v50 = vpop.f32.mrb[171].mxu1  ;;  %v8718_v28 = vld [vmem:[#allocation33_spill] sm:$0xff] }
 0x269   : > { %8709 = vst [vmem:[#allocation47_spill] sm:$0xff] %v8273_v62  ;;  %v8282_v25 = vadd.f32 %v3435_v36, %v8713_v32 }
 0x26a   : > { %8712 = vst [vmem:[#allocation41_spill] sm:$0xff] %v8277_v12 }
 0x26b   : > { %8714 = vst [vmem:[#allocation43_spill] sm:$0xff] %v8282_v25  ;;  %v6135_v20 = vpop.f32.mrb[160].mxu0 }
 0x26c   : > { %v4864_v37 = vadd.f32 %v6135_v20, %v8092_v27  ;;  %v4855_v31 = vpop.f32.mrb[161].mxu0  ;;  %v8716_v27 = vld [vmem:[#allocation24_spill] sm:$0xff]  ;;  %v8717_v20 = vld [vmem:[#allocation26_spill] sm:$0xff] }
 0x26d   : > { %v4856_v58 = vadd.f32 %v4855_v31, %v8076_v34  ;;  %v6136_v51 = vpop.f32.mrb[162].mxu0  ;;  %v8294_v1 = vpop.f32.mrb[172].mxu1 }
 0x26e   : > { %v5096_v16 = vadd.f32 %v4864_v37, %v8715_v10  ;;  %v4867_v18 = vadd.f32 %v6136_v51, %v8100_v49  ;;  %v4858_v4 = vpop.f32.mrb[163].mxu0  ;;  %v4720_v32 = vpop.f32.mrb[173].mxu1 }
 0x26f   : > { %v5094_v36 = vadd.f32 %v4856_v58, %v8716_v27  ;;  %v4859_v34 = vadd.f32 %v4858_v4, %v8083_v61  ;;  %v8299_v12 = vpop.f32.mrb[174].mxu1 }
 0x270   : > { %v5240_v50 = vmul.f32 0.0, %v5096_v16  ;;  %v5097_v31 = vadd.f32 %v4867_v18, %v8717_v20  ;;  %v4723_v37 = vpop.f32.mrb[175].mxu1 }
 0x271   : > { %5286 = vst [vmem:[%s8290_s14] sm:$0xff] %v5094_v36  ;;  %v5095_v25 = vadd.f32 %v4859_v34, %v8718_v28  ;;  %v5388_v49 = vmul.f32 %v5094_v36, %v5094_v36  ;;  %v8719_v34 = vld [vmem:[#allocation35_spill] sm:$0xff] }
 0x272   : > { %5288 = vst [vmem:[%s8290_s14 + $0x10] sm:$0xff] %v5240_v50  ;;  %5289 = vst [vmem:[%s8290_s14 + $0x18] sm:$0xff] %v5097_v31  ;;  %v5390_v16 = vmul.f32 %v5240_v50, %v5240_v50  ;;  %v5391_v28 = vmul.f32 %v5097_v31, %v5097_v31 }
 0x273   : > { %5287 = vst [vmem:[%s8290_s14 + $0x8] sm:$0xff] %v5095_v25  ;;  %v5334_v51 = vadd.f32 %v5095_v25, %v5094_v36  ;;  %v5389_v10 = vmul.f32 %v5095_v25, %v5095_v25  ;;  %v6139_v62 = vpop.f32.mrb[164].mxu0 }
 0x274   : > { %v4880_v58 = vadd.f32 %v6139_v62, %v8130_v22  ;;  %v4871_v61 = vpop.f32.mrb[165].mxu0 }
 0x275   : > { %v5335_v4 = vadd.f32 %v5334_v51, %v5240_v50  ;;  %v5436_v18 = vadd.f32 %v5389_v10, %v5388_v49  ;;  %v4872_v27 = vadd.f32 %v4871_v61, %v8110_v46  ;;  %v6140_v32 = vpop.f32.mrb[166].mxu0  ;;  %v8310_v25 = vpop.f32.mrb[176].mxu1 }
 0x276   : > { %v5100_v20 = vadd.f32 %v4880_v58, %v8719_v34  ;;  %v4883_v37 = vadd.f32 %v6140_v32, %v8139_v56  ;;  %v4874_v0 = vpop.f32.mrb[167].mxu0  ;;  %v4728_v49 = vpop.f32.mrb[177].mxu1 }
 0x277   : > { %v5437_v36 = vadd.f32 %v5436_v18, %v5390_v16  ;;  %v5098_v22 = vadd.f32 %v4872_v27, %v8078_v59  ;;  %v5336_v62 = vadd.f32 %v5335_v4, %v5097_v31  ;;  %v4875_v50 = vadd.f32 %v4874_v0, %v8119_v21  ;;  %v8316_v51 = vpop.f32.mrb[178].mxu1 }
 0x278   : > { %5292 = vst [vmem:[%s8290_s14 + $0x30] sm:$0xff] %v5100_v20  ;;  %v5101_v46 = vadd.f32 %v4883_v37, %v8081_v17  ;;  %v4731_v32 = vpop.f32.mrb[179].mxu1  ;;  %v5394_v34 = vmul.f32 %v5100_v20, %v5100_v20 }
 0x279   : > { %5290 = vst [vmem:[%s8290_s14 + $0x20] sm:$0xff] %v5098_v22  ;;  %v5337_v10 = vadd.f32 %v5336_v62, %v5098_v22  ;;  %v5392_v56 = vmul.f32 %v5098_v22, %v5098_v22  ;;  %v5438_v58 = vadd.f32 %v5437_v36, %v5391_v28  ;;  %v5099_v61 = vadd.f32 %v4875_v50, %v8085_v2 }
 0x27a   : > { %5293 = vst [vmem:[%s8290_s14 + $0x38] sm:$0xff] %v5101_v46  ;;  %v5395_v49 = vmul.f32 %v5101_v46, %v5101_v46 }
 0x27b   : > { %v5439_v16 = vadd.f32 %v5438_v58, %v5392_v56  ;;  %v5243_v59 = vmul.f32 0.0, %v5099_v61  ;;  %v6143_v31 = vpop.f32.mrb[168].mxu0 }
 0x27c   : > { %v4896_v21 = vadd.f32 %v6143_v31, %v8170_v40  ;;  %v4887_v0 = vpop.f32.mrb[169].mxu0 }
 0x27d   : > { %5291 = vst [vmem:[%s8290_s14 + $0x28] sm:$0xff] %v5243_v59  ;;  %v5338_v4 = vadd.f32 %v5337_v10, %v5243_v59  ;;  %v5393_v17 = vmul.f32 %v5243_v59, %v5243_v59  ;;  %v4888_v18 = vadd.f32 %v4887_v0, %v8150_v13  ;;  %v6144_v27 = vpop.f32.mrb[170].mxu0  ;;  %v8326_v36 = vpop.f32.mrb[180].mxu1 }
 0x27e   : > { %v5104_v28 = vadd.f32 %v4896_v21, %v8089_v47  ;;  %v4899_v2 = vadd.f32 %v6144_v27, %v8179_v8  ;;  %v4890_v37 = vpop.f32.mrb[171].mxu0  ;;  %v4736_v10 = vpop.f32.mrb[181].mxu1 }
 0x27f   : > { %v5339_v22 = vadd.f32 %v5338_v4, %v5100_v20  ;;  %v5440_v62 = vadd.f32 %v5439_v16, %v5393_v17  ;;  %v5102_v40 = vadd.f32 %v4888_v18, %v8094_v7  ;;  %v4891_v50 = vadd.f32 %v4890_v37, %v8159_v52  ;;  %v8332_v56 = vpop.f32.mrb[182].mxu1 }
 0x280   : > { %5296 = vst [vmem:[%s8290_s14 + $0x50] sm:$0xff] %v5104_v28  ;;  %v5105_v13 = vadd.f32 %v4899_v2, %v8098_v35  ;;  %v4739_v20 = vpop.f32.mrb[183].mxu1 }
 0x281   : > { %v5441_v47 = vadd.f32 %v5440_v62, %v5394_v34  ;;  %v5246_v8 = vmul.f32 0.0, %v5102_v40  ;;  %v5340_v58 = vadd.f32 %v5339_v22, %v5101_v46  ;;  %v5103_v61 = vadd.f32 %v4891_v50, %v8102_v15 }
 0x282   : > { %v5249_v32 = vmul.f32 0.0, %v5105_v13  ;;  %v5398_v15 = vmul.f32 %v5104_v28, %v5104_v28 }
 0x283   : > { %5294 = vst [vmem:[%s8290_s14 + $0x40] sm:$0xff] %v5246_v8  ;;  %v5341_v7 = vadd.f32 %v5340_v58, %v5246_v8  ;;  %v5396_v16 = vmul.f32 %v5246_v8, %v5246_v8  ;;  %v5442_v52 = vadd.f32 %v5441_v47, %v5395_v49  ;;  %5295 = vst [vmem:[%s8290_s14 + $0x48] sm:$0xff] %v5103_v61  ;;  %v6147_v59 = vpop.f32.mrb[172].mxu0 }
 0x284   : > { %5297 = vst [vmem:[%s8290_s14 + $0x58] sm:$0xff] %v5249_v32  ;;  %v4912_v31 = vadd.f32 %v6147_v59, %v8210_v38  ;;  %v4903_v21 = vpop.f32.mrb[173].mxu0  ;;  %v5397_v4 = vmul.f32 %v5103_v61, %v5103_v61  ;;  %v5399_v49 = vmul.f32 %v5249_v32, %v5249_v32 }
 0x285   : > { %v5443_v35 = vadd.f32 %v5442_v52, %v5396_v16  ;;  %v5342_v0 = vadd.f32 %v5341_v7, %v5103_v61  ;;  %v4904_v17 = vadd.f32 %v4903_v21, %v8190_v54  ;;  %v6148_v46 = vpop.f32.mrb[174].mxu0  ;;  %v8342_v2 = vpop.f32.mrb[184].mxu1 }
 0x286   : > { %v5108_v18 = vadd.f32 %v4912_v31, %v8107_v23  ;;  %v4915_v27 = vadd.f32 %v6148_v46, %v8219_v29  ;;  %v4906_v34 = vpop.f32.mrb[175].mxu0  ;;  %v4744_v54 = vpop.f32.mrb[185].mxu1 }
 0x287   : > { %v5343_v37 = vadd.f32 %v5342_v0, %v5104_v28  ;;  %v5444_v38 = vadd.f32 %v5443_v35, %v5397_v4  ;;  %v5106_v22 = vadd.f32 %v4904_v17, %v8113_v19  ;;  %v4907_v62 = vadd.f32 %v4906_v34, %v8199_v14  ;;  %v8347_v10 = vpop.f32.mrb[186].mxu1 }
 0x288   : > { %v5252_v40 = vmul.f32 0.0, %v5108_v18  ;;  %v5109_v50 = vadd.f32 %v4915_v27, %v8117_v42  ;;  %v4747_v47 = vpop.f32.mrb[187].mxu1 }
 0x289   : > { %v5445_v23 = vadd.f32 %v5444_v38, %v5398_v15  ;;  %5298 = vst [vmem:[%s8290_s14 + $0x60] sm:$0xff] %v5106_v22  ;;  %v5344_v29 = vadd.f32 %v5343_v37, %v5249_v32  ;;  %v5107_v13 = vadd.f32 %v4907_v62, %v8122_v26  ;;  %v5400_v19 = vmul.f32 %v5106_v22, %v5106_v22 }
 0x28a   : > { %5300 = vst [vmem:[%s8290_s14 + $0x70] sm:$0xff] %v5252_v40  ;;  %5301 = vst [vmem:[%s8290_s14 + $0x78] sm:$0xff] %v5109_v50  ;;  %v5402_v26 = vmul.f32 %v5252_v40, %v5252_v40  ;;  %v5403_v46 = vmul.f32 %v5109_v50, %v5109_v50 }
 0x28b   : > { %v5345_v28 = vadd.f32 %v5344_v29, %v5106_v22  ;;  %v5446_v8 = vadd.f32 %v5445_v23, %v5399_v49  ;;  %5299 = vst [vmem:[%s8290_s14 + $0x68] sm:$0xff] %v5107_v13  ;;  %v6151_v14 = vpop.f32.mrb[176].mxu0  ;;  %v5401_v7 = vmul.f32 %v5107_v13, %v5107_v13 }
 0x28c   : > { %v4928_v58 = vadd.f32 %v6151_v14, %v8250_v5  ;;  %v4919_v61 = vpop.f32.mrb[177].mxu0 }
 0x28d   : > { %v5447_v42 = vadd.f32 %v5446_v8, %v5400_v19  ;;  %v5346_v20 = vadd.f32 %v5345_v28, %v5107_v13  ;;  %v4920_v16 = vadd.f32 %v4919_v61, %v8230_v53  ;;  %v6152_v32 = vpop.f32.mrb[178].mxu0  ;;  %v8358_v21 = vpop.f32.mrb[188].mxu1 }
 0x28e   : > { %v5112_v52 = vadd.f32 %v4928_v58, %v8127_v30  ;;  %v4931_v59 = vadd.f32 %v6152_v32, %v8259_v55  ;;  %v4922_v31 = vpop.f32.mrb[179].mxu0  ;;  %v4752_v17 = vpop.f32.mrb[189].mxu1 }
 0x28f   : > { %v5347_v35 = vadd.f32 %v5346_v20, %v5252_v40  ;;  %v5448_v5 = vadd.f32 %v5447_v42, %v5401_v7  ;;  %v5110_v0 = vadd.f32 %v4920_v16, %v8133_v48  ;;  %v4923_v4 = vadd.f32 %v4922_v31, %v8239_v3  ;;  %v8364_v30 = vpop.f32.mrb[190].mxu1 }
 0x290   : > { %5304 = vst [vmem:[%s8290_s14 + $0x90] sm:$0xff] %v5112_v52  ;;  %v5113_v53 = vadd.f32 %v4931_v59, %v8137_v63  ;;  %v4755_v27 = vpop.f32.mrb[191].mxu1  ;;  %v5406_v23 = vmul.f32 %v5112_v52, %v5112_v52 }
 0x291   : > { %v5449_v15 = vadd.f32 %v5448_v5, %v5402_v26  ;;  %5302 = vst [vmem:[%s8290_s14 + $0x80] sm:$0xff] %v5110_v0  ;;  %v5348_v55 = vadd.f32 %v5347_v35, %v5109_v50  ;;  %v5111_v18 = vadd.f32 %v4923_v4, %v8142_v11  ;;  %v5404_v37 = vmul.f32 %v5110_v0, %v5110_v0  ;;  %v8720_v11 = vld [vmem:[#allocation32_spill] sm:$0xff] }
 0x292   : > { %5305 = vst [vmem:[%s8290_s14 + $0x98] sm:$0xff] %v5113_v53  ;;  %v5407_v58 = vmul.f32 %v5113_v53, %v5113_v53 }
 0x293   : > { %v5349_v34 = vadd.f32 %v5348_v55, %v5110_v0  ;;  %v5450_v48 = vadd.f32 %v5449_v15, %v5403_v46  ;;  %v5255_v38 = vmul.f32 0.0, %v5111_v18  ;;  %v6155_v3 = vpop.f32.mrb[180].mxu0 }
 0x294   : > { %v4944_v22 = vadd.f32 %v6155_v3, %v8294_v1  ;;  %v4935_v62 = vpop.f32.mrb[181].mxu0 }
 0x295   : > { %v5451_v63 = vadd.f32 %v5450_v48, %v5404_v37  ;;  %5303 = vst [vmem:[%s8290_s14 + $0x88] sm:$0xff] %v5255_v38  ;;  %v5350_v54 = vadd.f32 %v5349_v34, %v5255_v38  ;;  %v5405_v40 = vmul.f32 %v5255_v38, %v5255_v38  ;;  %v4936_v49 = vadd.f32 %v4935_v62, %v8270_v6  ;;  %v6156_v50 = vpop.f32.mrb[182].mxu0  ;;  %v8374_v28 = vpop.f32.mrb[192].mxu1 }
 0x296   : > { %v5116_v29 = vadd.f32 %v4944_v22, %v8720_v11  ;;  %v4947_v13 = vadd.f32 %v6156_v50, %v8299_v12  ;;  %v4938_v47 = vpop.f32.mrb[183].mxu0  ;;  %v4760_v61 = vpop.f32.mrb[193].mxu1 }
 0x297   : > { %v5351_v19 = vadd.f32 %v5350_v54, %v5112_v52  ;;  %v5452_v1 = vadd.f32 %v5451_v63, %v5405_v40  ;;  %v5114_v8 = vadd.f32 %v4936_v49, %v8153_v60  ;;  %v4939_v14 = vadd.f32 %v4938_v47, %v8279_v45  ;;  %v8380_v20 = vpop.f32.mrb[194].mxu1 }
 0x298   : > { %5308 = vst [vmem:[%s8290_s14 + $0xb0] sm:$0xff] %v5116_v29  ;;  %v5117_v6 = vadd.f32 %v4947_v13, %v8157_v41  ;;  %v4763_v32 = vpop.f32.mrb[195].mxu1 }
 0x299   : > { %v5453_v42 = vadd.f32 %v5452_v1, %v5406_v23  ;;  %v5258_v12 = vmul.f32 0.0, %v5114_v8  ;;  %v5352_v7 = vadd.f32 %v5351_v19, %v5113_v53  ;;  %v5115_v16 = vadd.f32 %v4939_v14, %v8162_v57 }
 0x29a   : > { %v5261_v26 = vmul.f32 0.0, %v5117_v6  ;;  %v5410_v57 = vmul.f32 %v5116_v29, %v5116_v29  ;;  %v8721_v6 = vld [vmem:[#allocation34_spill] sm:$0xff] }
 0x29b   : > { %5306 = vst [vmem:[%s8290_s14 + $0xa0] sm:$0xff] %v5258_v12  ;;  %v5353_v60 = vadd.f32 %v5352_v7, %v5258_v12  ;;  %v5408_v52 = vmul.f32 %v5258_v12, %v5258_v12  ;;  %v5454_v45 = vadd.f32 %v5453_v42, %v5407_v58  ;;  %5307 = vst [vmem:[%s8290_s14 + $0xa8] sm:$0xff] %v5115_v16  ;;  %v6159_v59 = vpop.f32.mrb[184].mxu0 }
 0x29c   : > { %5309 = vst [vmem:[%s8290_s14 + $0xb8] sm:$0xff] %v5261_v26  ;;  %v4960_v31 = vadd.f32 %v6159_v59, %v8326_v36  ;;  %v4951_v35 = vpop.f32.mrb[185].mxu0  ;;  %v5409_v0 = vmul.f32 %v5115_v16, %v5115_v16  ;;  %v5411_v38 = vmul.f32 %v5261_v26, %v5261_v26 }
 0x29d   : > { %v5455_v41 = vadd.f32 %v5454_v45, %v5408_v52  ;;  %v5354_v5 = vadd.f32 %v5353_v60, %v5115_v16  ;;  %v4952_v4 = vadd.f32 %v4951_v35, %v8310_v25  ;;  %v6160_v17 = vpop.f32.mrb[186].mxu0  ;;  %v4766_v55 = vpop.f32.mrb[196].mxu1 }
 0x29e   : > { %v5120_v53 = vadd.f32 %v4960_v31, %v8167_v43  ;;  %v4963_v46 = vadd.f32 %v6160_v17, %v8332_v56  ;;  %v4954_v15 = vpop.f32.mrb[187].mxu0  ;;  %v4768_v37 = vpop.f32.mrb[197].mxu1  ;;  %v8723_v17 = vld [vmem:[#allocation7_spill] sm:$0xff] }
 0x29f   : > { %v5355_v18 = vadd.f32 %v5354_v5, %v5116_v29  ;;  %v5456_v27 = vadd.f32 %v5455_v41, %v5409_v0  ;;  %v5118_v36 = vadd.f32 %v4952_v4, %v8173_v39  ;;  %v4955_v34 = vadd.f32 %v4954_v15, %v8316_v51  ;;  %v4769_v43 = vpop.f32.mrb[198].mxu1 }
 0x2a0   : > { %v5264_v25 = vmul.f32 0.0, %v5120_v53  ;;  %v5121_v48 = vadd.f32 %v4963_v46, %v8177_v9  ;;  %v4771_v62 = vpop.f32.mrb[199].mxu1 }
 0x2a1   : > { %v5457_v3 = vadd.f32 %v5456_v27, %v5410_v57  ;;  %5310 = vst [vmem:[%s8290_s14 + $0xc0] sm:$0xff] %v5118_v36  ;;  %v5356_v56 = vadd.f32 %v5355_v18, %v5261_v26  ;;  %v5119_v22 = vadd.f32 %v4955_v34, %v8182_v33  ;;  %v5412_v54 = vmul.f32 %v5118_v36, %v5118_v36 }
 0x2a2   : > { %5312 = vst [vmem:[%s8290_s14 + $0xd0] sm:$0xff] %v5264_v25  ;;  %5313 = vst [vmem:[%s8290_s14 + $0xd8] sm:$0xff] %v5121_v48  ;;  %v5414_v33 = vmul.f32 %v5264_v25, %v5264_v25  ;;  %v5415_v42 = vmul.f32 %v5121_v48, %v5121_v48 }
 0x2a3   : > { %v5357_v63 = vadd.f32 %v5356_v56, %v5118_v36  ;;  %v5458_v39 = vadd.f32 %v5457_v3, %v5411_v38  ;;  %5311 = vst [vmem:[%s8290_s14 + $0xc8] sm:$0xff] %v5119_v22  ;;  %v6163_v51 = vpop.f32.mrb[188].mxu0  ;;  %v5413_v23 = vmul.f32 %v5119_v22, %v5119_v22  ;;  %v8724_v36 = vld [vmem:[#allocation14_spill] sm:$0xff] }
 0x2a4   : > { %v4976_v40 = vadd.f32 %v6163_v51, %v8358_v21  ;;  %v4967_v49 = vpop.f32.mrb[189].mxu0 }
 0x2a5   : > { %v5459_v9 = vadd.f32 %v5458_v39, %v5412_v54  ;;  %v5358_v50 = vadd.f32 %v5357_v63, %v5119_v22  ;;  %v4968_v11 = vadd.f32 %v4967_v49, %v8342_v2  ;;  %v6164_v29 = vpop.f32.mrb[190].mxu0  ;;  %v4774_v1 = vpop.f32.mrb[200].mxu1  ;;  %v8726_v22 = vld [vmem:[#allocation28_spill] sm:$0xff] }
 0x2a6   : > { %v5124_v13 = vadd.f32 %v4976_v40, %v8187_v24  ;;  %v4979_v47 = vadd.f32 %v6164_v29, %v8364_v30  ;;  %v4970_v19 = vpop.f32.mrb[191].mxu0  ;;  %v4776_v61 = vpop.f32.mrb[201].mxu1  ;;  %v8722_v30 = vld [vmem:[#allocation13_spill] sm:$0xff] }
 0x2a7   : > { %v5359_v8 = vadd.f32 %v5358_v50, %v5264_v25  ;;  %v5460_v14 = vadd.f32 %v5459_v9, %v5413_v23  ;;  %v5122_v21 = vadd.f32 %v4968_v11, %v8193_v44  ;;  %v4971_v58 = vadd.f32 %v4970_v19, %v8347_v10  ;;  %v4777_v7 = vpop.f32.mrb[202].mxu1 }
 0x2a8   : > { %5316 = vst [vmem:[%s8290_s14 + $0xf0] sm:$0xff] %v5124_v13  ;;  %v5125_v2 = vadd.f32 %v4979_v47, %v8721_v6  ;;  %v4779_v32 = vpop.f32.mrb[203].mxu1  ;;  %v5418_v4 = vmul.f32 %v5124_v13, %v5124_v13  ;;  %v8727_v47 = vld [vmem:[#allocation19_spill] sm:$0xff]  ;;  %v8728_v6 = vld [vmem:[#allocation29_spill] sm:$0xff] }
 0x2a9   : > { %v5461_v12 = vadd.f32 %v5460_v14, %v5414_v33  ;;  %5314 = vst [vmem:[%s8290_s14 + $0xe0] sm:$0xff] %v5122_v21  ;;  %v5360_v24 = vadd.f32 %v5359_v8, %v5121_v48  ;;  %v5123_v16 = vadd.f32 %v4971_v58, %v8722_v30  ;;  %v5416_v60 = vmul.f32 %v5122_v21, %v5122_v21  ;;  %v8729_v30 = vld [vmem:[#allocation20_spill] sm:$0xff] }
 0x2aa   : > { %5317 = vst [vmem:[%s8290_s14 + $0xf8] sm:$0xff] %v5125_v2  ;;  %v5419_v37 = vmul.f32 %v5125_v2, %v5125_v2 }
 0x2ab   : > { %v5361_v26 = vadd.f32 %v5360_v24, %v5122_v21  ;;  %v5462_v52 = vadd.f32 %v5461_v12, %v5415_v42  ;;  %v5267_v44 = vmul.f32 0.0, %v5123_v16  ;;  %v6167_v45 = vpop.f32.mrb[192].mxu0 }
 0x2ac   : > { %v4992_v10 = vadd.f32 %v6167_v45, %v4766_v55  ;;  %v4983_v59 = vpop.f32.mrb[193].mxu0 }
 0x2ad   : > { %v5463_v31 = vadd.f32 %v5462_v52, %v5416_v60  ;;  %5315 = vst [vmem:[%s8290_s14 + $0xe8] sm:$0xff] %v5267_v44  ;;  %v5362_v35 = vadd.f32 %v5361_v26, %v5267_v44  ;;  %v5417_v41 = vmul.f32 %v5267_v44, %v5267_v44  ;;  %v4984_v5 = vadd.f32 %v4983_v59, %v8374_v28  ;;  %v6168_v0 = vpop.f32.mrb[194].mxu0  ;;  %v4782_v15 = vpop.f32.mrb[204].mxu1  ;;  %v8725_v28 = vld [vmem:[#allocation8_spill] sm:$0xff] }
 0x2ae   : > { %v5128_v57 = vadd.f32 %v4992_v10, %v8723_v17  ;;  %v4995_v53 = vadd.f32 %v6168_v0, %v4769_v43  ;;  %v4986_v46 = vpop.f32.mrb[195].mxu0  ;;  %v4784_v25 = vpop.f32.mrb[205].mxu1  ;;  %v8730_v52 = vld [vmem:[#allocation36_spill] sm:$0xff] }
 0x2af   : > { %v5363_v18 = vadd.f32 %v5362_v35, %v5124_v13  ;;  %v5464_v27 = vadd.f32 %v5463_v31, %v5417_v41  ;;  %v5126_v55 = vadd.f32 %v4984_v5, %v8724_v36  ;;  %v4987_v34 = vadd.f32 %v4986_v46, %v8380_v20  ;;  %v4785_v3 = vpop.f32.mrb[206].mxu1 }
 0x2b0   : > { %5320 = vst [vmem:[%s8290_s14 + $0x110] sm:$0xff] %v5128_v57  ;;  %v5129_v48 = vadd.f32 %v4995_v53, %v8725_v28  ;;  %v4787_v63 = vpop.f32.mrb[207].mxu1  ;;  %v5422_v13 = vmul.f32 %v5128_v57, %v5128_v57 }
 0x2b1   : > { %v5465_v38 = vadd.f32 %v5464_v27, %v5418_v4  ;;  %v5270_v56 = vmul.f32 0.0, %v5126_v55  ;;  %v5364_v43 = vadd.f32 %v5363_v18, %v5125_v2  ;;  %v5127_v62 = vadd.f32 %v4987_v34, %v8726_v22  ;;  %v8731_v27 = vld [vmem:[#allocation37_spill] sm:$0xff]  ;;  %v8733_v22 = vld [vmem:[#allocation30_spill] sm:$0xff] }
 0x2b2   : > { %v5273_v54 = vmul.f32 0.0, %v5129_v48 }
 0x2b3   : > { %5318 = vst [vmem:[%s8290_s14 + $0x100] sm:$0xff] %v5270_v56  ;;  %v5365_v39 = vadd.f32 %v5364_v43, %v5270_v56  ;;  %v5420_v51 = vmul.f32 %v5270_v56, %v5270_v56  ;;  %v5466_v40 = vadd.f32 %v5465_v38, %v5419_v37  ;;  %5319 = vst [vmem:[%s8290_s14 + $0x108] sm:$0xff] %v5127_v62  ;;  %v6171_v20 = vpop.f32.mrb[196].mxu0 }
 0x2b4   : > { %5321 = vst [vmem:[%s8290_s14 + $0x118] sm:$0xff] %v5273_v54  ;;  %v5008_v49 = vadd.f32 %v6171_v20, %v4782_v15  ;;  %v4999_v9 = vpop.f32.mrb[197].mxu0  ;;  %v5421_v11 = vmul.f32 %v5127_v62, %v5127_v62  ;;  %v5423_v16 = vmul.f32 %v5273_v54, %v5273_v54 }
 0x2b5   : > { %v5467_v50 = vadd.f32 %v5466_v40, %v5420_v51  ;;  %v5366_v23 = vadd.f32 %v5365_v39, %v5127_v62  ;;  %v5000_v29 = vadd.f32 %v4999_v9, %v4774_v1  ;;  %v6172_v33 = vpop.f32.mrb[198].mxu0  ;;  %v4790_v21 = vpop.f32.mrb[208].mxu1 }
 0x2b6   : > { %v5132_v19 = vadd.f32 %v5008_v49, %v8727_v47  ;;  %v5011_v8 = vadd.f32 %v6172_v33, %v4785_v3  ;;  %v5002_v14 = vpop.f32.mrb[199].mxu0  ;;  %v4792_v12 = vpop.f32.mrb[209].mxu1  ;;  %v8732_v3 = vld [vmem:[#allocation45_spill] sm:$0xff]  ;;  %v8734_v49 = vld [vmem:[#allocation31_spill] sm:$0xff] }
 0x2b7   : > { %v5367_v58 = vadd.f32 %v5366_v23, %v5128_v57  ;;  %v5468_v61 = vadd.f32 %v5467_v50, %v5421_v11  ;;  %v5130_v2 = vadd.f32 %v5000_v29, %v8728_v6  ;;  %v5003_v42 = vadd.f32 %v5002_v14, %v4777_v7  ;;  %v4793_v26 = vpop.f32.mrb[210].mxu1 }
 0x2b8   : > { %v5276_v24 = vmul.f32 0.0, %v5132_v19  ;;  %v5133_v1 = vadd.f32 %v5011_v8, %v8729_v30  ;;  %v4795_v45 = vpop.f32.mrb[211].mxu1 }
 0x2b9   : > { %v5469_v32 = vadd.f32 %v5468_v61, %v5422_v13  ;;  %5322 = vst [vmem:[%s8290_s14 + $0x120] sm:$0xff] %v5130_v2  ;;  %v5368_v60 = vadd.f32 %v5367_v58, %v5273_v54  ;;  %v5131_v44 = vadd.f32 %v5003_v42, %v8730_v52  ;;  %v5424_v59 = vmul.f32 %v5130_v2, %v5130_v2 }
 0x2ba   : > { %5324 = vst [vmem:[%s8290_s14 + $0x130] sm:$0xff] %v5276_v24  ;;  %5325 = vst [vmem:[%s8290_s14 + $0x138] sm:$0xff] %v5133_v1  ;;  %v5426_v57 = vmul.f32 %v5276_v24, %v5276_v24  ;;  %v5427_v25 = vmul.f32 %v5133_v1, %v5133_v1 }
 0x2bb   : > { %v5369_v10 = vadd.f32 %v5368_v60, %v5130_v2  ;;  %v5470_v31 = vadd.f32 %v5469_v32, %v5423_v16  ;;  %5323 = vst [vmem:[%s8290_s14 + $0x128] sm:$0xff] %v5131_v44  ;;  %v6175_v7 = vpop.f32.mrb[200].mxu0  ;;  %v5425_v0 = vmul.f32 %v5131_v44, %v5131_v44 }
 0x2bc   : > { %v5015_v35 = vpop.f32.mrb[201].mxu0 }
 0x2bd   : > { %v5471_v41 = vadd.f32 %v5470_v31, %v5424_v59  ;;  %v5370_v5 = vadd.f32 %v5369_v10, %v5131_v44  ;;  %v5016_v4 = vadd.f32 %v5015_v35, %v4790_v21  ;;  %v6176_v17 = vpop.f32.mrb[202].mxu0  ;;  %v4798_v46 = vpop.f32.mrb[212].mxu1 }
 0x2be   : > { %v5018_v53 = vpop.f32.mrb[203].mxu0  ;;  %v4800_v34 = vpop.f32.mrb[213].mxu1  ;;  %v5024_v37 = vadd.f32 %v6175_v7, %v4798_v46 }
 0x2bf   : > { %v5371_v15 = vadd.f32 %v5370_v5, %v5276_v24  ;;  %v5472_v18 = vadd.f32 %v5471_v41, %v5425_v0  ;;  %v5134_v36 = vadd.f32 %v5016_v4, %v8731_v27  ;;  %v5019_v55 = vadd.f32 %v5018_v53, %v4793_v26  ;;  %v4801_v48 = vpop.f32.mrb[214].mxu1  ;;  %v8735_v24 = vld [vmem:[#allocation47_spill] sm:$0xff]  ;;  %v8737_v5 = vld [vmem:[#allocation40_spill] sm:$0xff] }
 0x2c0   : > { %v4803_v43 = vpop.f32.mrb[215].mxu1  ;;  %v5136_v62 = vadd.f32 %v5024_v37, %v8733_v22  ;;  %v5027_v63 = vadd.f32 %v6176_v17, %v4801_v48  ;;  %v8736_v26 = vld [vmem:[#allocation43_spill] sm:$0xff] }
 0x2c1   : > { %v5473_v28 = vadd.f32 %v5472_v18, %v5426_v57  ;;  %5326 = vst [vmem:[%s8290_s14 + $0x140] sm:$0xff] %v5134_v36  ;;  %v5372_v38 = vadd.f32 %v5371_v15, %v5133_v1  ;;  %v5135_v56 = vadd.f32 %v5019_v55, %v8732_v3  ;;  %v5428_v39 = vmul.f32 %v5134_v36, %v5134_v36  ;;  %v8738_v15 = vld [vmem:[#allocation41_spill] sm:$0xff] }
 0x2c2   : > { %5328 = vst [vmem:[%s8290_s14 + $0x150] sm:$0xff] %v5136_v62  ;;  %v5137_v9 = vadd.f32 %v5027_v63, %v8734_v49  ;;  %v5430_v47 = vmul.f32 %v5136_v62, %v5136_v62 }
 0x2c3   : > { %v5373_v54 = vadd.f32 %v5372_v38, %v5134_v36  ;;  %v5474_v51 = vadd.f32 %v5473_v28, %v5427_v25  ;;  %v5279_v40 = vmul.f32 0.0, %v5135_v56  ;;  %v6179_v20 = vpop.f32.mrb[204].mxu0 }
 0x2c4   : > { %v5031_v50 = vpop.f32.mrb[205].mxu0  ;;  %5329 = vst [vmem:[%s8290_s14 + $0x158] sm:$0xff] %v5137_v9  ;;  %v5431_v61 = vmul.f32 %v5137_v9, %v5137_v9 }
 0x2c5   : > { %v5475_v23 = vadd.f32 %v5474_v51, %v5428_v39  ;;  %5327 = vst [vmem:[%s8290_s14 + $0x148] sm:$0xff] %v5279_v40  ;;  %v5374_v11 = vadd.f32 %v5373_v54, %v5279_v40  ;;  %v5429_v29 = vmul.f32 %v5279_v40, %v5279_v40  ;;  %v6180_v33 = vpop.f32.mrb[206].mxu0  ;;  %v4806_v19 = vpop.f32.mrb[216].mxu1 }
 0x2c6   : > { %v5034_v13 = vpop.f32.mrb[207].mxu0  ;;  %v4808_v21 = vpop.f32.mrb[217].mxu1  ;;  %v5032_v58 = vadd.f32 %v5031_v50, %v4806_v19 }
 0x2c7   : > { %v5375_v8 = vadd.f32 %v5374_v11, %v5136_v62  ;;  %v5476_v14 = vadd.f32 %v5475_v23, %v5429_v29  ;;  %v4809_v2 = vpop.f32.mrb[218].mxu1 }
 0x2c8   : > { %v4811_v12 = vpop.f32.mrb[219].mxu1  ;;  %v5138_v30 = vadd.f32 %v5032_v58, %v8735_v24  ;;  %v5035_v1 = vadd.f32 %v5034_v13, %v4809_v2 }
 0x2c9   : > { %v5477_v6 = vadd.f32 %v5476_v14, %v5430_v47  ;;  %v5376_v42 = vadd.f32 %v5375_v8, %v5137_v9 }
 0x2ca   : > { %v5282_v32 = vmul.f32 0.0, %v5138_v30  ;;  %v5139_v60 = vadd.f32 %v5035_v1, %v8736_v26 }
 0x2cb   : > { %v5478_v16 = vadd.f32 %v5477_v6, %v5431_v61 }
 0x2cc   : > { %5330 = vst [vmem:[%s8290_s14 + $0x160] sm:$0xff] %v5282_v32  ;;  %v5377_v52 = vadd.f32 %v5376_v42, %v5282_v32  ;;  %v5432_v44 = vmul.f32 %v5282_v32, %v5282_v32  ;;  %5331 = vst [vmem:[%s8290_s14 + $0x168] sm:$0xff] %v5139_v60  ;;  %v5433_v35 = vmul.f32 %v5139_v60, %v5139_v60 }
 0x2cd   : > { %v4814_v45 = vpop.f32.mrb[220].mxu1 }
 0x2ce   : > { %v5479_v10 = vadd.f32 %v5478_v16, %v5432_v44  ;;  %v5040_v59 = vadd.f32 %v6179_v20, %v4814_v45  ;;  %v4816_v31 = vpop.f32.mrb[221].mxu1  ;;  %v5378_v7 = vadd.f32 %v5377_v52, %v5139_v60 }
 0x2cf   : > { %v4817_v41 = vpop.f32.mrb[222].mxu1 }
 0x2d0   : > { %v5140_v0 = vadd.f32 %v5040_v59, %v8737_v5  ;;  %v5480_v4 = vadd.f32 %v5479_v10, %v5433_v35  ;;  %v5043_v17 = vadd.f32 %v6180_v33, %v4817_v41  ;;  %v4819_v57 = vpop.f32.mrb[223].mxu1 }
 0x2d2   : > { %5332 = vst [vmem:[%s8290_s14 + $0x170] sm:$0xff] %v5140_v0  ;;  %v5434_v53 = vmul.f32 %v5140_v0, %v5140_v0  ;;  %v5379_v46 = vadd.f32 %v5378_v7, %v5140_v0  ;;  %v5141_v18 = vadd.f32 %v5043_v17, %v8738_v15 }
 0x2d4   : > { %v5481_v27 = vadd.f32 %v5480_v4, %v5434_v53  ;;  %v5285_v36 = vmul.f32 0.0, %v5141_v18 }
 0x2d6   : > { %5333 = vst [vmem:[%s8290_s14 + $0x178] sm:$0xff] %v5285_v36  ;;  %v5380_v55 = vadd.f32 %v5379_v46, %v5285_v36  ;;  %v5435_v34 = vmul.f32 %v5285_v36, %v5285_v36 }
 0x2d8   : > { %v5381_v37 = vrot.slane %v5380_v55, 4  ;;  %v5482_v25 = vadd.f32 %v5481_v27, %v5435_v34 }
 0x2da   : > { %v5382_v28 = vadd.f32 %v5381_v37, %v5380_v55  ;;  %v5483_v48 = vrot.slane %v5482_v25, 4 }
 0x2dc   : > { %v5383_v38 = vrot.slane %v5382_v28, 2  ;;  %v5484_v3 = vadd.f32 %v5483_v48, %v5482_v25 }
 0x2de   : > { %v5384_v56 = vadd.f32 %v5383_v38, %v5382_v28  ;;  %v5485_v43 = vrot.slane %v5484_v3, 2 }
 0x2e0   : > { %v5385_v22 = vrot.slane %v5384_v56, 1  ;;  %v5486_v62 = vadd.f32 %v5485_v43, %v5484_v3 }
 0x2e2   : > { %v5386_v63 = vadd.f32 %v5385_v22, %v5384_v56  ;;  %v5487_v54 = vrot.slane %v5486_v62, 1 }
 0x2e4   : > { %5387 = vst [vmem:[%s265_s17] sm:$0x1] %v5386_v63  ;;  %v5488_v39 = vadd.f32 %v5487_v54, %v5486_v62 }
 0x2e6   : > { %5489 = vst [vmem:[%s268_s20] sm:$0x1] %v5488_v39 }
 0x2e7 PF: > { %s17_s21 = sadd.s32 1, %s6294_s21  }
 0x2e8   : > { %p14_p4 = scmp.ge.s32.totalorder %s17_s21, 4  }
 0x2ea   :  { %16 = sbr.rel (!%p14_p4) target bundleno = 1 (0x1), region = 92 }

</bundles_post_ra>
